<compile_context>
chip_gen: v7x
topology: tpu7x:2x2x1
jax: 0.10.0
libtpu: 0.0.40
codegen_flags: <defaults>
</compile_context>

<pallas_src>
import functools
import numpy as np
import jax
import jax.numpy as jnp
from jax.experimental import pallas as pl
from jax.experimental.pallas import tpu as pltpu

EPS = 1e-5


# ----------------------------- Pallas kernels -----------------------------

def _fc_fused_kernel(z_ref, w1_ref, b1_ref, g1_ref, be1_ref,
                     w2_ref, b2_ref, g2_ref, be2_ref, o_ref):
    """(M,K)@(K,1024)+b1 -> BN1d -> ReLU -> @(1024,tn)+b2 -> BN1d -> ReLU."""
    h = jnp.dot(z_ref[...].astype(jnp.bfloat16), w1_ref[...],
                preferred_element_type=jnp.float32) + b1_ref[...]
    m1 = jnp.mean(h, axis=0, keepdims=True)
    v1 = jnp.mean((h - m1) ** 2, axis=0, keepdims=True)       # biased var (train)
    h = jnp.maximum((h - m1) * jax.lax.rsqrt(v1 + EPS) * g1_ref[...] + be1_ref[...], 0.0)

    y = jnp.dot(h.astype(jnp.bfloat16), w2_ref[...],
                preferred_element_type=jnp.float32) + b2_ref[...]
    m2 = jnp.mean(y, axis=0, keepdims=True)
    v2 = jnp.mean((y - m2) ** 2, axis=0, keepdims=True)
    o_ref[...] = jnp.maximum(
        (y - m2) * jax.lax.rsqrt(v2 + EPS) * g2_ref[...] + be2_ref[...], 0.0)


def _deconv1_bn_relu_kernel(p_ref, w_ref, g_ref, be_ref, o_ref, *, oc):
    """im2col ConvTranspose (one matmul, 4 parity groups on lanes) + BN2d + ReLU.

    Conv bias is omitted: train-mode BN subtracts the per-channel mean, which
    cancels any per-channel constant exactly.  BN is applied as ONE affine
    sweep (acc*scale + shift); no full-tile (acc - mean) temporary is kept live.
    """
    acc = jnp.dot(p_ref[...], w_ref[...], preferred_element_type=jnp.float32)
    m = acc.shape[0]

    def ch_sum(v):                                             # (1, 4*oc) -> (1, oc)
        return v[:, 0:oc] + v[:, oc:2 * oc] + v[:, 2 * oc:3 * oc] + v[:, 3 * oc:4 * oc]

    n = 4.0 * m                                                # samples per channel
    mean = ch_sum(jnp.sum(acc, axis=0, keepdims=True)) / n     # (1, oc)
    ex2 = ch_sum(jnp.sum(acc * acc, axis=0, keepdims=True)) / n
    var = ex2 - mean * mean                                    # biased var (train)
    scale = g_ref[...] * jax.lax.rsqrt(var + EPS)              # (1, oc)
    shift = be_ref[...] - mean * scale
    scale4 = jnp.concatenate([scale] * 4, axis=1)              # (1, 4*oc)
    shift4 = jnp.concatenate([shift] * 4, axis=1)
    o_ref[...] = jnp.maximum(acc * scale4 + shift4, 0.0)


def _deconv2_tanh_kernel(p_ref, w_ref, b_ref, o_ref):
    """im2col ConvTranspose + bias + Tanh fused."""
    acc = jnp.dot(p_ref[...], w_ref[...], preferred_element_type=jnp.float32)
    o_ref[...] = jnp.tanh(acc + b_ref[...])


# ----------------------------- wrappers -----------------------------------

def fc_block(z, p, tn=1024):
    """Fused Linear+BN+ReLU (x2).  z:(M,K1); tiled over fc2's N only."""
    M, K1 = z.shape
    H1 = p["fc1_w"].shape[1]
    N2 = p["fc2_w"].shape[1]
    tn = min(tn, N2)
    assert N2 % tn == 0
    grid = (N2 // tn,)
    flops = grid[0] * 2 * M * K1 * H1 + 2 * M * H1 * N2 + 10 * M * (N2 + grid[0] * H1)
    bytes_accessed = (2 * (K1 * H1 * grid[0] + H1 * N2)                    # bf16 weights
                      + 4 * (M * K1 * grid[0] + M * N2 + 3 * (H1 * grid[0] + N2)))
    return pl.pallas_call(
        _fc_fused_kernel,
        out_shape=jax.ShapeDtypeStruct((M, N2), jnp.float32),
        grid=grid,
        in_specs=[
            pl.BlockSpec((M, K1), lambda j: (0, 0)),
            pl.BlockSpec((K1, H1), lambda j: (0, 0)),
            pl.BlockSpec((1, H1), lambda j: (0, 0)),
            pl.BlockSpec((1, H1), lambda j: (0, 0)),
            pl.BlockSpec((1, H1), lambda j: (0, 0)),
            pl.BlockSpec((H1, tn), lambda j: (0, j)),
            pl.BlockSpec((1, tn), lambda j: (0, j)),
            pl.BlockSpec((1, tn), lambda j: (0, j)),
            pl.BlockSpec((1, tn), lambda j: (0, j)),
        ],
        out_specs=pl.BlockSpec((M, tn), lambda j: (0, j)),
        compiler_params=pltpu.CompilerParams(dimension_semantics=("parallel",)),
        cost_estimate=pl.CostEstimate(flops=flops, transcendentals=0,
                                      bytes_accessed=bytes_accessed),
    )(z, p["fc1_w"], p["fc1_b"], p["bn1_g"], p["bn1_b"],
      p["fc2_w"], p["fc2_b"], p["bn2_g"], p["bn2_b"])


def _im2col_3x3(x):
    """3x3 zero-padded neighborhood of every pixel: (B,H,W,IC) -> (B*H*W, 9*IC)."""
    B, H, W, IC = x.shape
    xp = jnp.pad(x, ((0, 0), (1, 1), (1, 1), (0, 0)))
    shifts = [xp[:, 1 + dy:1 + dy + H, 1 + dx:1 + dx + W, :]
              for dy in (-1, 0, 1) for dx in (-1, 0, 1)]
    return jnp.stack(shifts, axis=3).reshape(B * H * W, 9 * IC)


def _deconv_weight_9(w):
    """PyTorch ConvTranspose2d weight (IC,OC,4,4) -> block-structured (9*IC, 4*OC).

    Row index: (3*dy_i + dx_i)*IC + ic over the 3x3 neighborhood (dy,dx in -1..1).
    Col index: (2*a + c)*OC + oc over the 4 output parity classes (a,c in 0..1).
    """
    IC, OC = w.shape[0], w.shape[1]
    taps = {0: {-1: 3, 0: 1}, 1: {0: 2, 1: 0}}              # parity -> {offset: k index}
    zero = jnp.zeros((IC, OC), w.dtype)
    mats = []
    for dy in (-1, 0, 1):
        for dx in (-1, 0, 1):
            for a in (0, 1):
                for c in (0, 1):
                    ky = taps[a].get(dy)
                    kx = taps[c].get(dx)
                    mats.append(zero if ky is None or kx is None else w[:, :, ky, kx])
    wb = jnp.stack(mats, axis=0).reshape(3, 3, 2, 2, IC, OC)
    return wb.transpose(0, 1, 4, 2, 3, 5).reshape(9 * IC, 4 * OC)


def deconv1_bn_relu(x, wb, gamma, beta):
    """ConvTranspose2d(4,2,1) + BN2d(train) + ReLU; NHWC in -> NHWC out.
    `wb` is the pre-packed (9*IC, 4*OC) bf16 weight from prepare_params."""
    B, H, W, IC = x.shape
    OC = wb.shape[1] // 4
    M, K, N = B * H * W, 9 * IC, 4 * OC
    patches = _im2col_3x3(x.astype(jnp.bfloat16))            # (M, 9*IC) bf16
    out = pl.pallas_call(
        functools.partial(_deconv1_bn_relu_kernel, oc=OC),
        out_shape=jax.ShapeDtypeStruct((M, N), jnp.float32),
        cost_estimate=pl.CostEstimate(flops=2 * M * K * N + 8 * M * N, transcendentals=0,
                                      bytes_accessed=2 * (M * K + K * N) + 4 * (M * N + 2 * N)),
    )(patches, wb, gamma, beta)
    # columns are (a,c,oc): interleave parities -> (B, 2H, 2W, OC)
    out = out.reshape(B, H, W, 2, 2, OC).transpose(0, 1, 3, 2, 4, 5)
    return out.reshape(B, 2 * H, 2 * W, OC)


def deconv2_tanh_nchw(x, wb, b4):
    """ConvTranspose2d(4,2,1) + Tanh; NHWC in -> NCHW out.
    `wb` is the pre-packed (9*IC, 4*OC) bf16 weight, `b4` the pre-tiled bias."""
    B, H, W, IC = x.shape
    OC = wb.shape[1] // 4
    M, K, N = B * H * W, 9 * IC, 4 * OC
    patches = _im2col_3x3(x.astype(jnp.bfloat16))            # (M, 9*IC) bf16
    out = pl.pallas_call(
        _deconv2_tanh_kernel,
        out_shape=jax.ShapeDtypeStruct((M, N), jnp.float32),
        cost_estimate=pl.CostEstimate(flops=2 * M * K * N + 2 * M * N,
                                      transcendentals=M * N,
                                      bytes_accessed=2 * (M * K + K * N) + 4 * (M * N + N)),
    )(patches, wb, b4)
    # columns are (a,c,oc), rows are (b,h,w) -> NCHW (B, OC, 2H, 2W)
    out = out.reshape(B, H, W, 2, 2, OC).transpose(0, 5, 1, 3, 2, 4)
    return out.reshape(B, OC, 2 * H, 2 * W)


def prepare_params(p):
    """One-time parameter repack (run ONCE, outside the jitted forward):
    bf16 matmul weights, pre-packed deconv weights, (1,N)-shaped BN/bias rows."""
    bf16, f32 = jnp.bfloat16, jnp.float32
    n1 = p["fc1_w"].shape[1]
    n2 = p["fc2_w"].shape[1]
    oc2 = p["dc2_w"].shape[1]
    return {
        "fc1_w": p["fc1_w"].astype(bf16),
        "fc1_b": p["fc1_b"].reshape(1, n1).astype(f32),
        "bn1_g": p["bn1_g"].reshape(1, n1).astype(f32),
        "bn1_b": p["bn1_b"].reshape(1, n1).astype(f32),
        "fc2_w": p["fc2_w"].astype(bf16),
        "fc2_b": p["fc2_b"].reshape(1, n2).astype(f32),
        "bn2_g": p["bn2_g"].reshape(1, n2).astype(f32),
        "bn2_b": p["bn2_b"].reshape(1, n2).astype(f32),
        # dc1 bias intentionally dropped: train-mode BN2d cancels it exactly.
        "dc1_wb": _deconv_weight_9(p["dc1_w"]).astype(bf16),
        "bn3_g": p["bn3_g"].reshape(1, -1).astype(f32),
        "bn3_b": p["bn3_b"].reshape(1, -1).astype(f32),
        "dc2_wb": _deconv_weight_9(p["dc2_w"]).astype(bf16),
        "dc2_b4": jnp.tile(p["dc2_b"], 4).reshape(1, 4 * oc2).astype(f32),
    }


def generator_forward(prepped, z, *, input_size):
    h = fc_block(z, prepped)
    B = z.shape[0]
    q = input_size // 4
    x = h.reshape(B, 128, q, q).transpose(0, 2, 3, 1)       # NCHW view -> NHWC
    x = deconv1_bn_relu(x, prepped["dc1_wb"], prepped["bn3_g"], prepped["bn3_b"])
    return deconv2_tanh_nchw(x, prepped["dc2_wb"], prepped["dc2_b4"])   # NCHW out


# ----------------------------- numpy reference -----------------------------

def _ref_conv_transpose(x, w, b):
    B, H, W_, IC = x.shape
    OC = w.shape[1]
    out = np.zeros((B, 2 * H, 2 * W_, OC), dtype=np.float64)
    for iy in range(H):
        for ix in range(W_):
            for ky in range(4):
                oy = 2 * iy - 1 + ky
                if not (0 <= oy < 2 * H):
                    continue
                for kx in range(4):
                    ox = 2 * ix - 1 + kx
                    if not (0 <= ox < 2 * W_):
                        continue
                    out[:, oy, ox, :] += x[:, iy, ix, :] @ w[:, :, ky, kx]
    return out + b


def _ref_generator(z, p, input_size):
    def bnr(x, g, b):
        m = x.mean(axis=0, keepdims=True)
        v = ((x - m) ** 2).mean(axis=0, keepdims=True)
        return np.maximum((x - m) / np.sqrt(v + EPS) * g + b, 0.0)

    h = z @ p["fc1_w"] + p["fc1_b"]
    h = bnr(h, p["bn1_g"], p["bn1_b"])
    h = h @ p["fc2_w"] + p["fc2_b"]
    h = bnr(h, p["bn2_g"], p["bn2_b"])
    B = z.shape[0]
    q = input_size // 4
    x = h.reshape(B, 128, q, q).transpose(0, 2, 3, 1)
    x = _ref_conv_transpose(x, p["dc1_w"], p["dc1_b"])
    Bx, OH, OW, C = x.shape
    x = bnr(x.reshape(-1, C), p["bn3_g"], p["bn3_b"]).reshape(Bx, OH, OW, C)
    x = np.tanh(_ref_conv_transpose(x, p["dc2_w"], p["dc2_b"]))
    return x.transpose(0, 3, 1, 2)


# ----------------------------- main ----------------------------------------

if __name__ == "__main__":
    # small, module-consistent shapes
    batch, input_dim, output_dim, input_size = 8, 32, 1, 16
    fc2_out = 128 * (input_size // 4) * (input_size // 4)   # 2048

    key = jax.random.PRNGKey(0)
    ks = jax.random.split(key, 16)
    s = 0.02
    f32 = jnp.float32
    params = {
        "fc1_w": jax.random.normal(ks[0], (input_dim, 1024), f32) * s,
        "fc1_b": 0.1 * jax.random.normal(ks[1], (1024,), f32),
        "bn1_g": 1.0 + s * jax.random.normal(ks[2], (1024,), f32),
        "bn1_b": 0.1 * jax.random.normal(ks[3], (1024,), f32),
        "fc2_w": jax.random.normal(ks[4], (1024, fc2_out), f32) * s,
        "fc2_b": 0.1 * jax.random.normal(ks[5], (fc2_out,), f32),
        "bn2_g": 1.0 + s * jax.random.normal(ks[6], (fc2_out,), f32),
        "bn2_b": 0.1 * jax.random.normal(ks[7], (fc2_out,), f32),
        "dc1_w": jax.random.normal(ks[8], (128, 64, 4, 4), f32) * s,
        "dc1_b": 0.1 * jax.random.normal(ks[9], (64,), f32),
        "bn3_g": 1.0 + s * jax.random.normal(ks[10], (64,), f32),
        "bn3_b": 0.1 * jax.random.normal(ks[11], (64,), f32),
        "dc2_w": jax.random.normal(ks[12], (64, output_dim, 4, 4), f32) * s,
        "dc2_b": 0.1 * jax.random.normal(ks[13], (output_dim,), f32),
    }
    z = jax.random.normal(ks[14], (batch, input_dim), f32)

    # one-time weight repack / bf16 cast (hoisted out of the jitted forward)
    prepped = jax.tree_util.tree_map(jax.block_until_ready, prepare_params(params))

    fwd = jax.jit(functools.partial(generator_forward, input_size=input_size))
    out = fwd(prepped, z)
    out = jax.block_until_ready(out)
    assert out.shape == (batch, output_dim, input_size, input_size)

    # verify against a float64 numpy reference of the exact PyTorch forward semantics
    np_params = {k: np.asarray(v, dtype=np.float64) for k, v in params.items()}
    ref = _ref_generator(np.asarray(z, dtype=np.float64), np_params, input_size)
    max_err = float(np.max(np.abs(np.asarray(out, dtype=np.float64) - ref)))
    assert max_err < 5e-2, f"mismatch vs reference, max_err={max_err}"

    print("KERNEL_OK")
</pallas_src>

<mosaic_0001>
module attributes {stable_mosaic.version = 11 : i64} {
  func.func @_fc_fused_kernel(%arg0: i32, %arg1: memref<8x32xf32, #tpu.memory_space<vmem>>, %arg2: memref<32x1024xbf16, #tpu.memory_space<vmem>>, %arg3: memref<1x1024xf32, #tpu.memory_space<vmem>>, %arg4: memref<1x1024xf32, #tpu.memory_space<vmem>>, %arg5: memref<1x1024xf32, #tpu.memory_space<vmem>>, %arg6: memref<1024x1024xbf16, #tpu.memory_space<vmem>>, %arg7: memref<1x1024xf32, #tpu.memory_space<vmem>>, %arg8: memref<1x1024xf32, #tpu.memory_space<vmem>>, %arg9: memref<1x1024xf32, #tpu.memory_space<vmem>>, %arg10: memref<8x1024xf32, #tpu.memory_space<vmem>>) attributes {dimension_semantics = [#tpu.dimension_semantics<parallel>], iteration_bounds = array<i64: 2>, scalar_prefetch = 0 : i64, scratch_operands = 0 : i64, tpu.core_type = #tpu.core_type<tc>, window_params = [{pipeline_mode = #tpu.pipeline_mode<synchronous>, transform_indices = @transform_0, window_bounds = array<i64: 8, 32>}, {pipeline_mode = #tpu.pipeline_mode<synchronous>, transform_indices = @transform_1, window_bounds = array<i64: 32, 1024>}, {pipeline_mode = #tpu.pipeline_mode<synchronous>, transform_indices = @transform_2, window_bounds = array<i64: 1, 1024>}, {pipeline_mode = #tpu.pipeline_mode<synchronous>, transform_indices = @transform_3, window_bounds = array<i64: 1, 1024>}, {pipeline_mode = #tpu.pipeline_mode<synchronous>, transform_indices = @transform_4, window_bounds = array<i64: 1, 1024>}, {transform_indices = @transform_5, window_bounds = array<i64: 1024, 1024>}, {transform_indices = @transform_6, window_bounds = array<i64: 1, 1024>}, {transform_indices = @transform_7, window_bounds = array<i64: 1, 1024>}, {transform_indices = @transform_8, window_bounds = array<i64: 1, 1024>}, {transform_indices = @transform_9, window_bounds = array<i64: 8, 1024>}]} {
    %c0 = arith.constant 0 : index
    %c0_0 = arith.constant 0 : index
    %0 = vector.load %arg1[%c0, %c0_0] : memref<8x32xf32, #tpu.memory_space<vmem>>, vector<8x32xf32>
    %1 = arith.truncf %0 : vector<8x32xf32> to vector<8x32xbf16>
    %c0_1 = arith.constant 0 : index
    %c0_2 = arith.constant 0 : index
    %2 = vector.load %arg2[%c0_1, %c0_2] : memref<32x1024xbf16, #tpu.memory_space<vmem>>, vector<32x1024xbf16>
    %cst = arith.constant dense<0.000000e+00> : vector<8x1024xf32>
    %3 = tpu.matmul %1, %2, %cst {dimension_numbers = #tpu.dot_dimension_numbers<[1], [0], [0], [1], [0, 0, 1, 1], [], []>} : vector<8x32xbf16>, vector<32x1024xbf16>, vector<8x1024xf32> -> vector<8x1024xf32>
    %c0_3 = arith.constant 0 : index
    %c0_4 = arith.constant 0 : index
    %4 = vector.load %arg3[%c0_3, %c0_4] : memref<1x1024xf32, #tpu.memory_space<vmem>>, vector<1x1024xf32>
    %5 = vector.broadcast %4 : vector<1x1024xf32> to vector<8x1024xf32>
    %6 = arith.addf %3, %5 : vector<8x1024xf32>
    %cst_5 = arith.constant dense<0.000000e+00> : vector<1024xf32>
    %7 = vector.multi_reduction <add>, %6, %cst_5 [0] : vector<8x1024xf32> to vector<1024xf32>
    %8 = vector.shape_cast %7 : vector<1024xf32> to vector<1x1024xf32>
    %cst_6 = arith.constant 8.000000e+00 : f32
    %9 = vector.broadcast %cst_6 : f32 to vector<1x1024xf32>
    %10 = arith.divf %8, %9 : vector<1x1024xf32>
    %11 = vector.broadcast %10 : vector<1x1024xf32> to vector<8x1024xf32>
    %12 = arith.subf %6, %11 : vector<8x1024xf32>
    %13 = arith.mulf %12, %12 : vector<8x1024xf32>
    %cst_7 = arith.constant dense<0.000000e+00> : vector<1024xf32>
    %14 = vector.multi_reduction <add>, %13, %cst_7 [0] : vector<8x1024xf32> to vector<1024xf32>
    %15 = vector.shape_cast %14 : vector<1024xf32> to vector<1x1024xf32>
    %cst_8 = arith.constant 8.000000e+00 : f32
    %16 = vector.broadcast %cst_8 : f32 to vector<1x1024xf32>
    %17 = arith.divf %15, %16 : vector<1x1024xf32>
    %18 = vector.broadcast %10 : vector<1x1024xf32> to vector<8x1024xf32>
    %19 = arith.subf %6, %18 : vector<8x1024xf32>
    %cst_9 = arith.constant 9.99999974E-6 : f32
    %20 = vector.broadcast %cst_9 : f32 to vector<1x1024xf32>
    %21 = arith.addf %17, %20 : vector<1x1024xf32>
    %22 = math.rsqrt %21 : vector<1x1024xf32>
    %23 = vector.broadcast %22 : vector<1x1024xf32> to vector<8x1024xf32>
    %24 = arith.mulf %19, %23 : vector<8x1024xf32>
    %c0_10 = arith.constant 0 : index
    %c0_11 = arith.constant 0 : index
    %25 = vector.load %arg4[%c0_10, %c0_11] : memref<1x1024xf32, #tpu.memory_space<vmem>>, vector<1x1024xf32>
    %26 = vector.broadcast %25 : vector<1x1024xf32> to vector<8x1024xf32>
    %27 = arith.mulf %24, %26 : vector<8x1024xf32>
    %c0_12 = arith.constant 0 : index
    %c0_13 = arith.constant 0 : index
    %28 = vector.load %arg5[%c0_12, %c0_13] : memref<1x1024xf32, #tpu.memory_space<vmem>>, vector<1x1024xf32>
    %29 = vector.broadcast %28 : vector<1x1024xf32> to vector<8x1024xf32>
    %30 = arith.addf %27, %29 : vector<8x1024xf32>
    %cst_14 = arith.constant 0.000000e+00 : f32
    %31 = vector.broadcast %cst_14 : f32 to vector<8x1024xf32>
    %32 = arith.maximumf %30, %31 : vector<8x1024xf32>
    %33 = arith.truncf %32 : vector<8x1024xf32> to vector<8x1024xbf16>
    %c0_15 = arith.constant 0 : index
    %c0_16 = arith.constant 0 : index
    %34 = vector.load %arg6[%c0_15, %c0_16] : memref<1024x1024xbf16, #tpu.memory_space<vmem>>, vector<1024x1024xbf16>
    %cst_17 = arith.constant dense<0.000000e+00> : vector<8x1024xf32>
    %35 = tpu.matmul %33, %34, %cst_17 {dimension_numbers = #tpu.dot_dimension_numbers<[1], [0], [0], [1], [0, 0, 1, 1], [], []>} : vector<8x1024xbf16>, vector<1024x1024xbf16>, vector<8x1024xf32> -> vector<8x1024xf32>
    %c0_18 = arith.constant 0 : index
    %c0_19 = arith.constant 0 : index
    %36 = vector.load %arg7[%c0_18, %c0_19] : memref<1x1024xf32, #tpu.memory_space<vmem>>, vector<1x1024xf32>
    %37 = vector.broadcast %36 : vector<1x1024xf32> to vector<8x1024xf32>
    %38 = arith.addf %35, %37 : vector<8x1024xf32>
    %cst_20 = arith.constant dense<0.000000e+00> : vector<1024xf32>
    %39 = vector.multi_reduction <add>, %38, %cst_20 [0] : vector<8x1024xf32> to vector<1024xf32>
    %40 = vector.shape_cast %39 : vector<1024xf32> to vector<1x1024xf32>
    %cst_21 = arith.constant 8.000000e+00 : f32
    %41 = vector.broadcast %cst_21 : f32 to vector<1x1024xf32>
    %42 = arith.divf %40, %41 : vector<1x1024xf32>
    %43 = vector.broadcast %42 : vector<1x1024xf32> to vector<8x1024xf32>
    %44 = arith.subf %38, %43 : vector<8x1024xf32>
    %45 = arith.mulf %44, %44 : vector<8x1024xf32>
    %cst_22 = arith.constant dense<0.000000e+00> : vector<1024xf32>
    %46 = vector.multi_reduction <add>, %45, %cst_22 [0] : vector<8x1024xf32> to vector<1024xf32>
    %47 = vector.shape_cast %46 : vector<1024xf32> to vector<1x1024xf32>
    %cst_23 = arith.constant 8.000000e+00 : f32
    %48 = vector.broadcast %cst_23 : f32 to vector<1x1024xf32>
    %49 = arith.divf %47, %48 : vector<1x1024xf32>
    %50 = vector.broadcast %42 : vector<1x1024xf32> to vector<8x1024xf32>
    %51 = arith.subf %38, %50 : vector<8x1024xf32>
    %cst_24 = arith.constant 9.99999974E-6 : f32
    %52 = vector.broadcast %cst_24 : f32 to vector<1x1024xf32>
    %53 = arith.addf %49, %52 : vector<1x1024xf32>
    %54 = math.rsqrt %53 : vector<1x1024xf32>
    %55 = vector.broadcast %54 : vector<1x1024xf32> to vector<8x1024xf32>
    %56 = arith.mulf %51, %55 : vector<8x1024xf32>
    %c0_25 = arith.constant 0 : index
    %c0_26 = arith.constant 0 : index
    %57 = vector.load %arg8[%c0_25, %c0_26] : memref<1x1024xf32, #tpu.memory_space<vmem>>, vector<1x1024xf32>
    %58 = vector.broadcast %57 : vector<1x1024xf32> to vector<8x1024xf32>
    %59 = arith.mulf %56, %58 : vector<8x1024xf32>
    %c0_27 = arith.constant 0 : index
    %c0_28 = arith.constant 0 : index
    %60 = vector.load %arg9[%c0_27, %c0_28] : memref<1x1024xf32, #tpu.memory_space<vmem>>, vector<1x1024xf32>
    %61 = vector.broadcast %60 : vector<1x1024xf32> to vector<8x1024xf32>
    %62 = arith.addf %59, %61 : vector<8x1024xf32>
    %cst_29 = arith.constant 0.000000e+00 : f32
    %63 = vector.broadcast %cst_29 : f32 to vector<8x1024xf32>
    %64 = arith.maximumf %62, %63 : vector<8x1024xf32>
    %c0_30 = arith.constant 0 : index
    %c0_31 = arith.constant 0 : index
    %65 = vector.load %arg10[%c0_30, %c0_31] : memref<8x1024xf32, #tpu.memory_space<vmem>>, vector<8x1024xf32>
    tpu.vector_store %arg10[%c0_30, %c0_31], %64 {strides = array<i32>} : memref<8x1024xf32, #tpu.memory_space<vmem>>, vector<8x1024xf32>,
    return
  }
  func.func @transform_0(%arg0: i32) -> (i32, i32) {
    %c0_i32 = arith.constant 0 : i32
    %c0_i32_0 = arith.constant 0 : i32
    %c0_i32_1 = arith.constant 0 : i32
    return %c0_i32, %c0_i32_0 : i32, i32
  }
  func.func @transform_1(%arg0: i32) -> (i32, i32) {
    %c0_i32 = arith.constant 0 : i32
    %c0_i32_0 = arith.constant 0 : i32
    %c0_i32_1 = arith.constant 0 : i32
    return %c0_i32, %c0_i32_0 : i32, i32
  }
  func.func @transform_2(%arg0: i32) -> (i32, i32) {
    %c0_i32 = arith.constant 0 : i32
    %c0_i32_0 = arith.constant 0 : i32
    %c0_i32_1 = arith.constant 0 : i32
    return %c0_i32, %c0_i32_0 : i32, i32
  }
  func.func @transform_3(%arg0: i32) -> (i32, i32) {
    %c0_i32 = arith.constant 0 : i32
    %c0_i32_0 = arith.constant 0 : i32
    %c0_i32_1 = arith.constant 0 : i32
    return %c0_i32, %c0_i32_0 : i32, i32
  }
  func.func @transform_4(%arg0: i32) -> (i32, i32) {
    %c0_i32 = arith.constant 0 : i32
    %c0_i32_0 = arith.constant 0 : i32
    %c0_i32_1 = arith.constant 0 : i32
    return %c0_i32, %c0_i32_0 : i32, i32
  }
  func.func @transform_5(%arg0: i32) -> (i32, i32) {
    %c0_i32 = arith.constant 0 : i32
    %c0_i32_0 = arith.constant 0 : i32
    return %c0_i32, %arg0 : i32, i32
  }
  func.func @transform_6(%arg0: i32) -> (i32, i32) {
    %c0_i32 = arith.constant 0 : i32
    %c0_i32_0 = arith.constant 0 : i32
    return %c0_i32, %arg0 : i32, i32
  }
  func.func @transform_7(%arg0: i32) -> (i32, i32) {
    %c0_i32 = arith.constant 0 : i32
    %c0_i32_0 = arith.constant 0 : i32
    return %c0_i32, %arg0 : i32, i32
  }
  func.func @transform_8(%arg0: i32) -> (i32, i32) {
    %c0_i32 = arith.constant 0 : i32
    %c0_i32_0 = arith.constant 0 : i32
    return %c0_i32, %arg0 : i32, i32
  }
  func.func @transform_9(%arg0: i32) -> (i32, i32) {
    %c0_i32 = arith.constant 0 : i32
    %c0_i32_0 = arith.constant 0 : i32
    return %c0_i32, %arg0 : i32, i32
  }
}

module attributes {stable_mosaic.version = 11 : i64} {
  func.func @_deconv1_bn_relu_kernel(%arg0: memref<128x1152xbf16, #tpu.memory_space<vmem>>, %arg1: memref<1152x256xbf16, #tpu.memory_space<vmem>>, %arg2: memref<1x64xf32, #tpu.memory_space<vmem>>, %arg3: memref<1x64xf32, #tpu.memory_space<vmem>>, %arg4: memref<128x256xf32, #tpu.memory_space<vmem>>) attributes {dimension_semantics = [], scalar_prefetch = 0 : i64, scratch_operands = 0 : i64, tpu.core_type = #tpu.core_type<tc>} {
    %c0 = arith.constant 0 : index
    %c0_0 = arith.constant 0 : index
    %0 = vector.load %arg0[%c0, %c0_0] : memref<128x1152xbf16, #tpu.memory_space<vmem>>, vector<128x1152xbf16>
    %c0_1 = arith.constant 0 : index
    %c0_2 = arith.constant 0 : index
    %1 = vector.load %arg1[%c0_1, %c0_2] : memref<1152x256xbf16, #tpu.memory_space<vmem>>, vector<1152x256xbf16>
    %cst = arith.constant dense<0.000000e+00> : vector<128x256xf32>
    %2 = tpu.matmul %0, %1, %cst {dimension_numbers = #tpu.dot_dimension_numbers<[1], [0], [0], [1], [0, 0, 1, 1], [], []>} : vector<128x1152xbf16>, vector<1152x256xbf16>, vector<128x256xf32> -> vector<128x256xf32>
    %cst_3 = arith.constant dense<0.000000e+00> : vector<256xf32>
    %3 = vector.multi_reduction <add>, %2, %cst_3 [0] : vector<128x256xf32> to vector<256xf32>
    %4 = vector.shape_cast %3 : vector<256xf32> to vector<1x256xf32>
    %5 = vector.extract_strided_slice %4 {offsets = [0, 0], sizes = [1, 64], strides = [1, 1]} : vector<1x256xf32> to vector<1x64xf32>
    %6 = vector.extract_strided_slice %4 {offsets = [0, 64], sizes = [1, 64], strides = [1, 1]} : vector<1x256xf32> to vector<1x64xf32>
    %7 = arith.addf %5, %6 : vector<1x64xf32>
    %8 = vector.extract_strided_slice %4 {offsets = [0, 128], sizes = [1, 64], strides = [1, 1]} : vector<1x256xf32> to vector<1x64xf32>
    %9 = arith.addf %7, %8 : vector<1x64xf32>
    %10 = vector.extract_strided_slice %4 {offsets = [0, 192], sizes = [1, 64], strides = [1, 1]} : vector<1x256xf32> to vector<1x64xf32>
    %11 = arith.addf %9, %10 : vector<1x64xf32>
    %cst_4 = arith.constant 5.120000e+02 : f32
    %12 = vector.broadcast %cst_4 : f32 to vector<1x64xf32>
    %13 = arith.divf %11, %12 : vector<1x64xf32>
    %14 = arith.mulf %2, %2 : vector<128x256xf32>
    %cst_5 = arith.constant dense<0.000000e+00> : vector<256xf32>
    %15 = vector.multi_reduction <add>, %14, %cst_5 [0] : vector<128x256xf32> to vector<256xf32>
    %16 = vector.shape_cast %15 : vector<256xf32> to vector<1x256xf32>
    %17 = vector.extract_strided_slice %16 {offsets = [0, 0], sizes = [1, 64], strides = [1, 1]} : vector<1x256xf32> to vector<1x64xf32>
    %18 = vector.extract_strided_slice %16 {offsets = [0, 64], sizes = [1, 64], strides = [1, 1]} : vector<1x256xf32> to vector<1x64xf32>
    %19 = arith.addf %17, %18 : vector<1x64xf32>
    %20 = vector.extract_strided_slice %16 {offsets = [0, 128], sizes = [1, 64], strides = [1, 1]} : vector<1x256xf32> to vector<1x64xf32>
    %21 = arith.addf %19, %20 : vector<1x64xf32>
    %22 = vector.extract_strided_slice %16 {offsets = [0, 192], sizes = [1, 64], strides = [1, 1]} : vector<1x256xf32> to vector<1x64xf32>
    %23 = arith.addf %21, %22 : vector<1x64xf32>
    %cst_6 = arith.constant 5.120000e+02 : f32
    %24 = vector.broadcast %cst_6 : f32 to vector<1x64xf32>
    %25 = arith.divf %23, %24 : vector<1x64xf32>
    %26 = arith.mulf %13, %13 : vector<1x64xf32>
    %27 = arith.subf %25, %26 : vector<1x64xf32>
    %c0_7 = arith.constant 0 : index
    %c0_8 = arith.constant 0 : index
    %28 = vector.load %arg2[%c0_7, %c0_8] : memref<1x64xf32, #tpu.memory_space<vmem>>, vector<1x64xf32>
    %cst_9 = arith.constant 9.99999974E-6 : f32
    %29 = vector.broadcast %cst_9 : f32 to vector<1x64xf32>
    %30 = arith.addf %27, %29 : vector<1x64xf32>
    %31 = math.rsqrt %30 : vector<1x64xf32>
    %32 = arith.mulf %28, %31 : vector<1x64xf32>
    %c0_10 = arith.constant 0 : index
    %c0_11 = arith.constant 0 : index
    %33 = vector.load %arg3[%c0_10, %c0_11] : memref<1x64xf32, #tpu.memory_space<vmem>>, vector<1x64xf32>
    %34 = arith.mulf %13, %32 : vector<1x64xf32>
    %35 = arith.subf %33, %34 : vector<1x64xf32>
    %36 = tpu.concatenate %32, %32, %32, %32 in 1 : vector<1x64xf32>, vector<1x64xf32>, vector<1x64xf32>, vector<1x64xf32> -> vector<1x256xf32>
    %37 = tpu.concatenate %35, %35, %35, %35 in 1 : vector<1x64xf32>, vector<1x64xf32>, vector<1x64xf32>, vector<1x64xf32> -> vector<1x256xf32>
    %38 = vector.broadcast %36 : vector<1x256xf32> to vector<128x256xf32>
    %39 = arith.mulf %2, %38 : vector<128x256xf32>
    %40 = vector.broadcast %37 : vector<1x256xf32> to vector<128x256xf32>
    %41 = arith.addf %39, %40 : vector<128x256xf32>
    %cst_12 = arith.constant 0.000000e+00 : f32
    %42 = vector.broadcast %cst_12 : f32 to vector<128x256xf32>
    %43 = arith.maximumf %41, %42 : vector<128x256xf32>
    %c0_13 = arith.constant 0 : index
    %c0_14 = arith.constant 0 : index
    %44 = vector.load %arg4[%c0_13, %c0_14] : memref<128x256xf32, #tpu.memory_space<vmem>>, vector<128x256xf32>
    tpu.vector_store %arg4[%c0_13, %c0_14], %43 {strides = array<i32>} : memref<128x256xf32, #tpu.memory_space<vmem>>, vector<128x256xf32>,
    return
  }
}

module attributes {stable_mosaic.version = 11 : i64} {
  func.func @_deconv2_tanh_kernel(%arg0: memref<512x576xbf16, #tpu.memory_space<vmem>>, %arg1: memref<576x4xbf16, #tpu.memory_space<vmem>>, %arg2: memref<1x4xf32, #tpu.memory_space<vmem>>, %arg3: memref<512x4xf32, #tpu.memory_space<vmem>>) attributes {dimension_semantics = [], scalar_prefetch = 0 : i64, scratch_operands = 0 : i64, tpu.core_type = #tpu.core_type<tc>} {
    %c0 = arith.constant 0 : index
    %c0_0 = arith.constant 0 : index
    %0 = vector.load %arg0[%c0, %c0_0] : memref<512x576xbf16, #tpu.memory_space<vmem>>, vector<512x576xbf16>
    %c0_1 = arith.constant 0 : index
    %c0_2 = arith.constant 0 : index
    %1 = vector.load %arg1[%c0_1, %c0_2] : memref<576x4xbf16, #tpu.memory_space<vmem>>, vector<576x4xbf16>
    %cst = arith.constant dense<0.000000e+00> : vector<512x4xf32>
    %2 = tpu.matmul %0, %1, %cst {dimension_numbers = #tpu.dot_dimension_numbers<[1], [0], [0], [1], [0, 0, 1, 1], [], []>} : vector<512x576xbf16>, vector<576x4xbf16>, vector<512x4xf32> -> vector<512x4xf32>
    %c0_3 = arith.constant 0 : index
    %c0_4 = arith.constant 0 : index
    %3 = vector.load %arg2[%c0_3, %c0_4] : memref<1x4xf32, #tpu.memory_space<vmem>>, vector<1x4xf32>
    %4 = vector.broadcast %3 : vector<1x4xf32> to vector<512x4xf32>
    %5 = arith.addf %2, %4 : vector<512x4xf32>
    %6 = math.tanh %5 : vector<512x4xf32>
    %c0_5 = arith.constant 0 : index
    %c0_6 = arith.constant 0 : index
    %7 = vector.load %arg3[%c0_5, %c0_6] : memref<512x4xf32, #tpu.memory_space<vmem>>, vector<512x4xf32>
    tpu.vector_store %arg3[%c0_5, %c0_6], %6 {strides = array<i32>} : memref<512x4xf32, #tpu.memory_space<vmem>>, vector<512x4xf32>,
    return
  }
}

</mosaic_0001>

<bundles_post_ra>
// kernel: generator_forward.3
= control target key start
LH: loop header
LB: loop body
LE: loop exit
PB: predicated region body
PF: predicated region fallthrough
CT: control target
= control target key end

     0   :  { %s7649_s0 = inlined_call_operand.hbm [shape: f32[8,32], index: 0, kind: input, shape index: {}]   ;;  %s7650_s1 = inlined_call_operand.hbm [shape: bf16[32,1024], index: 1, kind: input, shape index: {}]   ;;  %s7651_s2 = inlined_call_operand.hbm [shape: f32[1,1024], index: 2, kind: input, shape index: {}]   ;;  %s7652_s3 = inlined_call_operand.hbm [shape: f32[1,1024], index: 3, kind: input, shape index: {}]   ;;  %s7653_s4 = inlined_call_operand.hbm [shape: f32[1,1024], index: 4, kind: input, shape index: {}]   ;;  %s7654_s5 = inlined_call_operand.hbm [shape: bf16[1024,2048], index: 5, kind: input, shape index: {}]   ;;  %s7655_s6 = inlined_call_operand.hbm [shape: f32[1,2048], index: 6, kind: input, shape index: {}]   ;;  %s7656_s7 = inlined_call_operand.hbm [shape: f32[1,2048], index: 7, kind: input, shape index: {}]   ;;  %s7657_s8 = inlined_call_operand.hbm [shape: f32[1,2048], index: 8, kind: input, shape index: {}]   ;;  %s7658_s9 = inlined_call_operand.vmem [shape: f32[8,2048], index: 9, kind: output, shape index: {}]  }
   0x1   :  { %7677 = sst [smem:[#allocation24_spill]] %s7650_s1 }
   0x2   :  { %7678 = sst [smem:[#allocation25_spill]] %s7652_s3 }
   0x3   :  { %7679 = sst [smem:[#allocation26_spill]] %s7654_s5 }
   0x4   :  { %7680 = sst [smem:[#allocation27_spill]] %s7656_s7 }
   0x5   :  { %14 = vsyncpa [#allocation3], 0 }
   0x6   :  { %15 = vsyncpa [#allocation5], 0 }
   0x7   :  { %16 = vsyncpa [#allocation8], 0 }
   0x8   :  { %17 = vsyncpa [#allocation11], 0 }
   0x9   :  { %19 = vsyncpa [#allocation11 + $0x1], 0 }
   0xa   :  { %20 = vsyncpa [#allocation14], 0 }
   0xb   :  { %22 = vsyncpa [#allocation14 + $0x1], 0  ;;  %s6472_s30 = smov 0   ;;  %s6474_s10 = smov 0  }
   0xc   :  { %s6476_s11 = smov 0   ;;  %s6478_s12 = smov 0  }
   0xd LB: > { %7681 = sst [smem:[#allocation21_spill]] %s6403_s11  ;;  %s6491_s13 = sadd.s32 4294967295, %s6407_s12   ;;  %s6407_s12 = sphi %s6478_s12, %s7712_s12   ;;  %s6403_s11 = sphi %s6476_s11, %s7714_s11   ;;  %s6399_s10 = sphi %s6474_s10, %s7716_s10   ;;  %s6395_s30 = sphi %s6472_s30, %s7715_s30  }
   0xe   : > { %p153_p0 = scmp.ne.s32.totalorder %s6399_s10, %s6395_s30  ;;  %p7659_p1 = scmp.eq.s32.totalorder %s6491_s13, 0 }
   0xf   : > { %p5329_p2 = scmp.ge.s32.totalorder %s6407_s12, 1  ;;  %p268_p3 = scmp.lt.s32.totalorder %s6407_s12, 3 }
  0x10   : > { %p6499_p4 = por %p7659_p1, %p153_p0  ;;  %s6409_s16 = smov [#allocation4]  }
  0x11   : > { %p6503_p5 = pnand %p5329_p2, %p268_p3  ;;  %s291_s17 = sshll.u32 %s6409_s16, 4  ;;  %s292_s17 = int_to_ptr.vmem [resolvable:$true] %s291_s17 }
  0x12   : > { %s7682_s14 = scalar_select %p6499_p4, 1, 0 }
  0x13   : > { %s7683_s15 = scalar_select %p6503_p5, 1, 0 }
  0x14   : > { %p5982_p6 = pneg %p6503_p5  ;;  %s6410_s19 = smov [#allocation7]  }
  0x15   : > { %s316_s20 = sshll.u32 %s6410_s19, 4  ;;  %s7685_s1 = sld [smem:[#allocation24_spill]]  ;;  %s6515_s20 = int_to_ptr.vmem [resolvable:$true] %s316_s20 }
  0x16   : > { %p6511_p7 = pnand %p5982_p6, %p7659_p1 }
  0x18   : > { %s7684_s18 = scalar_select %p6511_p7, 1, 0 }
  0x19   : > { %p6525_p9 = pneg %p6511_p7 }
  0x1b   : > { %s6097_s23 = scalar_lea.hbm %s7685_s1, 2048 }
  0x1c   : > { %p6098_p8 = scmp.ne.s32.totalorder %s7685_s1, %s6097_s23  ;;  %p6104_p12 = scmp.lt.u32.totalorder %s6097_s23, %s7685_s1 }
  0x1d   : > { %s7686_s26 = scalar_select %p6525_p9, 1, 0 }
  0x1e   : > { %p6100_p10 = pnand %p6525_p9, %p6098_p8 }
  0x20   : > { %p6101_p11 = pneg %p6100_p10 }
  0x22   : > { %p6106_p13 = pnand %p6104_p12, %p6101_p11 }
  0x24   : > { %6109 = shalt.err (!%p6106_p13)
}
  0x25   : > { %s6110_s29 = scalar_lea.vmem %s292_s17, 2048  ;;  %p6118_p6 = scmp.lt.s32.totalorder %s292_s17, %s292_s17 }
  0x26   : > { %p6111_p0 = scmp.ne.s32.totalorder %s292_s17, %s6110_s29  ;;  %p6119_p1 = scmp.lt.s32.totalorder %s6110_s29, %s6110_s29 }
  0x28   : > { %p6113_p2 = pnand %p6111_p0, %p6525_p9  ;;  %p6120_p4 = por %p6119_p1, %p6118_p6 }
  0x2a   : > { %p6114_p3 = pneg %p6113_p2 }
  0x2c   : > { %p6121_p5 = pnand %p6120_p4, %p6114_p3 }
  0x2e   : > { %6124 = shalt.err (!%p6121_p5)
}
  0x2f   : > { %s7662_s30 = smov 512   ;;  %s7664_s16 = smov 32  }
  0x30   : > { %5988 = dma.hbm_to_vmem [thread:$0]  (!%p6511_p7), %s7685_s1, 2048, %s292_s17, [#allocation5], %s7662_s30, %s7662_s30, %s7664_s16  }
  0x31   : > { %s7687_s3 = sld [smem:[#allocation25_spill]] }
  0x37   : > { %s6125_s24 = scalar_lea.hbm %s7687_s3, 128 }
  0x38   : > { %p6126_p1 = scmp.ne.s32.totalorder %s7687_s3, %s6125_s24  ;;  %p6132_p8 = scmp.lt.u32.totalorder %s6125_s24, %s7687_s3 }
  0x3a   : > { %p6128_p4 = pnand %p6126_p1, %p6525_p9 }
  0x3c   : > { %p6129_p5 = pneg %p6128_p4 }
  0x3e   : > { %p6134_p10 = pnand %p6132_p8, %p6129_p5 }
  0x40   : > { %6137 = shalt.err (!%p6134_p10)
}
  0x41   : > { %s6138_s17 = scalar_lea.vmem %s6515_s20, 128  ;;  %p6146_p0 = scmp.lt.s32.totalorder %s6515_s20, %s6515_s20 }
  0x42   : > { %p6139_p11 = scmp.ne.s32.totalorder %s6515_s20, %s6138_s17  ;;  %p6147_p2 = scmp.lt.s32.totalorder %s6138_s17, %s6138_s17 }
  0x44   : > { %p6141_p12 = pnand %p6139_p11, %p6525_p9  ;;  %p6148_p3 = por %p6147_p2, %p6146_p0 }
  0x46   : > { %p6142_p13 = pneg %p6141_p12 }
  0x48   : > { %p6149_p6 = pnand %p6148_p3, %p6142_p13 }
  0x4a   : > { %6152 = shalt.err (!%p6149_p6)
}
  0x4b   : > { %5994 = dma.hbm_to_vmem [thread:$0]  (!%p6511_p7), %s7687_s3, 128, %s6515_s20, [#allocation8]  }
  0x4c   : > { %s6568_s22 = sadd.s32 1, %s6407_s12   ;;  %s140_s23 = sadd.s32 1, %s6403_s11 }
  0x4d   : > { %7688 = sst [smem:[#allocation22_spill]] %s6568_s22  ;;  %s137_s24 = ssub.s32 %s6407_s12, %s6568_s22 }
  0x4e   : > { %p147_p1 = scmp.ne.s32.totalorder %s6403_s11, %s6399_s10  ;;  %p138_p4 = scmp.eq.s32.totalorder %s137_s24, 0 }
  0x4f   : > { %p148_p5 = scmp.eq.s32.totalorder %s6407_s12, 0  ;;  %p6016_p8 = scmp.lt.s32.totalorder %s6407_s12, 2 }
  0x50   : > { %s7665_s25 = sand.u32 1, %s6407_s12   ;;  %s7663_s28 = sand.u32 1, %s6403_s11  }
  0x51   : > { %s6579_s27 = scalar_select %p138_p4, %s6403_s11, %s140_s23  }
  0x52   : > { %p149_p10 = por %p148_p5, %p147_p1  ;;  %s5894_s29 = sshll.u32 %s6407_s12, 9 }
  0x53   : > { %7689 = sst [smem:[#allocation23_spill]] %s6579_s27  ;;  %s5336_s17 = sshll.u32 %s7663_s28, 12 }
  0x54   : > { %s7690_s5 = sld [smem:[#allocation26_spill]]  ;;  %p6590_p11 = pnand %p6016_p8, %p149_p10 }
  0x55   : > { %s342_s23 = scalar_lea.vmem [#allocation10], %s5336_s17  ;;  %s6598_s28 = scalar_lea.sflag [#allocation11], %s7665_s25 }
  0x56   : > { %s7691_s24 = scalar_select %p6590_p11, 1, 0 }
  0x57   : > { %s349_s30 = sshll.u32 %s342_s23, 4  ;;  %p6604_p13 = pneg %p6590_p11  ;;  %s6594_s30 = int_to_ptr.vmem [resolvable:$true] %s349_s30 }
  0x5a   : > { %s6588_s21 = scalar_lea.hbm %s7690_s5, %s5894_s29  ;;  %s6158_s17 = scalar_lea.hbm %s7690_s5, 131072 }
  0x5b   : > { %s6153_s16 = scalar_lea.hbm %s6588_s21, 65536  ;;  %p6159_p3 = scmp.lt.u32.totalorder %s6588_s21, %s7690_s5 }
  0x5c   : > { %p6154_p12 = scmp.ne.s32.totalorder %s6588_s21, %s6153_s16  ;;  %p6160_p6 = scmp.lt.u32.totalorder %s6158_s17, %s6153_s16 }
  0x5d   : > { %s7692_s29 = scalar_select %p6604_p13, 1, 0 }
  0x5e   : > { %p6156_p0 = pnand %p6604_p13, %p6154_p12  ;;  %p6161_p1 = por %p6160_p6, %p6159_p3 }
  0x5f   : > { %p6162_p4 = scmp.lt.u32.totalorder %s6153_s16, %s6588_s21 }
  0x60   : > { %p6157_p2 = pneg %p6156_p0 }
  0x61   : > { %p6163_p5 = por %p6162_p4, %p6161_p1 }
  0x63   : > { %p6164_p8 = pnand %p6163_p5, %p6157_p2 }
  0x65   : > { %6167 = shalt.err (!%p6164_p8)
}
  0x66   : > { %s6168_s25 = scalar_lea.vmem %s6594_s30, 65536  ;;  %s6413_s19 = smov [#allocation10]  }
  0x67   : > { %p6169_p10 = scmp.ne.s32.totalorder %s6594_s30, %s6168_s25  ;;  %s6173_s20 = sshll.u32 %s6413_s19, 4  ;;  %s6174_s20 = int_to_ptr.vmem [resolvable:$false] %s6173_s20 }
  0x68   : > { %s6175_s1 = scalar_lea.vmem %s6174_s20, 131072  ;;  %p6176_p7 = scmp.lt.s32.totalorder %s6594_s30, %s6174_s20 }
  0x69   : > { %p6171_p12 = pnand %p6169_p10, %p6604_p13  ;;  %p6177_p9 = scmp.lt.s32.totalorder %s6175_s1, %s6168_s25 }
  0x6b   : > { %p6172_p0 = pneg %p6171_p12  ;;  %p6178_p3 = por %p6177_p9, %p6176_p7 }
  0x6d   : > { %p6179_p6 = pnand %p6178_p3, %p6172_p0 }
  0x6f   : > { %6182 = shalt.err (!%p6179_p6)
}
  0x70   : > { %s6414_s16 = smov 1024   ;;  %s7693_s17 = smov 32  }
  0x71   : > { %s7694_s23 = smov 512   ;;  %s7695_s19 = sand.u32 1, %s6403_s11  }
  0x72   : > { %6001 = dma.hbm_to_vmem [thread:$0]  (!%p6590_p11), %s6588_s21, 65536, %s6594_s30, %s6598_s28, %s6414_s16, %s7694_s23, %s7693_s17  }
  0x73   : > { %s6632_s3 = sshll.u32 %s7695_s19, 3  ;;  %s6635_s25 = sshll.u32 %s6407_s12, 7 }
  0x74   : > { %s7696_s7 = sld [smem:[#allocation27_spill]]  ;;  %s382_s27 = scalar_lea.vmem [#allocation13], %s6632_s3 }
  0x75   : > { %s390_s22 = sshll.u32 %s382_s27, 4  ;;  %s7697_s30 = sand.u32 1, %s6407_s12   ;;  %s391_s22 = int_to_ptr.vmem [resolvable:$true] %s390_s22 }
  0x76   : > { %s6646_s21 = scalar_lea.sflag [#allocation14], %s7697_s30 }
  0x7a   : > { %s6641_s5 = scalar_lea.hbm %s7696_s7, %s6635_s25  ;;  %s6188_s19 = scalar_lea.hbm %s7696_s7, 256 }
  0x7b   : > { %s6183_s16 = scalar_lea.hbm %s6641_s5, 128  ;;  %p6189_p1 = scmp.lt.u32.totalorder %s6641_s5, %s7696_s7 }
  0x7c   : > { %p6184_p7 = scmp.ne.s32.totalorder %s6641_s5, %s6183_s16  ;;  %p6190_p4 = scmp.lt.u32.totalorder %s6188_s19, %s6183_s16 }
  0x7d   : > { %p6192_p8 = scmp.lt.u32.totalorder %s6183_s16, %s6641_s5 }
  0x7e   : > { %p6186_p9 = pnand %p6184_p7, %p6604_p13  ;;  %p6191_p5 = por %p6190_p4, %p6189_p1 }
  0x80   : > { %p6187_p2 = pneg %p6186_p9  ;;  %p6193_p10 = por %p6192_p8, %p6191_p5 }
  0x82   : > { %p6194_p12 = pnand %p6193_p10, %p6187_p2 }
  0x84   : > { %6197 = shalt.err (!%p6194_p12)
}
  0x85   : > { %s6198_s12 = scalar_lea.vmem %s391_s22, 128  ;;  %s6415_s27 = smov [#allocation13]  }
  0x86   : > { %p6199_p0 = scmp.ne.s32.totalorder %s391_s22, %s6198_s12  ;;  %s6203_s30 = sshll.u32 %s6415_s27, 4  ;;  %s6204_s30 = int_to_ptr.vmem [resolvable:$false] %s6203_s30 }
  0x87   : > { %s6205_s17 = scalar_lea.vmem %s6204_s30, 256  ;;  %p6206_p7 = scmp.lt.s32.totalorder %s391_s22, %s6204_s30 }
  0x88   : > { %p6201_p3 = pnand %p6199_p0, %p6604_p13  ;;  %p6207_p9 = scmp.lt.s32.totalorder %s6205_s17, %s6198_s12 }
  0x8a   : > { %p6202_p6 = pneg %p6201_p3  ;;  %p6208_p11 = por %p6207_p9, %p6206_p7 }
  0x8c   : > { %p6209_p1 = pnand %p6208_p11, %p6202_p6 }
  0x8e   : > { %6212 = shalt.err (!%p6209_p1)
}
  0x8f   : > { %p7698_p4 = scmp.ne.s32.totalorder %s7691_s24, 0  ;;  %s6416_s16 = smov [#allocation2]  }
  0x90   : > { %s281_s23 = sshll.u32 %s6416_s16, 4  ;;  %s6417_s19 = smov [#allocation6]   ;;  %s282_s23 = int_to_ptr.vmem [resolvable:$true] %s281_s23 }
  0x91   : > { %6007 = dma.hbm_to_vmem [thread:$0]  (!%p7698_p4), %s6641_s5, 128, %s391_s22, %s6646_s21  }
  0x92   : > { %s305_s20 = sshll.u32 %s6417_s19, 4  ;;  %s6213_s7 = scalar_lea.hbm %s7649_s0, 128  ;;  %s306_s20 = int_to_ptr.vmem [resolvable:$true] %s305_s20 }
  0x93   : > { %p6214_p11 = scmp.ne.s32.totalorder %s7649_s0, %s6213_s7  ;;  %p7699_p2 = scmp.ne.s32.totalorder %s7686_s26, 0 }
  0x94   : > { %p6220_p10 = scmp.lt.u32.totalorder %s6213_s7, %s7649_s0 }
  0x95   : > { %p6216_p5 = pnand %p6214_p11, %p7699_p2 }
  0x97   : > { %p6217_p8 = pneg %p6216_p5 }
  0x99   : > { %p6222_p12 = pnand %p6220_p10, %p6217_p8 }
  0x9b   : > { %6225 = shalt.err (!%p6222_p12)
}
  0x9c   : > { %s6226_s5 = scalar_lea.vmem %s282_s23, 128  ;;  %p6234_p7 = scmp.lt.s32.totalorder %s282_s23, %s282_s23 }
  0x9d   : > { %p6227_p0 = scmp.ne.s32.totalorder %s282_s23, %s6226_s5  ;;  %p6235_p9 = scmp.lt.s32.totalorder %s6226_s5, %s6226_s5 }
  0x9f   : > { %p6229_p3 = pnand %p6227_p0, %p7699_p2  ;;  %p6236_p1 = por %p6235_p9, %p6234_p7 }
  0xa1   : > { %p6230_p6 = pneg %p6229_p3 }
  0xa3   : > { %p6237_p4 = pnand %p6236_p1, %p6230_p6 }
  0xa5   : > { %6240 = shalt.err (!%p6237_p4)
}
  0xa6   : > { %p7700_p11 = scmp.ne.s32.totalorder %s7684_s18, 0  ;;  %s6241_s19 = scalar_lea.hbm %s7651_s2, 128 }
  0xa7   : > { %p6242_p5 = scmp.ne.s32.totalorder %s7651_s2, %s6241_s19  ;;  %p6248_p4 = scmp.lt.u32.totalorder %s6241_s19, %s7651_s2 }
  0xa8   : > { %5985 = dma.hbm_to_vmem [thread:$0]  (!%p7700_p11), %s7649_s0, 128, %s282_s23, [#allocation3]  }
  0xa9   : > { %p6244_p8 = pnand %p6242_p5, %p7699_p2 }
  0xab   : > { %p6245_p10 = pneg %p6244_p8 }
  0xad   : > { %p6250_p12 = pnand %p6248_p4, %p6245_p10 }
  0xaf   : > { %6253 = shalt.err (!%p6250_p12)
}
  0xb0   : > { %s6254_s17 = scalar_lea.vmem %s306_s20, 128  ;;  %p6262_p7 = scmp.lt.s32.totalorder %s306_s20, %s306_s20 }
  0xb1   : > { %p6255_p0 = scmp.ne.s32.totalorder %s306_s20, %s6254_s17  ;;  %p6263_p9 = scmp.lt.s32.totalorder %s6254_s17, %s6254_s17 }
  0xb3   : > { %p6257_p3 = pnand %p6255_p0, %p7699_p2  ;;  %p6264_p1 = por %p6263_p9, %p6262_p7 }
  0xb5   : > { %p6258_p6 = pneg %p6257_p3 }
  0xb7   : > { %p6265_p13 = pnand %p6264_p1, %p6258_p6 }
  0xb9   : > { %6268 = shalt.err (!%p6265_p13)
}
  0xba   : > { %5991 = dma.hbm_to_vmem [thread:$0]  (!%p7700_p11), %s7651_s2, 128, %s306_s20, [#allocation5]  }
  0xbb   : > { %s6418_s22 = smov [#allocation9]   ;;  %s6706_s19 = scalar_lea.hbm %s7655_s6, %s6635_s25 }
  0xbc   : > { %s327_s16 = sshll.u32 %s6418_s22, 4  ;;  %s6269_s30 = scalar_lea.hbm %s7653_s4, 128  ;;  %s328_s16 = int_to_ptr.vmem [resolvable:$true] %s327_s16 }
  0xbd   : > { %p6270_p13 = scmp.ne.s32.totalorder %s7653_s4, %s6269_s30  ;;  %p6276_p10 = scmp.lt.u32.totalorder %s6269_s30, %s7653_s4 }
  0xbf   : > { %p6272_p5 = pnand %p6270_p13, %p7699_p2 }
  0xc1   : > { %p6273_p8 = pneg %p6272_p5 }
  0xc3   : > { %p6278_p4 = pnand %p6276_p10, %p6273_p8 }
  0xc5   : > { %6281 = shalt.err (!%p6278_p4)
}
  0xc6   : > { %s6282_s5 = scalar_lea.vmem %s328_s16, 128  ;;  %p6290_p6 = scmp.lt.s32.totalorder %s328_s16, %s328_s16 }
  0xc7   : > { %p6283_p12 = scmp.ne.s32.totalorder %s328_s16, %s6282_s5  ;;  %p6291_p7 = scmp.lt.s32.totalorder %s6282_s5, %s6282_s5 }
  0xc9   : > { %p6285_p0 = pnand %p6283_p12, %p7699_p2  ;;  %p6292_p9 = por %p6291_p7, %p6290_p6 }
  0xcb   : > { %p6286_p3 = pneg %p6285_p0 }
  0xcd   : > { %p6293_p1 = pnand %p6292_p9, %p6286_p3 }
  0xcf   : > { %6296 = shalt.err (!%p6293_p1)
}
  0xd0   : > { %5997 = dma.hbm_to_vmem [thread:$0]  (!%p7700_p11), %s7653_s4, 128, %s328_s16, [#allocation8]  }
  0xd1   : > { %s363_s26 = scalar_lea.vmem [#allocation12], %s6632_s3  ;;  %s6731_s30 = scalar_lea.hbm %s7657_s8, %s6635_s25 }
  0xd2   : > { %s371_s11 = sshll.u32 %s363_s26, 4  ;;  %s6297_s18 = scalar_lea.hbm %s6706_s19, 128  ;;  %s372_s11 = int_to_ptr.vmem [resolvable:$true] %s371_s11 }
  0xd3   : > { %p6298_p2 = scmp.ne.s32.totalorder %s6706_s19, %s6297_s18  ;;  %p7701_p13 = scmp.ne.s32.totalorder %s7692_s29, 0 }
  0xd4   : > { %s6302_s20 = scalar_lea.hbm %s7655_s6, 256  ;;  %p6303_p11 = scmp.lt.u32.totalorder %s6706_s19, %s7655_s6 }
  0xd5   : > { %p6300_p5 = pnand %p6298_p2, %p7701_p13  ;;  %p6304_p10 = scmp.lt.u32.totalorder %s6302_s20, %s6297_s18 }
  0xd6   : > { %p6306_p12 = scmp.lt.u32.totalorder %s6297_s18, %s6706_s19 }
  0xd7   : > { %p6301_p8 = pneg %p6300_p5  ;;  %p6305_p4 = por %p6304_p10, %p6303_p11 }
  0xd9   : > { %p6307_p0 = por %p6306_p12, %p6305_p4 }
  0xdb   : > { %p6308_p3 = pnand %p6307_p0, %p6301_p8 }
  0xdd   : > { %6311 = shalt.err (!%p6308_p3)
}
  0xde   : > { %s6312_s25 = scalar_lea.vmem %s372_s11, 128  ;;  %s6419_s16 = smov [#allocation12]  }
  0xdf   : > { %p6313_p6 = scmp.ne.s32.totalorder %s372_s11, %s6312_s25  ;;  %s6317_s22 = sshll.u32 %s6419_s16, 4  ;;  %s6318_s22 = int_to_ptr.vmem [resolvable:$false] %s6317_s22 }
  0xe0   : > { %s6319_s7 = scalar_lea.vmem %s6318_s22, 256  ;;  %p6320_p1 = scmp.lt.s32.totalorder %s372_s11, %s6318_s22 }
  0xe1   : > { %p6315_p7 = pnand %p6313_p6, %p7701_p13  ;;  %p6321_p2 = scmp.lt.s32.totalorder %s6319_s7, %s6312_s25 }
  0xe3   : > { %p6316_p9 = pneg %p6315_p7  ;;  %p6322_p5 = por %p6321_p2, %p6320_p1 }
  0xe5   : > { %p6323_p10 = pnand %p6322_p5, %p6316_p9 }
  0xe7   : > { %6326 = shalt.err (!%p6323_p10)
}
  0xe8   : > { %p7702_p11 = scmp.ne.s32.totalorder %s7691_s24, 0  ;;  %s401_s26 = scalar_lea.vmem [#allocation15], %s6632_s3 }
  0xe9   : > { %s409_s1 = sshll.u32 %s401_s26, 4  ;;  %s6327_s27 = scalar_lea.hbm %s6731_s30, 128  ;;  %s410_s1 = int_to_ptr.vmem [resolvable:$true] %s409_s1 }
  0xea   : > { %6004 = dma.hbm_to_vmem [thread:$0]  (!%p7702_p11), %s6706_s19, 128, %s372_s11, %s6598_s28  }
  0xeb   : > { %p6328_p8 = scmp.ne.s32.totalorder %s6731_s30, %s6327_s27  ;;  %s6332_s17 = scalar_lea.hbm %s7657_s8, 256 }
  0xec   : > { %p6333_p0 = scmp.lt.u32.totalorder %s6731_s30, %s7657_s8  ;;  %p6334_p3 = scmp.lt.u32.totalorder %s6332_s17, %s6327_s27 }
  0xed   : > { %p6330_p4 = pnand %p6328_p8, %p7701_p13  ;;  %p6336_p7 = scmp.lt.u32.totalorder %s6327_s27, %s6731_s30 }
  0xee   : > { %p6335_p6 = por %p6334_p3, %p6333_p0 }
  0xef   : > { %p6331_p12 = pneg %p6330_p4 }
  0xf0   : > { %p6337_p9 = por %p6336_p7, %p6335_p6 }
  0xf2   : > { %p6338_p1 = pnand %p6337_p9, %p6331_p12 }
  0xf4   : > { %6341 = shalt.err (!%p6338_p1)
}
  0xf5   : > { %s6342_s3 = scalar_lea.vmem %s410_s1, 128  ;;  %s6420_s28 = smov [#allocation15]  }
  0xf6   : > { %p6343_p2 = scmp.ne.s32.totalorder %s410_s1, %s6342_s3  ;;  %s6347_s19 = sshll.u32 %s6420_s28, 4  ;;  %s6348_s19 = int_to_ptr.vmem [resolvable:$false] %s6347_s19 }
  0xf7   : > { %s6349_s11 = scalar_lea.vmem %s6348_s19, 256  ;;  %p6350_p8 = scmp.lt.s32.totalorder %s410_s1, %s6348_s19 }
  0xf8   : > { %p6345_p5 = pnand %p6343_p2, %p7701_p13  ;;  %p6351_p4 = scmp.lt.s32.totalorder %s6349_s11, %s6342_s3 }
  0xfa   : > { %p6346_p10 = pneg %p6345_p5  ;;  %p6352_p11 = por %p6351_p4, %p6350_p8 }
  0xfc   : > { %p6353_p0 = pnand %p6352_p11, %p6346_p10 }
  0xfe   : > { %6356 = shalt.err (!%p6353_p0)
}
  0xff   : > { %p7703_p3 = scmp.ne.s32.totalorder %s7691_s24, 0  ;;  %p7704_p12 = scmp.ne.s32.totalorder %s7683_s15, 0 }
 0x100   : > { %p7705_p13 = scmp.eq.s32.totalorder (!%p7704_p12), %s6491_s13, 0 }
 0x101   : > { %6010 = dma.hbm_to_vmem [thread:$0]  (!%p7703_p3), %s6731_s30, 128, %s410_s1, %s6646_s21  }
 0x102   : > { %418 = sbr.rel (%p7704_p12) target bundleno = 1283 (0x503), region = 56 }
 0x109   : > { %6374 = dma.done.wait (%p7705_p13), [#allocation3], 128   ;;  %p7706_p6 = pmov %p7705_p13 }
 0x10b   : > { %6376 = vsyncadd (%p7706_p6), [#allocation3], 4294967168  ;;  %p7707_p7 = pmov %p7706_p6 }
 0x10c   : > { %p7708_p11 = pmov %p7706_p6 }
 0x10d   : > { %6378 = dma.done.wait (%p7707_p7), [#allocation5], 2176  }
 0x10e   : > { %6380 = vsyncadd (%p7708_p11), [#allocation5], 4294965120  ;;  %p7709_p9 = pmov %p7706_p6 }
 0x10f   : > { %p7710_p1 = pmov %p7706_p6 }
 0x110   : > { %6382 = dma.done.wait (%p7709_p9), [#allocation8], 256  }
 0x111   : > { %6384 = vsyncadd (%p7710_p1), [#allocation8], 4294967040  ;;  %s440_s15 = sand.u32 1, %s6491_s13   ;;  %s442_s24 = sand.u32 1, %s6399_s10  }
 0x112   : > { %s5354_s29 = sshll.u32 %s442_s24, 12  ;;  %s441_s21 = scalar_lea.sflag [#allocation11], %s440_s15 }
 0x113   : > { %s6786_s30 = scalar_lea.vmem [#allocation10], %s5354_s29  ;;  %p7711_p2 = scmp.ne.s32.totalorder %s7682_s14, 0 }
 0x115   : > { %6386 = dma.done.wait (%p7711_p2), %s441_s21, 65664  }
 0x116   : > { %6388 = vsyncadd (%p7711_p2), %s441_s21, 4294901632  ;;  %s6792_s5 = sshll.u32 %s442_s24, 3  ;;  %s459_s16 = scalar_lea.sflag [#allocation14], %s440_s15 }
 0x117   : > { %s453_s25 = scalar_lea.vmem [#allocation12], %s6792_s5  ;;  %s462_s22 = scalar_lea.vmem [#allocation13], %s6792_s5 }
 0x118   : > { %6390 = dma.done.wait (%p7711_p2), %s459_s16, 256  }
 0x119   : > { %6392 = vsyncadd (%p7711_p2), %s459_s16, 4294967040  ;;  %v6421_v0 = vmov 0   ;;  %v534_v1 = vld [vmem:[#allocation4] sm:$0xff]  ;;  %v535_v7 = vld [vmem:[#allocation4 + $0x8] sm:$0xff]  ;;  %vm672_vm0 = vcmask 261120   ;;  %s5358_s14 = sshll.u32 %s6491_s13, 3 }
 0x11a   : > { %708 = vmatprep.mubr.bf16.mxu0 %v6421_v0  ;;  %749 = vmatprep.mubr.bf16.mxu1 %v6421_v0  ;;  %v538_v2 = vld [vmem:[#allocation4 + $0x20] sm:$0xff]  ;;  %v539_v9 = vld [vmem:[#allocation4 + $0x28] sm:$0xff]  ;;  %v536_v15 = vld [vmem:[#allocation4 + $0x10] sm:$0xff]  ;;  %p526_p5 = scmp.lt.s32.totalorder %s5358_s14, 15  ;;  %s471_s7 = scalar_lea.vmem [#allocation15], %s6792_s5 }
 0x11b   : > { %v542_v3 = vld [vmem:[#allocation4 + $0x40] sm:$0xff]  ;;  %v5361_v4 = vcombine.high %v534_v1, %v538_v2  ;;  %v5360_v5 = vcombine.low %v534_v1, %v538_v2  ;;  %v543_v10 = vld [vmem:[#allocation4 + $0x48] sm:$0xff]  ;;  %v5363_v12 = vcombine.high %v535_v7, %v539_v9  ;;  %v5362_v13 = vcombine.low %v535_v7, %v539_v9  ;;  %v540_v16 = vld [vmem:[#allocation4 + $0x30] sm:$0xff] }
 0x11c   : > { %v546_v6 = vld [vmem:[#allocation4 + $0x60] sm:$0xff]  ;;  %v547_v11 = vld [vmem:[#allocation4 + $0x68] sm:$0xff]  ;;  %v532_v18 = vld [vmem:[#allocation2] sm:$0xff]  ;;  %v5365_v21 = vcombine.high %v536_v15, %v540_v16  ;;  %v5364_v27 = vcombine.low %v536_v15, %v540_v16  ;;  %s7718_s14 = smov (!%p526_p5, %s5358_s14), 15 }
 0x11d   : > { %v5369_v8 = vcombine.high %v542_v3, %v546_v6  ;;  %676 = vmatprep.subr.bf16.mxu0 %v5361_v4  ;;  %v5371_v14 = vcombine.high %v543_v10, %v547_v11  ;;  %v5368_v17 = vcombine.low %v542_v3, %v546_v6  ;;  %v537_v19 = vld [vmem:[#allocation4 + $0x18] sm:$0xff]  ;;  %717 = vmatprep.subr.bf16.mxu1 %v5363_v12  ;;  %v544_v23 = vld [vmem:[#allocation4 + $0x50] sm:$0xff]  ;;  %v1110_v36 = vld [vmem:[%s6786_s30 + $0x8] sm:$0xff]  ;;  %s5359_s13 = sshll.u32 %s7718_s14, 3 }
 0x11e   : > { %677 = vmatpush1.bf16.msra.mxu0 %v5360_v5  ;;  %v541_v20 = vld [vmem:[#allocation4 + $0x38] sm:$0xff]  ;;  %718 = vmatpush1.bf16.msra.mxu1 %v5362_v13  ;;  %v5370_v22 = vcombine.low %v543_v10, %v547_v11  ;;  %v548_v24 = vld [vmem:[#allocation4 + $0x70] sm:$0xff]  ;;  %v533_v25 = vpack.c.bf16 %v532_v18, %v532_v18  ;;  %v1114_v37 = vld [vmem:[%s6786_s30 + $0x28] sm:$0xff]  ;;  %s7602_s27 = scalar_lea.vmem %s7658_s9, %s5359_s13 }
 0x11f   : > { %678 = vmatprep.subr.bf16.mxu0 %v5369_v8  ;;  %719 = vmatprep.subr.bf16.mxu1 %v5371_v14  ;;  %v5367_v26 = vcombine.high %v537_v19, %v541_v20  ;;  %v545_v28 = vld [vmem:[#allocation4 + $0x58] sm:$0xff]  ;;  %v5373_v30 = vcombine.high %v544_v23, %v548_v24  ;;  %v5366_v31 = vcombine.low %v537_v19, %v541_v20  ;;  %v1118_v44 = vld [vmem:[%s6786_s30 + $0x48] sm:$0xff] }
 0x120   : > { %v549_v29 = vld [vmem:[#allocation4 + $0x78] sm:$0xff]  ;;  %v5372_v35 = vcombine.low %v544_v23, %v548_v24  ;;  %v5383_v42 = vcombine.high %v1110_v36, %v1114_v37  ;;  %v1122_v45 = vld [vmem:[%s6786_s30 + $0x68] sm:$0xff]  ;;  %v5382_v47 = vcombine.low %v1110_v36, %v1114_v37 }
 0x121   : > { %v1109_v32 = vld [vmem:[%s6786_s30] sm:$0xff]  ;;  %v5375_v34 = vcombine.high %v545_v28, %v549_v29  ;;  %v5374_v39 = vcombine.low %v545_v28, %v549_v29  ;;  %v5391_v48 = vcombine.high %v1118_v44, %v1122_v45  ;;  %v5390_v50 = vcombine.low %v1118_v44, %v1122_v45  ;;  %v1126_v53 = vld [vmem:[%s6786_s30 + $0x88] sm:$0xff] }
 0x122   : > { %679 = vmatpush1.bf16.msra.mxu0 %v5368_v17  ;;  %720 = vmatpush1.bf16.msra.mxu1 %v5370_v22  ;;  %v1113_v33 = vld [vmem:[%s6786_s30 + $0x20] sm:$0xff]  ;;  %v1130_v55 = vld [vmem:[%s6786_s30 + $0xa8] sm:$0xff] }
 0x123   : > { %758 = vmatprep.subr.bf16.mxu0 %v5365_v21  ;;  %799 = vmatprep.subr.bf16.mxu1 %v5367_v26  ;;  %v5381_v38 = vcombine.high %v1109_v32, %v1113_v33  ;;  %v1117_v40 = vld [vmem:[%s6786_s30 + $0x40] sm:$0xff]  ;;  %v5380_v43 = vcombine.low %v1109_v32, %v1113_v33  ;;  %v5398_v57 = vcombine.low %v1126_v53, %v1130_v55  ;;  %v1134_v61 = vld [vmem:[%s6786_s30 + $0xc8] sm:$0xff] }
 0x124   : > { %v1121_v41 = vld [vmem:[%s6786_s30 + $0x60] sm:$0xff]  ;;  %v5399_v58 = vcombine.high %v1126_v53, %v1130_v55  ;;  %v1138_v63 = vld [vmem:[%s6786_s30 + $0xe8] sm:$0xff] }
 0x125   : > { %5376 = vmatmul.mubr.msk.bf16.vlgmr.msra.gmra.mrb[0].mxu0 %vm672_vm0, %v533_v25  ;;  %5377 = vmatmul.mubr.msk.bf16.vlgmr.msra.gmra.mrb[0].mxu1 %vm672_vm0, %v533_v25  ;;  %v5389_v46 = vcombine.high %v1117_v40, %v1121_v41  ;;  %v5388_v49 = vcombine.low %v1117_v40, %v1121_v41  ;;  %v1125_v51 = vld [vmem:[%s6786_s30 + $0x80] sm:$0xff]  ;;  %v5406_v1 = vcombine.low %v1134_v61, %v1138_v63  ;;  %v1142_v5 = vld [vmem:[%s6786_s30 + $0x108] sm:$0xff] }
 0x126   : > { %759 = vmatpush1.bf16.msra.mxu0 %v5364_v27  ;;  %790 = vmatprep.mubr.bf16.mxu0 %v6421_v0  ;;  %v1129_v52 = vld [vmem:[%s6786_s30 + $0xa0] sm:$0xff]  ;;  %v5407_v2 = vcombine.high %v1134_v61, %v1138_v63  ;;  %v1146_v7 = vld [vmem:[%s6786_s30 + $0x128] sm:$0xff] }
 0x127   : > { %760 = vmatprep.subr.bf16.mxu0 %v5373_v30  ;;  %800 = vmatpush1.bf16.msra.mxu1 %v5366_v31  ;;  %v5397_v54 = vcombine.high %v1125_v51, %v1129_v52  ;;  %v5396_v56 = vcombine.low %v1125_v51, %v1129_v52  ;;  %v1133_v59 = vld [vmem:[%s6786_s30 + $0xc0] sm:$0xff]  ;;  %v5414_v9 = vcombine.low %v1142_v5, %v1146_v7  ;;  %v1150_v13 = vld [vmem:[%s6786_s30 + $0x148] sm:$0xff] }
 0x128   : > { %831 = vmatprep.mubr.bf16.mxu1 %v6421_v0  ;;  %801 = vmatprep.subr.bf16.mxu1 %v5375_v34  ;;  %v1137_v60 = vld [vmem:[%s6786_s30 + $0xe0] sm:$0xff]  ;;  %v5415_v10 = vcombine.high %v1142_v5, %v1146_v7  ;;  %v1154_v15 = vld [vmem:[%s6786_s30 + $0x168] sm:$0xff] }
 0x129   : > { %v5405_v62 = vcombine.high %v1133_v59, %v1137_v60  ;;  %v5404_v0 = vcombine.low %v1133_v59, %v1137_v60  ;;  %v1141_v3 = vld [vmem:[%s6786_s30 + $0x100] sm:$0xff]  ;;  %v5422_v17 = vcombine.low %v1150_v13, %v1154_v15  ;;  %v5423_v18 = vcombine.high %v1150_v13, %v1154_v15  ;;  %v1158_v21 = vld [vmem:[%s6786_s30 + $0x188] sm:$0xff] }
 0x12a   : > { %761 = vmatpush1.bf16.msra.mxu0 %v5372_v35  ;;  %v1145_v4 = vld [vmem:[%s6786_s30 + $0x120] sm:$0xff]  ;;  %v1162_v23 = vld [vmem:[%s6786_s30 + $0x1a8] sm:$0xff] }
 0x12b   : > { %4223 = vmatprep.subr.bf16.mxu0 %v5381_v38  ;;  %802 = vmatpush1.bf16.msra.mxu1 %v5374_v39  ;;  %v5413_v6 = vcombine.high %v1141_v3, %v1145_v4  ;;  %v5412_v8 = vcombine.low %v1141_v3, %v1145_v4  ;;  %v1149_v11 = vld [vmem:[%s6786_s30 + $0x140] sm:$0xff]  ;;  %v5431_v26 = vcombine.high %v1158_v21, %v1162_v23  ;;  %v1166_v29 = vld [vmem:[%s6786_s30 + $0x1c8] sm:$0xff] }
 0x12c   : > { %4387 = vmatprep.subr.bf16.mxu1 %v5383_v42  ;;  %v1153_v12 = vld [vmem:[%s6786_s30 + $0x160] sm:$0xff]  ;;  %v1170_v31 = vld [vmem:[%s6786_s30 + $0x1e8] sm:$0xff] }
 0x12d   : > { %5378 = vmatmul.mubr.msk.bf16.vlgmr.msra.gmra.mrb[4].mxu0 %vm672_vm0, %v533_v25  ;;  %v5421_v14 = vcombine.high %v1149_v11, %v1153_v12  ;;  %v5420_v16 = vcombine.low %v1149_v11, %v1153_v12  ;;  %v1157_v19 = vld [vmem:[%s6786_s30 + $0x180] sm:$0xff]  ;;  %v5438_v33 = vcombine.low %v1166_v29, %v1170_v31  ;;  %v5439_v34 = vcombine.high %v1166_v29, %v1170_v31  ;;  %v1174_v37 = vld [vmem:[%s6786_s30 + $0x208] sm:$0xff] }
 0x12e   : > { %4224 = vmatpush1.bf16.msra.mxu0 %v5380_v43  ;;  %5379 = vmatmul.mubr.msk.bf16.vlgmr.msra.gmra.mrb[4].mxu1 %vm672_vm0, %v533_v25  ;;  %v1161_v20 = vld [vmem:[%s6786_s30 + $0x1a0] sm:$0xff]  ;;  %v5430_v25 = vcombine.low %v1158_v21, %v1162_v23  ;;  %v1178_v39 = vld [vmem:[%s6786_s30 + $0x228] sm:$0xff] }
 0x12f   : > { %4225 = vmatprep.subr.bf16.mxu0 %v5389_v46  ;;  %4388 = vmatpush1.bf16.msra.mxu1 %v5382_v47  ;;  %v5429_v22 = vcombine.high %v1157_v19, %v1161_v20  ;;  %v5428_v24 = vcombine.low %v1157_v19, %v1161_v20  ;;  %v1165_v27 = vld [vmem:[%s6786_s30 + $0x1c0] sm:$0xff]  ;;  %v5446_v41 = vcombine.low %v1174_v37, %v1178_v39  ;;  %v1182_v45 = vld [vmem:[%s6786_s30 + $0x248] sm:$0xff] }
 0x130   : > { %4389 = vmatprep.subr.bf16.mxu1 %v5391_v48  ;;  %v1169_v28 = vld [vmem:[%s6786_s30 + $0x1e0] sm:$0xff]  ;;  %v5447_v42 = vcombine.high %v1174_v37, %v1178_v39  ;;  %v1186_v47 = vld [vmem:[%s6786_s30 + $0x268] sm:$0xff] }
 0x131   : > { %v5437_v30 = vcombine.high %v1165_v27, %v1169_v28  ;;  %v5436_v32 = vcombine.low %v1165_v27, %v1169_v28  ;;  %v1173_v35 = vld [vmem:[%s6786_s30 + $0x200] sm:$0xff]  ;;  %v1190_v53 = vld [vmem:[%s6786_s30 + $0x288] sm:$0xff] }
 0x132   : > { %4226 = vmatpush1.bf16.msra.mxu0 %v5388_v49  ;;  %v1177_v36 = vld [vmem:[%s6786_s30 + $0x220] sm:$0xff]  ;;  %v5454_v49 = vcombine.low %v1182_v45, %v1186_v47  ;;  %v1194_v55 = vld [vmem:[%s6786_s30 + $0x2a8] sm:$0xff] }
 0x133   : > { %4390 = vmatpush1.bf16.msra.mxu1 %v5390_v50  ;;  %4227 = vmatprep.subr.bf16.mxu0 %v5397_v54  ;;  %v5445_v38 = vcombine.high %v1173_v35, %v1177_v36  ;;  %v5444_v40 = vcombine.low %v1173_v35, %v1177_v36  ;;  %v1181_v43 = vld [vmem:[%s6786_s30 + $0x240] sm:$0xff]  ;;  %v5455_v50 = vcombine.high %v1182_v45, %v1186_v47  ;;  %v1198_v61 = vld [vmem:[%s6786_s30 + $0x2c8] sm:$0xff] }
 0x134   : > { %4391 = vmatprep.subr.bf16.mxu1 %v5399_v58  ;;  %v1185_v44 = vld [vmem:[%s6786_s30 + $0x260] sm:$0xff]  ;;  %v5463_v58 = vcombine.high %v1190_v53, %v1194_v55  ;;  %v1202_v63 = vld [vmem:[%s6786_s30 + $0x2e8] sm:$0xff] }
 0x135   : > { %v5453_v46 = vcombine.high %v1181_v43, %v1185_v44  ;;  %v5452_v48 = vcombine.low %v1181_v43, %v1185_v44  ;;  %v1189_v51 = vld [vmem:[%s6786_s30 + $0x280] sm:$0xff]  ;;  %v1206_v5 = vld [vmem:[%s6786_s30 + $0x308] sm:$0xff]  ;;  %v552_v43 = vlaneseq }
 0x136   : > { %4228 = vmatpush1.bf16.msra.mxu0 %v5396_v56  ;;  %v1193_v52 = vld [vmem:[%s6786_s30 + $0x2a0] sm:$0xff]  ;;  %v1210_v7 = vld [vmem:[%s6786_s30 + $0x328] sm:$0xff] }
 0x137   : > { %4392 = vmatpush1.bf16.msra.mxu1 %v5398_v57  ;;  %4229 = vmatprep.subr.bf16.mxu0 %v5405_v62  ;;  %v5461_v54 = vcombine.high %v1189_v51, %v1193_v52  ;;  %v5460_v56 = vcombine.low %v1189_v51, %v1193_v52  ;;  %v5462_v57 = vcombine.low %v1190_v53, %v1194_v55  ;;  %v1197_v59 = vld [vmem:[%s6786_s30 + $0x2c0] sm:$0xff]  ;;  %v1214_v13 = vld [vmem:[%s6786_s30 + $0x348] sm:$0xff]  ;;  %v6888_v44 = vshrl.u32 %v552_v43, 7 }
 0x138   : > { %4393 = vmatprep.subr.bf16.mxu1 %v5407_v2  ;;  %v1201_v60 = vld [vmem:[%s6786_s30 + $0x2e0] sm:$0xff]  ;;  %v5471_v2 = vcombine.high %v1198_v61, %v1202_v63  ;;  %v1218_v15 = vld [vmem:[%s6786_s30 + $0x368] sm:$0xff] }
 0x139   : > { %v5469_v62 = vcombine.high %v1197_v59, %v1201_v60  ;;  %v1205_v3 = vld [vmem:[%s6786_s30 + $0x300] sm:$0xff]  ;;  %v1222_v21 = vld [vmem:[%s6786_s30 + $0x388] sm:$0xff]  ;;  %v6891_v45 = vsub.s32 0, %v6888_v44  ;;  %v6896_v47 = vsub.s32 1, %v6888_v44 }
 0x13a   : > { %4230 = vmatpush1.bf16.msra.mxu0 %v5404_v0  ;;  %v5468_v0 = vcombine.low %v1197_v59, %v1201_v60  ;;  %v1209_v4 = vld [vmem:[%s6786_s30 + $0x320] sm:$0xff]  ;;  %v1226_v23 = vld [vmem:[%s6786_s30 + $0x3a8] sm:$0xff] }
 0x13b   : > { %4394 = vmatpush1.bf16.msra.mxu1 %v5406_v1  ;;  %4231 = vmatprep.subr.bf16.mxu0 %v5413_v6  ;;  %v5470_v1 = vcombine.low %v1198_v61, %v1202_v63  ;;  %v5477_v6 = vcombine.high %v1205_v3, %v1209_v4  ;;  %v1213_v11 = vld [vmem:[%s6786_s30 + $0x340] sm:$0xff]  ;;  %v1230_v29 = vld [vmem:[%s6786_s30 + $0x3c8] sm:$0xff] }
 0x13c   : > { %4395 = vmatprep.subr.bf16.mxu1 %v5415_v10  ;;  %v5479_v10 = vcombine.high %v1206_v5, %v1210_v7  ;;  %v1217_v12 = vld [vmem:[%s6786_s30 + $0x360] sm:$0xff]  ;;  %v6875_v37 = vld [vmem:[%s6786_s30 + $0x408] sm:$0xff] }
 0x13d   : > { %v1221_v19 = vld [vmem:[%s6786_s30 + $0x380] sm:$0xff]  ;;  %v6880_v39 = vld [vmem:[%s6786_s30 + $0x428] sm:$0xff] }
 0x13e   : > { %4232 = vmatpush1.bf16.msra.mxu0 %v5412_v8  ;;  %v5476_v8 = vcombine.low %v1205_v3, %v1209_v4  ;;  %v1225_v20 = vld [vmem:[%s6786_s30 + $0x3a0] sm:$0xff] }
 0x13f   : > { %4396 = vmatpush1.bf16.msra.mxu1 %v5414_v9  ;;  %4233 = vmatprep.subr.bf16.mxu0 %v5421_v14  ;;  %v5478_v9 = vcombine.low %v1206_v5, %v1210_v7  ;;  %v5485_v14 = vcombine.high %v1213_v11, %v1217_v12  ;;  %v1229_v27 = vld [vmem:[%s6786_s30 + $0x3c0] sm:$0xff] }
 0x140   : > { %4397 = vmatprep.subr.bf16.mxu1 %v5423_v18  ;;  %v5487_v18 = vcombine.high %v1214_v13, %v1218_v15  ;;  %v1233_v28 = vld [vmem:[%s6786_s30 + $0x3e0] sm:$0xff] }
 0x141   : > { %v5501_v31 = vcombine.high %v1229_v27, %v1233_v28  ;;  %v6869_v35 = vld [vmem:[%s6786_s30 + $0x400] sm:$0xff] }
 0x142   : > { %4234 = vmatpush1.bf16.msra.mxu0 %v5420_v16  ;;  %v5484_v16 = vcombine.low %v1213_v11, %v1217_v12  ;;  %v6872_v36 = vld [vmem:[%s6786_s30 + $0x420] sm:$0xff] }
 0x143   : > { %4398 = vmatpush1.bf16.msra.mxu1 %v5422_v17  ;;  %4235 = vmatprep.subr.bf16.mxu0 %v5429_v22  ;;  %v5486_v17 = vcombine.low %v1214_v13, %v1218_v15  ;;  %v5493_v22 = vcombine.high %v1221_v19, %v1225_v20 }
 0x144   : > { %4399 = vmatprep.subr.bf16.mxu1 %v5431_v26  ;;  %v5495_v26 = vcombine.high %v1222_v21, %v1226_v23 }
 0x146   : > { %4236 = vmatpush1.bf16.msra.mxu0 %v5428_v24  ;;  %v5492_v24 = vcombine.low %v1221_v19, %v1225_v20 }
 0x147   : > { %4400 = vmatpush1.bf16.msra.mxu1 %v5430_v25  ;;  %4237 = vmatprep.subr.bf16.mxu0 %v5437_v30  ;;  %v5494_v25 = vcombine.low %v1222_v21, %v1226_v23  ;;  %v5500_v30 = vcombine.low %v1229_v27, %v1233_v28  ;;  %v6913_v21 = vsub.s32 5, %v6888_v44 }
 0x148   : > { %4401 = vmatprep.subr.bf16.mxu1 %v5439_v34 }
 0x14a   : > { %4238 = vmatpush1.bf16.msra.mxu0 %v5436_v32  ;;  %v1234_v32 = vld [vmem:[%s6786_s30 + $0x3e8] sm:$0xff] }
 0x14b   : > { %4402 = vmatpush1.bf16.msra.mxu1 %v5438_v33  ;;  %4239 = vmatprep.subr.bf16.mxu0 %v5445_v38  ;;  %v5502_v33 = vcombine.low %v1230_v29, %v1234_v32  ;;  %v5503_v34 = vcombine.high %v1230_v29, %v1234_v32  ;;  %v5509_v38 = vcombine.high %v6869_v35, %v6872_v36 }
 0x14c   : > { %4403 = vmatprep.subr.bf16.mxu1 %v5447_v42  ;;  %v5511_v42 = vcombine.high %v6875_v37, %v6880_v39 }
 0x14e   : > { %4240 = vmatpush1.bf16.msra.mxu0 %v5444_v40  ;;  %v5508_v40 = vcombine.low %v6869_v35, %v6872_v36 }
 0x14f   : > { %4404 = vmatpush1.bf16.msra.mxu1 %v5446_v41  ;;  %4241 = vmatprep.subr.bf16.mxu0 %v5453_v46  ;;  %v5510_v41 = vcombine.low %v6875_v37, %v6880_v39  ;;  %v6893_v46 = vld [vmem:[#allocation6] sm:$0xff] }
 0x150   : > { %4405 = vmatprep.subr.bf16.mxu1 %v5455_v50  ;;  %v559_v50 = vrot.slane %v6893_v46, %v6896_v47  ;;  %v575_v29 = vrot.slane %v6893_v46, %v6913_v21 }
 0x152   : > { %4242 = vmatpush1.bf16.msra.mxu0 %v5452_v48  ;;  %v6899_v48 = vsub.s32 3, %v6888_v44 }
 0x153   : > { %4406 = vmatpush1.bf16.msra.mxu1 %v5454_v49  ;;  %4243 = vmatprep.subr.bf16.mxu0 %v5461_v54  ;;  %v555_v49 = vrot.slane %v6893_v46, %v6891_v45 }
 0x154   : > { %4407 = vmatprep.subr.bf16.mxu1 %v5463_v58  ;;  %v567_v52 = vrot.slane %v6893_v46, %v6899_v48 }
 0x156   : > { %4244 = vmatpush1.bf16.msra.mxu0 %v5460_v56 }
 0x157   : > { %4408 = vmatpush1.bf16.msra.mxu1 %v5462_v57  ;;  %4245 = vmatprep.subr.bf16.mxu0 %v5469_v62 }
 0x158   : > { %4409 = vmatprep.subr.bf16.mxu1 %v5471_v2 }
 0x15a   : > { %4246 = vmatpush1.bf16.msra.mxu0 %v5468_v0 }
 0x15b   : > { %4410 = vmatpush1.bf16.msra.mxu1 %v5470_v1  ;;  %4247 = vmatprep.subr.bf16.mxu0 %v5477_v6 }
 0x15c   : > { %4411 = vmatprep.subr.bf16.mxu1 %v5479_v10 }
 0x15e   : > { %4248 = vmatpush1.bf16.msra.mxu0 %v5476_v8 }
 0x15f   : > { %4412 = vmatpush1.bf16.msra.mxu1 %v5478_v9  ;;  %4249 = vmatprep.subr.bf16.mxu0 %v5485_v14 }
 0x160   : > { %4413 = vmatprep.subr.bf16.mxu1 %v5487_v18  ;;  %v6910_v18 = vsub.s32 2, %v6888_v44 }
 0x162   : > { %4250 = vmatpush1.bf16.msra.mxu0 %v5484_v16 }
 0x163   : > { %4414 = vmatpush1.bf16.msra.mxu1 %v5486_v17  ;;  %4251 = vmatprep.subr.bf16.mxu0 %v5493_v22 }
 0x164   : > { %4415 = vmatprep.subr.bf16.mxu1 %v5495_v26  ;;  %v563_v26 = vrot.slane %v6893_v46, %v6910_v18 }
 0x166   : > { %4252 = vmatpush1.bf16.msra.mxu0 %v5492_v24 }
 0x167   : > { %4416 = vmatpush1.bf16.msra.mxu1 %v5494_v25  ;;  %4253 = vmatprep.subr.bf16.mxu0 %v5501_v31 }
 0x168   : > { %4417 = vmatprep.subr.bf16.mxu1 %v5503_v34 }
 0x16a   : > { %4254 = vmatpush1.bf16.msra.mxu0 %v5500_v30 }
 0x16b   : > { %4418 = vmatpush1.bf16.msra.mxu1 %v5502_v33  ;;  %4264 = vmatprep.subr.bf16.mxu0 %v5509_v38 }
 0x16c   : > { %4428 = vmatprep.subr.bf16.mxu1 %v5511_v42 }
 0x1f8   : > { %v710_v51 = vpop.f32.mrb[0].mxu0  ;;  %v751_v57 = vpop.f32.mrb[0].mxu1 }
 0x1f9   : > { %v711_v53 = vadd.f32 %v710_v51, %v555_v49  ;;  %v712_v54 = vpop.f32.mrb[1].mxu0  ;;  %v753_v60 = vpop.f32.mrb[1].mxu1  ;;  %v6921_v38 = vadd.f32 %v751_v57, %v563_v26 }
 0x1fa   : > { %v713_v55 = vadd.f32 %v712_v54, %v559_v50  ;;  %v714_v56 = vpop.f32.mrb[2].mxu0  ;;  %v754_v62 = vadd.f32 %v753_v60, %v567_v52  ;;  %v755_v63 = vpop.f32.mrb[2].mxu1 }
 0x1fb   : > { %v840_v58 = vrot.slane %v711_v53, 4  ;;  %v715_v59 = vpop.f32.mrb[3].mxu0  ;;  %v756_v1 = vpop.f32.mrb[3].mxu1 }
 0x1fc   : > { %v846_v61 = vrot.slane %v713_v55, 4  ;;  %v858_v3 = vrot.slane %v754_v62, 4 }
 0x1fd   : > { %v841_v0 = vadd.f32 %v840_v58, %v711_v53  ;;  %v852_v58 = vrot.slane %v6921_v38, 4 }
 0x1fe   : > { %v847_v2 = vadd.f32 %v846_v61, %v713_v55  ;;  %v859_v6 = vadd.f32 %v858_v3, %v754_v62 }
 0x1ff   : > { %v842_v4 = vrot.slane %v841_v0, 2  ;;  %v853_v1 = vadd.f32 %v852_v58, %v6921_v38 }
 0x200   : > { %v848_v5 = vrot.slane %v847_v2, 2  ;;  %v6907_v7 = vpop.f32.mrb[4].mxu0  ;;  %v860_v11 = vrot.slane %v859_v6, 2 }
 0x201   : > { %v843_v8 = vadd.f32 %v842_v4, %v841_v0  ;;  %v794_v9 = vpop.f32.mrb[5].mxu0  ;;  %v6919_v30 = vpop.f32.mrb[4].mxu1 }
 0x202   : > { %v849_v10 = vadd.f32 %v848_v5, %v847_v2  ;;  %v796_v12 = vpop.f32.mrb[6].mxu0  ;;  %v861_v16 = vadd.f32 %v860_v11, %v859_v6  ;;  %v6923_v42 = vpop.f32.mrb[5].mxu1  ;;  %v6925_v50 = vadd.f32 %v794_v9, %v575_v29 }
 0x203   : > { %v844_v13 = vrot.slane %v843_v8, 1  ;;  %v797_v14 = vpop.f32.mrb[7].mxu0  ;;  %v837_v51 = vpop.f32.mrb[6].mxu1 }
 0x204   : > { %v850_v15 = vrot.slane %v849_v10, 1  ;;  %v862_v20 = vrot.slane %v861_v16, 1  ;;  %v870_v61 = vrot.slane %v6925_v50, 4 }
 0x205   : > { %v845_v17 = vadd.f32 %v844_v13, %v843_v8 }
 0x206   : > { %v851_v19 = vadd.f32 %v850_v15, %v849_v10  ;;  %v863_v24 = vadd.f32 %v862_v20, %v861_v16  ;;  %v871_v4 = vadd.f32 %v870_v61, %v6925_v50  ;;  %v854_v10 = vrot.slane %v853_v1, 2 }
 0x207   : > { %v889_v22 = vmul.f32 0.125, %v845_v17 }
 0x208   : > { %v890_v23 = vmul.f32 0.125, %v851_v19  ;;  %v892_v28 = vmul.f32 0.125, %v863_v24  ;;  %v872_v13 = vrot.slane %v871_v4, 2  ;;  %v855_v17 = vadd.f32 %v854_v10, %v853_v1  ;;  %v6931_v24 = vld [vmem:[#allocation7] sm:$0xff]  ;;  %v1245_v1 = vld [vmem:[%s6786_s30 + $0x440] sm:$0xff] }
 0x209   : > { %v897_v25 = vsub.f32 %v711_v53, %v889_v22  ;;  %v838_v53 = vpop.f32.mrb[7].mxu1  ;;  %v998_v29 = vrot.slane %v6931_v24, %v6891_v45 }
 0x20a   : > { %v898_v27 = vsub.f32 %v713_v55, %v890_v23  ;;  %v900_v33 = vsub.f32 %v754_v62, %v892_v28  ;;  %v873_v20 = vadd.f32 %v872_v13, %v871_v4  ;;  %v856_v22 = vrot.slane %v855_v17, 1  ;;  %v6933_v28 = vld [vmem:[#allocation9] sm:$0xff]  ;;  %v1249_v4 = vld [vmem:[%s6786_s30 + $0x460] sm:$0xff] }
 0x20b   : > { %v905_v31 = vmul.f32 %v897_v25, %v897_v25  ;;  %v1048_v51 = vrot.slane %v6933_v28, %v6891_v45  ;;  %v1060_v61 = vrot.slane %v6933_v28, %v6899_v48 }
 0x20c   : > { %v906_v32 = vmul.f32 %v898_v27, %v898_v27  ;;  %v908_v49 = vmul.f32 %v900_v33, %v900_v33  ;;  %v874_v23 = vrot.slane %v873_v20, 1  ;;  %v857_v26 = vadd.f32 %v856_v22, %v855_v17 }
 0x20d   : > { %v913_v34 = vrot.slane %v905_v31, 4 }
 0x20e   : > { %v919_v43 = vrot.slane %v906_v32, 4  ;;  %v931_v55 = vrot.slane %v908_v49, 4  ;;  %v891_v53 = vmul.f32 0.125, %v857_v26 }
 0x20f   : > { %v914_v52 = vadd.f32 %v913_v34, %v905_v31  ;;  %v875_v31 = vadd.f32 %v874_v23, %v873_v20  ;;  %v1002_v34 = vrot.slane %v6931_v24, %v6896_v47  ;;  %v5516_v20 = vcombine.low %v1245_v1, %v1249_v4 }
 0x210   : > { %v920_v54 = vadd.f32 %v919_v43, %v906_v32  ;;  %v932_v60 = vadd.f32 %v931_v55, %v908_v49  ;;  %v1052_v55 = vrot.slane %v6933_v28, %v6896_v47 }
 0x211   : > { %v915_v56 = vrot.slane %v914_v52, 2 }
 0x212   : > { %v921_v59 = vrot.slane %v920_v54, 2  ;;  %v933_v63 = vrot.slane %v932_v60, 2 }
 0x213   : > { %v916_v57 = vadd.f32 %v915_v56, %v914_v52 }
 0x214   : > { %v922_v62 = vadd.f32 %v921_v59, %v920_v54  ;;  %v934_v3 = vadd.f32 %v933_v63, %v932_v60  ;;  %v1010_v54 = vrot.slane %v6931_v24, %v6899_v48  ;;  %v894_v59 = vmul.f32 0.125, %v875_v31 }
 0x215   : > { %v917_v0 = vrot.slane %v916_v57, 1 }
 0x216   : > { %v923_v2 = vrot.slane %v922_v62, 1  ;;  %v935_v8 = vrot.slane %v934_v3, 1 }
 0x217   : > { %v918_v5 = vadd.f32 %v917_v0, %v916_v57 }
 0x218   : > { %v924_v6 = vadd.f32 %v923_v2, %v922_v62  ;;  %v936_v12 = vadd.f32 %v935_v8, %v934_v3  ;;  %v6952_v2 = vsub.f32 %v6925_v50, %v894_v59  ;;  %v1253_v50 = vld [vmem:[%s6786_s30 + $0x480] sm:$0xff] }
 0x219   : > { %v961_v9 = vmul.f32 0.125, %v918_v5  ;;  %v1250_v5 = vld [vmem:[%s6786_s30 + $0x468] sm:$0xff] }
 0x21a   : > { %v962_v11 = vmul.f32 0.125, %v924_v6  ;;  %v964_v16 = vmul.f32 0.125, %v936_v12  ;;  %v910_v13 = vmul.f32 %v6952_v2, %v6952_v2 }
 0x21b   : > { %v969_v14 = vadd.f32 1e-05, %v961_v9 }
 0x21c   : > { %v970_v15 = vadd.f32 1e-05, %v962_v11  ;;  %v972_v19 = vadd.f32 1e-05, %v964_v16  ;;  %v5517_v11 = vcombine.high %v1245_v1, %v1249_v4  ;;  %v1258_v16 = vld [vmem:[%s6786_s30 + $0x4a8] sm:$0xff]  ;;  %v943_v31 = vrot.slane %v910_v13, 4 }
 0x21d   : > { %6063 = vrsqrt.f32 %v969_v14  ;;  %v1257_v14 = vld [vmem:[%s6786_s30 + $0x4a0] sm:$0xff] }
 0x21e   : > { %6065 = vrsqrt.f32 %v970_v15  ;;  %v1254_v15 = vld [vmem:[%s6786_s30 + $0x488] sm:$0xff]  ;;  %v5525_v23 = vcombine.high %v1253_v50, %v1257_v14  ;;  %v5524_v36 = vcombine.low %v1253_v50, %v1257_v14 }
 0x21f   : > { %6067 = vrsqrt.f32 %v972_v19  ;;  %v5527_v26 = vcombine.high %v1254_v15, %v1258_v16  ;;  %v5526_v37 = vcombine.low %v1254_v15, %v1258_v16 }
 0x227   : > { %v6064_v32 = vpop.eup %6063 }
 0x228   : > { %v6066_v43 = vpop.eup %6065  ;;  %v985_v49 = vmul.f32 %v6064_v32, %v897_v25  ;;  %v1265_v32 = vld [vmem:[%s6786_s30 + $0x4e0] sm:$0xff] }
 0x229   : > { %v986_v52 = vmul.f32 %v6066_v43, %v898_v27  ;;  %v6068_v56 = vpop.eup %6067  ;;  %v6948_v27 = vsub.f32 %v6921_v38, %v891_v53  ;;  %v1266_v43 = vld [vmem:[%s6786_s30 + $0x4e8] sm:$0xff] }
 0x22a   : > { %v1035_v58 = vmul.f32 %v998_v29, %v985_v49  ;;  %v988_v25 = vmul.f32 %v6068_v56, %v900_v33  ;;  %v1246_v33 = vld [vmem:[%s6786_s30 + $0x448] sm:$0xff]  ;;  %v1261_v29 = vld [vmem:[%s6786_s30 + $0x4c0] sm:$0xff]  ;;  %v944_v49 = vadd.f32 %v943_v31, %v910_v13  ;;  %v7000_v13 = vsub.s32 4, %v6888_v44 }
 0x22b   : > { %v1036_v60 = vmul.f32 %v1002_v34, %v986_v52  ;;  %v907_v38 = vmul.f32 %v6948_v27, %v6948_v27  ;;  %v5519_v12 = vcombine.high %v1246_v33, %v1250_v5  ;;  %v5518_v22 = vcombine.low %v1246_v33, %v1250_v5  ;;  %v1262_v34 = vld [vmem:[%s6786_s30 + $0x4c8] sm:$0xff]  ;;  %v1285_v33 = vld [vmem:[%s6786_s30 + $0x580] sm:$0xff] }
 0x22c   : > { %v1085_v57 = vadd.f32 %v1048_v51, %v1035_v58  ;;  %v1038_v62 = vmul.f32 %v1010_v54, %v988_v25  ;;  %v5533_v39 = vcombine.high %v1261_v29, %v1265_v32  ;;  %v1273_v51 = vld [vmem:[%s6786_s30 + $0x520] sm:$0xff]  ;;  %v1270_v52 = vld [vmem:[%s6786_s30 + $0x508] sm:$0xff]  ;;  %v5534_v56 = vcombine.low %v1262_v34, %v1266_v43 }
 0x22d   : > { %v1086_v63 = vadd.f32 %v1052_v55, %v1036_v60  ;;  %v925_v19 = vrot.slane %v907_v38, 4  ;;  %v1274_v53 = vld [vmem:[%s6786_s30 + $0x528] sm:$0xff]  ;;  %v5532_v55 = vcombine.low %v1261_v29, %v1265_v32  ;;  %v1277_v60 = vld [vmem:[%s6786_s30 + $0x540] sm:$0xff]  ;;  %v945_v25 = vrot.slane %v944_v49, 2 }
 0x22e   : > { %v1093_v0 = vmax.f32 %v1085_v57, 0.0  ;;  %v1088_v6 = vadd.f32 %v1060_v61, %v1038_v62  ;;  %v5543_v59 = vcombine.high %v1270_v52, %v1274_v53  ;;  %v1281_v61 = vld [vmem:[%s6786_s30 + $0x560] sm:$0xff]  ;;  %v1278_v57 = vld [vmem:[%s6786_s30 + $0x548] sm:$0xff]  ;;  %v5542_v1 = vcombine.low %v1270_v52, %v1274_v53 }
 0x22f   : > { %v1094_v3 = vmax.f32 %v1086_v63, 0.0  ;;  %v926_v35 = vadd.f32 %v925_v19, %v907_v38  ;;  %v1282_v62 = vld [vmem:[%s6786_s30 + $0x568] sm:$0xff]  ;;  %v946_v5 = vadd.f32 %v945_v25, %v944_v49  ;;  %v1293_v19 = vld [vmem:[%s6786_s30 + $0x5c0] sm:$0xff] }
 0x230   : > { %v1096_v9 = vmax.f32 %v1088_v6, 0.0  ;;  %v6961_v10 = vpack.c.bf16 %v1093_v0, %v1093_v0  ;;  %v5551_v4 = vcombine.high %v1278_v57, %v1282_v62  ;;  %v1289_v6 = vld [vmem:[%s6786_s30 + $0x5a0] sm:$0xff]  ;;  %v1286_v38 = vld [vmem:[%s6786_s30 + $0x588] sm:$0xff]  ;;  %v5550_v50 = vcombine.low %v1278_v57, %v1282_v62 }
 0x231   : > { %v6959_v8 = vpack.c.bf16 %v1094_v3, %v1094_v3  ;;  %v927_v54 = vrot.slane %v926_v35, 2  ;;  %v5549_v3 = vcombine.high %v1277_v60, %v1281_v61  ;;  %v5557_v14 = vcombine.high %v1285_v33, %v1289_v6  ;;  %v1306_v49 = vld [vmem:[%s6786_s30 + $0x628] sm:$0xff]  ;;  %v1313_v25 = vld [vmem:[%s6786_s30 + $0x660] sm:$0xff] }
 0x232   : > { %v6971_v17 = vpack.c.bf16 %v1096_v9, %v1096_v9  ;;  %v1290_v9 = vld [vmem:[%s6786_s30 + $0x5a8] sm:$0xff]  ;;  %v947_v16 = vrot.slane %v946_v5, 1  ;;  %v5556_v29 = vcombine.low %v1285_v33, %v1289_v6 }
 0x233   : > { %4255 = vmatprep.mubr.bf16.mxu0 %v6959_v8  ;;  %4419 = vmatprep.mubr.bf16.mxu1 %v6959_v8  ;;  %v928_v63 = vadd.f32 %v927_v54, %v926_v35  ;;  %v5559_v15 = vcombine.high %v1286_v38, %v1290_v9  ;;  %v5558_v31 = vcombine.low %v1286_v38, %v1290_v9  ;;  %v1318_v6 = vld [vmem:[%s6786_s30 + $0x688] sm:$0xff] }
 0x234   : > { %4256 = vmatmul.mubr.bf16.vlgmr.msra.gmra.mrb[8].mxu0 %v6961_v10  ;;  %4420 = vmatmul.mubr.bf16.vlgmr.msra.gmra.mrb[8].mxu1 %v6961_v10  ;;  %v948_v35 = vadd.f32 %v947_v16, %v946_v5  ;;  %v1321_v5 = vld [vmem:[%s6786_s30 + $0x6a0] sm:$0xff]  ;;  %v1322_v38 = vld [vmem:[%s6786_s30 + $0x6a8] sm:$0xff] }
 0x235   : > { %4265 = vmatpush1.bf16.msra.mxu0 %v5508_v40  ;;  %4429 = vmatpush1.bf16.msra.mxu1 %v5510_v41  ;;  %v5535_v40 = vcombine.high %v1262_v34, %v1266_v43  ;;  %v1269_v41 = vld [vmem:[%s6786_s30 + $0x500] sm:$0xff]  ;;  %v571_v34 = vrot.slane %v6893_v46, %v7000_v13 }
 0x236   : > { %4266 = vmatprep.subr.bf16.mxu0 %v5517_v11  ;;  %4430 = vmatprep.subr.bf16.mxu1 %v5519_v12  ;;  %v5541_v58 = vcombine.high %v1269_v41, %v1273_v51  ;;  %v5540_v0 = vcombine.low %v1269_v41, %v1273_v51  ;;  %v929_v11 = vrot.slane %v928_v63, 1  ;;  %v5548_v12 = vcombine.low %v1277_v60, %v1281_v61  ;;  %v1302_v41 = vld [vmem:[%s6786_s30 + $0x608] sm:$0xff] }
 0x237   : > { %4296 = vmatprep.mubr.bf16.mxu0 %v6971_v17  ;;  %4460 = vmatprep.mubr.bf16.mxu1 %v6971_v17  ;;  %v7018_v52 = vadd.f32 %v6907_v7, %v571_v34  ;;  %v1310_v61 = vld [vmem:[%s6786_s30 + $0x648] sm:$0xff] }
 0x238   : > { %v930_v32 = vadd.f32 %v929_v11, %v928_v63  ;;  %v1314_v7 = vld [vmem:[%s6786_s30 + $0x668] sm:$0xff] }
 0x239   : > { %4267 = vmatpush1.bf16.msra.mxu0 %v5516_v20  ;;  %4431 = vmatpush1.bf16.msra.mxu1 %v5518_v22  ;;  %v1297_v20 = vld [vmem:[%s6786_s30 + $0x5e0] sm:$0xff]  ;;  %v7005_v22 = vsub.s32 7, %v6888_v44  ;;  %v864_v62 = vrot.slane %v7018_v52, 4 }
 0x23a   : > { %4268 = vmatprep.subr.bf16.mxu0 %v5525_v23  ;;  %4432 = vmatprep.subr.bf16.mxu1 %v5527_v26  ;;  %v1294_v23 = vld [vmem:[%s6786_s30 + $0x5c8] sm:$0xff]  ;;  %v5565_v43 = vcombine.high %v1293_v19, %v1297_v20  ;;  %v963_v51 = vmul.f32 0.125, %v930_v32  ;;  %v5564_v53 = vcombine.low %v1293_v19, %v1297_v20  ;;  %v1329_v19 = vld [vmem:[%s6786_s30 + $0x6e0] sm:$0xff] }
 0x23b   : > { %v1298_v26 = vld [vmem:[%s6786_s30 + $0x5e8] sm:$0xff]  ;;  %v865_v9 = vadd.f32 %v864_v62, %v7018_v52 }
 0x23c   : > { %v5566_v54 = vcombine.low %v1294_v23, %v1298_v26  ;;  %v971_v57 = vadd.f32 1e-05, %v963_v51  ;;  %v1326_v20 = vld [vmem:[%s6786_s30 + $0x6c8] sm:$0xff] }
 0x23d   : > { %4269 = vmatpush1.bf16.msra.mxu0 %v5524_v36  ;;  %4433 = vmatpush1.bf16.msra.mxu1 %v5526_v37  ;;  %v5567_v36 = vcombine.high %v1294_v23, %v1298_v26  ;;  %v1301_v37 = vld [vmem:[%s6786_s30 + $0x600] sm:$0xff]  ;;  %v1330_v23 = vld [vmem:[%s6786_s30 + $0x6e8] sm:$0xff]  ;;  %v866_v26 = vrot.slane %v865_v9, 2 }
 0x23e   : > { %4270 = vmatprep.subr.bf16.mxu0 %v5533_v39  ;;  %4434 = vmatprep.subr.bf16.mxu1 %v5535_v40  ;;  %v583_v39 = vrot.slane %v6893_v46, %v7005_v22  ;;  %v1305_v40 = vld [vmem:[%s6786_s30 + $0x620] sm:$0xff]  ;;  %6069 = vrsqrt.f32 %v971_v57  ;;  %v5599_v34 = vcombine.high %v1326_v20, %v1330_v23 }
 0x23f   : > { %v5572_v63 = vcombine.low %v1301_v37, %v1305_v40 }
 0x240   : > { %v7022_v60 = vadd.f32 %v6923_v42, %v583_v39  ;;  %v1317_v42 = vld [vmem:[%s6786_s30 + $0x680] sm:$0xff]  ;;  %v1338_v39 = vld [vmem:[%s6786_s30 + $0x728] sm:$0xff] }
 0x241   : > { %4271 = vmatpush1.bf16.msra.mxu0 %v5532_v55  ;;  %4435 = vmatpush1.bf16.msra.mxu1 %v5534_v56  ;;  %v966_v55 = vmul.f32 0.125, %v948_v35  ;;  %v5573_v56 = vcombine.high %v1301_v37, %v1305_v40  ;;  %v1334_v37 = vld [vmem:[%s6786_s30 + $0x708] sm:$0xff]  ;;  %v867_v40 = vadd.f32 %v866_v26, %v865_v9 }
 0x242   : > { %4272 = vmatprep.subr.bf16.mxu0 %v5541_v58  ;;  %4436 = vmatprep.subr.bf16.mxu1 %v5543_v59  ;;  %v5575_v58 = vcombine.high %v1302_v41, %v1306_v49  ;;  %v1309_v59 = vld [vmem:[%s6786_s30 + $0x640] sm:$0xff]  ;;  %v882_v33 = vrot.slane %v7022_v60, 4  ;;  %v1354_v9 = vld [vmem:[%s6786_s30 + $0x7a8] sm:$0xff] }
 0x243   : > { %v5580_v11 = vcombine.low %v1309_v59, %v1313_v25  ;;  %v868_v57 = vrot.slane %v867_v40, 1  ;;  %v1358_v26 = vld [vmem:[%s6786_s30 + $0x7c8] sm:$0xff] }
 0x244   : > { %v883_v16 = vadd.f32 %v882_v33, %v7022_v60 }
 0x245   : > { %4273 = vmatpush1.bf16.msra.mxu0 %v5540_v0  ;;  %4437 = vmatpush1.bf16.msra.mxu1 %v5542_v1  ;;  %v5574_v0 = vcombine.low %v1302_v41, %v1306_v49  ;;  %v974_v1 = vadd.f32 1e-05, %v966_v55  ;;  %v5598_v49 = vcombine.low %v1326_v20, %v1330_v23  ;;  %v1361_v23 = vld [vmem:[%s6786_s30 + $0x7e0] sm:$0xff] }
 0x246   : > { %4274 = vmatprep.subr.bf16.mxu0 %v5549_v3  ;;  %4438 = vmatprep.subr.bf16.mxu1 %v5551_v4  ;;  %v5581_v3 = vcombine.high %v1309_v59, %v1313_v25  ;;  %v5583_v4 = vcombine.high %v1310_v61, %v1314_v7  ;;  %v884_v35 = vrot.slane %v883_v16, 2  ;;  %v1342_v59 = vld [vmem:[%s6786_s30 + $0x748] sm:$0xff] }
 0x247   : > { %6071 = vrsqrt.f32 %v974_v1  ;;  %v1346_v25 = vld [vmem:[%s6786_s30 + $0x768] sm:$0xff] }
 0x248   : > { %v885_v55 = vadd.f32 %v884_v35, %v883_v16  ;;  %v1357_v16 = vld [vmem:[%s6786_s30 + $0x7c0] sm:$0xff] }
 0x249   : > { %4275 = vmatpush1.bf16.msra.mxu0 %v5548_v12  ;;  %4439 = vmatpush1.bf16.msra.mxu1 %v5550_v50  ;;  %v5582_v12 = vcombine.low %v1310_v61, %v1314_v7  ;;  %v5589_v50 = vcombine.high %v1317_v42, %v1321_v5  ;;  %v1006_v7 = vrot.slane %v6931_v24, %v6910_v18 }
 0x24a   : > { %4276 = vmatprep.subr.bf16.mxu0 %v5557_v14  ;;  %4440 = vmatprep.subr.bf16.mxu1 %v5559_v15  ;;  %v5591_v14 = vcombine.high %v1318_v6, %v1322_v38  ;;  %v1325_v15 = vld [vmem:[%s6786_s30 + $0x6c0] sm:$0xff]  ;;  %v886_v33 = vrot.slane %v885_v55, 1  ;;  %v5629_v35 = vcombine.high %v1357_v16, %v1361_v23 }
 0x24b   : > { %v5597_v32 = vcombine.high %v1325_v15, %v1329_v19  ;;  %v5596_v41 = vcombine.low %v1325_v15, %v1329_v19 }
 0x24c   : > { %v887_v19 = vadd.f32 %v886_v33, %v885_v55  ;;  %v5628_v55 = vcombine.low %v1357_v16, %v1361_v23  ;;  %v1381_v33 = vld [vmem:[%s6786_s30 + $0x880] sm:$0xff]  ;;  %v1394_v23 = vld [vmem:[%s6786_s30 + $0x8e8] sm:$0xff] }
 0x24d   : > { %4277 = vmatpush1.bf16.msra.mxu0 %v5556_v29  ;;  %4441 = vmatpush1.bf16.msra.mxu1 %v5558_v31  ;;  %v5588_v29 = vcombine.low %v1317_v42, %v1321_v5  ;;  %v5590_v31 = vcombine.low %v1318_v6, %v1322_v38  ;;  %v1353_v42 = vld [vmem:[%s6786_s30 + $0x7a0] sm:$0xff]  ;;  %v1018_v6 = vrot.slane %v6931_v24, %v6913_v21  ;;  %v1350_v38 = vld [vmem:[%s6786_s30 + $0x788] sm:$0xff] }
 0x24e   : > { %4278 = vmatprep.subr.bf16.mxu0 %v5565_v43  ;;  %4442 = vmatprep.subr.bf16.mxu1 %v5567_v36  ;;  %v1333_v43 = vld [vmem:[%s6786_s30 + $0x700] sm:$0xff] }
 0x24f   : > { %v1337_v36 = vld [vmem:[%s6786_s30 + $0x720] sm:$0xff] }
 0x250   : > { %v5605_v51 = vcombine.high %v1333_v43, %v1337_v36  ;;  %v5604_v62 = vcombine.low %v1333_v43, %v1337_v36  ;;  %v5622_v43 = vcombine.low %v1350_v38, %v1354_v9 }
 0x251   : > { %4279 = vmatpush1.bf16.msra.mxu0 %v5564_v53  ;;  %4443 = vmatpush1.bf16.msra.mxu1 %v5566_v54  ;;  %v5607_v53 = vcombine.high %v1334_v37, %v1338_v39  ;;  %v1341_v54 = vld [vmem:[%s6786_s30 + $0x740] sm:$0xff] }
 0x252   : > { %4280 = vmatprep.subr.bf16.mxu0 %v5573_v56  ;;  %4444 = vmatprep.subr.bf16.mxu1 %v5575_v58  ;;  %v6070_v56 = vpop.eup %6069  ;;  %v1345_v58 = vld [vmem:[%s6786_s30 + $0x760] sm:$0xff] }
 0x253   : > { %v6072_v61 = vpop.eup %6071  ;;  %v5613_v1 = vcombine.high %v1341_v54, %v1345_v58 }
 0x254   : > { %v990_v5 = vmul.f32 %v6072_v61, %v6952_v2  ;;  %v5623_v2 = vcombine.high %v1350_v38, %v1354_v9  ;;  %v1373_v61 = vld [vmem:[%s6786_s30 + $0x840] sm:$0xff]  ;;  %v1382_v38 = vld [vmem:[%s6786_s30 + $0x888] sm:$0xff] }
 0x255   : > { %4281 = vmatpush1.bf16.msra.mxu0 %v5572_v63  ;;  %4445 = vmatpush1.bf16.msra.mxu1 %v5574_v0  ;;  %v5606_v63 = vcombine.low %v1334_v37, %v1338_v39  ;;  %v987_v0 = vmul.f32 %v6070_v56, %v6948_v27  ;;  %v1056_v27 = vrot.slane %v6933_v28, %v6910_v18  ;;  %v1365_v39 = vld [vmem:[%s6786_s30 + $0x800] sm:$0xff]  ;;  %v1386_v9 = vld [vmem:[%s6786_s30 + $0x8a8] sm:$0xff] }
 0x256   : > { %4282 = vmatprep.subr.bf16.mxu0 %v5581_v3  ;;  %4446 = vmatprep.subr.bf16.mxu1 %v5583_v4  ;;  %v5615_v3 = vcombine.high %v1342_v59, %v1346_v25  ;;  %v1349_v4 = vld [vmem:[%s6786_s30 + $0x780] sm:$0xff]  ;;  %v1040_v20 = vmul.f32 %v1018_v6, %v990_v5 }
 0x257   : > { %v1037_v15 = vmul.f32 %v1006_v7, %v987_v0  ;;  %v1377_v7 = vld [vmem:[%s6786_s30 + $0x860] sm:$0xff] }
 0x258   : > { %v1385_v6 = vld [vmem:[%s6786_s30 + $0x8a0] sm:$0xff] }
 0x259   : > { %4283 = vmatpush1.bf16.msra.mxu0 %v5580_v11  ;;  %4447 = vmatpush1.bf16.msra.mxu1 %v5582_v12  ;;  %v5612_v11 = vcombine.low %v1341_v54, %v1345_v58  ;;  %v869_v12 = vadd.f32 %v868_v57, %v867_v40  ;;  %v1087_v37 = vadd.f32 %v1056_v27, %v1037_v15  ;;  %v896_v40 = vmul.f32 0.125, %v887_v19  ;;  %v1393_v19 = vld [vmem:[%s6786_s30 + $0x8e0] sm:$0xff] }
 0x25a   : > { %4284 = vmatprep.subr.bf16.mxu0 %v5589_v50  ;;  %4448 = vmatprep.subr.bf16.mxu1 %v5591_v14  ;;  %v5614_v50 = vcombine.low %v1342_v59, %v1346_v25  ;;  %v5621_v14 = vcombine.high %v1349_v4, %v1353_v42  ;;  %v5655_v15 = vcombine.high %v1382_v38, %v1386_v9 }
 0x25b   : > { %v1095_v58 = vmax.f32 %v1087_v37, 0.0  ;;  %v7075_v57 = vsub.f32 %v7022_v60, %v896_v40  ;;  %v1398_v37 = vld [vmem:[%s6786_s30 + $0x908] sm:$0xff] }
 0x25d   : > { %4285 = vmatpush1.bf16.msra.mxu0 %v5588_v29  ;;  %4449 = vmatpush1.bf16.msra.mxu1 %v5590_v31  ;;  %v1362_v29 = vld [vmem:[%s6786_s30 + $0x7e8] sm:$0xff]  ;;  %v1068_v31 = vrot.slane %v6933_v28, %v6913_v21  ;;  %v912_v5 = vmul.f32 %v7075_v57, %v7075_v57 }
 0x25e   : > { %4286 = vmatprep.subr.bf16.mxu0 %v5597_v32  ;;  %4450 = vmatprep.subr.bf16.mxu1 %v5599_v34  ;;  %v893_v32 = vmul.f32 0.125, %v869_v12  ;;  %v5620_v34 = vcombine.low %v1349_v4, %v1353_v42  ;;  %v5631_v36 = vcombine.high %v1358_v26, %v1362_v29  ;;  %v5630_v56 = vcombine.low %v1358_v26, %v1362_v29 }
 0x25f   : > { %v5645_v4 = vcombine.high %v1373_v61, %v1377_v7  ;;  %v7081_v42 = vpack.c.bf16 %v1095_v58, %v1095_v58  ;;  %v5644_v12 = vcombine.low %v1373_v61, %v1377_v7  ;;  %v955_v16 = vrot.slane %v912_v5, 4  ;;  %v1409_v58 = vld [vmem:[%s6786_s30 + $0x960] sm:$0xff] }
 0x260   : > { %v7070_v54 = vsub.f32 %v7018_v52, %v893_v32  ;;  %v1378_v52 = vld [vmem:[%s6786_s30 + $0x868] sm:$0xff]  ;;  %v5652_v29 = vcombine.low %v1381_v33, %v1385_v6 }
 0x261   : > { %4287 = vmatpush1.bf16.msra.mxu0 %v5596_v41  ;;  %4451 = vmatpush1.bf16.msra.mxu1 %v5598_v49  ;;  %v1369_v41 = vld [vmem:[%s6786_s30 + $0x820] sm:$0xff]  ;;  %v1366_v49 = vld [vmem:[%s6786_s30 + $0x808] sm:$0xff] }
 0x262   : > { %4288 = vmatprep.subr.bf16.mxu0 %v5605_v51  ;;  %4452 = vmatprep.subr.bf16.mxu1 %v5607_v53  ;;  %v1370_v51 = vld [vmem:[%s6786_s30 + $0x828] sm:$0xff]  ;;  %v1090_v53 = vadd.f32 %v1068_v31, %v1040_v20  ;;  %v5637_v59 = vcombine.high %v1365_v39, %v1369_v41  ;;  %v5636_v0 = vcombine.low %v1365_v39, %v1369_v41 }
 0x263   : > { %v5639_v25 = vcombine.high %v1366_v49, %v1370_v51  ;;  %v1390_v20 = vld [vmem:[%s6786_s30 + $0x8c8] sm:$0xff]  ;;  %v5654_v31 = vcombine.low %v1382_v38, %v1386_v9  ;;  %v7112_v38 = vsub.s32 6, %v6888_v44 }
 0x264   : > { %v1402_v39 = vld [vmem:[%s6786_s30 + $0x928] sm:$0xff] }
 0x265   : > { %4289 = vmatpush1.bf16.msra.mxu0 %v5604_v62  ;;  %4453 = vmatpush1.bf16.msra.mxu1 %v5606_v63  ;;  %v1374_v62 = vld [vmem:[%s6786_s30 + $0x848] sm:$0xff]  ;;  %v1098_v63 = vmax.f32 %v1090_v53, 0.0  ;;  %v5671_v53 = vcombine.high %v1398_v37, %v1402_v39  ;;  %v579_v44 = vrot.slane %v6893_v46, %v7112_v38 }
 0x266   : > { %4290 = vmatprep.subr.bf16.mxu0 %v5613_v1  ;;  %4454 = vmatprep.subr.bf16.mxu1 %v5615_v3  ;;  %v909_v1 = vmul.f32 %v7070_v54, %v7070_v54  ;;  %v5638_v3 = vcombine.low %v1366_v49, %v1370_v51  ;;  %v5647_v60 = vcombine.high %v1374_v62, %v1378_v52 }
 0x267   : > { %v5662_v49 = vcombine.low %v1390_v20, %v1394_v23 }
 0x268   : > { %v937_v27 = vrot.slane %v909_v1, 4 }
 0x269   : > { %4291 = vmatpush1.bf16.msra.mxu0 %v5612_v11  ;;  %4455 = vmatpush1.bf16.msra.mxu1 %v5614_v50  ;;  %v7089_v11 = vpack.c.bf16 %v1098_v63, %v1098_v63  ;;  %v5646_v50 = vcombine.low %v1374_v62, %v1378_v52  ;;  %v5670_v62 = vcombine.low %v1398_v37, %v1402_v39 }
 0x26a   : > { %4292 = vmatprep.subr.bf16.mxu0 %v5621_v14  ;;  %4456 = vmatprep.subr.bf16.mxu1 %v5623_v2  ;;  %v5653_v14 = vcombine.high %v1381_v33, %v1385_v6  ;;  %v1389_v2 = vld [vmem:[%s6786_s30 + $0x8c0] sm:$0xff]  ;;  %v938_v26 = vadd.f32 %v937_v27, %v909_v1 }
 0x26b   : > { %v5661_v32 = vcombine.high %v1389_v2, %v1393_v19  ;;  %v5660_v41 = vcombine.low %v1389_v2, %v1393_v19  ;;  %v1426_v2 = vld [vmem:[%s6786_s30 + $0x9e8] sm:$0xff] }
 0x26c   : > { %v939_v40 = vrot.slane %v938_v26, 2 }
 0x26d   : > { %4293 = vmatpush1.bf16.msra.mxu0 %v5620_v34  ;;  %4457 = vmatpush1.bf16.msra.mxu1 %v5622_v43  ;;  %v5663_v34 = vcombine.high %v1390_v20, %v1394_v23  ;;  %v1397_v43 = vld [vmem:[%s6786_s30 + $0x900] sm:$0xff] }
 0x26e   : > { %4294 = vmatprep.subr.bf16.mxu0 %v5629_v35  ;;  %4458 = vmatprep.subr.bf16.mxu1 %v5631_v36  ;;  %v956_v35 = vadd.f32 %v955_v16, %v912_v5  ;;  %v1401_v36 = vld [vmem:[%s6786_s30 + $0x920] sm:$0xff]  ;;  %v940_v61 = vadd.f32 %v939_v40, %v938_v26 }
 0x26f   : > { %v5669_v51 = vcombine.high %v1397_v43, %v1401_v36  ;;  %v5668_v7 = vcombine.low %v1397_v43, %v1401_v36  ;;  %v1434_v43 = vld [vmem:[%s6786_s30 + $0xa28] sm:$0xff]  ;;  %v7125_v36 = vadd.f32 %v6919_v30, %v579_v44 }
 0x270   : > { %v941_v33 = vrot.slane %v940_v61, 1  ;;  %v1466_v44 = vld [vmem:[%s6786_s30 + $0xb28] sm:$0xff] }
 0x271   : > { %4295 = vmatpush1.bf16.msra.mxu0 %v5628_v55  ;;  %4459 = vmatpush1.bf16.msra.mxu1 %v5630_v56  ;;  %v1405_v55 = vld [vmem:[%s6786_s30 + $0x940] sm:$0xff]  ;;  %v957_v56 = vrot.slane %v956_v35, 2  ;;  %v876_v30 = vrot.slane %v7125_v36, 4 }
 0x272   : > { %4305 = vmatprep.subr.bf16.mxu0 %v5637_v59  ;;  %4469 = vmatprep.subr.bf16.mxu1 %v5639_v25  ;;  %v1406_v59 = vld [vmem:[%s6786_s30 + $0x948] sm:$0xff]  ;;  %v5677_v52 = vcombine.high %v1405_v55, %v1409_v58  ;;  %v5676_v5 = vcombine.low %v1405_v55, %v1409_v58  ;;  %v942_v19 = vadd.f32 %v941_v33, %v940_v61 }
 0x273   : > { %v1410_v25 = vld [vmem:[%s6786_s30 + $0x968] sm:$0xff]  ;;  %v958_v1 = vadd.f32 %v957_v56, %v956_v35 }
 0x274   : > { %4297 = vmatmul.mubr.bf16.vlgmr.msra.gmra.mrb[8].mxu0 %v7081_v42  ;;  %4461 = vmatmul.mubr.bf16.vlgmr.msra.gmra.mrb[8].mxu1 %v7081_v42  ;;  %v5679_v63 = vcombine.high %v1406_v59, %v1410_v25  ;;  %v5678_v6 = vcombine.low %v1406_v59, %v1410_v25  ;;  %v965_v35 = vmul.f32 0.125, %v942_v19  ;;  %v1442_v55 = vld [vmem:[%s6786_s30 + $0xa68] sm:$0xff]  ;;  %v1465_v19 = vld [vmem:[%s6786_s30 + $0xb20] sm:$0xff] }
 0x275   : > { %4306 = vmatpush1.bf16.msra.mxu0 %v5636_v0  ;;  %4470 = vmatpush1.bf16.msra.mxu1 %v5638_v3  ;;  %v1413_v0 = vld [vmem:[%s6786_s30 + $0x980] sm:$0xff] }
 0x276   : > { %4307 = vmatprep.subr.bf16.mxu0 %v5645_v4  ;;  %4471 = vmatprep.subr.bf16.mxu1 %v5647_v60  ;;  %v1417_v3 = vld [vmem:[%s6786_s30 + $0x9a0] sm:$0xff]  ;;  %v1414_v4 = vld [vmem:[%s6786_s30 + $0x988] sm:$0xff]  ;;  %v973_v56 = vadd.f32 1e-05, %v965_v35 }
 0x277   : > { %4337 = vmatprep.mubr.bf16.mxu0 %v7089_v11  ;;  %4501 = vmatprep.mubr.bf16.mxu1 %v7089_v11  ;;  %v1418_v60 = vld [vmem:[%s6786_s30 + $0x9a8] sm:$0xff]  ;;  %v5685_v9 = vcombine.high %v1413_v0, %v1417_v3  ;;  %v5684_v16 = vcombine.low %v1413_v0, %v1417_v3  ;;  %v1473_v35 = vld [vmem:[%s6786_s30 + $0xb60] sm:$0xff] }
 0x278   : > { %v5687_v27 = vcombine.high %v1414_v4, %v1418_v60  ;;  %v5686_v20 = vcombine.low %v1414_v4, %v1418_v60  ;;  %v1450_v0 = vld [vmem:[%s6786_s30 + $0xaa8] sm:$0xff]  ;;  %6073 = vrsqrt.f32 %v973_v56 }
 0x279   : > { %4308 = vmatpush1.bf16.msra.mxu0 %v5644_v12  ;;  %4472 = vmatpush1.bf16.msra.mxu1 %v5646_v50  ;;  %v959_v12 = vrot.slane %v958_v1, 1  ;;  %v1421_v50 = vld [vmem:[%s6786_s30 + $0x9c0] sm:$0xff] }
 0x27a   : > { %4309 = vmatprep.subr.bf16.mxu0 %v5653_v14  ;;  %4473 = vmatprep.subr.bf16.mxu1 %v5655_v15  ;;  %v1425_v14 = vld [vmem:[%s6786_s30 + $0x9e0] sm:$0xff]  ;;  %v1422_v15 = vld [vmem:[%s6786_s30 + $0x9c8] sm:$0xff] }
 0x27b   : > { %v960_v23 = vadd.f32 %v959_v12, %v958_v1  ;;  %v5693_v26 = vcombine.high %v1421_v50, %v1425_v14  ;;  %v5692_v46 = vcombine.low %v1421_v50, %v1425_v14  ;;  %v5694_v37 = vcombine.low %v1422_v15, %v1426_v2 }
 0x27c   : > { %v877_v1 = vadd.f32 %v876_v30, %v7125_v36  ;;  %v1477_v30 = vld [vmem:[%s6786_s30 + $0xb80] sm:$0xff] }
 0x27d   : > { %4310 = vmatpush1.bf16.msra.mxu0 %v5652_v29  ;;  %4474 = vmatpush1.bf16.msra.mxu1 %v5654_v31  ;;  %v5695_v29 = vcombine.high %v1422_v15, %v1426_v2  ;;  %v1429_v31 = vld [vmem:[%s6786_s30 + $0xa00] sm:$0xff]  ;;  %v968_v39 = vmul.f32 0.125, %v960_v23 }
 0x27e   : > { %4311 = vmatprep.subr.bf16.mxu0 %v5661_v32  ;;  %4475 = vmatprep.subr.bf16.mxu1 %v5663_v34  ;;  %v1433_v32 = vld [vmem:[%s6786_s30 + $0xa20] sm:$0xff]  ;;  %v1430_v34 = vld [vmem:[%s6786_s30 + $0xa08] sm:$0xff]  ;;  %v878_v12 = vrot.slane %v877_v1, 2 }
 0x27f   : > { %v5701_v40 = vcombine.high %v1429_v31, %v1433_v32  ;;  %v5700_v58 = vcombine.low %v1429_v31, %v1433_v32  ;;  %v5702_v59 = vcombine.low %v1430_v34, %v1434_v43  ;;  %v976_v25 = vadd.f32 1e-05, %v968_v39 }
 0x280   : > { %v879_v23 = vadd.f32 %v878_v12, %v877_v1 }
 0x281   : > { %4312 = vmatpush1.bf16.msra.mxu0 %v5660_v41  ;;  %4476 = vmatpush1.bf16.msra.mxu1 %v5662_v49  ;;  %v5703_v41 = vcombine.high %v1430_v34, %v1434_v43  ;;  %v1437_v49 = vld [vmem:[%s6786_s30 + $0xa40] sm:$0xff]  ;;  %6075 = vrsqrt.f32 %v976_v25 }
 0x282   : > { %4313 = vmatprep.subr.bf16.mxu0 %v5669_v51  ;;  %4477 = vmatprep.subr.bf16.mxu1 %v5671_v53  ;;  %v1441_v51 = vld [vmem:[%s6786_s30 + $0xa60] sm:$0xff]  ;;  %v1438_v53 = vld [vmem:[%s6786_s30 + $0xa48] sm:$0xff]  ;;  %v6074_v43 = vpop.eup %6073 }
 0x283   : > { %v5709_v61 = vcombine.high %v1437_v49, %v1441_v51  ;;  %v5708_v3 = vcombine.low %v1437_v49, %v1441_v51  ;;  %v5710_v4 = vcombine.low %v1438_v53, %v1442_v55  ;;  %v1469_v34 = vld [vmem:[%s6786_s30 + $0xb40] sm:$0xff] }
 0x284   : > { %v1481_v25 = vld [vmem:[%s6786_s30 + $0xba0] sm:$0xff] }
 0x285   : > { %4314 = vmatpush1.bf16.msra.mxu0 %v5668_v7  ;;  %4478 = vmatpush1.bf16.msra.mxu1 %v5670_v62  ;;  %v5711_v7 = vcombine.high %v1438_v53, %v1442_v55  ;;  %v1445_v62 = vld [vmem:[%s6786_s30 + $0xa80] sm:$0xff]  ;;  %v989_v53 = vmul.f32 %v6074_v43, %v7070_v54  ;;  %v5741_v55 = vcombine.high %v1469_v34, %v1473_v35  ;;  %v1502_v43 = vld [vmem:[%s6786_s30 + $0xc48] sm:$0xff] }
 0x286   : > { %4315 = vmatprep.subr.bf16.mxu0 %v5677_v52  ;;  %4479 = vmatprep.subr.bf16.mxu1 %v5679_v63  ;;  %v1449_v52 = vld [vmem:[%s6786_s30 + $0xaa0] sm:$0xff]  ;;  %v1446_v63 = vld [vmem:[%s6786_s30 + $0xa88] sm:$0xff]  ;;  %v1064_v54 = vrot.slane %v6933_v28, %v7000_v13 }
 0x287   : > { %v5717_v60 = vcombine.high %v1445_v62, %v1449_v52  ;;  %v5719_v33 = vcombine.high %v1446_v63, %v1450_v0  ;;  %v5716_v50 = vcombine.low %v1445_v62, %v1449_v52  ;;  %v5718_v14 = vcombine.low %v1446_v63, %v1450_v0 }
 0x288   : > { %v5740_v52 = vcombine.low %v1469_v34, %v1473_v35  ;;  %v1505_v34 = vld [vmem:[%s6786_s30 + $0xc60] sm:$0xff]  ;;  %v1506_v35 = vld [vmem:[%s6786_s30 + $0xc68] sm:$0xff] }
 0x289   : > { %4316 = vmatpush1.bf16.msra.mxu0 %v5676_v5  ;;  %4480 = vmatpush1.bf16.msra.mxu1 %v5678_v6  ;;  %v1453_v5 = vld [vmem:[%s6786_s30 + $0xac0] sm:$0xff] }
 0x28a   : > { %4317 = vmatprep.subr.bf16.mxu0 %v5685_v9  ;;  %4481 = vmatprep.subr.bf16.mxu1 %v5687_v27  ;;  %v1457_v6 = vld [vmem:[%s6786_s30 + $0xae0] sm:$0xff]  ;;  %v1454_v9 = vld [vmem:[%s6786_s30 + $0xac8] sm:$0xff] }
 0x28b   : > { %v1458_v27 = vld [vmem:[%s6786_s30 + $0xae8] sm:$0xff]  ;;  %v5725_v15 = vcombine.high %v1453_v5, %v1457_v6  ;;  %v6076_v39 = vpop.eup %6075 }
 0x28c   : > { %v5727_v2 = vcombine.high %v1454_v9, %v1458_v27 }
 0x28d   : > { %4318 = vmatpush1.bf16.msra.mxu0 %v5684_v16  ;;  %4482 = vmatpush1.bf16.msra.mxu1 %v5686_v20  ;;  %v1461_v16 = vld [vmem:[%s6786_s30 + $0xb00] sm:$0xff]  ;;  %v1462_v20 = vld [vmem:[%s6786_s30 + $0xb08] sm:$0xff] }
 0x28e   : > { %4319 = vmatprep.subr.bf16.mxu0 %v5693_v26  ;;  %4483 = vmatprep.subr.bf16.mxu1 %v5695_v29  ;;  %v5724_v26 = vcombine.low %v1453_v5, %v1457_v6  ;;  %v5726_v29 = vcombine.low %v1454_v9, %v1458_v27  ;;  %v5733_v31 = vcombine.high %v1461_v16, %v1465_v19 }
 0x28f   : > { %v5735_v32 = vcombine.high %v1462_v20, %v1466_v44  ;;  %v5732_v49 = vcombine.low %v1461_v16, %v1465_v19  ;;  %v5734_v51 = vcombine.low %v1462_v20, %v1466_v44  ;;  %v1076_v5 = vrot.slane %v6933_v28, %v7005_v22  ;;  %v1494_v16 = vld [vmem:[%s6786_s30 + $0xc08] sm:$0xff] }
 0x290   : > { %v5748_v9 = vcombine.low %v1477_v30, %v1481_v25  ;;  %v1498_v19 = vld [vmem:[%s6786_s30 + $0xc28] sm:$0xff] }
 0x291   : > { %4320 = vmatpush1.bf16.msra.mxu0 %v5692_v46  ;;  %4484 = vmatpush1.bf16.msra.mxu1 %v5694_v37  ;;  %v1470_v46 = vld [vmem:[%s6786_s30 + $0xb48] sm:$0xff] }
 0x292   : > { %4321 = vmatprep.subr.bf16.mxu0 %v5701_v40  ;;  %4485 = vmatprep.subr.bf16.mxu1 %v5703_v41  ;;  %v1474_v37 = vld [vmem:[%s6786_s30 + $0xb68] sm:$0xff]  ;;  %v1014_v40 = vrot.slane %v6931_v24, %v7000_v13  ;;  %v880_v41 = vrot.slane %v879_v23, 1 }
 0x293   : > { %v5743_v56 = vcombine.high %v1470_v46, %v1474_v37  ;;  %v5742_v63 = vcombine.low %v1470_v46, %v1474_v37 }
 0x294   : > { %v881_v62 = vadd.f32 %v880_v41, %v879_v23  ;;  %v1039_v0 = vmul.f32 %v1014_v40, %v989_v53  ;;  %v1513_v53 = vld [vmem:[%s6786_s30 + $0xca0] sm:$0xff] }
 0x295   : > { %4322 = vmatpush1.bf16.msra.mxu0 %v5700_v58  ;;  %4486 = vmatpush1.bf16.msra.mxu1 %v5702_v59  ;;  %v992_v58 = vmul.f32 %v6076_v39, %v7075_v57  ;;  %v1026_v59 = vrot.slane %v6931_v24, %v7005_v22  ;;  %v5749_v57 = vcombine.high %v1477_v30, %v1481_v25  ;;  %v1485_v24 = vld [vmem:[%s6786_s30 + $0xbc0] sm:$0xff] }
 0x296   : > { %4323 = vmatprep.subr.bf16.mxu0 %v5709_v61  ;;  %4487 = vmatprep.subr.bf16.mxu1 %v5711_v7  ;;  %v1478_v61 = vld [vmem:[%s6786_s30 + $0xb88] sm:$0xff]  ;;  %v895_v6 = vmul.f32 0.125, %v881_v62  ;;  %v5766_v39 = vcombine.low %v1494_v16, %v1498_v19  ;;  %v5774_v25 = vcombine.low %v1502_v43, %v1506_v35  ;;  %v1521_v62 = vld [vmem:[%s6786_s30 + $0xce0] sm:$0xff] }
 0x297   : > { %v1482_v7 = vld [vmem:[%s6786_s30 + $0xba8] sm:$0xff] }
 0x298   : > { %v5751_v1 = vcombine.high %v1478_v61, %v1482_v7  ;;  %v5750_v27 = vcombine.low %v1478_v61, %v1482_v7  ;;  %v7172_v28 = vsub.f32 %v7125_v36, %v895_v6 }
 0x299   : > { %4324 = vmatpush1.bf16.msra.mxu0 %v5708_v3  ;;  %4488 = vmatpush1.bf16.msra.mxu1 %v5710_v4  ;;  %v1042_v3 = vmul.f32 %v1026_v59, %v992_v58  ;;  %v1489_v4 = vld [vmem:[%s6786_s30 + $0xbe0] sm:$0xff] }
 0x29a   : > { %4325 = vmatprep.subr.bf16.mxu0 %v5717_v60  ;;  %4489 = vmatprep.subr.bf16.mxu1 %v5719_v33  ;;  %v1486_v60 = vld [vmem:[%s6786_s30 + $0xbc8] sm:$0xff]  ;;  %v5757_v12 = vcombine.high %v1485_v24, %v1489_v4  ;;  %v5756_v44 = vcombine.low %v1485_v24, %v1489_v4  ;;  %v911_v36 = vmul.f32 %v7172_v28, %v7172_v28  ;;  %v1525_v4 = vld [vmem:[%s6786_s30 + $0xd00] sm:$0xff] }
 0x29b   : > { %v1490_v33 = vld [vmem:[%s6786_s30 + $0xbe8] sm:$0xff]  ;;  %v1092_v20 = vadd.f32 %v1076_v5, %v1042_v3 }
 0x29c   : > { %v5758_v23 = vcombine.low %v1486_v60, %v1490_v33  ;;  %v949_v58 = vrot.slane %v911_v36, 4  ;;  %v1530_v5 = vld [vmem:[%s6786_s30 + $0xd28] sm:$0xff] }
 0x29d   : > { %4326 = vmatpush1.bf16.msra.mxu0 %v5716_v50  ;;  %4490 = vmatpush1.bf16.msra.mxu1 %v5718_v14  ;;  %v5759_v50 = vcombine.high %v1486_v60, %v1490_v33  ;;  %v1089_v14 = vadd.f32 %v1064_v54, %v1039_v0  ;;  %v1100_v46 = vmax.f32 %v1092_v20, 0.0  ;;  %v1517_v54 = vld [vmem:[%s6786_s30 + $0xcc0] sm:$0xff]  ;;  %v1526_v33 = vld [vmem:[%s6786_s30 + $0xd08] sm:$0xff] }
 0x29e   : > { %4327 = vmatprep.subr.bf16.mxu0 %v5725_v15  ;;  %4491 = vmatprep.subr.bf16.mxu1 %v5727_v2  ;;  %v1493_v15 = vld [vmem:[%s6786_s30 + $0xc00] sm:$0xff]  ;;  %v950_v0 = vadd.f32 %v949_v58, %v911_v36  ;;  %v5789_v24 = vcombine.high %v1517_v54, %v1521_v62 }
 0x29f   : > { %v1497_v2 = vld [vmem:[%s6786_s30 + $0xc20] sm:$0xff]  ;;  %v7186_v30 = vpack.c.bf16 %v1100_v46, %v1100_v46 }
 0x2a0   : > { %v5764_v37 = vcombine.low %v1493_v15, %v1497_v2  ;;  %v1529_v60 = vld [vmem:[%s6786_s30 + $0xd20] sm:$0xff]  ;;  %v951_v6 = vrot.slane %v950_v0, 2 }
 0x2a1   : > { %4328 = vmatpush1.bf16.msra.mxu0 %v5724_v26  ;;  %4492 = vmatpush1.bf16.msra.mxu1 %v5726_v29  ;;  %v1097_v26 = vmax.f32 %v1089_v14, 0.0  ;;  %v5765_v29 = vcombine.high %v1493_v15, %v1497_v2  ;;  %v1533_v14 = vld [vmem:[%s6786_s30 + $0xd40] sm:$0xff]  ;;  %v1534_v2 = vld [vmem:[%s6786_s30 + $0xd48] sm:$0xff]  ;;  %v5796_v20 = vcombine.low %v1525_v4, %v1529_v60 }
 0x2a2   : > { %4329 = vmatprep.subr.bf16.mxu0 %v5733_v31  ;;  %4493 = vmatprep.subr.bf16.mxu1 %v5735_v32  ;;  %v5767_v31 = vcombine.high %v1494_v16, %v1498_v19  ;;  %v1501_v32 = vld [vmem:[%s6786_s30 + $0xc40] sm:$0xff]  ;;  %v1538_v16 = vld [vmem:[%s6786_s30 + $0xd68] sm:$0xff]  ;;  %v952_v19 = vadd.f32 %v951_v6, %v950_v0 }
 0x2a3   : > { %v7180_v40 = vpack.c.bf16 %v1097_v26, %v1097_v26  ;;  %v5773_v41 = vcombine.high %v1501_v32, %v1505_v34  ;;  %v5772_v59 = vcombine.low %v1501_v32, %v1505_v34  ;;  %v1537_v15 = vld [vmem:[%s6786_s30 + $0xd60] sm:$0xff]  ;;  %v5807_v26 = vcombine.high %v1534_v2, %v1538_v16  ;;  %v1542_v32 = vld [vmem:[%s6786_s30 + $0xd88] sm:$0xff] }
 0x2a4   : > { %v1546_v34 = vld [vmem:[%s6786_s30 + $0xda8] sm:$0xff]  ;;  %v5806_v46 = vcombine.low %v1534_v2, %v1538_v16 }
 0x2a5   : > { %4330 = vmatpush1.bf16.msra.mxu0 %v5732_v49  ;;  %4494 = vmatpush1.bf16.msra.mxu1 %v5734_v51  ;;  %v5775_v49 = vcombine.high %v1502_v43, %v1506_v35  ;;  %v1509_v51 = vld [vmem:[%s6786_s30 + $0xc80] sm:$0xff]  ;;  %v953_v43 = vrot.slane %v952_v19, 1  ;;  %v5804_v35 = vcombine.low %v1533_v14, %v1537_v15 }
 0x2a6   : > { %4331 = vmatprep.subr.bf16.mxu0 %v5741_v55  ;;  %4495 = vmatprep.subr.bf16.mxu1 %v5743_v56  ;;  %v1510_v55 = vld [vmem:[%s6786_s30 + $0xc88] sm:$0xff]  ;;  %v5781_v61 = vcombine.high %v1509_v51, %v1513_v53 }
 0x2a7   : > { %v1514_v56 = vld [vmem:[%s6786_s30 + $0xca8] sm:$0xff] }
 0x2a8   : > { %v5783_v7 = vcombine.high %v1510_v55, %v1514_v56 }
 0x2a9   : > { %4332 = vmatpush1.bf16.msra.mxu0 %v5740_v52  ;;  %4496 = vmatpush1.bf16.msra.mxu1 %v5742_v63  ;;  %v1518_v52 = vld [vmem:[%s6786_s30 + $0xcc8] sm:$0xff] }
 0x2aa   : > { %4333 = vmatprep.subr.bf16.mxu0 %v5749_v57  ;;  %4497 = vmatprep.subr.bf16.mxu1 %v5751_v1  ;;  %v1522_v63 = vld [vmem:[%s6786_s30 + $0xce8] sm:$0xff]  ;;  %v5780_v57 = vcombine.low %v1509_v51, %v1513_v53  ;;  %v5782_v1 = vcombine.low %v1510_v55, %v1514_v56  ;;  %v954_v53 = vadd.f32 %v953_v43, %v952_v19  ;;  %v1589_v43 = vld [vmem:[%s6786_s30 + $0xf00] sm:$0xff] }
 0x2ab   : > { %v5791_v3 = vcombine.high %v1518_v52, %v1522_v63  ;;  %v1554_v51 = vld [vmem:[%s6786_s30 + $0xde8] sm:$0xff]  ;;  %v5814_v56 = vcombine.low %v1542_v32, %v1546_v34 }
 0x2ad   : > { %4334 = vmatpush1.bf16.msra.mxu0 %v5748_v9  ;;  %4498 = vmatpush1.bf16.msra.mxu1 %v5750_v27  ;;  %v5788_v9 = vcombine.low %v1517_v54, %v1521_v62  ;;  %v5790_v27 = vcombine.low %v1518_v52, %v1522_v63  ;;  %v1562_v54 = vld [vmem:[%s6786_s30 + $0xe28] sm:$0xff]  ;;  %v967_v62 = vmul.f32 0.125, %v954_v53 }
 0x2ae   : > { %4335 = vmatprep.subr.bf16.mxu0 %v5757_v12  ;;  %4499 = vmatprep.subr.bf16.mxu1 %v5759_v50  ;;  %v5797_v12 = vcombine.high %v1525_v4, %v1529_v60  ;;  %v5799_v50 = vcombine.high %v1526_v33, %v1530_v5  ;;  %v1570_v4 = vld [vmem:[%s6786_s30 + $0xe68] sm:$0xff] }
 0x2af   : > { %v975_v60 = vadd.f32 1e-05, %v967_v62 }
 0x2b1   : > { %4336 = vmatpush1.bf16.msra.mxu0 %v5756_v44  ;;  %4500 = vmatpush1.bf16.msra.mxu1 %v5758_v23  ;;  %v5798_v44 = vcombine.low %v1526_v33, %v1530_v5  ;;  %v5805_v23 = vcombine.high %v1533_v14, %v1537_v15  ;;  %v1578_v14 = vld [vmem:[%s6786_s30 + $0xea8] sm:$0xff]  ;;  %6077 = vrsqrt.f32 %v975_v60 }
 0x2b2   : > { %4346 = vmatprep.subr.bf16.mxu0 %v5765_v29  ;;  %4510 = vmatprep.subr.bf16.mxu1 %v5767_v31  ;;  %v1541_v29 = vld [vmem:[%s6786_s30 + $0xd80] sm:$0xff] }
 0x2b3   : > { %v1545_v31 = vld [vmem:[%s6786_s30 + $0xda0] sm:$0xff] }
 0x2b4   : > { %4338 = vmatmul.mubr.bf16.vlgmr.msra.gmra.mrb[8].mxu0 %v7180_v40  ;;  %4502 = vmatmul.mubr.bf16.vlgmr.msra.gmra.mrb[8].mxu1 %v7180_v40  ;;  %v5813_v36 = vcombine.high %v1541_v29, %v1545_v31  ;;  %v5812_v55 = vcombine.low %v1541_v29, %v1545_v31 }
 0x2b5   : > { %4347 = vmatpush1.bf16.msra.mxu0 %v5764_v37  ;;  %4511 = vmatpush1.bf16.msra.mxu1 %v5766_v39  ;;  %v5815_v37 = vcombine.high %v1542_v32, %v1546_v34  ;;  %v1549_v39 = vld [vmem:[%s6786_s30 + $0xdc0] sm:$0xff] }
 0x2b6   : > { %4348 = vmatprep.subr.bf16.mxu0 %v5773_v41  ;;  %4512 = vmatprep.subr.bf16.mxu1 %v5775_v49  ;;  %v1553_v41 = vld [vmem:[%s6786_s30 + $0xde0] sm:$0xff]  ;;  %v1550_v49 = vld [vmem:[%s6786_s30 + $0xdc8] sm:$0xff] }
 0x2b7   : > { %4378 = vmatprep.mubr.bf16.mxu0 %v7186_v30  ;;  %4542 = vmatprep.mubr.bf16.mxu1 %v7186_v30  ;;  %v5821_v58 = vcombine.high %v1549_v39, %v1553_v41  ;;  %v5820_v52 = vcombine.low %v1549_v39, %v1553_v41  ;;  %v5822_v63 = vcombine.low %v1550_v49, %v1554_v51 }
 0x2b9   : > { %4349 = vmatpush1.bf16.msra.mxu0 %v5772_v59  ;;  %4513 = vmatpush1.bf16.msra.mxu1 %v5774_v25  ;;  %v5823_v59 = vcombine.high %v1550_v49, %v1554_v51  ;;  %v1557_v25 = vld [vmem:[%s6786_s30 + $0xe00] sm:$0xff] }
 0x2ba   : > { %4350 = vmatprep.subr.bf16.mxu0 %v5781_v61  ;;  %4514 = vmatprep.subr.bf16.mxu1 %v5783_v7  ;;  %v1561_v61 = vld [vmem:[%s6786_s30 + $0xe20] sm:$0xff]  ;;  %v1558_v7 = vld [vmem:[%s6786_s30 + $0xe08] sm:$0xff] }
 0x2bb   : > { %v5829_v0 = vcombine.high %v1557_v25, %v1561_v61  ;;  %v5828_v33 = vcombine.low %v1557_v25, %v1561_v61  ;;  %v5830_v5 = vcombine.low %v1558_v7, %v1562_v54  ;;  %v1597_v51 = vld [vmem:[%s6786_s30 + $0xf40] sm:$0xff]  ;;  %v6078_v53 = vpop.eup %6077 }
 0x2bd   : > { %4351 = vmatpush1.bf16.msra.mxu0 %v5780_v57  ;;  %4515 = vmatpush1.bf16.msra.mxu1 %v5782_v1  ;;  %v5831_v57 = vcombine.high %v1558_v7, %v1562_v54  ;;  %v1565_v1 = vld [vmem:[%s6786_s30 + $0xe40] sm:$0xff]  ;;  %v991_v54 = vmul.f32 %v6078_v53, %v7172_v28  ;;  %v1127_v53 = vld [vmem:[%s6786_s30 + $0x90] sm:$0xff] }
 0x2be   : > { %4352 = vmatprep.subr.bf16.mxu0 %v5789_v24  ;;  %4516 = vmatprep.subr.bf16.mxu1 %v5791_v3  ;;  %v1569_v24 = vld [vmem:[%s6786_s30 + $0xe60] sm:$0xff]  ;;  %v1566_v3 = vld [vmem:[%s6786_s30 + $0xe48] sm:$0xff] }
 0x2bf   : > { %v5837_v6 = vcombine.high %v1565_v1, %v1569_v24  ;;  %v5836_v15 = vcombine.low %v1565_v1, %v1569_v24  ;;  %v5838_v2 = vcombine.low %v1566_v3, %v1570_v4  ;;  %v1610_v1 = vld [vmem:[%s6786_s30 + $0xfa8] sm:$0xff] }
 0x2c1   : > { %4353 = vmatpush1.bf16.msra.mxu0 %v5788_v9  ;;  %4517 = vmatpush1.bf16.msra.mxu1 %v5790_v27  ;;  %v5839_v9 = vcombine.high %v1566_v3, %v1570_v4  ;;  %v1573_v27 = vld [vmem:[%s6786_s30 + $0xe80] sm:$0xff]  ;;  %v6096_v4 = vld [vmem:[#allocation9] sm:$0xff] }
 0x2c2   : > { %4354 = vmatprep.subr.bf16.mxu0 %v5797_v12  ;;  %4518 = vmatprep.subr.bf16.mxu1 %v5799_v50  ;;  %v1577_v12 = vld [vmem:[%s6786_s30 + $0xea0] sm:$0xff]  ;;  %v1574_v50 = vld [vmem:[%s6786_s30 + $0xe88] sm:$0xff]  ;;  %v1072_v60 = vrot.slane %v6096_v4, %v7112_v38  ;;  %v1144_v4 = vld [vmem:[%s6786_s30 + $0x118] sm:$0xff] }
 0x2c3   : > { %v5845_v16 = vcombine.high %v1573_v27, %v1577_v12  ;;  %v5847_v19 = vcombine.high %v1574_v50, %v1578_v14  ;;  %v5844_v29 = vcombine.low %v1573_v27, %v1577_v12  ;;  %v5846_v31 = vcombine.low %v1574_v50, %v1578_v14  ;;  %v1614_v27 = vld [vmem:[%s6786_s30 + $0xfc8] sm:$0xff] }
 0x2c4   : > { %v1618_v12 = vld [vmem:[%s6786_s30 + $0xfe8] sm:$0xff] }
 0x2c5   : > { %4355 = vmatpush1.bf16.msra.mxu0 %v5796_v20  ;;  %4519 = vmatpush1.bf16.msra.mxu1 %v5798_v44  ;;  %v1581_v20 = vld [vmem:[%s6786_s30 + $0xec0] sm:$0xff] }
 0x2c6   : > { %4356 = vmatprep.subr.bf16.mxu0 %v5805_v23  ;;  %4520 = vmatprep.subr.bf16.mxu1 %v5807_v26  ;;  %v1585_v44 = vld [vmem:[%s6786_s30 + $0xee0] sm:$0xff]  ;;  %v1582_v23 = vld [vmem:[%s6786_s30 + $0xec8] sm:$0xff] }
 0x2c7   : > { %v1586_v26 = vld [vmem:[%s6786_s30 + $0xee8] sm:$0xff]  ;;  %v5853_v32 = vcombine.high %v1581_v20, %v1585_v44 }
 0x2c8   : > { %v5855_v34 = vcombine.high %v1582_v23, %v1586_v26  ;;  %v5854_v39 = vcombine.low %v1582_v23, %v1586_v26  ;;  %v1116_v23 = vld [vmem:[%s6786_s30 + $0x38] sm:$0xff] }
 0x2c9   : > { %4357 = vmatpush1.bf16.msra.mxu0 %v5804_v35  ;;  %4521 = vmatpush1.bf16.msra.mxu1 %v5806_v46  ;;  %v1593_v35 = vld [vmem:[%s6786_s30 + $0xf20] sm:$0xff]  ;;  %v1590_v46 = vld [vmem:[%s6786_s30 + $0xf08] sm:$0xff] }
 0x2ca   : > { %4358 = vmatprep.subr.bf16.mxu0 %v5813_v36  ;;  %4522 = vmatprep.subr.bf16.mxu1 %v5815_v37  ;;  %v1594_v36 = vld [vmem:[%s6786_s30 + $0xf28] sm:$0xff]  ;;  %v5852_v37 = vcombine.low %v1581_v20, %v1585_v44  ;;  %v5861_v41 = vcombine.high %v1589_v43, %v1593_v35  ;;  %v5860_v61 = vcombine.low %v1589_v43, %v1593_v35  ;;  %v1115_v20 = vld [vmem:[%s6786_s30 + $0x30] sm:$0xff]  ;;  %v1112_v44 = vld [vmem:[%s6786_s30 + $0x18] sm:$0xff] }
 0x2cb   : > { %v5863_v49 = vcombine.high %v1590_v46, %v1594_v36  ;;  %v5862_v7 = vcombine.low %v1590_v46, %v1594_v36  ;;  %v1119_v43 = vld [vmem:[%s6786_s30 + $0x50] sm:$0xff]  ;;  %v1120_v46 = vld [vmem:[%s6786_s30 + $0x58] sm:$0xff] }
 0x2cc   : > { %v1123_v35 = vld [vmem:[%s6786_s30 + $0x70] sm:$0xff]  ;;  %v1124_v36 = vld [vmem:[%s6786_s30 + $0x78] sm:$0xff] }
 0x2cd   : > { %4359 = vmatpush1.bf16.msra.mxu0 %v5812_v55  ;;  %4523 = vmatpush1.bf16.msra.mxu1 %v5814_v56  ;;  %v1601_v55 = vld [vmem:[%s6786_s30 + $0xf60] sm:$0xff]  ;;  %v1598_v56 = vld [vmem:[%s6786_s30 + $0xf48] sm:$0xff] }
 0x2ce   : > { %4360 = vmatprep.subr.bf16.mxu0 %v5821_v58  ;;  %4524 = vmatprep.subr.bf16.mxu1 %v5823_v59  ;;  %v1602_v58 = vld [vmem:[%s6786_s30 + $0xf68] sm:$0xff]  ;;  %v6095_v59 = vld [vmem:[#allocation7] sm:$0xff]  ;;  %v5869_v62 = vcombine.high %v1597_v51, %v1601_v55  ;;  %v5868_v24 = vcombine.low %v1597_v51, %v1601_v55  ;;  %v5395_v51 = vcombine.high %v1120_v46, %v1124_v36 }
 0x2cf   : > { %v1022_v25 = vrot.slane %v6095_v59, %v7112_v38  ;;  %v5870_v3 = vcombine.low %v1598_v56, %v1602_v58  ;;  %v1131_v55 = vld [vmem:[%s6786_s30 + $0xb0] sm:$0xff]  ;;  %v5392_v59 = vcombine.low %v1119_v43, %v1123_v35 }
 0x2d1   : > { %4361 = vmatpush1.bf16.msra.mxu0 %v5820_v52  ;;  %4525 = vmatpush1.bf16.msra.mxu1 %v5822_v63  ;;  %v5871_v52 = vcombine.high %v1598_v56, %v1602_v58  ;;  %v1605_v63 = vld [vmem:[%s6786_s30 + $0xf80] sm:$0xff]  ;;  %v1041_v28 = vmul.f32 %v1022_v25, %v991_v54  ;;  %v1128_v56 = vld [vmem:[%s6786_s30 + $0x98] sm:$0xff]  ;;  %v5394_v25 = vcombine.low %v1120_v46, %v1124_v36  ;;  %v1135_v54 = vld [vmem:[%s6786_s30 + $0xd0] sm:$0xff] }
 0x2d2   : > { %4362 = vmatprep.subr.bf16.mxu0 %v5829_v0  ;;  %4526 = vmatprep.subr.bf16.mxu1 %v5831_v57  ;;  %v1609_v0 = vld [vmem:[%s6786_s30 + $0xfa0] sm:$0xff]  ;;  %v1606_v57 = vld [vmem:[%s6786_s30 + $0xf88] sm:$0xff]  ;;  %v1132_v58 = vld [vmem:[%s6786_s30 + $0xb8] sm:$0xff] }
 0x2d3   : > { %v5876_v50 = vcombine.low %v1605_v63, %v1609_v0  ;;  %v5878_v14 = vcombine.low %v1606_v57, %v1610_v1  ;;  %v1172_v46 = vld [vmem:[%s6786_s30 + $0x1f8] sm:$0xff] }
 0x2d5   : > { %4363 = vmatpush1.bf16.msra.mxu0 %v5828_v33  ;;  %4527 = vmatpush1.bf16.msra.mxu1 %v5830_v5  ;;  %v5877_v33 = vcombine.high %v1605_v63, %v1609_v0  ;;  %v5879_v5 = vcombine.high %v1606_v57, %v1610_v1  ;;  %v1140_v63 = vld [vmem:[%s6786_s30 + $0xf8] sm:$0xff]  ;;  %v5400_v0 = vcombine.low %v1127_v53, %v1131_v55 }
 0x2d6   : > { %4364 = vmatprep.subr.bf16.mxu0 %v5837_v6  ;;  %4528 = vmatprep.subr.bf16.mxu1 %v5839_v9  ;;  %v1613_v6 = vld [vmem:[%s6786_s30 + $0xfc0] sm:$0xff]  ;;  %v5402_v57 = vcombine.low %v1128_v56, %v1132_v58 }
 0x2d7   : > { %v1617_v9 = vld [vmem:[%s6786_s30 + $0xfe0] sm:$0xff] }
 0x2d8   : > { %v5884_v26 = vcombine.low %v1613_v6, %v1617_v9 }
 0x2d9   : > { %4365 = vmatpush1.bf16.msra.mxu0 %v5836_v15  ;;  %4529 = vmatpush1.bf16.msra.mxu1 %v5838_v2  ;;  %v5885_v15 = vcombine.high %v1613_v6, %v1617_v9  ;;  %v5887_v2 = vcombine.high %v1614_v27, %v1618_v12  ;;  %v1151_v9 = vld [vmem:[%s6786_s30 + $0x150] sm:$0xff] }
 0x2da   : > { %4366 = vmatprep.subr.bf16.mxu0 %v5845_v16  ;;  %4530 = vmatprep.subr.bf16.mxu1 %v5847_v19  ;;  %v1091_v16 = vadd.f32 %v1072_v60, %v1041_v28  ;;  %v1111_v19 = vld [vmem:[%s6786_s30 + $0x10] sm:$0xff]  ;;  %v1148_v60 = vld [vmem:[%s6786_s30 + $0x138] sm:$0xff] }
 0x2db   : > { %v5419_v6 = vcombine.high %v1144_v4, %v1148_v60 }
 0x2dd   : > { %4367 = vmatpush1.bf16.msra.mxu0 %v5844_v29  ;;  %4531 = vmatpush1.bf16.msra.mxu1 %v5846_v31  ;;  %v5886_v29 = vcombine.low %v1614_v27, %v1618_v12  ;;  %v1099_v31 = vmax.f32 %v1091_v16, 0.0  ;;  %v1155_v27 = vld [vmem:[%s6786_s30 + $0x170] sm:$0xff]  ;;  %v1152_v12 = vld [vmem:[%s6786_s30 + $0x158] sm:$0xff] }
 0x2de   : > { %4368 = vmatprep.subr.bf16.mxu0 %v5853_v32  ;;  %4532 = vmatprep.subr.bf16.mxu1 %v5855_v34  ;;  %v5385_v32 = vcombine.high %v1111_v19, %v1115_v20  ;;  %v5387_v34 = vcombine.high %v1112_v44, %v1116_v23 }
 0x2e1   : > { %4369 = vmatpush1.bf16.msra.mxu0 %v5852_v37  ;;  %4533 = vmatpush1.bf16.msra.mxu1 %v5854_v39  ;;  %v5384_v37 = vcombine.low %v1111_v19, %v1115_v20  ;;  %v7255_v39 = vpack.c.bf16 %v1099_v31, %v1099_v31  ;;  %v1159_v19 = vld [vmem:[%s6786_s30 + $0x190] sm:$0xff] }
 0x2e2   : > { %4370 = vmatprep.subr.bf16.mxu0 %v5861_v41  ;;  %4534 = vmatprep.subr.bf16.mxu1 %v5863_v49  ;;  %v5386_v41 = vcombine.low %v1112_v44, %v1116_v23  ;;  %v5393_v49 = vcombine.high %v1119_v43, %v1123_v35  ;;  %v1163_v20 = vld [vmem:[%s6786_s30 + $0x1b0] sm:$0xff]  ;;  %v1160_v44 = vld [vmem:[%s6786_s30 + $0x198] sm:$0xff] }
 0x2e3   : > { %v1164_v23 = vld [vmem:[%s6786_s30 + $0x1b8] sm:$0xff]  ;;  %v5433_v31 = vcombine.high %v1159_v19, %v1163_v20  ;;  %v1171_v43 = vld [vmem:[%s6786_s30 + $0x1f0] sm:$0xff]  ;;  %v5432_v36 = vcombine.low %v1159_v19, %v1163_v20 }
 0x2e4   : > { %v1168_v35 = vld [vmem:[%s6786_s30 + $0x1d8] sm:$0xff]  ;;  %v1211_v19 = vld [vmem:[%s6786_s30 + $0x330] sm:$0xff] }
 0x2e5   : > { %4371 = vmatpush1.bf16.msra.mxu0 %v5860_v61  ;;  %4535 = vmatpush1.bf16.msra.mxu1 %v5862_v7  ;;  %v5401_v61 = vcombine.high %v1127_v53, %v1131_v55  ;;  %v5403_v7 = vcombine.high %v1128_v56, %v1132_v58  ;;  %v1179_v53 = vld [vmem:[%s6786_s30 + $0x230] sm:$0xff]  ;;  %v1176_v55 = vld [vmem:[%s6786_s30 + $0x218] sm:$0xff] }
 0x2e6   : > { %4372 = vmatprep.subr.bf16.mxu0 %v5869_v62  ;;  %4536 = vmatprep.subr.bf16.mxu1 %v5871_v52  ;;  %v1139_v62 = vld [vmem:[%s6786_s30 + $0xf0] sm:$0xff]  ;;  %v1136_v52 = vld [vmem:[%s6786_s30 + $0xd8] sm:$0xff] }
 0x2e7   : > { %v5411_v1 = vcombine.high %v1136_v52, %v1140_v63  ;;  %v5408_v28 = vcombine.low %v1135_v54, %v1139_v62  ;;  %v1180_v56 = vld [vmem:[%s6786_s30 + $0x238] sm:$0xff] }
 0x2e8   : > { %v1208_v20 = vld [vmem:[%s6786_s30 + $0x318] sm:$0xff] }
 0x2e9   : > { %4373 = vmatpush1.bf16.msra.mxu0 %v5868_v24  ;;  %4537 = vmatpush1.bf16.msra.mxu1 %v5870_v3  ;;  %v1143_v24 = vld [vmem:[%s6786_s30 + $0x110] sm:$0xff] }
 0x2ea   : > { %4374 = vmatprep.subr.bf16.mxu0 %v5877_v33  ;;  %4538 = vmatprep.subr.bf16.mxu1 %v5879_v5  ;;  %v1147_v3 = vld [vmem:[%s6786_s30 + $0x130] sm:$0xff]  ;;  %v5410_v33 = vcombine.low %v1136_v52, %v1140_v63  ;;  %v1188_v52 = vld [vmem:[%s6786_s30 + $0x278] sm:$0xff] }
 0x2eb   : > { %v5417_v5 = vcombine.high %v1143_v24, %v1147_v3 }
 0x2ed   : > { %4375 = vmatpush1.bf16.msra.mxu0 %v5876_v50  ;;  %4539 = vmatpush1.bf16.msra.mxu1 %v5878_v14  ;;  %v1156_v50 = vld [vmem:[%s6786_s30 + $0x178] sm:$0xff]  ;;  %v5416_v14 = vcombine.low %v1143_v24, %v1147_v3  ;;  %v1195_v24 = vld [vmem:[%s6786_s30 + $0x2b0] sm:$0xff] }
 0x2ee   : > { %4376 = vmatprep.subr.bf16.mxu0 %v5885_v15  ;;  %4540 = vmatprep.subr.bf16.mxu1 %v5887_v2  ;;  %v5418_v15 = vcombine.low %v1144_v4, %v1148_v60  ;;  %v5425_v2 = vcombine.high %v1151_v9, %v1155_v27  ;;  %v5427_v16 = vcombine.high %v1152_v12, %v1156_v50  ;;  %v1192_v3 = vld [vmem:[%s6786_s30 + $0x298] sm:$0xff] }
 0x2ef   : > { %v1196_v4 = vld [vmem:[%s6786_s30 + $0x2b8] sm:$0xff] }
 0x2f1   : > { %4377 = vmatpush1.bf16.msra.mxu0 %v5884_v26  ;;  %4541 = vmatpush1.bf16.msra.mxu1 %v5886_v29  ;;  %v5424_v26 = vcombine.low %v1151_v9, %v1155_v27  ;;  %v5426_v29 = vcombine.low %v1152_v12, %v1156_v50  ;;  %v1203_v9 = vld [vmem:[%s6786_s30 + $0x2f0] sm:$0xff]  ;;  %v1200_v27 = vld [vmem:[%s6786_s30 + $0x2d8] sm:$0xff] }
 0x2f2   : > { %4551 = vmatprep.subr.bf16.mxu0 %v5385_v32  ;;  %4715 = vmatprep.subr.bf16.mxu1 %v5387_v34  ;;  %v5435_v32 = vcombine.high %v1160_v44, %v1164_v23  ;;  %v1167_v34 = vld [vmem:[%s6786_s30 + $0x1d0] sm:$0xff]  ;;  %v1204_v12 = vld [vmem:[%s6786_s30 + $0x2f8] sm:$0xff] }
 0x2f3   : > { %v5440_v58 = vcombine.low %v1167_v34, %v1171_v43 }
 0x2f4   : > { %4379 = vmatmul.mubr.bf16.vlgmr.msra.gmra.mrb[8].mxu0 %v7255_v39  ;;  %4543 = vmatmul.mubr.bf16.vlgmr.msra.gmra.mrb[8].mxu1 %v7255_v39 }
 0x2f5   : > { %4552 = vmatpush1.bf16.msra.mxu0 %v5384_v37  ;;  %4583 = vmatprep.mubr.bf16.mxu0 %v6959_v8  ;;  %v5434_v37 = vcombine.low %v1160_v44, %v1164_v23  ;;  %v1212_v44 = vld [vmem:[%s6786_s30 + $0x338] sm:$0xff] }
 0x2f6   : > { %4716 = vmatpush1.bf16.msra.mxu1 %v5386_v41  ;;  %4747 = vmatprep.mubr.bf16.mxu1 %v6959_v8  ;;  %v5409_v8 = vcombine.high %v1135_v54, %v1139_v62  ;;  %v5441_v41 = vcombine.high %v1167_v34, %v1171_v43  ;;  %v1187_v54 = vld [vmem:[%s6786_s30 + $0x270] sm:$0xff]  ;;  %v1184_v62 = vld [vmem:[%s6786_s30 + $0x258] sm:$0xff] }
 0x2f7   : > { %4553 = vmatprep.subr.bf16.mxu0 %v5393_v49  ;;  %4717 = vmatprep.subr.bf16.mxu1 %v5395_v51  ;;  %v5443_v49 = vcombine.high %v1168_v35, %v1172_v46  ;;  %v1175_v51 = vld [vmem:[%s6786_s30 + $0x210] sm:$0xff]  ;;  %v1216_v43 = vld [vmem:[%s6786_s30 + $0x358] sm:$0xff] }
 0x2f8   : > { %v5448_v63 = vcombine.low %v1175_v51, %v1179_v53  ;;  %v1219_v34 = vld [vmem:[%s6786_s30 + $0x370] sm:$0xff] }
 0x2f9   : > { %4554 = vmatpush1.bf16.msra.mxu0 %v5392_v59  ;;  %v5442_v59 = vcombine.low %v1168_v35, %v1172_v46  ;;  %v1220_v35 = vld [vmem:[%s6786_s30 + $0x378] sm:$0xff] }
 0x2fa   : > { %4718 = vmatpush1.bf16.msra.mxu1 %v5394_v25  ;;  %4555 = vmatprep.subr.bf16.mxu0 %v5401_v61  ;;  %v5449_v25 = vcombine.high %v1175_v51, %v1179_v53  ;;  %v5451_v61 = vcombine.high %v1176_v55, %v1180_v56  ;;  %v1227_v51 = vld [vmem:[%s6786_s30 + $0x3b0] sm:$0xff]  ;;  %v1224_v53 = vld [vmem:[%s6786_s30 + $0x398] sm:$0xff] }
 0x2fb   : > { %4719 = vmatprep.subr.bf16.mxu1 %v5403_v7  ;;  %v1183_v7 = vld [vmem:[%s6786_s30 + $0x250] sm:$0xff] }
 0x2fc   : > { %v5456_v60 = vcombine.low %v1183_v7, %v1187_v54 }
 0x2fd   : > { %4556 = vmatpush1.bf16.msra.mxu0 %v5400_v0  ;;  %v5450_v0 = vcombine.low %v1176_v55, %v1180_v56  ;;  %v1228_v55 = vld [vmem:[%s6786_s30 + $0x3b8] sm:$0xff] }
 0x2fe   : > { %4720 = vmatpush1.bf16.msra.mxu1 %v5402_v57  ;;  %4557 = vmatprep.subr.bf16.mxu0 %v5409_v8  ;;  %v5457_v57 = vcombine.high %v1183_v7, %v1187_v54  ;;  %v5459_v8 = vcombine.high %v1184_v62, %v1188_v52  ;;  %v1235_v7 = vld [vmem:[%s6786_s30 + $0x3f0] sm:$0xff]  ;;  %v1232_v54 = vld [vmem:[%s6786_s30 + $0x3d8] sm:$0xff] }
 0x2ff   : > { %4721 = vmatprep.subr.bf16.mxu1 %v5411_v1  ;;  %v1191_v1 = vld [vmem:[%s6786_s30 + $0x290] sm:$0xff] }
 0x300   : > { %v5464_v50 = vcombine.low %v1191_v1, %v1195_v24 }
 0x301   : > { %4558 = vmatpush1.bf16.msra.mxu0 %v5408_v28  ;;  %v5458_v28 = vcombine.low %v1184_v62, %v1188_v52  ;;  %v1236_v62 = vld [vmem:[%s6786_s30 + $0x3f8] sm:$0xff] }
 0x302   : > { %4722 = vmatpush1.bf16.msra.mxu1 %v5410_v33  ;;  %4559 = vmatprep.subr.bf16.mxu0 %v5417_v5  ;;  %v5465_v33 = vcombine.high %v1191_v1, %v1195_v24  ;;  %v5467_v5 = vcombine.high %v1192_v3, %v1196_v4  ;;  %v1243_v1 = vld [vmem:[%s6786_s30 + $0x430] sm:$0xff]  ;;  %v1240_v24 = vld [vmem:[%s6786_s30 + $0x418] sm:$0xff] }
 0x303   : > { %4723 = vmatprep.subr.bf16.mxu1 %v5419_v6  ;;  %v1199_v6 = vld [vmem:[%s6786_s30 + $0x2d0] sm:$0xff] }
 0x304   : > { %v5472_v23 = vcombine.low %v1199_v6, %v1203_v9 }
 0x305   : > { %4560 = vmatpush1.bf16.msra.mxu0 %v5416_v14  ;;  %v5466_v14 = vcombine.low %v1192_v3, %v1196_v4  ;;  %v1244_v3 = vld [vmem:[%s6786_s30 + $0x438] sm:$0xff] }
 0x306   : > { %4724 = vmatpush1.bf16.msra.mxu1 %v5418_v15  ;;  %4561 = vmatprep.subr.bf16.mxu0 %v5425_v2  ;;  %v5473_v15 = vcombine.high %v1199_v6, %v1203_v9  ;;  %v5475_v2 = vcombine.high %v1200_v27, %v1204_v12  ;;  %v1251_v6 = vld [vmem:[%s6786_s30 + $0x470] sm:$0xff] }
 0x307   : > { %4725 = vmatprep.subr.bf16.mxu1 %v5427_v16  ;;  %v1207_v16 = vld [vmem:[%s6786_s30 + $0x310] sm:$0xff] }
 0x308   : > { %v5480_v46 = vcombine.low %v1207_v16, %v1211_v19 }
 0x309   : > { %4562 = vmatpush1.bf16.msra.mxu0 %v5424_v26  ;;  %v5474_v26 = vcombine.low %v1200_v27, %v1204_v12  ;;  %v1248_v27 = vld [vmem:[%s6786_s30 + $0x458] sm:$0xff] }
 0x30a   : > { %4726 = vmatpush1.bf16.msra.mxu1 %v5426_v29  ;;  %4563 = vmatprep.subr.bf16.mxu0 %v5433_v31  ;;  %v5481_v29 = vcombine.high %v1207_v16, %v1211_v19  ;;  %v5483_v31 = vcombine.high %v1208_v20, %v1212_v44  ;;  %v1252_v12 = vld [vmem:[%s6786_s30 + $0x478] sm:$0xff] }
 0x30b   : > { %4727 = vmatprep.subr.bf16.mxu1 %v5435_v32  ;;  %v1215_v32 = vld [vmem:[%s6786_s30 + $0x350] sm:$0xff]  ;;  %v5523_v16 = vcombine.high %v1248_v27, %v1252_v12  ;;  %v1256_v19 = vld [vmem:[%s6786_s30 + $0x498] sm:$0xff] }
 0x30c   : > { %v5488_v56 = vcombine.low %v1215_v32, %v1219_v34 }
 0x30d   : > { %4564 = vmatpush1.bf16.msra.mxu0 %v5432_v36  ;;  %v5482_v36 = vcombine.low %v1208_v20, %v1212_v44  ;;  %v1260_v20 = vld [vmem:[%s6786_s30 + $0x4b8] sm:$0xff] }
 0x30e   : > { %4728 = vmatpush1.bf16.msra.mxu1 %v5434_v37  ;;  %4565 = vmatprep.subr.bf16.mxu0 %v5441_v41  ;;  %v5489_v37 = vcombine.high %v1215_v32, %v1219_v34  ;;  %v5491_v41 = vcombine.high %v1216_v43, %v1220_v35  ;;  %v1267_v32 = vld [vmem:[%s6786_s30 + $0x4f0] sm:$0xff]  ;;  %v1264_v34 = vld [vmem:[%s6786_s30 + $0x4d8] sm:$0xff] }
 0x30f   : > { %4729 = vmatprep.subr.bf16.mxu1 %v5443_v49  ;;  %v1223_v49 = vld [vmem:[%s6786_s30 + $0x390] sm:$0xff] }
 0x310   : > { %v5496_v52 = vcombine.low %v1223_v49, %v1227_v51 }
 0x311   : > { %4566 = vmatpush1.bf16.msra.mxu0 %v5440_v58  ;;  %v5490_v58 = vcombine.low %v1216_v43, %v1220_v35  ;;  %v5530_v35 = vcombine.low %v1256_v19, %v1260_v20 }
 0x312   : > { %4730 = vmatpush1.bf16.msra.mxu1 %v5442_v59  ;;  %4567 = vmatprep.subr.bf16.mxu0 %v5449_v25  ;;  %v5497_v59 = vcombine.high %v1223_v49, %v1227_v51  ;;  %v5499_v25 = vcombine.high %v1224_v53, %v1228_v55  ;;  %v1276_v49 = vld [vmem:[%s6786_s30 + $0x538] sm:$0xff] }
 0x313   : > { %4731 = vmatprep.subr.bf16.mxu1 %v5451_v61  ;;  %v1231_v61 = vld [vmem:[%s6786_s30 + $0x3d0] sm:$0xff] }
 0x314   : > { %v5504_v4 = vcombine.low %v1231_v61, %v1235_v7 }
 0x315   : > { %4568 = vmatpush1.bf16.msra.mxu0 %v5448_v63  ;;  %v5498_v63 = vcombine.low %v1224_v53, %v1228_v55 }
 0x316   : > { %4732 = vmatpush1.bf16.msra.mxu1 %v5450_v0  ;;  %4569 = vmatprep.subr.bf16.mxu0 %v5457_v57  ;;  %v5505_v0 = vcombine.high %v1231_v61, %v1235_v7  ;;  %v5507_v57 = vcombine.high %v1232_v54, %v1236_v62  ;;  %v1284_v61 = vld [vmem:[%s6786_s30 + $0x578] sm:$0xff] }
 0x317   : > { %4733 = vmatprep.subr.bf16.mxu1 %v5459_v8  ;;  %v1239_v8 = vld [vmem:[%s6786_s30 + $0x410] sm:$0xff] }
 0x318   : > { %v5512_v9 = vcombine.low %v1239_v8, %v1243_v1 }
 0x319   : > { %4570 = vmatpush1.bf16.msra.mxu0 %v5456_v60  ;;  %v5506_v60 = vcombine.low %v1232_v54, %v1236_v62 }
 0x31a   : > { %4734 = vmatpush1.bf16.msra.mxu1 %v5458_v28  ;;  %4571 = vmatprep.subr.bf16.mxu0 %v5465_v33  ;;  %v5513_v28 = vcombine.high %v1239_v8, %v1243_v1  ;;  %v5515_v33 = vcombine.high %v1240_v24, %v1244_v3  ;;  %v1292_v8 = vld [vmem:[%s6786_s30 + $0x5b8] sm:$0xff] }
 0x31b   : > { %4735 = vmatprep.subr.bf16.mxu1 %v5467_v5  ;;  %v1247_v5 = vld [vmem:[%s6786_s30 + $0x450] sm:$0xff] }
 0x31c   : > { %v5520_v44 = vcombine.low %v1247_v5, %v1251_v6 }
 0x31d   : > { %4572 = vmatpush1.bf16.msra.mxu0 %v5464_v50  ;;  %v5514_v50 = vcombine.low %v1240_v24, %v1244_v3 }
 0x31e   : > { %4736 = vmatpush1.bf16.msra.mxu1 %v5466_v14  ;;  %4573 = vmatprep.subr.bf16.mxu0 %v5473_v15  ;;  %v5521_v14 = vcombine.high %v1247_v5, %v1251_v6  ;;  %v1255_v15 = vld [vmem:[%s6786_s30 + $0x490] sm:$0xff]  ;;  %v1300_v5 = vld [vmem:[%s6786_s30 + $0x5f8] sm:$0xff] }
 0x31f   : > { %4737 = vmatprep.subr.bf16.mxu1 %v5475_v2  ;;  %v1259_v2 = vld [vmem:[%s6786_s30 + $0x4b0] sm:$0xff] }
 0x320   : > { %v5528_v43 = vcombine.low %v1255_v15, %v1259_v2 }
 0x321   : > { %4574 = vmatpush1.bf16.msra.mxu0 %v5472_v23  ;;  %v5522_v23 = vcombine.low %v1248_v27, %v1252_v12 }
 0x322   : > { %4738 = vmatpush1.bf16.msra.mxu1 %v5474_v26  ;;  %4575 = vmatprep.subr.bf16.mxu0 %v5481_v29  ;;  %v5529_v26 = vcombine.high %v1255_v15, %v1259_v2  ;;  %v5531_v29 = vcombine.high %v1256_v19, %v1260_v20  ;;  %v1304_v15 = vld [vmem:[%s6786_s30 + $0x618] sm:$0xff] }
 0x323   : > { %4739 = vmatprep.subr.bf16.mxu1 %v5483_v31  ;;  %v1263_v31 = vld [vmem:[%s6786_s30 + $0x4d0] sm:$0xff]  ;;  %v1308_v2 = vld [vmem:[%s6786_s30 + $0x638] sm:$0xff] }
 0x324   : > { %v5536_v51 = vcombine.low %v1263_v31, %v1267_v32 }
 0x325   : > { %4576 = vmatpush1.bf16.msra.mxu0 %v5480_v46  ;;  %v5537_v46 = vcombine.high %v1263_v31, %v1267_v32  ;;  %v1316_v31 = vld [vmem:[%s6786_s30 + $0x678] sm:$0xff] }
 0x326   : > { %4740 = vmatpush1.bf16.msra.mxu1 %v5482_v36  ;;  %4577 = vmatprep.subr.bf16.mxu0 %v5489_v37  ;;  %v1271_v36 = vld [vmem:[%s6786_s30 + $0x510] sm:$0xff] }
 0x327   : > { %4741 = vmatprep.subr.bf16.mxu1 %v5491_v41  ;;  %v1275_v37 = vld [vmem:[%s6786_s30 + $0x530] sm:$0xff]  ;;  %v1272_v41 = vld [vmem:[%s6786_s30 + $0x518] sm:$0xff] }
 0x328   : > { %v5545_v55 = vcombine.high %v1271_v36, %v1275_v37  ;;  %v5544_v7 = vcombine.low %v1271_v36, %v1275_v37  ;;  %v5546_v54 = vcombine.low %v1272_v41, %v1276_v49  ;;  %v1324_v36 = vld [vmem:[%s6786_s30 + $0x6b8] sm:$0xff] }
 0x329   : > { %4578 = vmatpush1.bf16.msra.mxu0 %v5488_v56  ;;  %v5547_v56 = vcombine.high %v1272_v41, %v1276_v49 }
 0x32a   : > { %4742 = vmatpush1.bf16.msra.mxu1 %v5490_v58  ;;  %4579 = vmatprep.subr.bf16.mxu0 %v5497_v59  ;;  %v1279_v58 = vld [vmem:[%s6786_s30 + $0x550] sm:$0xff] }
 0x32b   : > { %4743 = vmatprep.subr.bf16.mxu1 %v5499_v25  ;;  %v1283_v59 = vld [vmem:[%s6786_s30 + $0x570] sm:$0xff]  ;;  %v1280_v25 = vld [vmem:[%s6786_s30 + $0x558] sm:$0xff] }
 0x32c   : > { %v5553_v62 = vcombine.high %v1279_v58, %v1283_v59  ;;  %v5552_v1 = vcombine.low %v1279_v58, %v1283_v59  ;;  %v5554_v24 = vcombine.low %v1280_v25, %v1284_v61  ;;  %v1332_v58 = vld [vmem:[%s6786_s30 + $0x6f8] sm:$0xff] }
 0x32d   : > { %4580 = vmatpush1.bf16.msra.mxu0 %v5496_v52  ;;  %v5555_v52 = vcombine.high %v1280_v25, %v1284_v61 }
 0x32e   : > { %4744 = vmatpush1.bf16.msra.mxu1 %v5498_v63  ;;  %4581 = vmatprep.subr.bf16.mxu0 %v5505_v0  ;;  %v1287_v63 = vld [vmem:[%s6786_s30 + $0x590] sm:$0xff] }
 0x32f   : > { %4745 = vmatprep.subr.bf16.mxu1 %v5507_v57  ;;  %v1291_v0 = vld [vmem:[%s6786_s30 + $0x5b0] sm:$0xff]  ;;  %v1288_v57 = vld [vmem:[%s6786_s30 + $0x598] sm:$0xff] }
 0x330   : > { %v5561_v3 = vcombine.high %v1287_v63, %v1291_v0  ;;  %v5560_v6 = vcombine.low %v1287_v63, %v1291_v0  ;;  %v1340_v63 = vld [vmem:[%s6786_s30 + $0x738] sm:$0xff] }
 0x331   : > { %4582 = vmatpush1.bf16.msra.mxu0 %v5504_v4  ;;  %v5563_v4 = vcombine.high %v1288_v57, %v1292_v8 }
 0x332   : > { %4746 = vmatpush1.bf16.msra.mxu1 %v5506_v60  ;;  %4592 = vmatprep.subr.bf16.mxu0 %v5513_v28  ;;  %v1295_v60 = vld [vmem:[%s6786_s30 + $0x5d0] sm:$0xff] }
 0x333   : > { %4756 = vmatprep.subr.bf16.mxu1 %v5515_v33  ;;  %v1299_v28 = vld [vmem:[%s6786_s30 + $0x5f0] sm:$0xff]  ;;  %v1296_v33 = vld [vmem:[%s6786_s30 + $0x5d8] sm:$0xff] }
 0x334   : > { %4584 = vmatmul.mubr.bf16.vlgmr.msra.gmra.mrb[12].mxu0 %v6961_v10  ;;  %v5569_v27 = vcombine.high %v1295_v60, %v1299_v28  ;;  %v5571_v12 = vcombine.high %v1296_v33, %v1300_v5  ;;  %v5570_v19 = vcombine.low %v1296_v33, %v1300_v5 }
 0x335   : > { %4748 = vmatmul.mubr.bf16.vlgmr.msra.gmra.mrb[12].mxu1 %v6961_v10  ;;  %4593 = vmatpush1.bf16.msra.mxu0 %v5512_v9  ;;  %v1268_v10 = vld [vmem:[%s6786_s30 + $0x4f8] sm:$0xff]  ;;  %v5562_v9 = vcombine.low %v1288_v57, %v1292_v8 }
 0x336   : > { %4624 = vmatprep.mubr.bf16.mxu0 %v6971_v17  ;;  %4757 = vmatpush1.bf16.msra.mxu1 %v5514_v50  ;;  %v5538_v53 = vcombine.low %v1264_v34, %v1268_v10  ;;  %v1303_v50 = vld [vmem:[%s6786_s30 + $0x610] sm:$0xff] }
 0x337   : > { %4788 = vmatprep.mubr.bf16.mxu1 %v6971_v17  ;;  %4594 = vmatprep.subr.bf16.mxu0 %v5521_v14  ;;  %v5539_v17 = vcombine.high %v1264_v34, %v1268_v10  ;;  %v1307_v14 = vld [vmem:[%s6786_s30 + $0x630] sm:$0xff]  ;;  %v5578_v34 = vcombine.low %v1304_v15, %v1308_v2 }
 0x338   : > { %4758 = vmatprep.subr.bf16.mxu1 %v5523_v16  ;;  %v5568_v16 = vcombine.low %v1295_v60, %v1299_v28  ;;  %v5577_v20 = vcombine.high %v1303_v50, %v1307_v14  ;;  %v5576_v32 = vcombine.low %v1303_v50, %v1307_v14  ;;  %v1348_v60 = vld [vmem:[%s6786_s30 + $0x778] sm:$0xff] }
 0x339   : > { %4595 = vmatpush1.bf16.msra.mxu0 %v5520_v44  ;;  %v5579_v44 = vcombine.high %v1304_v15, %v1308_v2  ;;  %v1356_v50 = vld [vmem:[%s6786_s30 + $0x7b8] sm:$0xff] }
 0x33a   : > { %4759 = vmatpush1.bf16.msra.mxu1 %v5522_v23  ;;  %4596 = vmatprep.subr.bf16.mxu0 %v5529_v26  ;;  %v1311_v23 = vld [vmem:[%s6786_s30 + $0x650] sm:$0xff] }
 0x33b   : > { %4760 = vmatprep.subr.bf16.mxu1 %v5531_v29  ;;  %v1315_v26 = vld [vmem:[%s6786_s30 + $0x670] sm:$0xff]  ;;  %v1312_v29 = vld [vmem:[%s6786_s30 + $0x658] sm:$0xff] }
 0x33c   : > { %v5585_v10 = vcombine.high %v1311_v23, %v1315_v26  ;;  %v5584_v37 = vcombine.low %v1311_v23, %v1315_v26  ;;  %v5586_v41 = vcombine.low %v1312_v29, %v1316_v31  ;;  %v1364_v23 = vld [vmem:[%s6786_s30 + $0x7f8] sm:$0xff] }
 0x33d   : > { %4597 = vmatpush1.bf16.msra.mxu0 %v5528_v43  ;;  %v5587_v43 = vcombine.high %v1312_v29, %v1316_v31 }
 0x33e   : > { %4761 = vmatpush1.bf16.msra.mxu1 %v5530_v35  ;;  %4598 = vmatprep.subr.bf16.mxu0 %v5537_v46  ;;  %v1319_v35 = vld [vmem:[%s6786_s30 + $0x690] sm:$0xff] }
 0x33f   : > { %4762 = vmatprep.subr.bf16.mxu1 %v5539_v17  ;;  %v1323_v46 = vld [vmem:[%s6786_s30 + $0x6b0] sm:$0xff]  ;;  %v1320_v17 = vld [vmem:[%s6786_s30 + $0x698] sm:$0xff] }
 0x340   : > { %v5593_v49 = vcombine.high %v1319_v35, %v1323_v46  ;;  %v5592_v59 = vcombine.low %v1319_v35, %v1323_v46  ;;  %v5594_v25 = vcombine.low %v1320_v17, %v1324_v36  ;;  %v1372_v35 = vld [vmem:[%s6786_s30 + $0x838] sm:$0xff] }
 0x341   : > { %4599 = vmatpush1.bf16.msra.mxu0 %v5536_v51  ;;  %v5595_v51 = vcombine.high %v1320_v17, %v1324_v36 }
 0x342   : > { %4763 = vmatpush1.bf16.msra.mxu1 %v5538_v53  ;;  %4600 = vmatprep.subr.bf16.mxu0 %v5545_v55  ;;  %v1327_v53 = vld [vmem:[%s6786_s30 + $0x6d0] sm:$0xff] }
 0x343   : > { %4764 = vmatprep.subr.bf16.mxu1 %v5547_v56  ;;  %v1331_v55 = vld [vmem:[%s6786_s30 + $0x6f0] sm:$0xff]  ;;  %v1328_v56 = vld [vmem:[%s6786_s30 + $0x6d8] sm:$0xff] }
 0x344   : > { %v5601_v61 = vcombine.high %v1327_v53, %v1331_v55  ;;  %v5600_v0 = vcombine.low %v1327_v53, %v1331_v55  ;;  %v5602_v57 = vcombine.low %v1328_v56, %v1332_v58  ;;  %v1376_v53 = vld [vmem:[%s6786_s30 + $0x858] sm:$0xff] }
 0x345   : > { %4601 = vmatpush1.bf16.msra.mxu0 %v5544_v7  ;;  %v5603_v7 = vcombine.high %v1328_v56, %v1332_v58  ;;  %v1380_v55 = vld [vmem:[%s6786_s30 + $0x878] sm:$0xff] }
 0x346   : > { %4765 = vmatpush1.bf16.msra.mxu1 %v5546_v54  ;;  %4602 = vmatprep.subr.bf16.mxu0 %v5553_v62  ;;  %v1335_v54 = vld [vmem:[%s6786_s30 + $0x710] sm:$0xff] }
 0x347   : > { %4766 = vmatprep.subr.bf16.mxu1 %v5555_v52  ;;  %v1339_v62 = vld [vmem:[%s6786_s30 + $0x730] sm:$0xff]  ;;  %v1336_v52 = vld [vmem:[%s6786_s30 + $0x718] sm:$0xff] }
 0x348   : > { %v5609_v8 = vcombine.high %v1335_v54, %v1339_v62  ;;  %v5608_v28 = vcombine.low %v1335_v54, %v1339_v62  ;;  %v5610_v33 = vcombine.low %v1336_v52, %v1340_v63  ;;  %v1388_v54 = vld [vmem:[%s6786_s30 + $0x8b8] sm:$0xff] }
 0x349   : > { %4603 = vmatpush1.bf16.msra.mxu0 %v5552_v1  ;;  %v5611_v1 = vcombine.high %v1336_v52, %v1340_v63  ;;  %v5650_v52 = vcombine.low %v1376_v53, %v1380_v55 }
 0x34a   : > { %4767 = vmatpush1.bf16.msra.mxu1 %v5554_v24  ;;  %4604 = vmatprep.subr.bf16.mxu0 %v5561_v3  ;;  %v1343_v24 = vld [vmem:[%s6786_s30 + $0x750] sm:$0xff] }
 0x34b   : > { %4768 = vmatprep.subr.bf16.mxu1 %v5563_v4  ;;  %v1347_v3 = vld [vmem:[%s6786_s30 + $0x770] sm:$0xff]  ;;  %v1344_v4 = vld [vmem:[%s6786_s30 + $0x758] sm:$0xff] }
 0x34c   : > { %v5617_v5 = vcombine.high %v1343_v24, %v1347_v3  ;;  %v5616_v14 = vcombine.low %v1343_v24, %v1347_v3  ;;  %v5618_v15 = vcombine.low %v1344_v4, %v1348_v60 }
 0x34d   : > { %4605 = vmatpush1.bf16.msra.mxu0 %v5560_v6  ;;  %v5619_v6 = vcombine.high %v1344_v4, %v1348_v60  ;;  %v1399_v60 = vld [vmem:[%s6786_s30 + $0x910] sm:$0xff] }
 0x34e   : > { %4769 = vmatpush1.bf16.msra.mxu1 %v5562_v9  ;;  %4606 = vmatprep.subr.bf16.mxu0 %v5569_v27  ;;  %v1351_v9 = vld [vmem:[%s6786_s30 + $0x790] sm:$0xff] }
 0x34f   : > { %4770 = vmatprep.subr.bf16.mxu1 %v5571_v12  ;;  %v1355_v27 = vld [vmem:[%s6786_s30 + $0x7b0] sm:$0xff]  ;;  %v1352_v12 = vld [vmem:[%s6786_s30 + $0x798] sm:$0xff] }
 0x350   : > { %v5625_v2 = vcombine.high %v1351_v9, %v1355_v27  ;;  %v5624_v26 = vcombine.low %v1351_v9, %v1355_v27  ;;  %v5626_v29 = vcombine.low %v1352_v12, %v1356_v50 }
 0x351   : > { %4607 = vmatpush1.bf16.msra.mxu0 %v5568_v16  ;;  %v5627_v16 = vcombine.high %v1352_v12, %v1356_v50  ;;  %v1407_v50 = vld [vmem:[%s6786_s30 + $0x950] sm:$0xff] }
 0x352   : > { %4771 = vmatpush1.bf16.msra.mxu1 %v5570_v19  ;;  %4608 = vmatprep.subr.bf16.mxu0 %v5577_v20  ;;  %v1359_v19 = vld [vmem:[%s6786_s30 + $0x7d0] sm:$0xff] }
 0x353   : > { %4772 = vmatprep.subr.bf16.mxu1 %v5579_v44  ;;  %v1363_v20 = vld [vmem:[%s6786_s30 + $0x7f0] sm:$0xff]  ;;  %v1360_v44 = vld [vmem:[%s6786_s30 + $0x7d8] sm:$0xff] }
 0x354   : > { %v5633_v31 = vcombine.high %v1359_v19, %v1363_v20  ;;  %v5632_v46 = vcombine.low %v1359_v19, %v1363_v20  ;;  %v5634_v17 = vcombine.low %v1360_v44, %v1364_v23 }
 0x355   : > { %4609 = vmatpush1.bf16.msra.mxu0 %v5576_v32  ;;  %v5635_v32 = vcombine.high %v1360_v44, %v1364_v23  ;;  %v1415_v23 = vld [vmem:[%s6786_s30 + $0x990] sm:$0xff] }
 0x356   : > { %4773 = vmatpush1.bf16.msra.mxu1 %v5578_v34  ;;  %4610 = vmatprep.subr.bf16.mxu0 %v5585_v10  ;;  %v1367_v34 = vld [vmem:[%s6786_s30 + $0x810] sm:$0xff] }
 0x357   : > { %4774 = vmatprep.subr.bf16.mxu1 %v5587_v43  ;;  %v1371_v10 = vld [vmem:[%s6786_s30 + $0x830] sm:$0xff]  ;;  %v1368_v43 = vld [vmem:[%s6786_s30 + $0x818] sm:$0xff] }
 0x358   : > { %v5641_v36 = vcombine.high %v1367_v34, %v1371_v10  ;;  %v5642_v56 = vcombine.low %v1368_v43, %v1372_v35 }
 0x359   : > { %4611 = vmatpush1.bf16.msra.mxu0 %v5584_v37  ;;  %v5643_v37 = vcombine.high %v1368_v43, %v1372_v35  ;;  %v1423_v35 = vld [vmem:[%s6786_s30 + $0x9d0] sm:$0xff] }
 0x35a   : > { %4775 = vmatpush1.bf16.msra.mxu1 %v5586_v41  ;;  %4612 = vmatprep.subr.bf16.mxu0 %v5593_v49  ;;  %v1375_v41 = vld [vmem:[%s6786_s30 + $0x850] sm:$0xff] }
 0x35b   : > { %4776 = vmatprep.subr.bf16.mxu1 %v5595_v51  ;;  %v1379_v49 = vld [vmem:[%s6786_s30 + $0x870] sm:$0xff]  ;;  %v5640_v51 = vcombine.low %v1367_v34, %v1371_v10 }
 0x35c   : > { %v5649_v58 = vcombine.high %v1375_v41, %v1379_v49  ;;  %v5648_v62 = vcombine.low %v1375_v41, %v1379_v49 }
 0x35d   : > { %4613 = vmatpush1.bf16.msra.mxu0 %v5592_v59  ;;  %v1383_v59 = vld [vmem:[%s6786_s30 + $0x890] sm:$0xff] }
 0x35e   : > { %4777 = vmatpush1.bf16.msra.mxu1 %v5594_v25  ;;  %4614 = vmatprep.subr.bf16.mxu0 %v5601_v61  ;;  %v1387_v25 = vld [vmem:[%s6786_s30 + $0x8b0] sm:$0xff]  ;;  %v5651_v61 = vcombine.high %v1376_v53, %v1380_v55 }
 0x35f   : > { %4778 = vmatprep.subr.bf16.mxu1 %v5603_v7  ;;  %v1384_v7 = vld [vmem:[%s6786_s30 + $0x898] sm:$0xff]  ;;  %v5657_v63 = vcombine.high %v1383_v59, %v1387_v25  ;;  %v5656_v24 = vcombine.low %v1383_v59, %v1387_v25  ;;  %v1431_v53 = vld [vmem:[%s6786_s30 + $0xa10] sm:$0xff] }
 0x360   : > { %v5658_v3 = vcombine.low %v1384_v7, %v1388_v54  ;;  %v1435_v55 = vld [vmem:[%s6786_s30 + $0xa30] sm:$0xff] }
 0x361   : > { %4615 = vmatpush1.bf16.msra.mxu0 %v5600_v0  ;;  %v5659_v0 = vcombine.high %v1384_v7, %v1388_v54  ;;  %v1439_v54 = vld [vmem:[%s6786_s30 + $0xa50] sm:$0xff] }
 0x362   : > { %4779 = vmatpush1.bf16.msra.mxu1 %v5602_v57  ;;  %4616 = vmatprep.subr.bf16.mxu0 %v5609_v8  ;;  %v1391_v57 = vld [vmem:[%s6786_s30 + $0x8d0] sm:$0xff] }
 0x363   : > { %4780 = vmatprep.subr.bf16.mxu1 %v5611_v1  ;;  %v1395_v8 = vld [vmem:[%s6786_s30 + $0x8f0] sm:$0xff]  ;;  %v1392_v1 = vld [vmem:[%s6786_s30 + $0x8d8] sm:$0xff] }
 0x364   : > { %v5665_v4 = vcombine.high %v1391_v57, %v1395_v8 }
 0x365   : > { %4617 = vmatpush1.bf16.msra.mxu0 %v5608_v28  ;;  %v1403_v28 = vld [vmem:[%s6786_s30 + $0x930] sm:$0xff] }
 0x366   : > { %4781 = vmatpush1.bf16.msra.mxu1 %v5610_v33  ;;  %4618 = vmatprep.subr.bf16.mxu0 %v5617_v5  ;;  %v1400_v33 = vld [vmem:[%s6786_s30 + $0x918] sm:$0xff]  ;;  %v5673_v27 = vcombine.high %v1399_v60, %v1403_v28 }
 0x367   : > { %4782 = vmatprep.subr.bf16.mxu1 %v5619_v6  ;;  %v1404_v5 = vld [vmem:[%s6786_s30 + $0x938] sm:$0xff]  ;;  %v5664_v6 = vcombine.low %v1391_v57, %v1395_v8 }
 0x368   : > { %v5675_v12 = vcombine.high %v1400_v33, %v1404_v5  ;;  %v5674_v19 = vcombine.low %v1400_v33, %v1404_v5  ;;  %v1455_v5 = vld [vmem:[%s6786_s30 + $0xad0] sm:$0xff] }
 0x369   : > { %4619 = vmatpush1.bf16.msra.mxu0 %v5616_v14  ;;  %v1411_v14 = vld [vmem:[%s6786_s30 + $0x970] sm:$0xff] }
 0x36a   : > { %4783 = vmatpush1.bf16.msra.mxu1 %v5618_v15  ;;  %4620 = vmatprep.subr.bf16.mxu0 %v5625_v2  ;;  %v1408_v15 = vld [vmem:[%s6786_s30 + $0x958] sm:$0xff]  ;;  %v5681_v20 = vcombine.high %v1407_v50, %v1411_v14 }
 0x36b   : > { %4784 = vmatprep.subr.bf16.mxu1 %v5627_v16  ;;  %v1412_v2 = vld [vmem:[%s6786_s30 + $0x978] sm:$0xff]  ;;  %v5672_v16 = vcombine.low %v1399_v60, %v1403_v28 }
 0x36c   : > { %v5683_v44 = vcombine.high %v1408_v15, %v1412_v2  ;;  %v5682_v34 = vcombine.low %v1408_v15, %v1412_v2  ;;  %v1463_v2 = vld [vmem:[%s6786_s30 + $0xb10] sm:$0xff] }
 0x36d   : > { %4621 = vmatpush1.bf16.msra.mxu0 %v5624_v26  ;;  %v1419_v26 = vld [vmem:[%s6786_s30 + $0x9b0] sm:$0xff] }
 0x36e   : > { %4785 = vmatpush1.bf16.msra.mxu1 %v5626_v29  ;;  %4622 = vmatprep.subr.bf16.mxu0 %v5633_v31  ;;  %v1416_v29 = vld [vmem:[%s6786_s30 + $0x998] sm:$0xff]  ;;  %v5689_v10 = vcombine.high %v1415_v23, %v1419_v26 }
 0x36f   : > { %4786 = vmatprep.subr.bf16.mxu1 %v5635_v32  ;;  %v1420_v31 = vld [vmem:[%s6786_s30 + $0x9b8] sm:$0xff]  ;;  %v5680_v32 = vcombine.low %v1407_v50, %v1411_v14 }
 0x370   : > { %v5691_v43 = vcombine.high %v1416_v29, %v1420_v31  ;;  %v5690_v41 = vcombine.low %v1416_v29, %v1420_v31  ;;  %v1471_v31 = vld [vmem:[%s6786_s30 + $0xb50] sm:$0xff] }
 0x371   : > { %4623 = vmatpush1.bf16.msra.mxu0 %v5632_v46  ;;  %v1427_v46 = vld [vmem:[%s6786_s30 + $0x9f0] sm:$0xff] }
 0x372   : > { %4787 = vmatpush1.bf16.msra.mxu1 %v5634_v17  ;;  %4633 = vmatprep.subr.bf16.mxu0 %v5641_v36  ;;  %v1424_v17 = vld [vmem:[%s6786_s30 + $0x9d8] sm:$0xff]  ;;  %v5697_v49 = vcombine.high %v1423_v35, %v1427_v46  ;;  %v5696_v59 = vcombine.low %v1423_v35, %v1427_v46 }
 0x373   : > { %4797 = vmatprep.subr.bf16.mxu1 %v5643_v37  ;;  %v1428_v36 = vld [vmem:[%s6786_s30 + $0x9f8] sm:$0xff]  ;;  %v5688_v37 = vcombine.low %v1415_v23, %v1419_v26 }
 0x374   : > { %4625 = vmatmul.mubr.bf16.vlgmr.msra.gmra.mrb[12].mxu0 %v7081_v42  ;;  %v5698_v25 = vcombine.low %v1424_v17, %v1428_v36 }
 0x375   : > { %4789 = vmatmul.mubr.bf16.vlgmr.msra.gmra.mrb[12].mxu1 %v7081_v42  ;;  %4634 = vmatpush1.bf16.msra.mxu0 %v5640_v51  ;;  %v1396_v42 = vld [vmem:[%s6786_s30 + $0x8f8] sm:$0xff]  ;;  %v5699_v51 = vcombine.high %v1424_v17, %v1428_v36  ;;  %v1479_v36 = vld [vmem:[%s6786_s30 + $0xb90] sm:$0xff] }
 0x376   : > { %4665 = vmatprep.mubr.bf16.mxu0 %v7089_v11  ;;  %4798 = vmatpush1.bf16.msra.mxu1 %v5642_v56  ;;  %v5666_v9 = vcombine.low %v1392_v1, %v1396_v42  ;;  %v1432_v56 = vld [vmem:[%s6786_s30 + $0xa18] sm:$0xff] }
 0x377   : > { %4829 = vmatprep.mubr.bf16.mxu1 %v7089_v11  ;;  %4635 = vmatprep.subr.bf16.mxu0 %v5649_v58  ;;  %v5667_v11 = vcombine.high %v1392_v1, %v1396_v42  ;;  %v1436_v58 = vld [vmem:[%s6786_s30 + $0xa38] sm:$0xff]  ;;  %v1447_v42 = vld [vmem:[%s6786_s30 + $0xa90] sm:$0xff] }
 0x378   : > { %4799 = vmatprep.subr.bf16.mxu1 %v5651_v61  ;;  %v5705_v61 = vcombine.high %v1431_v53, %v1435_v55  ;;  %v5707_v7 = vcombine.high %v1432_v56, %v1436_v58  ;;  %v5706_v57 = vcombine.low %v1432_v56, %v1436_v58  ;;  %v1487_v58 = vld [vmem:[%s6786_s30 + $0xbd0] sm:$0xff] }
 0x379   : > { %4636 = vmatpush1.bf16.msra.mxu0 %v5648_v62  ;;  %v1443_v62 = vld [vmem:[%s6786_s30 + $0xa70] sm:$0xff] }
 0x37a   : > { %4800 = vmatpush1.bf16.msra.mxu1 %v5650_v52  ;;  %4637 = vmatprep.subr.bf16.mxu0 %v5657_v63  ;;  %v1440_v52 = vld [vmem:[%s6786_s30 + $0xa58] sm:$0xff]  ;;  %v5713_v8 = vcombine.high %v1439_v54, %v1443_v62 }
 0x37b   : > { %4801 = vmatprep.subr.bf16.mxu1 %v5659_v0  ;;  %v1444_v63 = vld [vmem:[%s6786_s30 + $0xa78] sm:$0xff]  ;;  %v5704_v0 = vcombine.low %v1431_v53, %v1435_v55 }
 0x37c   : > { %v5715_v1 = vcombine.high %v1440_v52, %v1444_v63  ;;  %v5714_v60 = vcombine.low %v1440_v52, %v1444_v63  ;;  %v1495_v63 = vld [vmem:[%s6786_s30 + $0xc10] sm:$0xff] }
 0x37d   : > { %4638 = vmatpush1.bf16.msra.mxu0 %v5656_v24  ;;  %v1451_v24 = vld [vmem:[%s6786_s30 + $0xab0] sm:$0xff] }
 0x37e   : > { %4802 = vmatpush1.bf16.msra.mxu1 %v5658_v3  ;;  %4639 = vmatprep.subr.bf16.mxu0 %v5665_v4  ;;  %v1448_v3 = vld [vmem:[%s6786_s30 + $0xa98] sm:$0xff]  ;;  %v5721_v28 = vcombine.high %v1447_v42, %v1451_v24 }
 0x37f   : > { %4803 = vmatprep.subr.bf16.mxu1 %v5667_v11  ;;  %v1452_v4 = vld [vmem:[%s6786_s30 + $0xab8] sm:$0xff]  ;;  %v5712_v11 = vcombine.low %v1439_v54, %v1443_v62 }
 0x380   : > { %v5723_v33 = vcombine.high %v1448_v3, %v1452_v4  ;;  %v5722_v50 = vcombine.low %v1448_v3, %v1452_v4  ;;  %v1503_v4 = vld [vmem:[%s6786_s30 + $0xc50] sm:$0xff] }
 0x381   : > { %4640 = vmatpush1.bf16.msra.mxu0 %v5664_v6  ;;  %v1459_v6 = vld [vmem:[%s6786_s30 + $0xaf0] sm:$0xff] }
 0x382   : > { %4804 = vmatpush1.bf16.msra.mxu1 %v5666_v9  ;;  %4641 = vmatprep.subr.bf16.mxu0 %v5673_v27  ;;  %v1456_v9 = vld [vmem:[%s6786_s30 + $0xad8] sm:$0xff]  ;;  %v5729_v14 = vcombine.high %v1455_v5, %v1459_v6 }
 0x383   : > { %4805 = vmatprep.subr.bf16.mxu1 %v5675_v12  ;;  %v1460_v27 = vld [vmem:[%s6786_s30 + $0xaf8] sm:$0xff]  ;;  %v5720_v12 = vcombine.low %v1447_v42, %v1451_v24 }
 0x384   : > { %v5731_v15 = vcombine.high %v1456_v9, %v1460_v27  ;;  %v5730_v23 = vcombine.low %v1456_v9, %v1460_v27  ;;  %v1511_v9 = vld [vmem:[%s6786_s30 + $0xc90] sm:$0xff] }
 0x385   : > { %4642 = vmatpush1.bf16.msra.mxu0 %v5672_v16  ;;  %v1467_v16 = vld [vmem:[%s6786_s30 + $0xb30] sm:$0xff] }
 0x386   : > { %4806 = vmatpush1.bf16.msra.mxu1 %v5674_v19  ;;  %4643 = vmatprep.subr.bf16.mxu0 %v5681_v20  ;;  %v1464_v19 = vld [vmem:[%s6786_s30 + $0xb18] sm:$0xff]  ;;  %v5737_v26 = vcombine.high %v1463_v2, %v1467_v16  ;;  %v1515_v27 = vld [vmem:[%s6786_s30 + $0xcb0] sm:$0xff] }
 0x387   : > { %4807 = vmatprep.subr.bf16.mxu1 %v5683_v44  ;;  %v1468_v20 = vld [vmem:[%s6786_s30 + $0xb38] sm:$0xff]  ;;  %v5728_v44 = vcombine.low %v1455_v5, %v1459_v6 }
 0x388   : > { %v5739_v29 = vcombine.high %v1464_v19, %v1468_v20  ;;  %v5738_v35 = vcombine.low %v1464_v19, %v1468_v20  ;;  %v1519_v20 = vld [vmem:[%s6786_s30 + $0xcd0] sm:$0xff] }
 0x389   : > { %4644 = vmatpush1.bf16.msra.mxu0 %v5680_v32  ;;  %v1475_v32 = vld [vmem:[%s6786_s30 + $0xb70] sm:$0xff] }
 0x38a   : > { %4808 = vmatpush1.bf16.msra.mxu1 %v5682_v34  ;;  %4645 = vmatprep.subr.bf16.mxu0 %v5689_v10  ;;  %v1472_v34 = vld [vmem:[%s6786_s30 + $0xb58] sm:$0xff]  ;;  %v5745_v46 = vcombine.high %v1471_v31, %v1475_v32 }
 0x38b   : > { %4809 = vmatprep.subr.bf16.mxu1 %v5691_v43  ;;  %v1476_v10 = vld [vmem:[%s6786_s30 + $0xb78] sm:$0xff]  ;;  %v5736_v43 = vcombine.low %v1463_v2, %v1467_v16  ;;  %v5785_v16 = vcombine.high %v1511_v9, %v1515_v27 }
 0x38c   : > { %v5747_v17 = vcombine.high %v1472_v34, %v1476_v10  ;;  %v5746_v53 = vcombine.low %v1472_v34, %v1476_v10  ;;  %v1531_v34 = vld [vmem:[%s6786_s30 + $0xd30] sm:$0xff]  ;;  %v1528_v10 = vld [vmem:[%s6786_s30 + $0xd18] sm:$0xff] }
 0x38d   : > { %4646 = vmatpush1.bf16.msra.mxu0 %v5688_v37  ;;  %v1483_v37 = vld [vmem:[%s6786_s30 + $0xbb0] sm:$0xff] }
 0x38e   : > { %4810 = vmatpush1.bf16.msra.mxu1 %v5690_v41  ;;  %4647 = vmatprep.subr.bf16.mxu0 %v5697_v49  ;;  %v1480_v41 = vld [vmem:[%s6786_s30 + $0xb98] sm:$0xff]  ;;  %v5753_v55 = vcombine.high %v1479_v36, %v1483_v37 }
 0x38f   : > { %4811 = vmatprep.subr.bf16.mxu1 %v5699_v51  ;;  %v1484_v49 = vld [vmem:[%s6786_s30 + $0xbb8] sm:$0xff]  ;;  %v5744_v51 = vcombine.low %v1471_v31, %v1475_v32  ;;  %v1527_v32 = vld [vmem:[%s6786_s30 + $0xd10] sm:$0xff] }
 0x390   : > { %v5755_v56 = vcombine.high %v1480_v41, %v1484_v49  ;;  %v5754_v54 = vcombine.low %v1480_v41, %v1484_v49  ;;  %v1539_v41 = vld [vmem:[%s6786_s30 + $0xd70] sm:$0xff]  ;;  %v1536_v49 = vld [vmem:[%s6786_s30 + $0xd58] sm:$0xff] }
 0x391   : > { %4648 = vmatpush1.bf16.msra.mxu0 %v5696_v59  ;;  %v1491_v59 = vld [vmem:[%s6786_s30 + $0xbf0] sm:$0xff] }
 0x392   : > { %4812 = vmatpush1.bf16.msra.mxu1 %v5698_v25  ;;  %4649 = vmatprep.subr.bf16.mxu0 %v5705_v61  ;;  %v1488_v25 = vld [vmem:[%s6786_s30 + $0xbd8] sm:$0xff]  ;;  %v5761_v62 = vcombine.high %v1487_v58, %v1491_v59 }
 0x393   : > { %4813 = vmatprep.subr.bf16.mxu1 %v5707_v7  ;;  %v1492_v61 = vld [vmem:[%s6786_s30 + $0xbf8] sm:$0xff]  ;;  %v5752_v7 = vcombine.low %v1479_v36, %v1483_v37  ;;  %v1535_v37 = vld [vmem:[%s6786_s30 + $0xd50] sm:$0xff] }
 0x394   : > { %v5763_v52 = vcombine.high %v1488_v25, %v1492_v61  ;;  %v5762_v42 = vcombine.low %v1488_v25, %v1492_v61  ;;  %v1543_v25 = vld [vmem:[%s6786_s30 + $0xd90] sm:$0xff] }
 0x395   : > { %4650 = vmatpush1.bf16.msra.mxu0 %v5704_v0  ;;  %v1499_v0 = vld [vmem:[%s6786_s30 + $0xc30] sm:$0xff] }
 0x396   : > { %4814 = vmatpush1.bf16.msra.mxu1 %v5706_v57  ;;  %4651 = vmatprep.subr.bf16.mxu0 %v5713_v8  ;;  %v1496_v57 = vld [vmem:[%s6786_s30 + $0xc18] sm:$0xff]  ;;  %v5769_v24 = vcombine.high %v1495_v63, %v1499_v0  ;;  %v1547_v61 = vld [vmem:[%s6786_s30 + $0xdb0] sm:$0xff] }
 0x397   : > { %4815 = vmatprep.subr.bf16.mxu1 %v5715_v1  ;;  %v1500_v8 = vld [vmem:[%s6786_s30 + $0xc38] sm:$0xff]  ;;  %v5760_v1 = vcombine.low %v1487_v58, %v1491_v59  ;;  %v5809_v58 = vcombine.high %v1535_v37, %v1539_v41 }
 0x398   : > { %v5771_v3 = vcombine.high %v1496_v57, %v1500_v8  ;;  %v5770_v5 = vcombine.low %v1496_v57, %v1500_v8  ;;  %v5808_v57 = vcombine.low %v1535_v37, %v1539_v41 }
 0x399   : > { %4652 = vmatpush1.bf16.msra.mxu0 %v5712_v11  ;;  %v1507_v11 = vld [vmem:[%s6786_s30 + $0xc70] sm:$0xff] }
 0x39a   : > { %4816 = vmatpush1.bf16.msra.mxu1 %v5714_v60  ;;  %4653 = vmatprep.subr.bf16.mxu0 %v5721_v28  ;;  %v5768_v60 = vcombine.low %v1495_v63, %v1499_v0  ;;  %v1504_v28 = vld [vmem:[%s6786_s30 + $0xc58] sm:$0xff]  ;;  %v5777_v6 = vcombine.high %v1503_v4, %v1507_v11 }
 0x39b   : > { %4817 = vmatprep.subr.bf16.mxu1 %v5723_v33  ;;  %v1508_v33 = vld [vmem:[%s6786_s30 + $0xc78] sm:$0xff] }
 0x39c   : > { %v5778_v2 = vcombine.low %v1504_v28, %v1508_v33 }
 0x39d   : > { %4654 = vmatpush1.bf16.msra.mxu0 %v5720_v12  ;;  %v5779_v12 = vcombine.high %v1504_v28, %v1508_v33 }
 0x39e   : > { %4818 = vmatpush1.bf16.msra.mxu1 %v5722_v50  ;;  %4655 = vmatprep.subr.bf16.mxu0 %v5729_v14  ;;  %v1512_v50 = vld [vmem:[%s6786_s30 + $0xc98] sm:$0xff] }
 0x39f   : > { %4819 = vmatprep.subr.bf16.mxu1 %v5731_v15  ;;  %v1516_v14 = vld [vmem:[%s6786_s30 + $0xcb8] sm:$0xff]  ;;  %v5776_v15 = vcombine.low %v1503_v4, %v1507_v11  ;;  %v1551_v4 = vld [vmem:[%s6786_s30 + $0xdd0] sm:$0xff] }
 0x3a0   : > { %v5787_v19 = vcombine.high %v1512_v50, %v1516_v14  ;;  %v1555_v11 = vld [vmem:[%s6786_s30 + $0xdf0] sm:$0xff] }
 0x3a1   : > { %4656 = vmatpush1.bf16.msra.mxu0 %v5728_v44  ;;  %v1523_v44 = vld [vmem:[%s6786_s30 + $0xcf0] sm:$0xff] }
 0x3a2   : > { %4820 = vmatpush1.bf16.msra.mxu1 %v5730_v23  ;;  %4657 = vmatprep.subr.bf16.mxu0 %v5737_v26  ;;  %v1520_v23 = vld [vmem:[%s6786_s30 + $0xcd8] sm:$0xff]  ;;  %v5784_v26 = vcombine.low %v1511_v9, %v1515_v27  ;;  %v5793_v31 = vcombine.high %v1519_v20, %v1523_v44 }
 0x3a3   : > { %4821 = vmatprep.subr.bf16.mxu1 %v5739_v29  ;;  %v5786_v29 = vcombine.low %v1512_v50, %v1516_v14  ;;  %v1556_v9 = vld [vmem:[%s6786_s30 + $0xdf8] sm:$0xff] }
 0x3a5   : > { %4658 = vmatpush1.bf16.msra.mxu0 %v5736_v43  ;;  %v1532_v43 = vld [vmem:[%s6786_s30 + $0xd38] sm:$0xff] }
 0x3a6   : > { %4822 = vmatpush1.bf16.msra.mxu1 %v5738_v35  ;;  %4659 = vmatprep.subr.bf16.mxu0 %v5745_v46  ;;  %v5792_v35 = vcombine.low %v1519_v20, %v1523_v44  ;;  %v5803_v36 = vcombine.high %v1528_v10, %v1532_v43 }
 0x3a7   : > { %4823 = vmatprep.subr.bf16.mxu1 %v5747_v17  ;;  %v5801_v17 = vcombine.high %v1527_v32, %v1531_v34 }
 0x3a9   : > { %4660 = vmatpush1.bf16.msra.mxu0 %v5744_v51  ;;  %v1540_v51 = vld [vmem:[%s6786_s30 + $0xd78] sm:$0xff] }
 0x3aa   : > { %4824 = vmatpush1.bf16.msra.mxu1 %v5746_v53  ;;  %4661 = vmatprep.subr.bf16.mxu0 %v5753_v55  ;;  %v5800_v53 = vcombine.low %v1527_v32, %v1531_v34  ;;  %v7483_v55 = vld [vmem:[%s453_s25] sm:$0xff]  ;;  %v5811_v59 = vcombine.high %v1536_v49, %v1540_v51  ;;  %v5810_v8 = vcombine.low %v1536_v49, %v1540_v51 }
 0x3ab   : > { %4825 = vmatprep.subr.bf16.mxu1 %v5755_v56  ;;  %v5802_v56 = vcombine.low %v1528_v10, %v1532_v43  ;;  %v1630_v63 = vrot.slane %v7483_v55, %v6896_v47  ;;  %v1638_v0 = vrot.slane %v7483_v55, %v6899_v48  ;;  %v1560_v10 = vld [vmem:[%s6786_s30 + $0xe18] sm:$0xff] }
 0x3ac   : > { %v1564_v43 = vld [vmem:[%s6786_s30 + $0xe38] sm:$0xff] }
 0x3ad   : > { %4662 = vmatpush1.bf16.msra.mxu0 %v5752_v7  ;;  %v1626_v7 = vrot.slane %v7483_v55, %v6891_v45 }
 0x3ae   : > { %4826 = vmatpush1.bf16.msra.mxu1 %v5754_v54  ;;  %4663 = vmatprep.subr.bf16.mxu0 %v5761_v62  ;;  %v1634_v54 = vrot.slane %v7483_v55, %v6910_v18  ;;  %v1544_v62 = vld [vmem:[%s6786_s30 + $0xd98] sm:$0xff] }
 0x3af   : > { %4827 = vmatprep.subr.bf16.mxu1 %v5763_v52  ;;  %v1548_v52 = vld [vmem:[%s6786_s30 + $0xdb8] sm:$0xff] }
 0x3b0   : > { %v5818_v44 = vcombine.low %v1544_v62, %v1548_v52 }
 0x3b1   : > { %4664 = vmatpush1.bf16.msra.mxu0 %v5760_v1  ;;  %v5817_v1 = vcombine.high %v1543_v25, %v1547_v61 }
 0x3b2   : > { %4828 = vmatpush1.bf16.msra.mxu1 %v5762_v42  ;;  %4674 = vmatprep.subr.bf16.mxu0 %v5769_v24 }
 0x3b3   : > { %4838 = vmatprep.subr.bf16.mxu1 %v5771_v3  ;;  %v5819_v3 = vcombine.high %v1544_v62, %v1548_v52 }
 0x3b4   : > { %4666 = vmatmul.mubr.bf16.vlgmr.msra.gmra.mrb[12].mxu0 %v7180_v40 }
 0x3b5   : > { %4830 = vmatmul.mubr.bf16.vlgmr.msra.gmra.mrb[12].mxu1 %v7180_v40  ;;  %4675 = vmatpush1.bf16.msra.mxu0 %v5768_v60  ;;  %v1524_v40 = vld [vmem:[%s6786_s30 + $0xcf8] sm:$0xff] }
 0x3b6   : > { %4706 = vmatprep.mubr.bf16.mxu0 %v7186_v30  ;;  %4839 = vmatpush1.bf16.msra.mxu1 %v5770_v5  ;;  %v5794_v46 = vcombine.low %v1520_v23, %v1524_v40 }
 0x3b7   : > { %4870 = vmatprep.mubr.bf16.mxu1 %v7186_v30  ;;  %4676 = vmatprep.subr.bf16.mxu0 %v5777_v6  ;;  %v5795_v30 = vcombine.high %v1520_v23, %v1524_v40  ;;  %v1552_v6 = vld [vmem:[%s6786_s30 + $0xdd8] sm:$0xff]  ;;  %v5825_v23 = vcombine.high %v1551_v4, %v1555_v11 }
 0x3b8   : > { %4840 = vmatprep.subr.bf16.mxu1 %v5779_v12  ;;  %v5826_v41 = vcombine.low %v1552_v6, %v1556_v9 }
 0x3b9   : > { %4677 = vmatpush1.bf16.msra.mxu0 %v5776_v15  ;;  %v5816_v15 = vcombine.low %v1543_v25, %v1547_v61 }
 0x3ba   : > { %4841 = vmatpush1.bf16.msra.mxu1 %v5778_v2  ;;  %4678 = vmatprep.subr.bf16.mxu0 %v5785_v16 }
 0x3bb   : > { %4842 = vmatprep.subr.bf16.mxu1 %v5787_v19 }
 0x3bd   : > { %4679 = vmatpush1.bf16.msra.mxu0 %v5784_v26 }
 0x3be   : > { %4843 = vmatpush1.bf16.msra.mxu1 %v5786_v29  ;;  %4680 = vmatprep.subr.bf16.mxu0 %v5793_v31  ;;  %v5827_v29 = vcombine.high %v1552_v6, %v1556_v9  ;;  %v1559_v31 = vld [vmem:[%s6786_s30 + $0xe10] sm:$0xff]  ;;  %v1576_v6 = vld [vmem:[%s6786_s30 + $0xe98] sm:$0xff] }
 0x3bf   : > { %4844 = vmatprep.subr.bf16.mxu1 %v5795_v30  ;;  %v1563_v30 = vld [vmem:[%s6786_s30 + $0xe30] sm:$0xff]  ;;  %v1580_v9 = vld [vmem:[%s6786_s30 + $0xeb8] sm:$0xff] }
 0x3c0   : > { %v5833_v49 = vcombine.high %v1559_v31, %v1563_v30 }
 0x3c1   : > { %4681 = vmatpush1.bf16.msra.mxu0 %v5792_v35 }
 0x3c2   : > { %4845 = vmatpush1.bf16.msra.mxu1 %v5794_v46  ;;  %4682 = vmatprep.subr.bf16.mxu0 %v5801_v17  ;;  %v5824_v17 = vcombine.low %v1551_v4, %v1555_v11  ;;  %v1575_v4 = vld [vmem:[%s6786_s30 + $0xe90] sm:$0xff] }
 0x3c3   : > { %4846 = vmatprep.subr.bf16.mxu1 %v5803_v36  ;;  %v1579_v11 = vld [vmem:[%s6786_s30 + $0xeb0] sm:$0xff] }
 0x3c5   : > { %4683 = vmatpush1.bf16.msra.mxu0 %v5800_v53 }
 0x3c6   : > { %4847 = vmatpush1.bf16.msra.mxu1 %v5802_v56  ;;  %4684 = vmatprep.subr.bf16.mxu0 %v5809_v58  ;;  %v5835_v56 = vcombine.high %v1560_v10, %v1564_v43  ;;  %v1567_v58 = vld [vmem:[%s6786_s30 + $0xe50] sm:$0xff] }
 0x3c7   : > { %v4380_v42 = vpop.f32.mrb[8].mxu0  ;;  %v4544_v24 = vpop.f32.mrb[8].mxu1  ;;  %4848 = vmatprep.subr.bf16.mxu1 %v5811_v59  ;;  %v1571_v59 = vld [vmem:[%s6786_s30 + $0xe70] sm:$0xff] }
 0x3c8   : > { %v7499_v60 = vadd.f32 %v4380_v42, %v1626_v7  ;;  %v7501_v28 = vadd.f32 %v4544_v24, %v1634_v54  ;;  %v4382_v33 = vpop.f32.mrb[9].mxu0  ;;  %v4546_v5 = vpop.f32.mrb[9].mxu1  ;;  %v1568_v7 = vld [vmem:[%s6786_s30 + $0xe58] sm:$0xff] }
 0x3c9   : > { %v7505_v27 = vadd.f32 %v4382_v33, %v1630_v63  ;;  %v7507_v12 = vadd.f32 %v4546_v5, %v1638_v0  ;;  %v4384_v50 = vpop.f32.mrb[10].mxu0  ;;  %v4548_v14 = vpop.f32.mrb[10].mxu1  ;;  %4685 = vmatpush1.bf16.msra.mxu0 %v5808_v57  ;;  %v1572_v54 = vld [vmem:[%s6786_s30 + $0xe78] sm:$0xff]  ;;  %v5832_v63 = vcombine.low %v1559_v31, %v1563_v30 }
 0x3ca   : > { %v4879_v2 = vrot.slane %v7499_v60, 4  ;;  %v4891_v16 = vrot.slane %v7501_v28, 4  ;;  %4849 = vmatpush1.bf16.msra.mxu1 %v5810_v8  ;;  %v4385_v19 = vpop.f32.mrb[11].mxu0  ;;  %v4549_v20 = vpop.f32.mrb[11].mxu1  ;;  %4686 = vmatprep.subr.bf16.mxu0 %v5817_v1  ;;  %v5834_v8 = vcombine.low %v1560_v10, %v1564_v43  ;;  %v5841_v1 = vcombine.high %v1567_v58, %v1571_v59 }
 0x3cb   : > { %v4885_v40 = vrot.slane %v7505_v27, 4  ;;  %v4897_v26 = vrot.slane %v7507_v12, 4  ;;  %4850 = vmatprep.subr.bf16.mxu1 %v5819_v3  ;;  %v5843_v3 = vcombine.high %v1568_v7, %v1572_v54  ;;  %v5842_v19 = vcombine.low %v1568_v7, %v1572_v54 }
 0x3cc   : > { %v4880_v32 = vadd.f32 %v7499_v60, %v4879_v2  ;;  %v4892_v34 = vadd.f32 %v7501_v28, %v4891_v16  ;;  %v5849_v20 = vcombine.high %v1575_v4, %v1579_v11 }
 0x3cd   : > { %v4886_v35 = vadd.f32 %v7505_v27, %v4885_v40  ;;  %v4898_v46 = vadd.f32 %v7507_v12, %v4897_v26  ;;  %4687 = vmatpush1.bf16.msra.mxu0 %v5816_v15  ;;  %v5840_v15 = vcombine.low %v1567_v58, %v1571_v59  ;;  %v5851_v40 = vcombine.high %v1576_v6, %v1580_v9  ;;  %v1583_v26 = vld [vmem:[%s6786_s30 + $0xed0] sm:$0xff] }
 0x3ce   : > { %v4881_v36 = vrot.slane %v4880_v32, 2  ;;  %v4893_v37 = vrot.slane %v4892_v34, 2  ;;  %4851 = vmatpush1.bf16.msra.mxu1 %v5818_v44  ;;  %4688 = vmatprep.subr.bf16.mxu0 %v5825_v23 }
 0x3cf   : > { %v4887_v51 = vrot.slane %v4886_v35, 2  ;;  %v4899_v53 = vrot.slane %v4898_v46, 2  ;;  %4852 = vmatprep.subr.bf16.mxu1 %v5827_v29  ;;  %v1587_v29 = vld [vmem:[%s6786_s30 + $0xef0] sm:$0xff] }
 0x3d0   : > { %v4882_v25 = vadd.f32 %v4881_v36, %v4880_v32  ;;  %v4894_v61 = vadd.f32 %v4893_v37, %v4892_v34  ;;  %v1584_v32 = vld [vmem:[%s6786_s30 + $0xed8] sm:$0xff]  ;;  %v1591_v37 = vld [vmem:[%s6786_s30 + $0xf10] sm:$0xff] }
 0x3d1   : > { %v4888_v62 = vadd.f32 %v4887_v51, %v4886_v35  ;;  %v4900_v52 = vadd.f32 %v4899_v53, %v4898_v46  ;;  %4689 = vmatpush1.bf16.msra.mxu0 %v5824_v17  ;;  %v1588_v34 = vld [vmem:[%s6786_s30 + $0xef8] sm:$0xff]  ;;  %v5848_v35 = vcombine.low %v1575_v4, %v1579_v11  ;;  %v5850_v46 = vcombine.low %v1576_v6, %v1580_v9 }
 0x3d2   : > { %v4883_v0 = vrot.slane %v4882_v25, 1  ;;  %v4895_v57 = vrot.slane %v4894_v61, 1  ;;  %4853 = vmatpush1.bf16.msra.mxu1 %v5826_v41  ;;  %4690 = vmatprep.subr.bf16.mxu0 %v5833_v49  ;;  %v5857_v17 = vcombine.high %v1583_v26, %v1587_v29  ;;  %v5859_v36 = vcombine.high %v1584_v32, %v1588_v34  ;;  %v1595_v41 = vld [vmem:[%s6786_s30 + $0xf30] sm:$0xff]  ;;  %v1592_v53 = vld [vmem:[%s6786_s30 + $0xf18] sm:$0xff] }
 0x3d3   : > { %v4889_v42 = vrot.slane %v4888_v62, 1  ;;  %v4901_v24 = vrot.slane %v4900_v52, 1  ;;  %4854 = vmatprep.subr.bf16.mxu1 %v5835_v56  ;;  %v1596_v56 = vld [vmem:[%s6786_s30 + $0xf38] sm:$0xff] }
 0x3d4   : > { %v4884_v33 = vadd.f32 %v4883_v0, %v4882_v25  ;;  %v4896_v5 = vadd.f32 %v4895_v57, %v4894_v61  ;;  %v5856_v25 = vcombine.low %v1583_v26, %v1587_v29  ;;  %v5858_v61 = vcombine.low %v1584_v32, %v1588_v34  ;;  %v1599_v57 = vld [vmem:[%s6786_s30 + $0xf50] sm:$0xff] }
 0x3d5   : > { %v4890_v50 = vadd.f32 %v4889_v42, %v4888_v62  ;;  %v4902_v14 = vadd.f32 %v4901_v24, %v4900_v52  ;;  %4691 = vmatpush1.bf16.msra.mxu0 %v5832_v63  ;;  %v5865_v62 = vcombine.high %v1591_v37, %v1595_v41  ;;  %v5867_v0 = vcombine.high %v1592_v53, %v1596_v56  ;;  %v1600_v24 = vld [vmem:[%s6786_s30 + $0xf58] sm:$0xff] }
 0x3d6   : > { %v4927_v2 = vmul.f32 0.125, %v4884_v33  ;;  %v4929_v16 = vmul.f32 0.125, %v4896_v5  ;;  %4855 = vmatpush1.bf16.msra.mxu1 %v5834_v8  ;;  %4692 = vmatprep.subr.bf16.mxu0 %v5841_v1  ;;  %v1603_v8 = vld [vmem:[%s6786_s30 + $0xf70] sm:$0xff]  ;;  %v5864_v33 = vcombine.low %v1591_v37, %v1595_v41  ;;  %v5866_v5 = vcombine.low %v1592_v53, %v1596_v56 }
 0x3d7   : > { %v4928_v44 = vmul.f32 0.125, %v4890_v50  ;;  %v4930_v23 = vmul.f32 0.125, %v4902_v14  ;;  %4856 = vmatprep.subr.bf16.mxu1 %v5843_v3  ;;  %v1604_v3 = vld [vmem:[%s6786_s30 + $0xf78] sm:$0xff]  ;;  %v5873_v50 = vcombine.high %v1599_v57, %v1603_v8  ;;  %v5872_v32 = vcombine.low %v1599_v57, %v1603_v8  ;;  %v7575_v8 = vld [vmem:[%s471_s7] sm:$0xff] }
 0x3d8   : > { %v7532_v31 = vsub.f32 %v7499_v60, %v4927_v2  ;;  %v7535_v30 = vsub.f32 %v7501_v28, %v4929_v16  ;;  %v5875_v2 = vcombine.high %v1600_v24, %v1604_v3  ;;  %v1607_v16 = vld [vmem:[%s6786_s30 + $0xf90] sm:$0xff]  ;;  %v5874_v34 = vcombine.low %v1600_v24, %v1604_v3 }
 0x3d9   : > { %v7540_v10 = vsub.f32 %v7505_v27, %v4928_v44  ;;  %v7543_v43 = vsub.f32 %v7507_v12, %v4930_v23  ;;  %4693 = vmatpush1.bf16.msra.mxu0 %v5840_v15  ;;  %v1608_v23 = vld [vmem:[%s6786_s30 + $0xf98] sm:$0xff] }
 0x3da   : > { %v4943_v60 = vmul.f32 %v7532_v31, %v7532_v31  ;;  %v4945_v28 = vmul.f32 %v7535_v30, %v7535_v30  ;;  %4857 = vmatpush1.bf16.msra.mxu1 %v5842_v19  ;;  %4694 = vmatprep.subr.bf16.mxu0 %v5849_v20  ;;  %v1611_v19 = vld [vmem:[%s6786_s30 + $0xfb0] sm:$0xff] }
 0x3db   : > { %v4944_v27 = vmul.f32 %v7540_v10, %v7540_v10  ;;  %v4946_v12 = vmul.f32 %v7543_v43, %v7543_v43  ;;  %4858 = vmatprep.subr.bf16.mxu1 %v5851_v40  ;;  %v1612_v40 = vld [vmem:[%s6786_s30 + $0xfb8] sm:$0xff] }
 0x3dc   : > { %v4951_v49 = vrot.slane %v4943_v60, 4  ;;  %v4963_v51 = vrot.slane %v4945_v28, 4  ;;  %v7572_v57 = vld [vmem:[%s462_s22] sm:$0xff] }
 0x3dd   : > { %v4957_v58 = vrot.slane %v4944_v27, 4  ;;  %v4969_v59 = vrot.slane %v4946_v12, 4  ;;  %4695 = vmatpush1.bf16.msra.mxu0 %v5848_v35  ;;  %v5044_v24 = vrot.slane %v7572_v57, %v6910_v18 }
 0x3de   : > { %v4952_v7 = vadd.f32 %v4951_v49, %v4943_v60  ;;  %v4964_v54 = vadd.f32 %v4963_v51, %v4945_v28  ;;  %4859 = vmatpush1.bf16.msra.mxu1 %v5850_v46  ;;  %4696 = vmatprep.subr.bf16.mxu0 %v5857_v17  ;;  %v5881_v60 = vcombine.high %v1607_v16, %v1611_v19  ;;  %v1616_v49 = vld [vmem:[%s6786_s30 + $0xfd8] sm:$0xff] }
 0x3df   : > { %v4958_v52 = vadd.f32 %v4957_v58, %v4944_v27  ;;  %v4970_v63 = vadd.f32 %v4969_v59, %v4946_v12  ;;  %4860 = vmatprep.subr.bf16.mxu1 %v5859_v36  ;;  %v5883_v27 = vcombine.high %v1608_v23, %v1612_v40  ;;  %v1615_v12 = vld [vmem:[%s6786_s30 + $0xfd0] sm:$0xff]  ;;  %v1620_v51 = vld [vmem:[%s6786_s30 + $0xff8] sm:$0xff]  ;;  %v5880_v58 = vcombine.low %v1607_v16, %v1611_v19 }
 0x3e0   : > { %v4953_v1 = vrot.slane %v4952_v7, 2  ;;  %v4965_v42 = vrot.slane %v4964_v54, 2  ;;  %v1619_v36 = vld [vmem:[%s6786_s30 + $0xff0] sm:$0xff] }
 0x3e1   : > { %v4959_v4 = vrot.slane %v4958_v52, 2  ;;  %v4971_v11 = vrot.slane %v4970_v63, 2  ;;  %4697 = vmatpush1.bf16.msra.mxu0 %v5856_v25 }
 0x3e2   : > { %v4954_v6 = vadd.f32 %v4953_v1, %v4952_v7  ;;  %v4966_v9 = vadd.f32 %v4965_v42, %v4964_v54  ;;  %4861 = vmatpush1.bf16.msra.mxu1 %v5858_v61  ;;  %4698 = vmatprep.subr.bf16.mxu0 %v5865_v62  ;;  %v5882_v61 = vcombine.low %v1608_v23, %v1612_v40 }
 0x3e3   : > { %v4960_v14 = vadd.f32 %v4959_v4, %v4958_v52  ;;  %v4972_v15 = vadd.f32 %v4971_v11, %v4970_v63  ;;  %4862 = vmatprep.subr.bf16.mxu1 %v5867_v0  ;;  %v5889_v7 = vcombine.high %v1615_v12, %v1619_v36  ;;  %v5891_v52 = vcombine.high %v1616_v49, %v1620_v51 }
 0x3e4   : > { %v4955_v20 = vrot.slane %v4954_v6, 1  ;;  %v4967_v44 = vrot.slane %v4966_v9, 1  ;;  %v5888_v63 = vcombine.low %v1615_v12, %v1619_v36  ;;  %v5890_v0 = vcombine.low %v1616_v49, %v1620_v51 }
 0x3e5   : > { %v4961_v26 = vrot.slane %v4960_v14, 1  ;;  %v4973_v29 = vrot.slane %v4972_v15, 1  ;;  %4699 = vmatpush1.bf16.msra.mxu0 %v5864_v33  ;;  %v5036_v1 = vrot.slane %v7572_v57, %v6891_v45  ;;  %v5086_v11 = vrot.slane %v7575_v8, %v6891_v45 }
 0x3e6   : > { %v4956_v35 = vadd.f32 %v4955_v20, %v4954_v6  ;;  %v4968_v46 = vadd.f32 %v4967_v44, %v4966_v9  ;;  %4863 = vmatpush1.bf16.msra.mxu1 %v5866_v5  ;;  %4700 = vmatprep.subr.bf16.mxu0 %v5873_v50  ;;  %v5040_v33 = vrot.slane %v7572_v57, %v6896_v47 }
 0x3e7   : > { %v4962_v28 = vadd.f32 %v4961_v26, %v4960_v14  ;;  %v4974_v17 = vadd.f32 %v4973_v29, %v4972_v15  ;;  %4864 = vmatprep.subr.bf16.mxu1 %v5875_v2  ;;  %v5094_v9 = vrot.slane %v7575_v8, %v6910_v18  ;;  %v5090_v45 = vrot.slane %v7575_v8, %v6896_v47 }
 0x3e8   : > { %v4999_v37 = vmul.f32 0.125, %v4956_v35  ;;  %v5001_v41 = vmul.f32 0.125, %v4968_v46  ;;  %v1642_v40 = vrot.slane %v7483_v55, %v7000_v13  ;;  %v1650_v26 = vrot.slane %v7483_v55, %v7112_v38 }
 0x3e9   : > { %v5000_v53 = vmul.f32 0.125, %v4962_v28  ;;  %v5002_v56 = vmul.f32 0.125, %v4974_v17  ;;  %4701 = vmatpush1.bf16.msra.mxu0 %v5872_v32  ;;  %v1646_v29 = vrot.slane %v7483_v55, %v6913_v21  ;;  %v1654_v32 = vrot.slane %v7483_v55, %v7005_v22 }
 0x3ea   : > { %v5007_v59 = vadd.f32 1e-05, %v4999_v37  ;;  %v5009_v25 = vadd.f32 1e-05, %v5001_v41  ;;  %4865 = vmatpush1.bf16.msra.mxu1 %v5874_v34  ;;  %4702 = vmatprep.subr.bf16.mxu0 %v5881_v60 }
 0x3eb   : > { %v5008_v54 = vadd.f32 1e-05, %v5000_v53  ;;  %v5010_v62 = vadd.f32 1e-05, %v5002_v56  ;;  %4866 = vmatprep.subr.bf16.mxu1 %v5883_v27 }
 0x3ec   : > { %6079 = vrsqrt.f32 %v5007_v59 }
 0x3ed   : > { %6081 = vrsqrt.f32 %v5009_v25  ;;  %4703 = vmatpush1.bf16.msra.mxu0 %v5880_v58 }
 0x3ee   : > { %6083 = vrsqrt.f32 %v5008_v54  ;;  %4867 = vmatpush1.bf16.msra.mxu1 %v5882_v61  ;;  %4704 = vmatprep.subr.bf16.mxu0 %v5889_v7 }
 0x3ef   : > { %6085 = vrsqrt.f32 %v5010_v62  ;;  %4868 = vmatprep.subr.bf16.mxu1 %v5891_v52 }
 0x3f1   : > { %4705 = vmatpush1.bf16.msra.mxu0 %v5888_v63 }
 0x3f2   : > { %4869 = vmatpush1.bf16.msra.mxu1 %v5890_v0 }
 0x3f4   : > { %4707 = vmatmul.mubr.bf16.vlgmr.msra.gmra.mrb[12].mxu0 %v7255_v39 }
 0x3f5   : > { %4871 = vmatmul.mubr.bf16.vlgmr.msra.gmra.mrb[12].mxu1 %v7255_v39  ;;  %v5048_v39 = vrot.slane %v7572_v57, %v6899_v48 }
 0x3f6   : > { %v6080_v42 = vpop.eup %6079 }
 0x3f7   : > { %v6082_v3 = vpop.eup %6081  ;;  %v5023_v4 = vmul.f32 %v6080_v42, %v7532_v31 }
 0x3f8   : > { %v6084_v5 = vpop.eup %6083  ;;  %v5025_v6 = vmul.f32 %v6082_v3, %v7535_v30  ;;  %v5098_v30 = vrot.slane %v7575_v8, %v6899_v48 }
 0x3f9   : > { %v6086_v50 = vpop.eup %6085  ;;  %v5073_v14 = vmul.f32 %v5036_v1, %v5023_v4  ;;  %v5024_v31 = vmul.f32 %v6084_v5, %v7540_v10 }
 0x3fa   : > { %v5075_v15 = vmul.f32 %v5044_v24, %v5025_v6  ;;  %v5026_v2 = vmul.f32 %v6086_v50, %v7543_v43 }
 0x3fb   : > { %v5123_v16 = vadd.f32 %v5086_v11, %v5073_v14  ;;  %v5074_v19 = vmul.f32 %v5040_v33, %v5024_v31 }
 0x3fc   : > { %v5125_v18 = vadd.f32 %v5094_v9, %v5075_v15  ;;  %v5076_v10 = vmul.f32 %v5048_v39, %v5026_v2 }
 0x3fd   : > { %v5131_v47 = vmax.f32 %v5123_v16, 0.0  ;;  %v5124_v20 = vadd.f32 %v5090_v45, %v5074_v19 }
 0x3fe   : > { %v5133_v44 = vmax.f32 %v5125_v18, 0.0  ;;  %v5126_v43 = vadd.f32 %v5098_v30, %v5076_v10 }
 0x3ff   : > { %5139 = vst [vmem:[%s7602_s27] sm:$0xff] %v5131_v47  ;;  %v5132_v23 = vmax.f32 %v5124_v20, 0.0 }
 0x400   : > { %5141 = vst [vmem:[%s7602_s27 + $0x10] sm:$0xff] %v5133_v44  ;;  %v5134_v48 = vmax.f32 %v5126_v43, 0.0 }
 0x401   : > { %5140 = vst [vmem:[%s7602_s27 + $0x8] sm:$0xff] %v5132_v23 }
 0x402   : > { %5142 = vst [vmem:[%s7602_s27 + $0x18] sm:$0xff] %v5134_v48 }
 0x4c7   : > { %v4708_v34 = vpop.f32.mrb[12].mxu0 }
 0x4c8   : > { %v5902_v35 = vadd.f32 %v4708_v34, %v1642_v40  ;;  %v4872_v46 = vpop.f32.mrb[12].mxu1  ;;  %v4710_v60 = vpop.f32.mrb[13].mxu0 }
 0x4c9   : > { %v5904_v28 = vadd.f32 %v4872_v46, %v1650_v26  ;;  %v5903_v17 = vadd.f32 %v4710_v60, %v1646_v29  ;;  %v4874_v27 = vpop.f32.mrb[13].mxu1  ;;  %v4712_v12 = vpop.f32.mrb[14].mxu0 }
 0x4ca   : > { %v4903_v36 = vrot.slane %v5902_v35, 4  ;;  %v5905_v37 = vadd.f32 %v4874_v27, %v1654_v32  ;;  %v4876_v41 = vpop.f32.mrb[14].mxu1  ;;  %v4713_v49 = vpop.f32.mrb[15].mxu0 }
 0x4cb   : > { %v4915_v51 = vrot.slane %v5904_v28, 4  ;;  %v4909_v53 = vrot.slane %v5903_v17, 4  ;;  %v4877_v56 = vpop.f32.mrb[15].mxu1 }
 0x4cc   : > { %v4904_v58 = vadd.f32 %v5902_v35, %v4903_v36  ;;  %v4921_v59 = vrot.slane %v5905_v37, 4 }
 0x4cd   : > { %v4916_v25 = vadd.f32 %v5904_v28, %v4915_v51  ;;  %v4910_v61 = vadd.f32 %v5903_v17, %v4909_v53 }
 0x4ce   : > { %v4905_v55 = vrot.slane %v4904_v58, 2  ;;  %v4922_v7 = vadd.f32 %v5905_v37, %v4921_v59 }
 0x4cf   : > { %v4917_v54 = vrot.slane %v4916_v25, 2  ;;  %v4911_v62 = vrot.slane %v4910_v61, 2 }
 0x4d0   : > { %v4906_v52 = vadd.f32 %v4905_v55, %v4904_v58  ;;  %v4923_v63 = vrot.slane %v4922_v7, 2 }
 0x4d1   : > { %v4918_v0 = vadd.f32 %v4917_v54, %v4916_v25  ;;  %v4912_v1 = vadd.f32 %v4911_v62, %v4910_v61  ;;  %v5052_v62 = vrot.slane %v7572_v57, %v7000_v13 }
 0x4d2   : > { %v4907_v42 = vrot.slane %v4906_v52, 1  ;;  %v4924_v24 = vadd.f32 %v4923_v63, %v4922_v7  ;;  %v5060_v63 = vrot.slane %v7572_v57, %v7112_v38 }
 0x4d3   : > { %v4919_v3 = vrot.slane %v4918_v0, 1  ;;  %v4913_v4 = vrot.slane %v4912_v1, 1 }
 0x4d4   : > { %v4908_v11 = vadd.f32 %v4907_v42, %v4906_v52  ;;  %v4925_v33 = vrot.slane %v4924_v24, 1  ;;  %v5102_v42 = vrot.slane %v7575_v8, %v7000_v13 }
 0x4d5   : > { %v4920_v5 = vadd.f32 %v4919_v3, %v4918_v0  ;;  %v4914_v6 = vadd.f32 %v4913_v4, %v4912_v1 }
 0x4d6   : > { %v4931_v9 = vmul.f32 0.125, %v4908_v11  ;;  %v4926_v39 = vadd.f32 %v4925_v33, %v4924_v24  ;;  %v5056_v24 = vrot.slane %v7572_v57, %v6913_v21  ;;  %v5110_v11 = vrot.slane %v7575_v8, %v7112_v38 }
 0x4d7   : > { %v4933_v50 = vmul.f32 0.125, %v4920_v5  ;;  %v4932_v14 = vmul.f32 0.125, %v4914_v6  ;;  %v5064_v33 = vrot.slane %v7572_v57, %v7005_v22 }
 0x4d8   : > { %v4939_v31 = vsub.f32 %v5902_v35, %v4931_v9  ;;  %v4934_v45 = vmul.f32 0.125, %v4926_v39  ;;  %v5106_v39 = vrot.slane %v7575_v8, %v6913_v21 }
 0x4d9   : > { %v4941_v15 = vsub.f32 %v5904_v28, %v4933_v50  ;;  %v4940_v2 = vsub.f32 %v5903_v17, %v4932_v14  ;;  %v5114_v14 = vrot.slane %v7575_v8, %v7005_v22 }
 0x4da   : > { %v4947_v30 = vmul.f32 %v4939_v31, %v4939_v31  ;;  %v4942_v16 = vsub.f32 %v5905_v37, %v4934_v45 }
 0x4db   : > { %v4949_v19 = vmul.f32 %v4941_v15, %v4941_v15  ;;  %v4948_v18 = vmul.f32 %v4940_v2, %v4940_v2 }
 0x4dc   : > { %v4975_v10 = vrot.slane %v4947_v30, 4  ;;  %v4950_v47 = vmul.f32 %v4942_v16, %v4942_v16 }
 0x4dd   : > { %v4987_v20 = vrot.slane %v4949_v19, 4  ;;  %v4981_v44 = vrot.slane %v4948_v18, 4 }
 0x4de   : > { %v4976_v43 = vadd.f32 %v4975_v10, %v4947_v30  ;;  %v4993_v23 = vrot.slane %v4950_v47, 4 }
 0x4df   : > { %v4988_v48 = vadd.f32 %v4987_v20, %v4949_v19  ;;  %v4982_v40 = vadd.f32 %v4981_v44, %v4948_v18 }
 0x4e0   : > { %v4977_v26 = vrot.slane %v4976_v43, 2  ;;  %v4994_v29 = vadd.f32 %v4993_v23, %v4950_v47 }
 0x4e1   : > { %v4989_v32 = vrot.slane %v4988_v48, 2  ;;  %v4983_v34 = vrot.slane %v4982_v40, 2 }
 0x4e2   : > { %v4978_v35 = vadd.f32 %v4977_v26, %v4976_v43  ;;  %v4995_v46 = vrot.slane %v4994_v29, 2 }
 0x4e3   : > { %v4990_v60 = vadd.f32 %v4989_v32, %v4988_v48  ;;  %v4984_v28 = vadd.f32 %v4983_v34, %v4982_v40 }
 0x4e4   : > { %v4979_v17 = vrot.slane %v4978_v35, 1  ;;  %v4996_v27 = vadd.f32 %v4995_v46, %v4994_v29 }
 0x4e5   : > { %v4991_v12 = vrot.slane %v4990_v60, 1  ;;  %v4985_v36 = vrot.slane %v4984_v28, 1 }
 0x4e6   : > { %v4980_v37 = vadd.f32 %v4979_v17, %v4978_v35  ;;  %v4997_v41 = vrot.slane %v4996_v27, 1 }
 0x4e7   : > { %v4992_v49 = vadd.f32 %v4991_v12, %v4990_v60  ;;  %v4986_v51 = vadd.f32 %v4985_v36, %v4984_v28 }
 0x4e8   : > { %v5003_v53 = vmul.f32 0.125, %v4980_v37  ;;  %v4998_v56 = vadd.f32 %v4997_v41, %v4996_v27 }
 0x4e9   : > { %v5005_v58 = vmul.f32 0.125, %v4992_v49  ;;  %v5004_v59 = vmul.f32 0.125, %v4986_v51 }
 0x4ea   : > { %v5011_v25 = vadd.f32 1e-05, %v5003_v53  ;;  %v5006_v61 = vmul.f32 0.125, %v4998_v56 }
 0x4eb   : > { %v5013_v55 = vadd.f32 1e-05, %v5005_v58  ;;  %v5012_v7 = vadd.f32 1e-05, %v5004_v59 }
 0x4ec   : > { %6087 = vrsqrt.f32 %v5011_v25  ;;  %v5014_v54 = vadd.f32 1e-05, %v5006_v61 }
 0x4ed   : > { %6089 = vrsqrt.f32 %v5013_v55 }
 0x4ee   : > { %6091 = vrsqrt.f32 %v5012_v7 }
 0x4ef   : > { %6093 = vrsqrt.f32 %v5014_v54 }
 0x4f6   : > { %v6088_v52 = vpop.eup %6087 }
 0x4f7   : > { %v6090_v0 = vpop.eup %6089  ;;  %v5027_v1 = vmul.f32 %v6088_v52, %v4939_v31 }
 0x4f8   : > { %v6092_v3 = vpop.eup %6091  ;;  %v5029_v4 = vmul.f32 %v6090_v0, %v4941_v15 }
 0x4f9   : > { %v6094_v5 = vpop.eup %6093  ;;  %v5077_v6 = vmul.f32 %v5052_v62, %v5027_v1  ;;  %v5028_v9 = vmul.f32 %v6092_v3, %v4940_v2 }
 0x4fa   : > { %v5079_v13 = vmul.f32 %v5060_v63, %v5029_v4  ;;  %v5030_v50 = vmul.f32 %v6094_v5, %v4942_v16 }
 0x4fb   : > { %v5127_v31 = vadd.f32 %v5102_v42, %v5077_v6  ;;  %v5078_v38 = vmul.f32 %v5056_v24, %v5028_v9 }
 0x4fc   : > { %v5129_v45 = vadd.f32 %v5110_v11, %v5079_v13  ;;  %v5080_v15 = vmul.f32 %v5064_v33, %v5030_v50 }
 0x4fd   : > { %v5135_v57 = vmax.f32 %v5127_v31, 0.0  ;;  %v5128_v30 = vadd.f32 %v5106_v39, %v5078_v38 }
 0x4fe   : > { %v5137_v19 = vmax.f32 %v5129_v45, 0.0  ;;  %v5130_v18 = vadd.f32 %v5114_v14, %v5080_v15 }
 0x4ff   : > { %5143 = vst [vmem:[%s7602_s27 + $0x20] sm:$0xff] %v5135_v57  ;;  %v5136_v2 = vmax.f32 %v5128_v30, 0.0 }
 0x500   : > { %5145 = vst [vmem:[%s7602_s27 + $0x30] sm:$0xff] %v5137_v19  ;;  %v5138_v10 = vmax.f32 %v5130_v18, 0.0 }
 0x501   : > { %5144 = vst [vmem:[%s7602_s27 + $0x28] sm:$0xff] %v5136_v2 }
 0x502   : > { %5146 = vst [vmem:[%s7602_s27 + $0x38] sm:$0xff] %v5138_v10 }
 0x503 PF: > { %s7712_s12 = sld [smem:[#allocation22_spill]]  ;;  %s7713_s18 = sld [smem:[#allocation21_spill]] }
 0x504   : > { %s7714_s11 = sld [smem:[#allocation23_spill]]  ;;  %s7715_s30 = smov %s6399_s10 }
 0x509   : > { %p25_p10 = scmp.ge.s32.totalorder %s7712_s12, 4   ;;  %s7716_s10 = smov %s7713_s18 }
 0x50b   :  { %27 = sbr.rel (!%p25_p10) target bundleno = 13 (0xd), region = 152 }
 0x512   :  { %5169 = vsyncpa [#allocation3], 1 }
 0x513   :  { %5171 = vsyncpa [#allocation3 + $0x1], 1 }
 0x514   :  { %5172 = vsyncpa [#allocation5], 1 }
 0x515   :  { %5173 = vsyncpa [#allocation8], 1 }
 0x516   :  { %5174 = vsyncpa [#allocation11], 1 }
 0x517   :  { %5176 = vsyncpa [#allocation11 + $0x1], 1 }
 0x518   :  { %5177 = vsyncpa [#allocation14], 1 }
 0x519   :  { %5179 = vsyncpa [#allocation14 + $0x1], 1 }

// kernel: generator_forward.4
= control target key start
LH: loop header
LB: loop body
LE: loop exit
PB: predicated region body
PF: predicated region fallthrough
CT: control target
= control target key end

     0   :  { %vm2053_vm0 = vcmask 523264   ;;  %s4131_s1 = inlined_call_operand.vmem [shape: bf16[1152,256], index: 1, kind: input, shape index: {}]   ;;  %s4132_s0 = inlined_call_operand.vmem [shape: bf16[128,1152], index: 0, kind: input, shape index: {}]   ;;  %s4133_s2 = inlined_call_operand.vmem [shape: f32[1,64], index: 2, kind: input, shape index: {}]   ;;  %s4134_s3 = inlined_call_operand.vmem [shape: f32[1,64], index: 3, kind: input, shape index: {}]   ;;  %s4135_s4 = inlined_call_operand.vmem [shape: f32[128,256], index: 4, kind: output, shape index: {}]  }
   0x1   :  { %v2582_v0 = vld [vmem:[%s4131_s1 + $0x4] ss:$8 sps:$4 sm:$0xff]   ;;  %v2586_v2 = vld [vmem:[%s4131_s1] ss:$8 sps:$4 sm:$0xff]   ;;  %v2588_v4 = vld [vmem:[%s4131_s1 + $0x14] ss:$8 sps:$4 sm:$0xff]  }
   0x2   :  { %v2584_v1 = vld [vmem:[%s4131_s1 + $0x204] ss:$8 sps:$4 sm:$0xff]   ;;  %1330 = vmatprep.subr.bf16.mxu1 %v2582_v0  ;;  %v2587_v3 = vld [vmem:[%s4131_s1 + $0x200] ss:$8 sps:$4 sm:$0xff]   ;;  %v2590_v5 = vld [vmem:[%s4131_s1 + $0x214] ss:$8 sps:$4 sm:$0xff]  }
   0x3   :  { %1556 = vmatprep.subr.bf16.mxu0 %v2584_v1  ;;  %1331 = vmatpush1.bf16.msra.mxu1 %v2586_v2  ;;  %v2592_v6 = vld [vmem:[%s4131_s1 + $0x10] ss:$8 sps:$4 sm:$0xff]   ;;  %v2594_v8 = vld [vmem:[%s4131_s1 + $0x24] ss:$8 sps:$4 sm:$0xff]   ;;  %v2598_v10 = vld [vmem:[%s4131_s1 + $0x20] ss:$8 sps:$4 sm:$0xff]  }
   0x4   :  { %1557 = vmatpush1.bf16.msra.mxu0 %v2587_v3  ;;  %1332 = vmatprep.subr.bf16.mxu1 %v2588_v4  ;;  %v2593_v7 = vld [vmem:[%s4131_s1 + $0x210] ss:$8 sps:$4 sm:$0xff]   ;;  %v2596_v9 = vld [vmem:[%s4131_s1 + $0x224] ss:$8 sps:$4 sm:$0xff]   ;;  %v2599_v11 = vld [vmem:[%s4131_s1 + $0x220] ss:$8 sps:$4 sm:$0xff]  }
   0x5   :  { %1558 = vmatprep.subr.bf16.mxu0 %v2590_v5  ;;  %v2600_v12 = vld [vmem:[%s4131_s1 + $0x34] ss:$8 sps:$4 sm:$0xff]   ;;  %v2604_v14 = vld [vmem:[%s4131_s1 + $0x30] ss:$8 sps:$4 sm:$0xff]   ;;  %v2606_v16 = vld [vmem:[%s4131_s1 + $0x44] ss:$8 sps:$4 sm:$0xff]  }
   0x6   :  { %v2602_v13 = vld [vmem:[%s4131_s1 + $0x234] ss:$8 sps:$4 sm:$0xff]   ;;  %v2605_v15 = vld [vmem:[%s4131_s1 + $0x230] ss:$8 sps:$4 sm:$0xff]   ;;  %v2608_v17 = vld [vmem:[%s4131_s1 + $0x244] ss:$8 sps:$4 sm:$0xff]  }
   0x7   :  { %1333 = vmatpush1.bf16.msra.mxu1 %v2592_v6  ;;  %v2610_v18 = vld [vmem:[%s4131_s1 + $0x40] ss:$8 sps:$4 sm:$0xff]   ;;  %v2612_v20 = vld [vmem:[%s4131_s1 + $0x54] ss:$8 sps:$4 sm:$0xff]   ;;  %v2616_v22 = vld [vmem:[%s4131_s1 + $0x50] ss:$8 sps:$4 sm:$0xff]  }
   0x8   :  { %1559 = vmatpush1.bf16.msra.mxu0 %v2593_v7  ;;  %1334 = vmatprep.subr.bf16.mxu1 %v2594_v8  ;;  %v2611_v19 = vld [vmem:[%s4131_s1 + $0x240] ss:$8 sps:$4 sm:$0xff]   ;;  %v2614_v21 = vld [vmem:[%s4131_s1 + $0x254] ss:$8 sps:$4 sm:$0xff]   ;;  %v2617_v23 = vld [vmem:[%s4131_s1 + $0x250] ss:$8 sps:$4 sm:$0xff]  }
   0x9   :  { %1560 = vmatprep.subr.bf16.mxu0 %v2596_v9  ;;  %v2618_v24 = vld [vmem:[%s4131_s1 + $0x64] ss:$8 sps:$4 sm:$0xff]   ;;  %v2622_v26 = vld [vmem:[%s4131_s1 + $0x60] ss:$8 sps:$4 sm:$0xff]   ;;  %v2624_v28 = vld [vmem:[%s4131_s1 + $0x74] ss:$8 sps:$4 sm:$0xff]  }
   0xa   :  { %v2620_v25 = vld [vmem:[%s4131_s1 + $0x264] ss:$8 sps:$4 sm:$0xff]   ;;  %v2623_v27 = vld [vmem:[%s4131_s1 + $0x260] ss:$8 sps:$4 sm:$0xff]   ;;  %v2626_v29 = vld [vmem:[%s4131_s1 + $0x274] ss:$8 sps:$4 sm:$0xff]  }
   0xb   :  { %1335 = vmatpush1.bf16.msra.mxu1 %v2598_v10  ;;  %v2628_v30 = vld [vmem:[%s4131_s1 + $0x70] ss:$8 sps:$4 sm:$0xff]   ;;  %v2630_v32 = vld [vmem:[%s4131_s1 + $0x84] ss:$8 sps:$4 sm:$0xff]   ;;  %v2634_v34 = vld [vmem:[%s4131_s1 + $0x80] ss:$8 sps:$4 sm:$0xff]  }
   0xc   :  { %1561 = vmatpush1.bf16.msra.mxu0 %v2599_v11  ;;  %1336 = vmatprep.subr.bf16.mxu1 %v2600_v12  ;;  %v2629_v31 = vld [vmem:[%s4131_s1 + $0x270] ss:$8 sps:$4 sm:$0xff]   ;;  %v2632_v33 = vld [vmem:[%s4131_s1 + $0x284] ss:$8 sps:$4 sm:$0xff]   ;;  %v2635_v35 = vld [vmem:[%s4131_s1 + $0x280] ss:$8 sps:$4 sm:$0xff]  }
   0xd   :  { %1562 = vmatprep.subr.bf16.mxu0 %v2602_v13  ;;  %v2636_v36 = vld [vmem:[%s4131_s1 + $0x94] ss:$8 sps:$4 sm:$0xff]   ;;  %v2640_v38 = vld [vmem:[%s4131_s1 + $0x90] ss:$8 sps:$4 sm:$0xff]   ;;  %v2642_v40 = vld [vmem:[%s4131_s1 + $0xa4] ss:$8 sps:$4 sm:$0xff]  }
   0xe   :  { %v2638_v37 = vld [vmem:[%s4131_s1 + $0x294] ss:$8 sps:$4 sm:$0xff]   ;;  %v2641_v39 = vld [vmem:[%s4131_s1 + $0x290] ss:$8 sps:$4 sm:$0xff]   ;;  %v2644_v41 = vld [vmem:[%s4131_s1 + $0x2a4] ss:$8 sps:$4 sm:$0xff]  }
   0xf   :  { %1337 = vmatpush1.bf16.msra.mxu1 %v2604_v14  ;;  %v2646_v42 = vld [vmem:[%s4131_s1 + $0xa0] ss:$8 sps:$4 sm:$0xff]   ;;  %v2648_v44 = vld [vmem:[%s4131_s1 + $0xb4] ss:$8 sps:$4 sm:$0xff]   ;;  %v2652_v46 = vld [vmem:[%s4131_s1 + $0xb0] ss:$8 sps:$4 sm:$0xff]  }
  0x10   :  { %1563 = vmatpush1.bf16.msra.mxu0 %v2605_v15  ;;  %1338 = vmatprep.subr.bf16.mxu1 %v2606_v16  ;;  %v2647_v43 = vld [vmem:[%s4131_s1 + $0x2a0] ss:$8 sps:$4 sm:$0xff]   ;;  %v2650_v45 = vld [vmem:[%s4131_s1 + $0x2b4] ss:$8 sps:$4 sm:$0xff]   ;;  %v2653_v47 = vld [vmem:[%s4131_s1 + $0x2b0] ss:$8 sps:$4 sm:$0xff]  }
  0x11   :  { %1564 = vmatprep.subr.bf16.mxu0 %v2608_v17  ;;  %v2654_v48 = vld [vmem:[%s4131_s1 + $0xc4] ss:$8 sps:$4 sm:$0xff]   ;;  %v2683_v51 = vld [vmem:[%s4132_s0 + $0x14] ss:$36 sps:$4 sm:$0xff]   ;;  %v2658_v52 = vld [vmem:[%s4131_s1 + $0xc0] ss:$8 sps:$4 sm:$0xff]  }
  0x12   :  { %v2680_v49 = vld [vmem:[%s4132_s0 + $0x4] ss:$36 sps:$4 sm:$0xff]   ;;  %1588 = vmatprep.mubr.bf16.mxu0 %v2683_v51  ;;  %v2660_v54 = vld [vmem:[%s4131_s1 + $0xd4] ss:$8 sps:$4 sm:$0xff]   ;;  %v2664_v56 = vld [vmem:[%s4131_s1 + $0xd0] ss:$8 sps:$4 sm:$0xff]  }
  0x13   :  { %1339 = vmatpush1.bf16.msra.mxu1 %v2610_v18  ;;  %v2656_v50 = vld [vmem:[%s4131_s1 + $0x2c4] ss:$8 sps:$4 sm:$0xff]   ;;  %1362 = vmatprep.mubr.bf16.mxu1 %v2680_v49  ;;  %v2659_v53 = vld [vmem:[%s4131_s1 + $0x2c0] ss:$8 sps:$4 sm:$0xff]   ;;  %v2662_v55 = vld [vmem:[%s4131_s1 + $0x2d4] ss:$8 sps:$4 sm:$0xff]  }
  0x14   :  { %1565 = vmatpush1.bf16.msra.mxu0 %v2611_v19  ;;  %1340 = vmatprep.subr.bf16.mxu1 %v2612_v20  ;;  %v2665_v57 = vld [vmem:[%s4131_s1 + $0x2d0] ss:$8 sps:$4 sm:$0xff]   ;;  %v2666_v58 = vld [vmem:[%s4131_s1 + $0xe4] ss:$8 sps:$4 sm:$0xff]   ;;  %v2670_v60 = vld [vmem:[%s4131_s1 + $0xe0] ss:$8 sps:$4 sm:$0xff]  }
  0x15   :  { %1566 = vmatprep.subr.bf16.mxu0 %v2614_v21  ;;  %v2668_v59 = vld [vmem:[%s4131_s1 + $0x2e4] ss:$8 sps:$4 sm:$0xff]   ;;  %v2671_v61 = vld [vmem:[%s4131_s1 + $0x2e0] ss:$8 sps:$4 sm:$0xff]   ;;  %v2672_v62 = vld [vmem:[%s4131_s1 + $0xf4] ss:$8 sps:$4 sm:$0xff]  }
  0x16   :  { %v2674_v63 = vld [vmem:[%s4131_s1 + $0x2f4] ss:$8 sps:$4 sm:$0xff]   ;;  %v2676_v0 = vld [vmem:[%s4131_s1 + $0xf0] ss:$8 sps:$4 sm:$0xff]   ;;  %v2686_v2 = vld [vmem:[%s4131_s1 + $0x104] ss:$8 sps:$4 sm:$0xff]  }
  0x17   :  { %1341 = vmatpush1.bf16.msra.mxu1 %v2616_v22  ;;  %v2677_v1 = vld [vmem:[%s4131_s1 + $0x2f0] ss:$8 sps:$4 sm:$0xff]   ;;  %v3135_v3 = vld [vmem:[%s4131_s1 + $0x304] ss:$8 sps:$4 sm:$0xff]   ;;  %v2684_v6 = vld [vmem:[%s4131_s1 + $0x100] ss:$8 sps:$4 sm:$0xff]  }
  0x18   :  { %1567 = vmatpush1.bf16.msra.mxu0 %v2617_v23  ;;  %1342 = vmatprep.subr.bf16.mxu1 %v2618_v24  ;;  %v2678_v4 = vld [vmem:[%s4132_s0] ss:$36 sps:$4 sm:$0xff]   ;;  %v2681_v5 = vld [vmem:[%s4132_s0 + $0x10] ss:$36 sps:$4 sm:$0xff]   ;;  %v2700_v16 = vld [vmem:[%s4132_s0 + $0x48] ss:$36 sps:$4 sm:$0xff]  }
  0x19   :  { %1568 = vmatprep.subr.bf16.mxu0 %v2620_v25  ;;  %v3149_v7 = vld [vmem:[%s4131_s1 + $0x300] ss:$8 sps:$4 sm:$0xff]   ;;  %v2692_v8 = vld [vmem:[%s4131_s1 + $0x114] ss:$8 sps:$4 sm:$0xff]   ;;  %v2696_v10 = vld [vmem:[%s4132_s0 + $0x4c] ss:$36 sps:$4 sm:$0xff]  }
  0x1a   :  { %v3158_v9 = vld [vmem:[%s4131_s1 + $0x314] ss:$8 sps:$4 sm:$0xff]   ;;  %v2690_v12 = vld [vmem:[%s4131_s1 + $0x110] ss:$8 sps:$4 sm:$0xff]   ;;  %v2703_v14 = vld [vmem:[%s4131_s1 + $0x124] ss:$8 sps:$4 sm:$0xff]  }
  0x1b   :  { %1343 = vmatpush1.bf16.msra.mxu1 %v2622_v26  ;;  %v2698_v11 = vld [vmem:[%s4132_s0 + $0x5c] ss:$36 sps:$4 sm:$0xff]   ;;  %v3173_v13 = vld [vmem:[%s4131_s1 + $0x310] ss:$8 sps:$4 sm:$0xff]   ;;  %v3182_v15 = vld [vmem:[%s4131_s1 + $0x324] ss:$8 sps:$4 sm:$0xff]  }
  0x1c   :  { %1569 = vmatpush1.bf16.msra.mxu0 %v2623_v27  ;;  %1344 = vmatprep.subr.bf16.mxu1 %v2624_v28  ;;  %v2701_v17 = vld [vmem:[%s4131_s1 + $0x120] ss:$8 sps:$4 sm:$0xff]   ;;  %v2704_v18 = vld [vmem:[%s4132_s0 + $0x58] ss:$36 sps:$4 sm:$0xff]   ;;  %v2721_v26 = vld [vmem:[%s4131_s1 + $0x144] ss:$8 sps:$4 sm:$0xff]  }
  0x1d   :  { %1570 = vmatprep.subr.bf16.mxu0 %v2626_v29  ;;  %v3196_v19 = vld [vmem:[%s4131_s1 + $0x320] ss:$8 sps:$4 sm:$0xff]   ;;  %v2710_v20 = vld [vmem:[%s4131_s1 + $0x134] ss:$8 sps:$4 sm:$0xff]   ;;  %v2708_v24 = vld [vmem:[%s4131_s1 + $0x130] ss:$8 sps:$4 sm:$0xff]  }
  0x1e   :  { %v3206_v21 = vld [vmem:[%s4131_s1 + $0x334] ss:$8 sps:$4 sm:$0xff]   ;;  %v2716_v23 = vld [vmem:[%s4132_s0 + $0xa4] ss:$36 sps:$4 sm:$0xff]   ;;  %v3221_v25 = vld [vmem:[%s4131_s1 + $0x330] ss:$8 sps:$4 sm:$0xff]  }
  0x1f   :  { %1345 = vmatpush1.bf16.msra.mxu1 %v2628_v30  ;;  %v2714_v22 = vld [vmem:[%s4132_s0 + $0x94] ss:$36 sps:$4 sm:$0xff]   ;;  %v3230_v27 = vld [vmem:[%s4131_s1 + $0x344] ss:$8 sps:$4 sm:$0xff]   ;;  %v2719_v29 = vld [vmem:[%s4131_s1 + $0x140] ss:$8 sps:$4 sm:$0xff]  }
  0x20   :  { %1571 = vmatpush1.bf16.msra.mxu0 %v2629_v31  ;;  %1346 = vmatprep.subr.bf16.mxu1 %v2630_v32  ;;  %v2718_v28 = vld [vmem:[%s4132_s0 + $0x90] ss:$36 sps:$4 sm:$0xff]   ;;  %v2722_v30 = vld [vmem:[%s4132_s0 + $0xa0] ss:$36 sps:$4 sm:$0xff]  }
  0x21   :  { %1572 = vmatprep.subr.bf16.mxu0 %v2632_v33  ;;  %v3244_v31 = vld [vmem:[%s4131_s1 + $0x340] ss:$8 sps:$4 sm:$0xff]   ;;  %v2728_v32 = vld [vmem:[%s4131_s1 + $0x154] ss:$8 sps:$4 sm:$0xff]   ;;  %v3317_v49 = vld [vmem:[%s4131_s1 + $0x370] ss:$8 sps:$4 sm:$0xff]  }
  0x22   :  { %v3254_v33 = vld [vmem:[%s4131_s1 + $0x354] ss:$8 sps:$4 sm:$0xff]   ;;  %v3326_v51 = vld [vmem:[%s4131_s1 + $0x384] ss:$8 sps:$4 sm:$0xff]  }
  0x23   :  { %1347 = vmatpush1.bf16.msra.mxu1 %v2634_v34  ;;  %v2732_v34 = vld [vmem:[%s4132_s0 + $0xdc] ss:$36 sps:$4 sm:$0xff]  }
  0x24   :  { %1573 = vmatpush1.bf16.msra.mxu0 %v2635_v35  ;;  %1348 = vmatprep.subr.bf16.mxu1 %v2636_v36  ;;  %v2734_v35 = vld [vmem:[%s4132_s0 + $0xec] ss:$36 sps:$4 sm:$0xff]  }
  0x25   :  { %1574 = vmatprep.subr.bf16.mxu0 %v2638_v37  ;;  %v2726_v36 = vld [vmem:[%s4131_s1 + $0x150] ss:$8 sps:$4 sm:$0xff]  }
  0x26   :  { %v3269_v37 = vld [vmem:[%s4131_s1 + $0x350] ss:$8 sps:$4 sm:$0xff]  }
  0x27   :  { %1349 = vmatpush1.bf16.msra.mxu1 %v2640_v38  ;;  %v2739_v38 = vld [vmem:[%s4131_s1 + $0x164] ss:$8 sps:$4 sm:$0xff]  }
  0x28   :  { %1575 = vmatpush1.bf16.msra.mxu0 %v2641_v39  ;;  %1350 = vmatprep.subr.bf16.mxu1 %v2642_v40  ;;  %v3278_v39 = vld [vmem:[%s4131_s1 + $0x364] ss:$8 sps:$4 sm:$0xff]   ;;  %v2736_v40 = vld [vmem:[%s4132_s0 + $0xd8] ss:$36 sps:$4 sm:$0xff]  }
  0x29   :  { %1576 = vmatprep.subr.bf16.mxu0 %v2644_v41  ;;  %v2737_v41 = vld [vmem:[%s4131_s1 + $0x160] ss:$8 sps:$4 sm:$0xff]  }
  0x2b   :  { %1351 = vmatpush1.bf16.msra.mxu1 %v2646_v42  ;;  %v2740_v42 = vld [vmem:[%s4132_s0 + $0xe8] ss:$36 sps:$4 sm:$0xff]  }
  0x2c   :  { %1577 = vmatpush1.bf16.msra.mxu0 %v2647_v43  ;;  %1352 = vmatprep.subr.bf16.mxu1 %v2648_v44  ;;  %v3292_v43 = vld [vmem:[%s4131_s1 + $0x360] ss:$8 sps:$4 sm:$0xff]   ;;  %v2746_v44 = vld [vmem:[%s4131_s1 + $0x174] ss:$8 sps:$4 sm:$0xff]  }
  0x2d   :  { %1578 = vmatprep.subr.bf16.mxu0 %v2650_v45  ;;  %v3302_v45 = vld [vmem:[%s4131_s1 + $0x374] ss:$8 sps:$4 sm:$0xff]  }
  0x2f   :  { %1353 = vmatpush1.bf16.msra.mxu1 %v2652_v46  ;;  %v2750_v46 = vld [vmem:[%s4132_s0 + $0x124] ss:$36 sps:$4 sm:$0xff]  }
  0x30   :  { %1579 = vmatpush1.bf16.msra.mxu0 %v2653_v47  ;;  %1354 = vmatprep.subr.bf16.mxu1 %v2654_v48  ;;  %v2752_v47 = vld [vmem:[%s4132_s0 + $0x134] ss:$36 sps:$4 sm:$0xff]  }
  0x31   :  { %1580 = vmatprep.subr.bf16.mxu0 %v2656_v50  ;;  %v2744_v48 = vld [vmem:[%s4131_s1 + $0x170] ss:$8 sps:$4 sm:$0xff]   ;;  %v2757_v50 = vld [vmem:[%s4131_s1 + $0x184] ss:$8 sps:$4 sm:$0xff]  }
  0x33   :  { %1355 = vmatpush1.bf16.msra.mxu1 %v2658_v52  ;;  %v2754_v52 = vld [vmem:[%s4132_s0 + $0x120] ss:$36 sps:$4 sm:$0xff]  }
  0x34   :  { %1581 = vmatpush1.bf16.msra.mxu0 %v2659_v53  ;;  %1356 = vmatprep.subr.bf16.mxu1 %v2660_v54  ;;  %v2755_v53 = vld [vmem:[%s4131_s1 + $0x180] ss:$8 sps:$4 sm:$0xff]   ;;  %v2758_v54 = vld [vmem:[%s4132_s0 + $0x130] ss:$36 sps:$4 sm:$0xff]  }
  0x35   :  { %1582 = vmatprep.subr.bf16.mxu0 %v2662_v55  ;;  %v3340_v55 = vld [vmem:[%s4131_s1 + $0x380] ss:$8 sps:$4 sm:$0xff]  }
  0x37   :  { %1357 = vmatpush1.bf16.msra.mxu1 %v2664_v56  ;;  %v2764_v56 = vld [vmem:[%s4131_s1 + $0x194] ss:$8 sps:$4 sm:$0xff]  }
  0x38   :  { %1583 = vmatpush1.bf16.msra.mxu0 %v2665_v57  ;;  %1358 = vmatprep.subr.bf16.mxu1 %v2666_v58  ;;  %v3350_v57 = vld [vmem:[%s4131_s1 + $0x394] ss:$8 sps:$4 sm:$0xff]   ;;  %v2768_v58 = vld [vmem:[%s4132_s0 + $0x16c] ss:$36 sps:$4 sm:$0xff]  }
  0x39   :  { %1584 = vmatprep.subr.bf16.mxu0 %v2668_v59  ;;  %v2770_v59 = vld [vmem:[%s4132_s0 + $0x17c] ss:$36 sps:$4 sm:$0xff]  }
  0x3b   :  { %1359 = vmatpush1.bf16.msra.mxu1 %v2670_v60  ;;  %v2762_v60 = vld [vmem:[%s4131_s1 + $0x190] ss:$8 sps:$4 sm:$0xff]  }
  0x3c   :  { %1585 = vmatpush1.bf16.msra.mxu0 %v2671_v61  ;;  %1360 = vmatprep.subr.bf16.mxu1 %v2672_v62  ;;  %v3365_v61 = vld [vmem:[%s4131_s1 + $0x390] ss:$8 sps:$4 sm:$0xff]   ;;  %v2775_v62 = vld [vmem:[%s4131_s1 + $0x1a4] ss:$8 sps:$4 sm:$0xff]  }
  0x3d   :  { %1586 = vmatprep.subr.bf16.mxu0 %v2674_v63  ;;  %v3374_v63 = vld [vmem:[%s4131_s1 + $0x3a4] ss:$8 sps:$4 sm:$0xff]  }
  0x3f   :  { %1361 = vmatpush1.bf16.msra.mxu1 %v2676_v0  ;;  %v2772_v0 = vld [vmem:[%s4132_s0 + $0x168] ss:$36 sps:$4 sm:$0xff]  }
  0x40   :  { %1587 = vmatpush1.bf16.msra.mxu0 %v2677_v1  ;;  %1443 = vmatprep.subr.bf16.mxu1 %v2686_v2  ;;  %v2773_v1 = vld [vmem:[%s4131_s1 + $0x1a0] ss:$8 sps:$4 sm:$0xff]   ;;  %v2776_v2 = vld [vmem:[%s4132_s0 + $0x178] ss:$36 sps:$4 sm:$0xff]  }
  0x41   :  { %1669 = vmatprep.subr.bf16.mxu0 %v3135_v3 }
  0x42   :  { %1363 = vmatmul.mubr.bf16.vlgmr.msra.gmra.mrb[0].mxu1 %v2678_v4  ;;  %v3388_v4 = vld [vmem:[%s4131_s1 + $0x3a0] ss:$8 sps:$4 sm:$0xff]  }
  0x43   :  { %1589 = vmatmul.mubr.bf16.vlgmr.msra.gmra.mrb[0].mxu0 %v2681_v5  ;;  %1444 = vmatpush1.bf16.msra.mxu1 %v2684_v6  ;;  %v2782_v5 = vld [vmem:[%s4131_s1 + $0x1b4] ss:$8 sps:$4 sm:$0xff]  }
  0x44   :  { %1670 = vmatpush1.bf16.msra.mxu0 %v3149_v7  ;;  %1445 = vmatprep.subr.bf16.mxu1 %v2692_v8  ;;  %v3398_v6 = vld [vmem:[%s4131_s1 + $0x3b4] ss:$8 sps:$4 sm:$0xff]  }
  0x45   :  { %1671 = vmatprep.subr.bf16.mxu0 %v3158_v9  ;;  %1372 = vmatprep.mubr.bf16.mxu1 %v2696_v10  ;;  %v2786_v8 = vld [vmem:[%s4132_s0 + $0x1b4] ss:$36 sps:$4 sm:$0xff]   ;;  %v2788_v10 = vld [vmem:[%s4132_s0 + $0x1c4] ss:$36 sps:$4 sm:$0xff]  }
  0x46   :  { %1598 = vmatprep.mubr.bf16.mxu0 %v2698_v11  ;;  %v2780_v11 = vld [vmem:[%s4131_s1 + $0x1b0] ss:$8 sps:$4 sm:$0xff]  }
  0x47   :  { %1446 = vmatpush1.bf16.msra.mxu1 %v2690_v12  ;;  %v3412_v12 = vld [vmem:[%s4131_s1 + $0x3b0] ss:$8 sps:$4 sm:$0xff]  }
  0x48   :  { %1672 = vmatpush1.bf16.msra.mxu0 %v3173_v13  ;;  %1447 = vmatprep.subr.bf16.mxu1 %v2703_v14  ;;  %v2793_v14 = vld [vmem:[%s4131_s1 + $0x1c4] ss:$8 sps:$4 sm:$0xff]  }
  0x49   :  { %1673 = vmatprep.subr.bf16.mxu0 %v3182_v15 }
  0x4a   :  { %1373 = vmatmul.mubr.bf16.gmra.mrb[4].mxu1 %v2700_v16  ;;  %v3422_v16 = vld [vmem:[%s4131_s1 + $0x3c4] ss:$8 sps:$4 sm:$0xff]  }
  0x4b   :  { %1599 = vmatmul.mubr.bf16.gmra.mrb[4].mxu0 %v2704_v18  ;;  %1448 = vmatpush1.bf16.msra.mxu1 %v2701_v17  ;;  %v2790_v17 = vld [vmem:[%s4132_s0 + $0x1b0] ss:$36 sps:$4 sm:$0xff]   ;;  %v2791_v18 = vld [vmem:[%s4131_s1 + $0x1c0] ss:$8 sps:$4 sm:$0xff]  }
  0x4c   :  { %1674 = vmatpush1.bf16.msra.mxu0 %v3196_v19  ;;  %1449 = vmatprep.subr.bf16.mxu1 %v2710_v20  ;;  %v2794_v20 = vld [vmem:[%s4132_s0 + $0x1c0] ss:$36 sps:$4 sm:$0xff]  }
  0x4d   :  { %1675 = vmatprep.subr.bf16.mxu0 %v3206_v21  ;;  %1382 = vmatprep.mubr.bf16.mxu1 %v2714_v22  ;;  %v3436_v22 = vld [vmem:[%s4131_s1 + $0x3c0] ss:$8 sps:$4 sm:$0xff]  }
  0x4e   :  { %1608 = vmatprep.mubr.bf16.mxu0 %v2716_v23  ;;  %v2800_v23 = vld [vmem:[%s4131_s1 + $0x1d4] ss:$8 sps:$4 sm:$0xff]  }
  0x4f   :  { %1450 = vmatpush1.bf16.msra.mxu1 %v2708_v24  ;;  %v3446_v24 = vld [vmem:[%s4131_s1 + $0x3d4] ss:$8 sps:$4 sm:$0xff]  }
  0x50   :  { %1676 = vmatpush1.bf16.msra.mxu0 %v3221_v25  ;;  %1451 = vmatprep.subr.bf16.mxu1 %v2721_v26  ;;  %v2804_v26 = vld [vmem:[%s4132_s0 + $0x1fc] ss:$36 sps:$4 sm:$0xff]  }
  0x51   :  { %1677 = vmatprep.subr.bf16.mxu0 %v3230_v27 }
  0x52   :  { %1383 = vmatmul.mubr.bf16.gmra.mrb[8].mxu1 %v2718_v28  ;;  %v2806_v28 = vld [vmem:[%s4132_s0 + $0x20c] ss:$36 sps:$4 sm:$0xff]  }
  0x53   :  { %1609 = vmatmul.mubr.bf16.gmra.mrb[8].mxu0 %v2722_v30  ;;  %1452 = vmatpush1.bf16.msra.mxu1 %v2719_v29  ;;  %v2798_v29 = vld [vmem:[%s4131_s1 + $0x1d0] ss:$8 sps:$4 sm:$0xff]  }
  0x54   :  { %1678 = vmatpush1.bf16.msra.mxu0 %v3244_v31  ;;  %1453 = vmatprep.subr.bf16.mxu1 %v2728_v32  ;;  %v3460_v30 = vld [vmem:[%s4131_s1 + $0x3d0] ss:$8 sps:$4 sm:$0xff]   ;;  %v2811_v32 = vld [vmem:[%s4131_s1 + $0x1e4] ss:$8 sps:$4 sm:$0xff]  }
  0x55   :  { %1679 = vmatprep.subr.bf16.mxu0 %v3254_v33  ;;  %1392 = vmatprep.mubr.bf16.mxu1 %v2732_v34  ;;  %v3470_v34 = vld [vmem:[%s4131_s1 + $0x3e4] ss:$8 sps:$4 sm:$0xff]  }
  0x56   :  { %1618 = vmatprep.mubr.bf16.mxu0 %v2734_v35  ;;  %v2808_v35 = vld [vmem:[%s4132_s0 + $0x1f8] ss:$36 sps:$4 sm:$0xff]  }
  0x57   :  { %1454 = vmatpush1.bf16.msra.mxu1 %v2726_v36  ;;  %v2809_v36 = vld [vmem:[%s4131_s1 + $0x1e0] ss:$8 sps:$4 sm:$0xff]  }
  0x58   :  { %1680 = vmatpush1.bf16.msra.mxu0 %v3269_v37  ;;  %1455 = vmatprep.subr.bf16.mxu1 %v2739_v38  ;;  %v2812_v38 = vld [vmem:[%s4132_s0 + $0x208] ss:$36 sps:$4 sm:$0xff]  }
  0x59   :  { %1681 = vmatprep.subr.bf16.mxu0 %v3278_v39 }
  0x5a   :  { %1393 = vmatmul.mubr.bf16.gmra.mrb[12].mxu1 %v2736_v40  ;;  %v3484_v40 = vld [vmem:[%s4131_s1 + $0x3e0] ss:$8 sps:$4 sm:$0xff]  }
  0x5b   :  { %1619 = vmatmul.mubr.bf16.gmra.mrb[12].mxu0 %v2740_v42  ;;  %1456 = vmatpush1.bf16.msra.mxu1 %v2737_v41  ;;  %v2818_v41 = vld [vmem:[%s4131_s1 + $0x1f4] ss:$8 sps:$4 sm:$0xff]  }
  0x5c   :  { %1682 = vmatpush1.bf16.msra.mxu0 %v3292_v43  ;;  %1457 = vmatprep.subr.bf16.mxu1 %v2746_v44  ;;  %v3494_v42 = vld [vmem:[%s4131_s1 + $0x3f4] ss:$8 sps:$4 sm:$0xff]   ;;  %v2824_v44 = vld [vmem:[%s4132_s0 + $0xc] ss:$36 sps:$4 sm:$0xff]  }
  0x5d   :  { %1683 = vmatprep.subr.bf16.mxu0 %v3302_v45  ;;  %1402 = vmatprep.mubr.bf16.mxu1 %v2750_v46  ;;  %v2827_v46 = vld [vmem:[%s4132_s0 + $0x1c] ss:$36 sps:$4 sm:$0xff]  }
  0x5e   :  { %1628 = vmatprep.mubr.bf16.mxu0 %v2752_v47  ;;  %v2816_v47 = vld [vmem:[%s4131_s1 + $0x1f0] ss:$8 sps:$4 sm:$0xff]  }
  0x5f   :  { %1458 = vmatpush1.bf16.msra.mxu1 %v2744_v48  ;;  %v3509_v48 = vld [vmem:[%s4131_s1 + $0x3f0] ss:$8 sps:$4 sm:$0xff]  }
  0x60   :  { %1684 = vmatpush1.bf16.msra.mxu0 %v3317_v49  ;;  %1459 = vmatprep.subr.bf16.mxu1 %v2757_v50  ;;  %v2830_v50 = vld [vmem:[%s4131_s1 + $0x404] ss:$8 sps:$4 sm:$0xff]  }
  0x61   :  { %1685 = vmatprep.subr.bf16.mxu0 %v3326_v51 }
  0x62   :  { %1403 = vmatmul.mubr.bf16.gmra.mrb[16].mxu1 %v2754_v52  ;;  %v2822_v52 = vld [vmem:[%s4132_s0 + $0x8] ss:$36 sps:$4 sm:$0xff]  }
  0x63   :  { %1629 = vmatmul.mubr.bf16.gmra.mrb[16].mxu0 %v2758_v54  ;;  %1460 = vmatpush1.bf16.msra.mxu1 %v2755_v53  ;;  %v2825_v53 = vld [vmem:[%s4132_s0 + $0x18] ss:$36 sps:$4 sm:$0xff]   ;;  %v2828_v54 = vld [vmem:[%s4131_s1 + $0x400] ss:$8 sps:$4 sm:$0xff]  }
  0x64   :  { %1686 = vmatpush1.bf16.msra.mxu0 %v3340_v55  ;;  %1461 = vmatprep.subr.bf16.mxu1 %v2764_v56  ;;  %v2833_v56 = vld [vmem:[%s4131_s1 + $0x414] ss:$8 sps:$4 sm:$0xff]  }
  0x65   :  { %1687 = vmatprep.subr.bf16.mxu0 %v3350_v57  ;;  %1412 = vmatprep.mubr.bf16.mxu1 %v2768_v58  ;;  %v2834_v58 = vld [vmem:[%s4132_s0 + $0x54] ss:$36 sps:$4 sm:$0xff]  }
  0x66   :  { %1638 = vmatprep.mubr.bf16.mxu0 %v2770_v59  ;;  %v2836_v59 = vld [vmem:[%s4132_s0 + $0x64] ss:$36 sps:$4 sm:$0xff]  }
  0x67   :  { %1462 = vmatpush1.bf16.msra.mxu1 %v2762_v60  ;;  %v2831_v60 = vld [vmem:[%s4131_s1 + $0x410] ss:$8 sps:$4 sm:$0xff]  }
  0x68   :  { %1688 = vmatpush1.bf16.msra.mxu0 %v3365_v61  ;;  %1463 = vmatprep.subr.bf16.mxu1 %v2775_v62  ;;  %v2838_v62 = vld [vmem:[%s4132_s0 + $0x50] ss:$36 sps:$4 sm:$0xff]  }
  0x69   :  { %1689 = vmatprep.subr.bf16.mxu0 %v3374_v63 }
  0x6a   :  { %1413 = vmatmul.mubr.bf16.gmra.mrb[20].mxu1 %v2772_v0  ;;  %v2845_v0 = vld [vmem:[%s4131_s1 + $0x434] ss:$8 sps:$4 sm:$0xff]  }
  0x6b   :  { %1639 = vmatmul.mubr.bf16.gmra.mrb[20].mxu0 %v2776_v2  ;;  %1464 = vmatpush1.bf16.msra.mxu1 %v2773_v1  ;;  %v2846_v1 = vld [vmem:[%s4132_s0 + $0x9c] ss:$36 sps:$4 sm:$0xff]   ;;  %v2854_v2 = vld [vmem:[%s4131_s1 + $0x444] ss:$8 sps:$4 sm:$0xff]  }
  0x6c   :  { %1690 = vmatpush1.bf16.msra.mxu0 %v3388_v4  ;;  %1465 = vmatprep.subr.bf16.mxu1 %v2782_v5  ;;  %v2850_v5 = vld [vmem:[%s4132_s0 + $0x98] ss:$36 sps:$4 sm:$0xff]  }
  0x6d   :  { %1691 = vmatprep.subr.bf16.mxu0 %v3398_v6  ;;  %1422 = vmatprep.mubr.bf16.mxu1 %v2786_v8  ;;  %v2857_v8 = vld [vmem:[%s4131_s1 + $0x454] ss:$8 sps:$4 sm:$0xff]  }
  0x6e   :  { %1648 = vmatprep.mubr.bf16.mxu0 %v2788_v10  ;;  %v2858_v10 = vld [vmem:[%s4132_s0 + $0xe4] ss:$36 sps:$4 sm:$0xff]  }
  0x6f   :  { %1466 = vmatpush1.bf16.msra.mxu1 %v2780_v11  ;;  %v2866_v11 = vld [vmem:[%s4131_s1 + $0x464] ss:$8 sps:$4 sm:$0xff]  }
  0x70   :  { %1692 = vmatpush1.bf16.msra.mxu0 %v3412_v12  ;;  %1467 = vmatprep.subr.bf16.mxu1 %v2793_v14  ;;  %v2862_v14 = vld [vmem:[%s4132_s0 + $0xe0] ss:$36 sps:$4 sm:$0xff]  }
  0x71   :  { %1693 = vmatprep.subr.bf16.mxu0 %v3422_v16 }
  0x72   :  { %1423 = vmatmul.mubr.bf16.gmra.mrb[24].mxu1 %v2790_v17  ;;  %v2869_v17 = vld [vmem:[%s4131_s1 + $0x474] ss:$8 sps:$4 sm:$0xff]  }
  0x73   :  { %1649 = vmatmul.mubr.bf16.gmra.mrb[24].mxu0 %v2794_v20  ;;  %1468 = vmatpush1.bf16.msra.mxu1 %v2791_v18  ;;  %v2870_v18 = vld [vmem:[%s4132_s0 + $0x12c] ss:$36 sps:$4 sm:$0xff]  }
  0x74   :  { %1694 = vmatpush1.bf16.msra.mxu0 %v3436_v22  ;;  %1469 = vmatprep.subr.bf16.mxu1 %v2800_v23  ;;  %v2872_v20 = vld [vmem:[%s4132_s0 + $0x128] ss:$36 sps:$4 sm:$0xff]  }
  0x75   :  { %1695 = vmatprep.subr.bf16.mxu0 %v3446_v24  ;;  %1432 = vmatprep.mubr.bf16.mxu1 %v2804_v26  ;;  %v2877_v23 = vld [vmem:[%s4132_s0 + $0x68] ss:$36 sps:$4 sm:$0xff]  }
  0x76   :  { %1658 = vmatprep.mubr.bf16.mxu0 %v2806_v28  ;;  %v2893_v26 = vld [vmem:[%s4132_s0 + $0x188] ss:$36 sps:$4 sm:$0xff]  }
  0x77   :  { %1470 = vmatpush1.bf16.msra.mxu1 %v2798_v29  ;;  %v2894_v28 = vld [vmem:[%s4132_s0 + $0x1cc] ss:$36 sps:$4 sm:$0xff]  }
  0x78   :  { %1696 = vmatpush1.bf16.msra.mxu0 %v3460_v30  ;;  %1471 = vmatprep.subr.bf16.mxu1 %v2811_v32  ;;  %v2896_v29 = vld [vmem:[%s4132_s0 + $0x1c8] ss:$36 sps:$4 sm:$0xff]   ;;  %v2898_v32 = vld [vmem:[%s4132_s0 + $0x214] ss:$36 sps:$4 sm:$0xff]  }
  0x79   :  { %1697 = vmatprep.subr.bf16.mxu0 %v3470_v34 }
  0x7a   :  { %1433 = vmatmul.mubr.bf16.gmra.mrb[28].mxu1 %v2808_v35  ;;  %v2901_v35 = vld [vmem:[%s4132_s0 + $0x218] ss:$36 sps:$4 sm:$0xff]  }
  0x7b   :  { %1659 = vmatmul.mubr.bf16.gmra.mrb[28].mxu0 %v2812_v38  ;;  %1472 = vmatpush1.bf16.msra.mxu1 %v2809_v36 }
  0x7c   :  { %1698 = vmatpush1.bf16.msra.mxu0 %v3484_v40  ;;  %1473 = vmatprep.subr.bf16.mxu1 %v2818_v41 }
  0x7d   :  { %1699 = vmatprep.subr.bf16.mxu0 %v3494_v42  ;;  %1475 = vmatprep.mubr.bf16.mxu1 %v2824_v44 }
  0x7e   :  { %1701 = vmatprep.mubr.bf16.mxu0 %v2827_v46 }
  0x7f   :  { %1474 = vmatpush1.bf16.msra.mxu1 %v2816_v47 }
  0x80   :  { %1700 = vmatpush1.bf16.msra.mxu0 %v3509_v48  ;;  %2420 = vmatprep.subr.bf16.mxu1 %v3135_v3  ;;  %v2842_v3 = vld [vmem:[%s4131_s1 + $0x424] ss:$8 sps:$4 sm:$0xff]  }
  0x81   :  { %1782 = vmatprep.subr.bf16.mxu0 %v2830_v50 }
  0x82   :  { %1476 = vmatmul.mubr.bf16.vlgmr.msra.gmra.mrb[0].mxu1 %v2822_v52 }
  0x83   :  { %1702 = vmatmul.mubr.bf16.vlgmr.msra.gmra.mrb[0].mxu0 %v2825_v53  ;;  %2436 = vmatpush1.bf16.msra.mxu1 %v3149_v7  ;;  %v2839_v7 = vld [vmem:[%s4132_s0 + $0x60] ss:$36 sps:$4 sm:$0xff]  }
  0x84   :  { %1783 = vmatpush1.bf16.msra.mxu0 %v2828_v54  ;;  %2421 = vmatprep.subr.bf16.mxu1 %v3158_v9  ;;  %v2840_v9 = vld [vmem:[%s4131_s1 + $0x420] ss:$8 sps:$4 sm:$0xff]  }
  0x85   :  { %1784 = vmatprep.subr.bf16.mxu0 %v2833_v56  ;;  %1485 = vmatprep.mubr.bf16.mxu1 %v2834_v58 }
  0x86   :  { %1711 = vmatprep.mubr.bf16.mxu0 %v2836_v59 }
  0x87   :  { %2437 = vmatpush1.bf16.msra.mxu1 %v3173_v13  ;;  %v2848_v13 = vld [vmem:[%s4132_s0 + $0xac] ss:$36 sps:$4 sm:$0xff]  }
  0x88   :  { %1785 = vmatpush1.bf16.msra.mxu0 %v2831_v60  ;;  %2422 = vmatprep.subr.bf16.mxu1 %v3182_v15  ;;  %v2843_v15 = vld [vmem:[%s4131_s1 + $0x430] ss:$8 sps:$4 sm:$0xff]  }
  0x89   :  { %1786 = vmatprep.subr.bf16.mxu0 %v2842_v3 }
  0x8a   :  { %1486 = vmatmul.mubr.bf16.gmra.mrb[4].mxu1 %v2838_v62 }
  0x8b   :  { %1712 = vmatmul.mubr.bf16.gmra.mrb[4].mxu0 %v2839_v7  ;;  %2438 = vmatpush1.bf16.msra.mxu1 %v3196_v19  ;;  %v2851_v19 = vld [vmem:[%s4132_s0 + $0xa8] ss:$36 sps:$4 sm:$0xff]  }
  0x8c   :  { %1787 = vmatpush1.bf16.msra.mxu0 %v2840_v9  ;;  %2423 = vmatprep.subr.bf16.mxu1 %v3206_v21  ;;  %v2852_v21 = vld [vmem:[%s4131_s1 + $0x440] ss:$8 sps:$4 sm:$0xff]  }
  0x8d   :  { %1788 = vmatprep.subr.bf16.mxu0 %v2845_v0  ;;  %1495 = vmatprep.mubr.bf16.mxu1 %v2846_v1 }
  0x8e   :  { %1721 = vmatprep.mubr.bf16.mxu0 %v2848_v13 }
  0x8f   :  { %2439 = vmatpush1.bf16.msra.mxu1 %v3221_v25  ;;  %v2860_v25 = vld [vmem:[%s4132_s0 + $0xf4] ss:$36 sps:$4 sm:$0xff]  }
  0x90   :  { %1789 = vmatpush1.bf16.msra.mxu0 %v2843_v15  ;;  %2424 = vmatprep.subr.bf16.mxu1 %v3230_v27  ;;  %v2855_v27 = vld [vmem:[%s4131_s1 + $0x450] ss:$8 sps:$4 sm:$0xff]  }
  0x91   :  { %1790 = vmatprep.subr.bf16.mxu0 %v2854_v2 }
  0x92   :  { %1496 = vmatmul.mubr.bf16.gmra.mrb[8].mxu1 %v2850_v5 }
  0x93   :  { %1722 = vmatmul.mubr.bf16.gmra.mrb[8].mxu0 %v2851_v19  ;;  %2440 = vmatpush1.bf16.msra.mxu1 %v3244_v31  ;;  %v2863_v31 = vld [vmem:[%s4132_s0 + $0xf0] ss:$36 sps:$4 sm:$0xff]  }
  0x94   :  { %1791 = vmatpush1.bf16.msra.mxu0 %v2852_v21  ;;  %2425 = vmatprep.subr.bf16.mxu1 %v3254_v33  ;;  %v2864_v33 = vld [vmem:[%s4131_s1 + $0x460] ss:$8 sps:$4 sm:$0xff]  }
  0x95   :  { %1792 = vmatprep.subr.bf16.mxu0 %v2857_v8  ;;  %1505 = vmatprep.mubr.bf16.mxu1 %v2858_v10 }
  0x96   :  { %1731 = vmatprep.mubr.bf16.mxu0 %v2860_v25 }
  0x97   :  { %2441 = vmatpush1.bf16.msra.mxu1 %v3269_v37  ;;  %v2867_v37 = vld [vmem:[%s4131_s1 + $0x470] ss:$8 sps:$4 sm:$0xff]  }
  0x98   :  { %1793 = vmatpush1.bf16.msra.mxu0 %v2855_v27  ;;  %2426 = vmatprep.subr.bf16.mxu1 %v3278_v39  ;;  %v2904_v39 = vmov 0  }
  0x99   :  { %1794 = vmatprep.subr.bf16.mxu0 %v2866_v11 }
  0x9a   :  { %1506 = vmatmul.mubr.bf16.gmra.mrb[12].mxu1 %v2862_v14 }
  0x9b   :  { %1732 = vmatmul.mubr.bf16.gmra.mrb[12].mxu0 %v2863_v31  ;;  %2442 = vmatpush1.bf16.msra.mxu1 %v3292_v43  ;;  %v2873_v43 = vld [vmem:[%s4132_s0 + $0x20] ss:$36 sps:$4 sm:$0xff]  }
  0x9c   :  { %1795 = vmatpush1.bf16.msra.mxu0 %v2864_v33  ;;  %2427 = vmatprep.subr.bf16.mxu1 %v3302_v45  ;;  %v2874_v45 = vld [vmem:[%s4132_s0 + $0x174] ss:$36 sps:$4 sm:$0xff]  }
  0x9d   :  { %1796 = vmatprep.subr.bf16.mxu0 %v2869_v17  ;;  %1515 = vmatprep.mubr.bf16.mxu1 %v2870_v18 }
  0x9e   :  { %1814 = vmatprep.mubr.bf16.mxu0 %v2904_v39 }
  0x9f   :  { %2443 = vmatpush1.bf16.msra.mxu1 %v3317_v49  ;;  %v2876_v49 = vld [vmem:[%s4132_s0 + $0x170] ss:$36 sps:$4 sm:$0xff]  }
  0xa0   :  { %1797 = vmatpush1.bf16.msra.mxu0 %v2867_v37  ;;  %2428 = vmatprep.subr.bf16.mxu1 %v3326_v51  ;;  %v2878_v51 = vld [vmem:[%s4132_s0 + $0x1bc] ss:$36 sps:$4 sm:$0xff]  }
  0xa2   :  { %1516 = vmatmul.mubr.bf16.gmra.mrb[16].mxu1 %v2872_v20 }
  0xa3   :  { %1815 = vmatmul.mubr.bf16.vlgmr.msra.gmra.mrb[0].mxu0 %v2873_v43  ;;  %2444 = vmatpush1.bf16.msra.mxu1 %v3340_v55  ;;  %v2880_v55 = vld [vmem:[%s4132_s0 + $0x1b8] ss:$36 sps:$4 sm:$0xff]  }
  0xa4   :  { %1525 = vmatprep.mubr.bf16.mxu1 %v2874_v45  ;;  %2429 = vmatprep.subr.bf16.mxu1 %v3350_v57  ;;  %v2881_v57 = vld [vmem:[%s4132_s0 + $0xb0] ss:$36 sps:$4 sm:$0xff]  }
  0xa5   :  { %1824 = vmatprep.mubr.bf16.mxu0 %v2904_v39 }
  0xa7   :  { %2445 = vmatpush1.bf16.msra.mxu1 %v3365_v61  ;;  %v2882_v61 = vld [vmem:[%s4132_s0 + $0x204] ss:$36 sps:$4 sm:$0xff]  }
  0xa8   :  { %2430 = vmatprep.subr.bf16.mxu1 %v3374_v63  ;;  %v2884_v63 = vld [vmem:[%s4132_s0 + $0x200] ss:$36 sps:$4 sm:$0xff]  }
  0xaa   :  { %1526 = vmatmul.mubr.bf16.gmra.mrb[20].mxu1 %v2876_v49 }
  0xab   :  { %1825 = vmatmul.mubr.bf16.gmra.mrb[4].mxu0 %v2877_v23  ;;  %2446 = vmatpush1.bf16.msra.mxu1 %v3388_v4  ;;  %v2885_v4 = vld [vmem:[%s4132_s0 + $0xf8] ss:$36 sps:$4 sm:$0xff]  }
  0xac   :  { %1535 = vmatprep.mubr.bf16.mxu1 %v2878_v51  ;;  %2431 = vmatprep.subr.bf16.mxu1 %v3398_v6  ;;  %v2888_v6 = vld [vmem:[%s4132_s0 + $0x13c] ss:$36 sps:$4 sm:$0xff]  }
  0xad   :  { %1834 = vmatprep.mubr.bf16.mxu0 %v2904_v39 }
  0xaf   :  { %2447 = vmatpush1.bf16.msra.mxu1 %v3412_v12  ;;  %v2886_v12 = vld [vmem:[%s4132_s0 + $0x138] ss:$36 sps:$4 sm:$0xff]  }
  0xb0   :  { %2432 = vmatprep.subr.bf16.mxu1 %v3422_v16  ;;  %v2889_v16 = vld [vmem:[%s4132_s0 + $0x140] ss:$36 sps:$4 sm:$0xff]  }
  0xb2   :  { %1536 = vmatmul.mubr.bf16.gmra.mrb[24].mxu1 %v2880_v55 }
  0xb3   :  { %1835 = vmatmul.mubr.bf16.gmra.mrb[8].mxu0 %v2881_v57  ;;  %2448 = vmatpush1.bf16.msra.mxu1 %v3436_v22  ;;  %v2890_v22 = vld [vmem:[%s4132_s0 + $0x184] ss:$36 sps:$4 sm:$0xff]  }
  0xb4   :  { %1545 = vmatprep.mubr.bf16.mxu1 %v2882_v61  ;;  %2433 = vmatprep.subr.bf16.mxu1 %v3446_v24  ;;  %v2892_v24 = vld [vmem:[%s4132_s0 + $0x180] ss:$36 sps:$4 sm:$0xff]  }
  0xb5   :  { %1844 = vmatprep.mubr.bf16.mxu0 %v2904_v39 }
  0xb7   :  { %2449 = vmatpush1.bf16.msra.mxu1 %v3460_v30  ;;  %v2897_v30 = vld [vmem:[%s4132_s0 + $0x1d0] ss:$36 sps:$4 sm:$0xff]  }
  0xb8   :  { %2434 = vmatprep.subr.bf16.mxu1 %v3470_v34  ;;  %v2900_v34 = vld [vmem:[%s4132_s0 + $0x210] ss:$36 sps:$4 sm:$0xff]   ;;  %s2905_s0 = smov 64  }
  0xba   :  { %1546 = vmatmul.mubr.bf16.gmra.mrb[28].mxu1 %v2884_v63 }
  0xbb   :  { %1845 = vmatmul.mubr.bf16.gmra.mrb[12].mxu0 %v2885_v4  ;;  %2450 = vmatpush1.bf16.msra.mxu1 %v3484_v40 }
  0xbc   :  { %1741 = vmatprep.mubr.bf16.mxu1 %v2888_v6  ;;  %2435 = vmatprep.subr.bf16.mxu1 %v3494_v42 }
  0xbd   :  { %1854 = vmatprep.mubr.bf16.mxu0 %v2904_v39 }
  0xbf   :  { %2451 = vmatpush1.bf16.msra.mxu1 %v3509_v48 }
  0xc2   :  { %1742 = vmatmul.mubr.bf16.vlgmr.msra.gmra.mrb[32].mxu1 %v2886_v12 }
  0xc3   :  { %1855 = vmatmul.mubr.bf16.gmra.mrb[32].mxu0 %v2889_v16  ;;  %1751 = vmatprep.mubr.bf16.mxu1 %v2890_v22 }
  0xc4   :  { %1864 = vmatprep.mubr.bf16.mxu0 %v2904_v39 }
  0xca   :  { %1752 = vmatmul.mubr.bf16.gmra.mrb[36].mxu1 %v2892_v24 }
  0xcb   :  { %1865 = vmatmul.mubr.bf16.gmra.mrb[36].mxu0 %v2893_v26  ;;  %1761 = vmatprep.mubr.bf16.mxu1 %v2894_v28 }
  0xcc   :  { %1874 = vmatprep.mubr.bf16.mxu0 %v2904_v39 }
  0xd2   :  { %1762 = vmatmul.mubr.bf16.gmra.mrb[40].mxu1 %v2896_v29 }
  0xd3   :  { %1875 = vmatmul.mubr.bf16.gmra.mrb[40].mxu0 %v2897_v30  ;;  %1771 = vmatprep.mubr.bf16.mxu1 %v2898_v32 }
  0xd4   :  { %1884 = vmatprep.mubr.bf16.mxu0 %v2904_v39 }
  0xda   :  { %1772 = vmatmul.mubr.bf16.gmra.mrb[44].mxu1 %v2900_v34 }
  0xdb   :  { %1885 = vmatmul.mubr.bf16.gmra.mrb[44].mxu0 %v2901_v35 }
 0x136   :  { %v1630_v36 = vpop.f32.mrb[16].mxu0 }
 0x137   :  { %v1632_v38 = vpop.f32.mrb[17].mxu0 }
 0x138   :  { %v1634_v40 = vpop.f32.mrb[18].mxu0 }
 0x139   :  { %v1636_v41 = vpop.f32.mrb[19].mxu0 }
 0x13e   :  { %v1640_v42 = vpop.f32.mrb[20].mxu0 }
 0x13f   :  { %v1642_v44 = vpop.f32.mrb[21].mxu0 }
 0x140   :  { %v1644_v46 = vpop.f32.mrb[22].mxu0 }
 0x141   :  { %v1646_v47 = vpop.f32.mrb[23].mxu0 }
 0x146   :  { %v1650_v48 = vpop.f32.mrb[24].mxu0 }
 0x147   :  { %v1652_v50 = vpop.f32.mrb[25].mxu0 }
 0x148   :  { %v3715_v52 = vpop.f32.mrb[26].mxu0 }
 0x149   :  { %v3717_v53 = vpop.f32.mrb[27].mxu0 }
 0x14e   :  { %v3719_v54 = vpop.f32.mrb[28].mxu0 }
 0x14f   :  { %v3721_v56 = vpop.f32.mrb[29].mxu0 }
 0x150   :  { %v3723_v58 = vpop.f32.mrb[30].mxu0 }
 0x151   :  { %v3725_v59 = vpop.f32.mrb[31].mxu0 }
 0x155   :  { %v1477_v60 = vpop.f32.mrb[0].mxu1 }
 0x156   :  { %v1479_v3 = vpop.f32.mrb[1].mxu1 }
 0x157   :  { %v1481_v62 = vpop.f32.mrb[2].mxu1 }
 0x158   :  { %v1483_v7 = vpop.f32.mrb[3].mxu1 }
 0x15d   :  { %v1487_v9 = vpop.f32.mrb[4].mxu1 }
 0x15e   :  { %v1489_v0 = vpop.f32.mrb[5].mxu1 }
 0x15f   :  { %v1491_v1 = vpop.f32.mrb[6].mxu1 }
 0x160   :  { %v1493_v13 = vpop.f32.mrb[7].mxu1 }
 0x165   :  { %v1497_v15 = vpop.f32.mrb[8].mxu1 }
 0x166   :  { %v1499_v2 = vpop.f32.mrb[9].mxu1 }
 0x167   :  { %v1501_v5 = vpop.f32.mrb[10].mxu1 }
 0x168   :  { %v1503_v19 = vpop.f32.mrb[11].mxu1 }
 0x16d   :  { %v3727_v21 = vpop.f32.mrb[12].mxu1 }
 0x16e   :  { %v3729_v8 = vpop.f32.mrb[13].mxu1 }
 0x16f   :  { %v3731_v10 = vpop.f32.mrb[14].mxu1 }
 0x170   :  { %v3733_v25 = vpop.f32.mrb[15].mxu1 }
 0x175   :  { %v1517_v27 = vpop.f32.mrb[16].mxu1 }
 0x176   :  { %v1816_v11 = vpop.f32.mrb[0].mxu0  ;;  %v3735_v14 = vadd.f32 %v1630_v36, %v1517_v27  ;;  %v1519_v33 = vpop.f32.mrb[17].mxu1 }
 0x177   :  { %v3737_v31 = vadd.f32 %v1816_v11, %v1477_v60  ;;  %v1818_v17 = vpop.f32.mrb[1].mxu0  ;;  %v3739_v18 = vadd.f32 %v1632_v38, %v1519_v33  ;;  %v1521_v39 = vpop.f32.mrb[18].mxu1 }
 0x178   :  { %v3741_v37 = vadd.f32 %v1818_v17, %v1479_v3  ;;  %v1820_v20 = vpop.f32.mrb[2].mxu0  ;;  %v3743_v43 = vadd.f32 %v1634_v40, %v1521_v39  ;;  %v1523_v49 = vpop.f32.mrb[19].mxu1 }
 0x179   :  { %v3745_v45 = vadd.f32 %v1820_v20, %v1481_v62  ;;  %v1822_v23 = vpop.f32.mrb[3].mxu0  ;;  %v3747_v51 = vadd.f32 %v1636_v41, %v1523_v49 }
 0x17a   :  { %v3749_v55 = vadd.f32 %v1822_v23, %v1483_v7 }
 0x17d   :  { %v1527_v57 = vpop.f32.mrb[20].mxu1 }
 0x17e   :  { %v1826_v61 = vpop.f32.mrb[4].mxu0  ;;  %v3751_v63 = vadd.f32 %v1640_v42, %v1527_v57  ;;  %v1529_v6 = vpop.f32.mrb[21].mxu1 }
 0x17f   :  { %v3753_v4 = vadd.f32 %v1826_v61, %v1487_v9  ;;  %v1828_v12 = vpop.f32.mrb[5].mxu0  ;;  %v3755_v16 = vadd.f32 %v1642_v44, %v1529_v6  ;;  %v1531_v24 = vpop.f32.mrb[22].mxu1 }
 0x180   :  { %v3757_v22 = vadd.f32 %v1828_v12, %v1489_v0  ;;  %v1830_v26 = vpop.f32.mrb[6].mxu0  ;;  %v3759_v28 = vadd.f32 %v1644_v46, %v1531_v24  ;;  %v1533_v30 = vpop.f32.mrb[23].mxu1 }
 0x181   :  { %v3761_v29 = vadd.f32 %v1830_v26, %v1491_v1  ;;  %v1832_v32 = vpop.f32.mrb[7].mxu0  ;;  %v3763_v34 = vadd.f32 %v1646_v47, %v1533_v30 }
 0x182   :  { %v3765_v35 = vadd.f32 %v1832_v32, %v1493_v13  ;;  %v1953_v13 = vmul.f32 %v3749_v55, %v3749_v55 }
 0x185   :  { %v1537_v36 = vpop.f32.mrb[24].mxu1 }
 0x186   :  { %v1836_v38 = vpop.f32.mrb[8].mxu0  ;;  %v3767_v40 = vadd.f32 %v1650_v48, %v1537_v36  ;;  %v1539_v42 = vpop.f32.mrb[25].mxu1 }
 0x187   :  { %v3769_v41 = vadd.f32 %v1836_v38, %v1497_v15  ;;  %v1838_v44 = vpop.f32.mrb[9].mxu0  ;;  %v3771_v60 = vadd.f32 %v1652_v50, %v1539_v42  ;;  %v1541_v3 = vpop.f32.mrb[26].mxu1  ;;  %v1952_v50 = vmul.f32 %v3745_v45, %v3745_v45  ;;  %v1950_v15 = vmul.f32 %v3737_v31, %v3737_v31 }
 0x188   :  { %v3773_v46 = vadd.f32 %v1838_v44, %v1499_v2  ;;  %v1840_v62 = vpop.f32.mrb[10].mxu0  ;;  %v3776_v7 = vadd.f32 %v3715_v52, %v1541_v3  ;;  %v1543_v9 = vpop.f32.mrb[27].mxu1  ;;  %v1895_v52 = vadd.f32 %v3745_v45, %v3737_v31  ;;  %v1954_v2 = vmul.f32 %v3753_v4, %v3753_v4 }
 0x189   :  { %v3778_v47 = vadd.f32 %v1840_v62, %v1501_v5  ;;  %v1842_v0 = vpop.f32.mrb[11].mxu0  ;;  %v3781_v48 = vadd.f32 %v3717_v53, %v1543_v9  ;;  %v1951_v53 = vmul.f32 %v3741_v37, %v3741_v37  ;;  %v1916_v5 = vadd.f32 %v3749_v55, %v3741_v37 }
 0x18a   :  { %v3783_v1 = vadd.f32 %v1842_v0, %v1503_v19  ;;  %v1955_v19 = vmul.f32 %v3757_v22, %v3757_v22  ;;  %v1982_v33 = vadd.f32 %v1952_v50, %v1950_v15  ;;  %v1896_v17 = vadd.f32 %v3753_v4, %v1895_v52 }
 0x18b   :  { %v2003_v57 = vadd.f32 %v1953_v13, %v1951_v53  ;;  %v1917_v61 = vadd.f32 %v3757_v22, %v1916_v5  ;;  %v1959_v62 = vmul.f32 %v3773_v46, %v3773_v46  ;;  %v1960_v52 = vmul.f32 %v3778_v47, %v3778_v47 }
 0x18c   :  { %v1983_v30 = vadd.f32 %v1982_v33, %v1954_v2  ;;  %v1897_v3 = vadd.f32 %v3761_v29, %v1896_v17 }
 0x18d   :  { %v1547_v27 = vpop.f32.mrb[28].mxu1  ;;  %v2004_v42 = vadd.f32 %v2003_v57, %v1955_v19 }
 0x18e   :  { %v1846_v11 = vpop.f32.mrb[12].mxu0  ;;  %v3803_v39 = vadd.f32 %v3719_v54, %v1547_v27  ;;  %v1549_v49 = vpop.f32.mrb[29].mxu1  ;;  %v1956_v54 = vmul.f32 %v3761_v29, %v3761_v29  ;;  %v1898_v0 = vadd.f32 %v3769_v41, %v1897_v3  ;;  %v1961_v27 = vmul.f32 %v3783_v1, %v3783_v1 }
 0x18f   :  { %v3806_v20 = vadd.f32 %v1846_v11, %v3727_v21  ;;  %v1848_v23 = vpop.f32.mrb[13].mxu0  ;;  %v3810_v6 = vadd.f32 %v3721_v56, %v1549_v49  ;;  %v1551_v24 = vpop.f32.mrb[30].mxu1  ;;  %v1957_v56 = vmul.f32 %v3765_v35, %v3765_v35 }
 0x190   :  { %v3813_v12 = vadd.f32 %v1848_v23, %v3729_v8  ;;  %v1850_v26 = vpop.f32.mrb[14].mxu0  ;;  %v3818_v21 = vadd.f32 %v3723_v58, %v1551_v24  ;;  %v1553_v36 = vpop.f32.mrb[31].mxu1  ;;  %v1958_v58 = vmul.f32 %v3769_v41, %v3769_v41  ;;  %v1984_v9 = vadd.f32 %v1983_v30, %v1956_v54 }
 0x191   :  { %v3821_v32 = vadd.f32 %v1850_v26, %v3731_v10  ;;  %v1852_v38 = vpop.f32.mrb[15].mxu0  ;;  %v3826_v8 = vadd.f32 %v3725_v59, %v1553_v36  ;;  %v1918_v10 = vadd.f32 %v3765_v35, %v1917_v61  ;;  %v2005_v50 = vadd.f32 %v2004_v42, %v1957_v56 }
 0x192   :  { %v3829_v44 = vadd.f32 %v1852_v38, %v3733_v25  ;;  %v1985_v25 = vadd.f32 %v1984_v9, %v1958_v58  ;;  %v1899_v49 = vadd.f32 %v3778_v47, %v1898_v0  ;;  %v1962_v23 = vmul.f32 %v3806_v20, %v3806_v20 }
 0x193   :  { %v1919_v59 = vadd.f32 %v3773_v46, %v1918_v10  ;;  %v2006_v19 = vadd.f32 %v2005_v50, %v1959_v62  ;;  %v1963_v30 = vmul.f32 %v3813_v12, %v3813_v12  ;;  %v1964_v10 = vmul.f32 %v3821_v32, %v3821_v32 }
 0x194   :  { %v1986_v36 = vadd.f32 %v1985_v25, %v1960_v52  ;;  %v1900_v38 = vadd.f32 %v3806_v20, %v1899_v49  ;;  %v1965_v9 = vmul.f32 %v3829_v44, %v3829_v44 }
 0x195   :  { %v1743_v13 = vpop.f32.mrb[32].mxu1  ;;  %v1920_v26 = vadd.f32 %v3783_v1, %v1919_v59  ;;  %v2007_v56 = vadd.f32 %v2006_v19, %v1961_v27 }
 0x196   :  { %v1856_v15 = vpop.f32.mrb[32].mxu0  ;;  %v2469_v2 = vadd.f32 %v3735_v14, %v1743_v13  ;;  %v1745_v53 = vpop.f32.mrb[33].mxu1  ;;  %v1987_v58 = vadd.f32 %v1986_v36, %v1962_v23  ;;  %v1901_v50 = vadd.f32 %v3821_v32, %v1900_v38 }
 0x197   :  { %v1858_v5 = vpop.f32.mrb[33].mxu0  ;;  %v2472_v11 = vadd.f32 %v3739_v18, %v1745_v53  ;;  %v1747_v33 = vpop.f32.mrb[34].mxu1  ;;  %v1921_v3 = vadd.f32 %v3813_v12, %v1920_v26  ;;  %v2008_v62 = vadd.f32 %v2007_v56, %v1963_v30 }
 0x198   :  { %v1860_v17 = vpop.f32.mrb[34].mxu0  ;;  %v3848_v57 = vadd.f32 %v2469_v2, %v1856_v15  ;;  %v2475_v61 = vadd.f32 %v3743_v43, %v1747_v33  ;;  %v1749_v14 = vpop.f32.mrb[35].mxu1  ;;  %v1988_v27 = vadd.f32 %v1987_v58, %v1964_v10 }
 0x199   :  { %v1862_v24 = vpop.f32.mrb[35].mxu0  ;;  %v3854_v54 = vadd.f32 %v2472_v11, %v1858_v5  ;;  %v2478_v18 = vadd.f32 %v3747_v51, %v1749_v14  ;;  %v1922_v52 = vadd.f32 %v3829_v44, %v1921_v3  ;;  %v2009_v23 = vadd.f32 %v2008_v62, %v1965_v9 }
 0x19a   :  { %v3858_v42 = vadd.f32 %v2475_v61, %v1860_v17  ;;  %v1966_v59 = vmul.f32 %v3848_v57, %v3848_v57  ;;  %v1902_v11 = vadd.f32 %v3848_v57, %v1901_v50 }
 0x19b   :  { %v3861_v43 = vadd.f32 %v2478_v18, %v1862_v24  ;;  %v1967_v2 = vmul.f32 %v3854_v54, %v3854_v54  ;;  %v1923_v61 = vadd.f32 %v3854_v54, %v1922_v52 }
 0x19c   :  { %v1989_v26 = vadd.f32 %v1988_v27, %v1966_v59  ;;  %v1903_v38 = vadd.f32 %v3858_v42, %v1902_v11 }
 0x19d   :  { %v1753_v0 = vpop.f32.mrb[36].mxu1  ;;  %v2010_v18 = vadd.f32 %v2009_v23, %v1967_v2  ;;  %v1969_v36 = vmul.f32 %v3861_v43, %v3861_v43  ;;  %v1924_v3 = vadd.f32 %v3861_v43, %v1923_v61 }
 0x19e   :  { %v1866_v51 = vpop.f32.mrb[36].mxu0  ;;  %v2481_v13 = vadd.f32 %v3751_v63, %v1753_v0  ;;  %v1755_v15 = vpop.f32.mrb[37].mxu1 }
 0x19f   :  { %v1868_v25 = vpop.f32.mrb[37].mxu0  ;;  %v2484_v53 = vadd.f32 %v3755_v16, %v1755_v15  ;;  %v1757_v5 = vpop.f32.mrb[38].mxu1  ;;  %v1968_v16 = vmul.f32 %v3858_v42, %v3858_v42  ;;  %v2011_v59 = vadd.f32 %v2010_v18, %v1969_v36 }
 0x1a0   :  { %v1870_v19 = vpop.f32.mrb[38].mxu0  ;;  %v3876_v33 = vadd.f32 %v2481_v13, %v1866_v51  ;;  %v2487_v17 = vadd.f32 %v3759_v28, %v1757_v5  ;;  %v1759_v49 = vpop.f32.mrb[39].mxu1 }
 0x1a1   :  { %v1872_v63 = vpop.f32.mrb[39].mxu0  ;;  %v3880_v14 = vadd.f32 %v2484_v53, %v1868_v25  ;;  %v2490_v24 = vadd.f32 %v3763_v34, %v1759_v49  ;;  %v1990_v62 = vadd.f32 %v1989_v26, %v1968_v16 }
 0x1a2   :  { %v3885_v30 = vadd.f32 %v2487_v17, %v1870_v19  ;;  %v1970_v56 = vmul.f32 %v3876_v33, %v3876_v33  ;;  %v1904_v9 = vadd.f32 %v3876_v33, %v1903_v38 }
 0x1a3   :  { %v3889_v28 = vadd.f32 %v2490_v24, %v1872_v63  ;;  %v1971_v34 = vmul.f32 %v3880_v14, %v3880_v14  ;;  %v1925_v13 = vadd.f32 %v3880_v14, %v1924_v3 }
 0x1a4   :  { %v1991_v2 = vadd.f32 %v1990_v62, %v1970_v56  ;;  %v1972_v53 = vmul.f32 %v3885_v30, %v3885_v30  ;;  %v1905_v63 = vadd.f32 %v3885_v30, %v1904_v9 }
 0x1a5   :  { %v1763_v58 = vpop.f32.mrb[40].mxu1  ;;  %v1973_v17 = vmul.f32 %v3889_v28, %v3889_v28  ;;  %v1926_v24 = vadd.f32 %v3889_v28, %v1925_v13 }
 0x1a6   :  { %v1876_v10 = vpop.f32.mrb[40].mxu0  ;;  %v2493_v0 = vadd.f32 %v3767_v40, %v1763_v58  ;;  %v1765_v51 = vpop.f32.mrb[41].mxu1  ;;  %v2012_v40 = vadd.f32 %v2011_v59, %v1971_v34  ;;  %v1992_v16 = vadd.f32 %v1991_v2, %v1972_v53 }
 0x1a7   :  { %v1878_v50 = vpop.f32.mrb[41].mxu0  ;;  %v2496_v15 = vadd.f32 %v3771_v60, %v1765_v51  ;;  %v1767_v25 = vpop.f32.mrb[42].mxu1 }
 0x1a8   :  { %v1880_v52 = vpop.f32.mrb[42].mxu0  ;;  %v3903_v5 = vadd.f32 %v2493_v0, %v1876_v10  ;;  %v2499_v19 = vadd.f32 %v3776_v7, %v1767_v25  ;;  %v1769_v27 = vpop.f32.mrb[43].mxu1  ;;  %v2013_v36 = vadd.f32 %v2012_v40, %v1973_v17 }
 0x1a9   :  { %v1882_v11 = vpop.f32.mrb[43].mxu0  ;;  %v3908_v49 = vadd.f32 %v2496_v15, %v1878_v50  ;;  %v2502_v60 = vadd.f32 %v3781_v48, %v1769_v27 }
 0x1aa   :  { %v1974_v23 = vmul.f32 %v3903_v5, %v3903_v5  ;;  %v3914_v61 = vadd.f32 %v2499_v19, %v1880_v52  ;;  %v1906_v18 = vadd.f32 %v3903_v5, %v1905_v63 }
 0x1ab   :  { %v1975_v7 = vmul.f32 %v3908_v49, %v3908_v49  ;;  %v3919_v26 = vadd.f32 %v2502_v60, %v1882_v11  ;;  %v1927_v48 = vadd.f32 %v3908_v49, %v1926_v24 }
 0x1ac   :  { %v1993_v3 = vadd.f32 %v1992_v16, %v1974_v23  ;;  %v1976_v34 = vmul.f32 %v3914_v61, %v3914_v61  ;;  %v1907_v13 = vadd.f32 %v3914_v61, %v1906_v18 }
 0x1ad   :  { %v1773_v38 = vpop.f32.mrb[44].mxu1  ;;  %v2014_v9 = vadd.f32 %v2013_v36, %v1975_v7  ;;  %v1977_v0 = vmul.f32 %v3919_v26, %v3919_v26 }
 0x1ae   :  { %v1886_v56 = vpop.f32.mrb[44].mxu0  ;;  %v2505_v58 = vadd.f32 %v3803_v39, %v1773_v38  ;;  %v1775_v10 = vpop.f32.mrb[45].mxu1  ;;  %v1928_v39 = vadd.f32 %v3919_v26, %v1927_v48  ;;  %v1994_v27 = vadd.f32 %v1993_v3, %v1976_v34 }
 0x1af   :  { %v1888_v62 = vpop.f32.mrb[45].mxu0  ;;  %v2508_v51 = vadd.f32 %v3810_v6, %v1775_v10  ;;  %v1777_v50 = vpop.f32.mrb[46].mxu1  ;;  %v2015_v17 = vadd.f32 %v2014_v9, %v1977_v0 }
 0x1b0   :  { %v1890_v59 = vpop.f32.mrb[46].mxu0  ;;  %v3930_v15 = vadd.f32 %v2505_v58, %v1886_v56  ;;  %v2511_v25 = vadd.f32 %v3818_v21, %v1777_v50  ;;  %v1779_v52 = vpop.f32.mrb[47].mxu1 }
 0x1b1   :  { %v1892_v2 = vpop.f32.mrb[47].mxu0  ;;  %v3934_v53 = vadd.f32 %v2508_v51, %v1888_v62  ;;  %v2514_v19 = vadd.f32 %v3826_v8, %v1779_v52 }
 0x1b2   :  { %v1908_v11 = vadd.f32 %v3930_v15, %v1907_v13  ;;  %v1978_v6 = vmul.f32 %v3930_v15, %v3930_v15  ;;  %v3940_v40 = vadd.f32 %v2511_v25, %v1890_v59 }
 0x1b3   :  { %v1929_v60 = vadd.f32 %v3934_v53, %v1928_v39  ;;  %v1979_v21 = vmul.f32 %v3934_v53, %v3934_v53  ;;  %v3945_v63 = vadd.f32 %v2514_v19, %v1892_v2 }
 0x1b4   :  { %v1995_v23 = vadd.f32 %v1994_v27, %v1978_v6  ;;  %v1909_v24 = vadd.f32 %v3940_v40, %v1908_v11  ;;  %v1980_v8 = vmul.f32 %v3940_v40, %v3940_v40 }
 0x1b5   :  { %v2016_v7 = vadd.f32 %v2015_v17, %v1979_v21  ;;  %v1930_v16 = vadd.f32 %v3945_v63, %v1929_v60  ;;  %v1981_v18 = vmul.f32 %v3945_v63, %v3945_v63 }
 0x1b6   :  { %v1910_v36 = vrot.slane %v1909_v24, 4  ;;  %v1996_v48 = vadd.f32 %v1995_v23, %v1980_v8 }
 0x1b7   :  { %v1931_v38 = vrot.slane %v1930_v16, 4  ;;  %v2017_v56 = vadd.f32 %v2016_v7, %v1981_v18 }
 0x1b8   :  { %v1997_v3 = vrot.slane %v1996_v48, 4  ;;  %v1911_v34 = vadd.f32 %v1910_v36, %v1909_v24 }
 0x1b9   :  { %v2018_v58 = vrot.slane %v2017_v56, 4  ;;  %v1932_v10 = vadd.f32 %v1931_v38, %v1930_v16 }
 0x1ba   :  { %v1912_v62 = vrot.slane %v1911_v34, 2  ;;  %v1998_v9 = vadd.f32 %v1997_v3, %v1996_v48 }
 0x1bb   :  { %v1933_v0 = vrot.slane %v1932_v10, 2  ;;  %v2019_v51 = vadd.f32 %v2018_v58, %v2017_v56 }
 0x1bc   :  { %v1913_v50 = vadd.f32 %v1912_v62, %v1911_v34  ;;  %v1999_v59 = vrot.slane %v1998_v9, 2 }
 0x1bd   :  { %v1934_v13 = vadd.f32 %v1933_v0, %v1932_v10  ;;  %v2020_v25 = vrot.slane %v2019_v51, 2 }
 0x1be   :  { %v1914_v52 = vrot.slane %v1913_v50, 1  ;;  %v2000_v2 = vadd.f32 %v1999_v59, %v1998_v9  ;;  %v2046_v9 = vlaneseq }
 0x1bf   :  { %v1935_v39 = vrot.slane %v1934_v13, 1  ;;  %v2021_v19 = vadd.f32 %v2020_v25, %v2019_v51  ;;  %v2038_v51 = vld [vmem:[%s4133_s2] sm:$0x1] }
 0x1c0   :  { %v1915_v27 = vadd.f32 %v1914_v52, %v1913_v50  ;;  %v2001_v11 = vrot.slane %v2000_v2, 1  ;;  %v2047_v0 = vshrl.u32 %v2046_v9, 7  ;;  %v2042_v25 = vld [vmem:[%s4134_s3] sm:$0x1] }
 0x1c1   :  { %v1936_v6 = vadd.f32 %v1935_v39, %v1934_v13  ;;  %v2022_v17 = vrot.slane %v2021_v19, 1 }
 0x1c2   :  { %1938 = vrot.lane.b32.xlu0 %v1915_v27, %s2905_s0  ;;  %v2002_v60 = vadd.f32 %v2001_v11, %v2000_v2  ;;  %v2048_v50 = vsub.s32 0, %v2047_v0 }
 0x1c3   :  { %1944 = vrot.lane.b32.xlu1 %v1936_v6, %s2905_s0  ;;  %v2023_v21 = vadd.f32 %v2022_v17, %v2021_v19 }
 0x1c6   :  { %2025 = vrot.lane.b32.xlu0 %v2002_v60, %s2905_s0 }
 0x1c7   :  { %2031 = vrot.lane.b32.xlu1 %v2023_v21, %s2905_s0 }
 0x234   :  { %v1939_v23 = vpop.permute.xlu0 %1938 }
 0x235   :  { %v1941_v24 = vadd.f32 %v1939_v23, %v1915_v27  ;;  %v1945_v8 = vpop.permute.xlu1 %1944 }
 0x237   :  { %v1942_v7 = vadd.f32 %v1941_v24, %v1936_v6 }
 0x238   :  { %v2026_v16 = vpop.permute.xlu0 %2025 }
 0x239   :  { %v1947_v18 = vadd.f32 %v1945_v8, %v1942_v7  ;;  %v2028_v36 = vadd.f32 %v2026_v16, %v2002_v60  ;;  %v2032_v56 = vpop.permute.xlu1 %2031 }
 0x23b   :  { %v1949_v48 = vmul.f32 0.001953125, %v1947_v18  ;;  %v2029_v38 = vadd.f32 %v2028_v36, %v2023_v21 }
 0x23d   :  { %v2034_v3 = vadd.f32 %v2032_v56, %v2029_v38  ;;  %v2036_v34 = vmul.f32 %v1949_v48, %v1949_v48 }
 0x23f   :  { %v2035_v58 = vmul.f32 0.001953125, %v2034_v3 }
 0x241   :  { %v2037_v10 = vsub.f32 %v2035_v58, %v2036_v34 }
 0x243   :  { %v2039_v62 = vadd.f32 1e-05, %v2037_v10 }
 0x245   :  { %2902 = vrsqrt.f32 %v2039_v62 }
 0x24f   :  { %v2903_v59 = vpop.eup %2902 }
 0x250   :  { %v2041_v13 = vmul.f32 %v2903_v59, %v2038_v51 }
 0x252   :  { %v2049_v52 = vrot.slane %v2041_v13, %v2048_v50  ;;  %v2043_v2 = vmul.f32 %v2041_v13, %v1949_v48 }
 0x254   :  { %2050 = vrot.lane.b32.xlu0 %v2049_v52, %s2905_s0  ;;  %v2044_v39 = vsub.f32 %v2042_v25, %v2043_v2 }
 0x256   :  { %v2059_v19 = vrot.slane %v2044_v39, %v2048_v50 }
 0x258   :  { %2060 = vrot.lane.b32.xlu1 %v2059_v19, %s2905_s0 }
 0x2c6   :  { %v2051_v27 = vpop.permute.xlu0 %2050 }
 0x2c7   :  { %v2054_v11 = vsel %vm2053_vm0, %v2041_v13, %v2051_v27 }
 0x2c8   :  { %v2067_v6 = vrot.slane %v2054_v11, %v2048_v50 }
 0x2ca   :  { %v2068_v17 = vmul.f32 %v3737_v31, %v2067_v6  ;;  %v2069_v60 = vmul.f32 %v3741_v37, %v2067_v6  ;;  %v2070_v21 = vmul.f32 %v3745_v45, %v2067_v6  ;;  %v2071_v23 = vmul.f32 %v3749_v55, %v2067_v6  ;;  %v2061_v48 = vpop.permute.xlu1 %2060 }
 0x2cb   :  { %v2072_v24 = vmul.f32 %v3753_v4, %v2067_v6  ;;  %v2073_v8 = vmul.f32 %v3757_v22, %v2067_v6  ;;  %v2074_v7 = vmul.f32 %v3761_v29, %v2067_v6  ;;  %v2075_v16 = vmul.f32 %v3765_v35, %v2067_v6 }
 0x2cc   :  { %v2076_v18 = vmul.f32 %v3769_v41, %v2067_v6  ;;  %v2077_v36 = vmul.f32 %v3773_v46, %v2067_v6  ;;  %v2078_v31 = vmul.f32 %v3778_v47, %v2067_v6  ;;  %v2079_v37 = vmul.f32 %v3783_v1, %v2067_v6 }
 0x2cd   :  { %v2080_v45 = vmul.f32 %v3806_v20, %v2067_v6  ;;  %v2081_v55 = vmul.f32 %v3813_v12, %v2067_v6  ;;  %v2082_v4 = vmul.f32 %v3821_v32, %v2067_v6  ;;  %v2083_v22 = vmul.f32 %v3829_v44, %v2067_v6 }
 0x2ce   :  { %v2084_v29 = vmul.f32 %v3848_v57, %v2067_v6  ;;  %v2085_v35 = vmul.f32 %v3854_v54, %v2067_v6  ;;  %v2086_v41 = vmul.f32 %v3858_v42, %v2067_v6  ;;  %v2087_v46 = vmul.f32 %v3861_v43, %v2067_v6 }
 0x2cf   :  { %v2088_v47 = vmul.f32 %v3876_v33, %v2067_v6  ;;  %v2089_v1 = vmul.f32 %v3880_v14, %v2067_v6  ;;  %v2090_v20 = vmul.f32 %v3885_v30, %v2067_v6  ;;  %v2091_v12 = vmul.f32 %v3889_v28, %v2067_v6 }
 0x2d0   :  { %v2092_v32 = vmul.f32 %v3903_v5, %v2067_v6  ;;  %v2063_v44 = vsel %vm2053_vm0, %v2044_v39, %v2061_v48  ;;  %v2093_v57 = vmul.f32 %v3908_v49, %v2067_v6  ;;  %v2094_v54 = vmul.f32 %v3914_v61, %v2067_v6 }
 0x2d1   :  { %v2095_v42 = vmul.f32 %v3919_v26, %v2067_v6  ;;  %v2103_v38 = vrot.slane %v2063_v44, %v2048_v50  ;;  %v2096_v43 = vmul.f32 %v3930_v15, %v2067_v6  ;;  %v2097_v33 = vmul.f32 %v3934_v53, %v2067_v6 }
 0x2d2   :  { %v2098_v14 = vmul.f32 %v3940_v40, %v2067_v6  ;;  %v2099_v30 = vmul.f32 %v3945_v63, %v2067_v6 }
 0x2d3   :  { %v2104_v28 = vadd.f32 %v2103_v38, %v2068_v17  ;;  %v2105_v56 = vadd.f32 %v2103_v38, %v2069_v60  ;;  %v2106_v5 = vadd.f32 %v2103_v38, %v2070_v21  ;;  %v2107_v3 = vadd.f32 %v2103_v38, %v2071_v23 }
 0x2d4   :  { %v2108_v34 = vadd.f32 %v2103_v38, %v2072_v24  ;;  %v2109_v58 = vadd.f32 %v2103_v38, %v2073_v8  ;;  %v2110_v49 = vadd.f32 %v2103_v38, %v2074_v7  ;;  %v2111_v10 = vadd.f32 %v2103_v38, %v2075_v16 }
 0x2d5   :  { %v2112_v61 = vadd.f32 %v2103_v38, %v2076_v18  ;;  %v2113_v62 = vadd.f32 %v2103_v38, %v2077_v36  ;;  %v2114_v26 = vadd.f32 %v2103_v38, %v2078_v31  ;;  %v2115_v9 = vadd.f32 %v2103_v38, %v2079_v37 }
 0x2d6   :  { %v2116_v0 = vadd.f32 %v2103_v38, %v2080_v45  ;;  %v2117_v15 = vadd.f32 %v2103_v38, %v2081_v55  ;;  %v2118_v51 = vadd.f32 %v2103_v38, %v2082_v4  ;;  %v2119_v53 = vadd.f32 %v2103_v38, %v2083_v22 }
 0x2d7   :  { %v2120_v50 = vadd.f32 %v2103_v38, %v2084_v29  ;;  %v2121_v40 = vadd.f32 %v2103_v38, %v2085_v35  ;;  %v2122_v59 = vadd.f32 %v2103_v38, %v2086_v41  ;;  %v2123_v63 = vadd.f32 %v2103_v38, %v2087_v46 }
 0x2d8   :  { %v3999_v13 = vadd.f32 %v2103_v38, %v2088_v47  ;;  %v4001_v25 = vadd.f32 %v2103_v38, %v2089_v1  ;;  %v4003_v52 = vadd.f32 %v2103_v38, %v2090_v20  ;;  %v4005_v2 = vadd.f32 %v2103_v38, %v2091_v12 }
 0x2d9   :  { %v4007_v39 = vadd.f32 %v2103_v38, %v2092_v32  ;;  %v4009_v19 = vadd.f32 %v2103_v38, %v2093_v57  ;;  %v4011_v27 = vadd.f32 %v2103_v38, %v2094_v54  ;;  %v4013_v11 = vadd.f32 %v2103_v38, %v2095_v42 }
 0x2da   :  { %v4015_v6 = vadd.f32 %v2103_v38, %v2096_v43  ;;  %v4017_v17 = vadd.f32 %v2103_v38, %v2097_v33  ;;  %v4019_v60 = vadd.f32 %v2103_v38, %v2098_v14  ;;  %v4021_v21 = vadd.f32 %v2103_v38, %v2099_v30 }
 0x2db   :  { %v2136_v23 = vmax.f32 %v2104_v28, 0.0  ;;  %v2137_v24 = vmax.f32 %v2105_v56, 0.0  ;;  %v2138_v8 = vmax.f32 %v2106_v5, 0.0  ;;  %v2139_v7 = vmax.f32 %v2107_v3, 0.0 }
 0x2dc   :  { %v2140_v16 = vmax.f32 %v2108_v34, 0.0  ;;  %v2141_v18 = vmax.f32 %v2109_v58, 0.0  ;;  %v2142_v36 = vmax.f32 %v2110_v49, 0.0  ;;  %v2143_v31 = vmax.f32 %v2111_v10, 0.0 }
 0x2dd   :  { %v2144_v37 = vmax.f32 %v2112_v61, 0.0  ;;  %v2145_v45 = vmax.f32 %v2113_v62, 0.0  ;;  %v2146_v55 = vmax.f32 %v2114_v26, 0.0  ;;  %v2147_v48 = vmax.f32 %v2115_v9, 0.0  ;;  %2168 = vst [vmem:[%s4135_s4] sm:$0xff] %v2136_v23  ;;  %2169 = vst [vmem:[%s4135_s4 + $0x8] sm:$0xff] %v2137_v24 }
 0x2de   :  { %2170 = vst [vmem:[%s4135_s4 + $0x10] sm:$0xff] %v2138_v8  ;;  %2171 = vst [vmem:[%s4135_s4 + $0x18] sm:$0xff] %v2139_v7  ;;  %v2148_v4 = vmax.f32 %v2116_v0, 0.0  ;;  %v2149_v22 = vmax.f32 %v2117_v15, 0.0  ;;  %v2150_v29 = vmax.f32 %v2118_v51, 0.0  ;;  %v2151_v35 = vmax.f32 %v2119_v53, 0.0 }
 0x2df   :  { %2172 = vst [vmem:[%s4135_s4 + $0x20] sm:$0xff] %v2140_v16  ;;  %2173 = vst [vmem:[%s4135_s4 + $0x28] sm:$0xff] %v2141_v18  ;;  %v2152_v41 = vmax.f32 %v2120_v50, 0.0  ;;  %v2153_v46 = vmax.f32 %v2121_v40, 0.0  ;;  %v2154_v47 = vmax.f32 %v2122_v59, 0.0  ;;  %v2155_v1 = vmax.f32 %v2123_v63, 0.0 }
 0x2e0   :  { %2174 = vst [vmem:[%s4135_s4 + $0x30] sm:$0xff] %v2142_v36  ;;  %2175 = vst [vmem:[%s4135_s4 + $0x38] sm:$0xff] %v2143_v31  ;;  %v2156_v20 = vmax.f32 %v3999_v13, 0.0  ;;  %v2157_v12 = vmax.f32 %v4001_v25, 0.0  ;;  %v2158_v32 = vmax.f32 %v4003_v52, 0.0  ;;  %v2159_v44 = vmax.f32 %v4005_v2, 0.0 }
 0x2e1   :  { %2176 = vst [vmem:[%s4135_s4 + $0x40] sm:$0xff] %v2144_v37  ;;  %2177 = vst [vmem:[%s4135_s4 + $0x48] sm:$0xff] %v2145_v45  ;;  %v2160_v57 = vmax.f32 %v4007_v39, 0.0  ;;  %v2161_v54 = vmax.f32 %v4009_v19, 0.0  ;;  %v2162_v42 = vmax.f32 %v4011_v27, 0.0  ;;  %v2163_v38 = vmax.f32 %v4013_v11, 0.0 }
 0x2e2   :  { %2178 = vst [vmem:[%s4135_s4 + $0x50] sm:$0xff] %v2146_v55  ;;  %2179 = vst [vmem:[%s4135_s4 + $0x58] sm:$0xff] %v2147_v48  ;;  %v2164_v43 = vmax.f32 %v4015_v6, 0.0  ;;  %v2165_v33 = vmax.f32 %v4017_v17, 0.0  ;;  %v2166_v14 = vmax.f32 %v4019_v60, 0.0  ;;  %v2167_v30 = vmax.f32 %v4021_v21, 0.0 }
 0x2e3   :  { %2180 = vst [vmem:[%s4135_s4 + $0x60] sm:$0xff] %v2148_v4  ;;  %2181 = vst [vmem:[%s4135_s4 + $0x68] sm:$0xff] %v2149_v22 }
 0x2e4   :  { %2182 = vst [vmem:[%s4135_s4 + $0x70] sm:$0xff] %v2150_v29  ;;  %2183 = vst [vmem:[%s4135_s4 + $0x78] sm:$0xff] %v2151_v35 }
 0x2e5   :  { %2184 = vst [vmem:[%s4135_s4 + $0x80] sm:$0xff] %v2152_v41  ;;  %2185 = vst [vmem:[%s4135_s4 + $0x88] sm:$0xff] %v2153_v46 }
 0x2e6   :  { %2186 = vst [vmem:[%s4135_s4 + $0x90] sm:$0xff] %v2154_v47  ;;  %2187 = vst [vmem:[%s4135_s4 + $0x98] sm:$0xff] %v2155_v1 }
 0x2e7   :  { %2188 = vst [vmem:[%s4135_s4 + $0xa0] sm:$0xff] %v2156_v20  ;;  %2189 = vst [vmem:[%s4135_s4 + $0xa8] sm:$0xff] %v2157_v12 }
 0x2e8   :  { %2190 = vst [vmem:[%s4135_s4 + $0xb0] sm:$0xff] %v2158_v32  ;;  %2191 = vst [vmem:[%s4135_s4 + $0xb8] sm:$0xff] %v2159_v44 }
 0x2e9   :  { %2192 = vst [vmem:[%s4135_s4 + $0xc0] sm:$0xff] %v2160_v57  ;;  %2193 = vst [vmem:[%s4135_s4 + $0xc8] sm:$0xff] %v2161_v54 }
 0x2ea   :  { %2194 = vst [vmem:[%s4135_s4 + $0xd0] sm:$0xff] %v2162_v42  ;;  %2195 = vst [vmem:[%s4135_s4 + $0xd8] sm:$0xff] %v2163_v38 }
 0x2eb   :  { %2196 = vst [vmem:[%s4135_s4 + $0xe0] sm:$0xff] %v2164_v43  ;;  %2197 = vst [vmem:[%s4135_s4 + $0xe8] sm:$0xff] %v2165_v33 }
 0x2ec   :  { %2198 = vst [vmem:[%s4135_s4 + $0xf0] sm:$0xff] %v2166_v14  ;;  %2199 = vst [vmem:[%s4135_s4 + $0xf8] sm:$0xff] %v2167_v30 }

// kernel: generator_forward.5
= control target key start
LH: loop header
LB: loop body
LE: loop exit
PB: predicated region body
PF: predicated region fallthrough
CT: control target
= control target key end

     0   :  { %v3302_v0 = vmov 0   ;;  %vm1302_vm0 = vcmask 523264   ;;  %vm2330_vm1 = vcmask 31744   ;;  %s4623_s1 = inlined_call_operand.vmem [shape: bf16[576,4], index: 1, kind: input, shape index: {}]   ;;  %s4624_s0 = inlined_call_operand.vmem [shape: bf16[512,576], index: 0, kind: input, shape index: {}]   ;;  %s4625_s2 = inlined_call_operand.vmem [shape: f32[1,4], index: 2, kind: input, shape index: {}]   ;;  %s4626_s3 = inlined_call_operand.vmem [shape: f32[512,4], index: 3, kind: output, shape index: {}]  }
   0x1   :  { %1399 = vmatprep.subr.bf16.mxu0 %v3302_v0  ;;  %2736 = vmatprep.subr.bf16.mxu1 %v3302_v0  ;;  %v2913_v1 = vld [vmem:[%s4623_s1] sm:$0xff]   ;;  %v2914_v2 = vld [vmem:[%s4623_s1 + $0x8] sm:$0xff]   ;;  %v2915_v3 = vld [vmem:[%s4623_s1 + $0x10] sm:$0xff]  }
   0x2   :  { %1400 = vmatpush1.bf16.msra.mxu0 %v2913_v1  ;;  %2752 = vmatpush1.bf16.msra.mxu1 %v2913_v1  ;;  %v2916_v4 = vld [vmem:[%s4623_s1 + $0x18] sm:$0xff]   ;;  %v2917_v5 = vld [vmem:[%s4623_s1 + $0x20] sm:$0xff]   ;;  %v2918_v7 = vld [vmem:[%s4623_s1 + $0x28] sm:$0xff]  }
   0x3   :  { %1401 = vmatprep.subr.bf16.mxu0 %v3302_v0  ;;  %2737 = vmatprep.subr.bf16.mxu1 %v3302_v0  ;;  %v2931_v6 = vld [vmem:[%s4624_s0 + $0x4] ss:$20 sps:$4 sm:$0xff]   ;;  %v2919_v9 = vld [vmem:[%s4623_s1 + $0x30] sm:$0xff]   ;;  %v2922_v12 = vld [vmem:[%s4623_s1 + $0x48] sm:$0xff]  }
   0x4   :  { %v2934_v8 = vld [vmem:[%s4624_s0 + $0x144] ss:$20 sps:$4 sm:$0xff]   ;;  %1431 = vmatprep.mubr.bf16.mxu0 %v2931_v6  ;;  %v2923_v13 = vld [vmem:[%s4623_s1 + $0x50] sm:$0xff]   ;;  %v2926_v16 = vld [vmem:[%s4623_s1 + $0x68] sm:$0xff]  }
   0x5   :  { %1495 = vmatprep.mubr.bf16.mxu1 %v2934_v8  ;;  %v2920_v10 = vld [vmem:[%s4623_s1 + $0x38] sm:$0xff]   ;;  %v2921_v11 = vld [vmem:[%s4623_s1 + $0x40] sm:$0xff]   ;;  %v2927_v17 = vld [vmem:[%s4623_s1 + $0x70] sm:$0xff]  }
   0x6   :  { %1402 = vmatpush1.bf16.msra.mxu0 %v2914_v2  ;;  %2753 = vmatpush1.bf16.msra.mxu1 %v2914_v2  ;;  %v2924_v14 = vld [vmem:[%s4623_s1 + $0x58] sm:$0xff]   ;;  %v2925_v15 = vld [vmem:[%s4623_s1 + $0x60] sm:$0xff]   ;;  %v2985_v25 = vld [vmem:[%s4623_s1 + $0x108] sm:$0xff]  }
   0x7   :  { %1403 = vmatprep.subr.bf16.mxu0 %v3302_v0  ;;  %2738 = vmatprep.subr.bf16.mxu1 %v3302_v0  ;;  %v2928_v18 = vld [vmem:[%s4623_s1 + $0x78] sm:$0xff]   ;;  %v2936_v19 = vld [vmem:[%s4623_s1 + $0x100] sm:$0xff]   ;;  %v2937_v26 = vld [vmem:[%s4623_s1 + $0x88] sm:$0xff]  }
   0x8   :  { %v2929_v20 = vld [vmem:[%s4624_s0] ss:$20 sps:$4 sm:$0xff]   ;;  %v2942_v27 = vld [vmem:[%s4624_s0 + $0x28] ss:$20 sps:$4 sm:$0xff]   ;;  %v2950_v34 = vld [vmem:[%s4624_s0 + $0x50] ss:$20 sps:$4 sm:$0xff]  }
   0x9   :  { %v2932_v21 = vld [vmem:[%s4624_s0 + $0x140] ss:$20 sps:$4 sm:$0xff]   ;;  %v2943_v28 = vld [vmem:[%s4624_s0 + $0x168] ss:$20 sps:$4 sm:$0xff]   ;;  %v2951_v35 = vld [vmem:[%s4624_s0 + $0x190] ss:$20 sps:$4 sm:$0xff]  }
   0xa   :  { %1404 = vmatpush1.bf16.msra.mxu0 %v2915_v3  ;;  %2754 = vmatpush1.bf16.msra.mxu1 %v2915_v3  ;;  %v2935_v22 = vld [vmem:[%s4623_s1 + $0x80] sm:$0xff]   ;;  %v2944_v29 = vld [vmem:[%s4623_s1 + $0x90] sm:$0xff]   ;;  %v2945_v33 = vld [vmem:[%s4623_s1 + $0x98] sm:$0xff]  }
   0xb   :  { %1405 = vmatprep.subr.bf16.mxu0 %v3302_v0  ;;  %2739 = vmatprep.subr.bf16.mxu1 %v3302_v0  ;;  %v2938_v23 = vld [vmem:[%s4624_s0 + $0x2c] ss:$20 sps:$4 sm:$0xff]   ;;  %v3025_v30 = vld [vmem:[%s4623_s1 + $0x110] sm:$0xff]   ;;  %v2962_v43 = vld [vmem:[%s4624_s0 + $0xa4] ss:$20 sps:$4 sm:$0xff]  }
   0xc   :  { %v2940_v24 = vld [vmem:[%s4624_s0 + $0x16c] ss:$20 sps:$4 sm:$0xff]   ;;  %v2946_v31 = vld [vmem:[%s4624_s0 + $0x54] ss:$20 sps:$4 sm:$0xff]   ;;  %v2954_v37 = vld [vmem:[%s4624_s0 + $0x7c] ss:$20 sps:$4 sm:$0xff]  }
   0xd   :  { %v2948_v32 = vld [vmem:[%s4624_s0 + $0x194] ss:$20 sps:$4 sm:$0xff]   ;;  %v2952_v36 = vld [vmem:[%s4623_s1 + $0xa0] sm:$0xff]   ;;  %v2956_v38 = vld [vmem:[%s4624_s0 + $0x1bc] ss:$20 sps:$4 sm:$0xff]  }
   0xe   :  { %1406 = vmatpush1.bf16.msra.mxu0 %v2916_v4  ;;  %2755 = vmatpush1.bf16.msra.mxu1 %v2916_v4  ;;  %v2953_v39 = vld [vmem:[%s4623_s1 + $0xa8] sm:$0xff]   ;;  %v2960_v42 = vld [vmem:[%s4623_s1 + $0xb0] sm:$0xff]   ;;  %v3062_v44 = vld [vmem:[%s4623_s1 + $0x118] sm:$0xff]  }
   0xf   :  { %1407 = vmatprep.subr.bf16.mxu0 %v3302_v0  ;;  %2740 = vmatprep.subr.bf16.mxu1 %v3302_v0  ;;  %v2958_v40 = vld [vmem:[%s4624_s0 + $0x78] ss:$20 sps:$4 sm:$0xff]   ;;  %v2966_v47 = vld [vmem:[%s4624_s0 + $0xa0] ss:$20 sps:$4 sm:$0xff]   ;;  %v2974_v53 = vld [vmem:[%s4624_s0 + $0xc8] ss:$20 sps:$4 sm:$0xff]  }
  0x10   :  { %v2959_v41 = vld [vmem:[%s4624_s0 + $0x1b8] ss:$20 sps:$4 sm:$0xff]   ;;  %v2967_v48 = vld [vmem:[%s4624_s0 + $0x1e0] ss:$20 sps:$4 sm:$0xff]   ;;  %v2975_v54 = vld [vmem:[%s4624_s0 + $0x208] ss:$20 sps:$4 sm:$0xff]  }
  0x11   :  { %v2964_v45 = vld [vmem:[%s4624_s0 + $0x1e4] ss:$20 sps:$4 sm:$0xff]   ;;  %v2970_v50 = vld [vmem:[%s4624_s0 + $0xcc] ss:$20 sps:$4 sm:$0xff]   ;;  %v2976_v55 = vld [vmem:[%s4623_s1 + $0xd0] sm:$0xff]  }
  0x12   :  { %1408 = vmatpush1.bf16.msra.mxu0 %v2917_v5  ;;  %2756 = vmatpush1.bf16.msra.mxu1 %v2917_v5  ;;  %v2961_v46 = vld [vmem:[%s4623_s1 + $0xb8] sm:$0xff]   ;;  %v2968_v49 = vld [vmem:[%s4623_s1 + $0xc0] sm:$0xff]   ;;  %v2969_v52 = vld [vmem:[%s4623_s1 + $0xc8] sm:$0xff]  }
  0x13   :  { %1409 = vmatprep.subr.bf16.mxu0 %v3302_v0  ;;  %2741 = vmatprep.subr.bf16.mxu1 %v3302_v0  ;;  %v2972_v51 = vld [vmem:[%s4624_s0 + $0x20c] ss:$20 sps:$4 sm:$0xff]   ;;  %v2978_v56 = vld [vmem:[%s4624_s0 + $0xf4] ss:$20 sps:$4 sm:$0xff]   ;;  %v2977_v58 = vld [vmem:[%s4623_s1 + $0xd8] sm:$0xff]  }
  0x14   :  { %v2980_v57 = vld [vmem:[%s4624_s0 + $0x234] ss:$20 sps:$4 sm:$0xff]   ;;  %v2982_v59 = vld [vmem:[%s4624_s0 + $0xf0] ss:$20 sps:$4 sm:$0xff]   ;;  %v2991_v2 = vld [vmem:[%s4624_s0 + $0x118] ss:$20 sps:$4 sm:$0xff]  }
  0x15   :  { %v2983_v60 = vld [vmem:[%s4624_s0 + $0x230] ss:$20 sps:$4 sm:$0xff]   ;;  %v2986_v1 = vld [vmem:[%s4623_s1 + $0xe8] sm:$0xff]  }
  0x16   :  { %1410 = vmatpush1.bf16.msra.mxu0 %v2918_v7  ;;  %2757 = vmatpush1.bf16.msra.mxu1 %v2918_v7  ;;  %v2984_v61 = vld [vmem:[%s4623_s1 + $0xe0] sm:$0xff]   ;;  %v2987_v62 = vld [vmem:[%s4624_s0 + $0x11c] ss:$20 sps:$4 sm:$0xff]   ;;  %v2992_v3 = vld [vmem:[%s4624_s0 + $0x258] ss:$20 sps:$4 sm:$0xff]  }
  0x17   :  { %1411 = vmatprep.subr.bf16.mxu0 %v3302_v0  ;;  %2742 = vmatprep.subr.bf16.mxu1 %v3302_v0  ;;  %v2989_v63 = vld [vmem:[%s4624_s0 + $0x25c] ss:$20 sps:$4 sm:$0xff]   ;;  %v2995_v5 = vld [vmem:[%s4624_s0 + $0x284] ss:$20 sps:$4 sm:$0xff]   ;;  %v2999_v6 = vld [vmem:[%s4624_s0 + $0xc] ss:$20 sps:$4 sm:$0xff]  }
  0x18   :  { %v2993_v4 = vld [vmem:[%s4623_s1 + $0xf0] sm:$0xff]   ;;  %v2994_v7 = vld [vmem:[%s4623_s1 + $0xf8] sm:$0xff]  }
  0x19   :  { %v2997_v8 = vld [vmem:[%s4624_s0 + $0x8] ss:$20 sps:$4 sm:$0xff]  }
  0x1a   :  { %1412 = vmatpush1.bf16.msra.mxu0 %v2919_v9  ;;  %2758 = vmatpush1.bf16.msra.mxu1 %v2919_v9  ;;  %v3000_v9 = vld [vmem:[%s4624_s0 + $0x280] ss:$20 sps:$4 sm:$0xff]  }
  0x1b   :  { %1413 = vmatprep.subr.bf16.mxu0 %v3302_v0  ;;  %2743 = vmatprep.subr.bf16.mxu1 %v3302_v0 }
  0x1e   :  { %1414 = vmatpush1.bf16.msra.mxu0 %v2920_v10  ;;  %2759 = vmatpush1.bf16.msra.mxu1 %v2920_v10  ;;  %v3001_v10 = vld [vmem:[%s4624_s0 + $0x2ac] ss:$20 sps:$4 sm:$0xff]  }
  0x1f   :  { %1415 = vmatprep.subr.bf16.mxu0 %v3302_v0  ;;  %2744 = vmatprep.subr.bf16.mxu1 %v3302_v0 }
  0x22   :  { %1416 = vmatpush1.bf16.msra.mxu0 %v2921_v11  ;;  %2760 = vmatpush1.bf16.msra.mxu1 %v2921_v11  ;;  %v3003_v11 = vld [vmem:[%s4624_s0 + $0x34] ss:$20 sps:$4 sm:$0xff]  }
  0x23   :  { %1417 = vmatprep.subr.bf16.mxu0 %v3302_v0  ;;  %2745 = vmatprep.subr.bf16.mxu1 %v3302_v0 }
  0x26   :  { %1418 = vmatpush1.bf16.msra.mxu0 %v2922_v12  ;;  %2761 = vmatpush1.bf16.msra.mxu1 %v2922_v12  ;;  %v3006_v12 = vld [vmem:[%s4624_s0 + $0x30] ss:$20 sps:$4 sm:$0xff]  }
  0x27   :  { %1419 = vmatprep.subr.bf16.mxu0 %v3302_v0  ;;  %2746 = vmatprep.subr.bf16.mxu1 %v3302_v0 }
  0x2a   :  { %1420 = vmatpush1.bf16.msra.mxu0 %v2923_v13  ;;  %2762 = vmatpush1.bf16.msra.mxu1 %v2923_v13  ;;  %v3007_v13 = vld [vmem:[%s4624_s0 + $0x2d4] ss:$20 sps:$4 sm:$0xff]  }
  0x2b   :  { %1421 = vmatprep.subr.bf16.mxu0 %v3302_v0  ;;  %2747 = vmatprep.subr.bf16.mxu1 %v3302_v0 }
  0x2e   :  { %1422 = vmatpush1.bf16.msra.mxu0 %v2924_v14  ;;  %2763 = vmatpush1.bf16.msra.mxu1 %v2924_v14  ;;  %v3009_v14 = vld [vmem:[%s4624_s0 + $0x5c] ss:$20 sps:$4 sm:$0xff]  }
  0x2f   :  { %1423 = vmatprep.subr.bf16.mxu0 %v3302_v0  ;;  %2748 = vmatprep.subr.bf16.mxu1 %v3302_v0 }
  0x32   :  { %1424 = vmatpush1.bf16.msra.mxu0 %v2925_v15  ;;  %2764 = vmatpush1.bf16.msra.mxu1 %v2925_v15  ;;  %v3011_v15 = vld [vmem:[%s4624_s0 + $0x2d0] ss:$20 sps:$4 sm:$0xff]  }
  0x33   :  { %1425 = vmatprep.subr.bf16.mxu0 %v3302_v0  ;;  %2749 = vmatprep.subr.bf16.mxu1 %v3302_v0 }
  0x36   :  { %1426 = vmatpush1.bf16.msra.mxu0 %v2926_v16  ;;  %2765 = vmatpush1.bf16.msra.mxu1 %v2926_v16  ;;  %v3012_v16 = vld [vmem:[%s4624_s0 + $0x58] ss:$20 sps:$4 sm:$0xff]  }
  0x37   :  { %1427 = vmatprep.subr.bf16.mxu0 %v3302_v0  ;;  %2750 = vmatprep.subr.bf16.mxu1 %v3302_v0 }
  0x3a   :  { %1428 = vmatpush1.bf16.msra.mxu0 %v2927_v17  ;;  %2766 = vmatpush1.bf16.msra.mxu1 %v2927_v17  ;;  %v3013_v17 = vld [vmem:[%s4624_s0 + $0x2fc] ss:$20 sps:$4 sm:$0xff]  }
  0x3b   :  { %1429 = vmatprep.subr.bf16.mxu0 %v3302_v0  ;;  %2751 = vmatprep.subr.bf16.mxu1 %v3302_v0 }
  0x3e   :  { %1430 = vmatpush1.bf16.msra.mxu0 %v2928_v18  ;;  %2767 = vmatpush1.bf16.msra.mxu1 %v2928_v18  ;;  %v3015_v18 = vld [vmem:[%s4624_s0 + $0x84] ss:$20 sps:$4 sm:$0xff]  }
  0x3f   :  { %1688 = vmatprep.subr.bf16.mxu0 %v3302_v0  ;;  %2664 = vmatprep.subr.bf16.mxu1 %v2936_v19 }
  0x41   :  { %1432 = vmatmul.mubr.bf16.vlgmr.msra.gmra.mrb[0].mxu0 %v2929_v20  ;;  %1496 = vmatmul.mubr.bf16.vlgmr.msra.gmra.mrb[0].mxu1 %v2932_v21  ;;  %v3018_v20 = vld [vmem:[%s4624_s0 + $0x80] ss:$20 sps:$4 sm:$0xff]   ;;  %v3019_v21 = vld [vmem:[%s4624_s0 + $0x324] ss:$20 sps:$4 sm:$0xff]  }
  0x42   :  { %1689 = vmatpush1.bf16.msra.mxu0 %v2935_v22  ;;  %2665 = vmatpush3.bf16.msra.mxu1 %v2936_v19  ;;  %v3017_v19 = vld [vmem:[%s4624_s0 + $0x2f8] ss:$20 sps:$4 sm:$0xff]  }
  0x43   :  { %1690 = vmatprep.subr.bf16.mxu0 %v3302_v0  ;;  %1439 = vmatprep.mubr.bf16.mxu0 %v2938_v23  ;;  %v3021_v22 = vld [vmem:[%s4624_s0 + $0xac] ss:$20 sps:$4 sm:$0xff]  }
  0x44   :  { %1503 = vmatprep.mubr.bf16.mxu1 %v2940_v24  ;;  %2666 = vmatprep.subr.bf16.mxu1 %v2985_v25  ;;  %v3023_v23 = vld [vmem:[%s4624_s0 + $0x320] ss:$20 sps:$4 sm:$0xff]   ;;  %v3024_v24 = vld [vmem:[%s4624_s0 + $0xa8] ss:$20 sps:$4 sm:$0xff]  }
  0x46   :  { %1691 = vmatpush1.bf16.msra.mxu0 %v2937_v26  ;;  %2667 = vmatpush3.bf16.msra.mxu1 %v2985_v25  ;;  %v3026_v25 = vld [vmem:[%s4624_s0 + $0x34c] ss:$20 sps:$4 sm:$0xff]   ;;  %v3028_v26 = vld [vmem:[%s4624_s0 + $0xd4] ss:$20 sps:$4 sm:$0xff]  }
  0x47   :  { %1692 = vmatprep.subr.bf16.mxu0 %v3302_v0  ;;  %2668 = vmatprep.subr.bf16.mxu1 %v3025_v30 }
  0x49   :  { %1440 = vmatmul.mubr.bf16.gmra.mrb[4].mxu0 %v2942_v27  ;;  %1504 = vmatmul.mubr.bf16.gmra.mrb[4].mxu1 %v2943_v28  ;;  %v3030_v27 = vld [vmem:[%s4624_s0 + $0x348] ss:$20 sps:$4 sm:$0xff]   ;;  %v3031_v28 = vld [vmem:[%s4624_s0 + $0xd0] ss:$20 sps:$4 sm:$0xff]  }
  0x4a   :  { %1693 = vmatpush1.bf16.msra.mxu0 %v2944_v29  ;;  %1447 = vmatprep.mubr.bf16.mxu0 %v2946_v31  ;;  %v3032_v29 = vld [vmem:[%s4624_s0 + $0x374] ss:$20 sps:$4 sm:$0xff]   ;;  %v3036_v31 = vld [vmem:[%s4624_s0 + $0x370] ss:$20 sps:$4 sm:$0xff]  }
  0x4b   :  { %1694 = vmatprep.subr.bf16.mxu0 %v3302_v0  ;;  %1511 = vmatprep.mubr.bf16.mxu1 %v2948_v32  ;;  %v3037_v32 = vld [vmem:[%s4624_s0 + $0xf8] ss:$20 sps:$4 sm:$0xff]  }
  0x4c   :  { %2669 = vmatpush3.bf16.msra.mxu1 %v3025_v30  ;;  %v3034_v30 = vld [vmem:[%s4624_s0 + $0xfc] ss:$20 sps:$4 sm:$0xff]  }
  0x4d   :  { %2670 = vmatprep.subr.bf16.mxu1 %v3062_v44 }
  0x4e   :  { %1695 = vmatpush1.bf16.msra.mxu0 %v2945_v33  ;;  %v3038_v33 = vld [vmem:[%s4624_s0 + $0x39c] ss:$20 sps:$4 sm:$0xff]  }
  0x4f   :  { %1696 = vmatprep.subr.bf16.mxu0 %v3302_v0 }
  0x50   :  { %2671 = vmatpush3.bf16.msra.mxu1 %v3062_v44  ;;  %v3055_v44 = vld [vmem:[%s4624_s0 + $0x170] ss:$20 sps:$4 sm:$0xff]  }
  0x51   :  { %1448 = vmatmul.mubr.bf16.gmra.mrb[8].mxu0 %v2950_v34  ;;  %1512 = vmatmul.mubr.bf16.gmra.mrb[8].mxu1 %v2951_v35  ;;  %v3040_v34 = vld [vmem:[%s4624_s0 + $0x124] ss:$20 sps:$4 sm:$0xff]  }
  0x52   :  { %1697 = vmatpush1.bf16.msra.mxu0 %v2952_v36  ;;  %1455 = vmatprep.mubr.bf16.mxu0 %v2954_v37  ;;  %v3042_v35 = vld [vmem:[%s4624_s0 + $0x398] ss:$20 sps:$4 sm:$0xff]   ;;  %v3043_v36 = vld [vmem:[%s4624_s0 + $0x120] ss:$20 sps:$4 sm:$0xff]  }
  0x53   :  { %1698 = vmatprep.subr.bf16.mxu0 %v3302_v0  ;;  %1519 = vmatprep.mubr.bf16.mxu1 %v2956_v38  ;;  %v3044_v37 = vld [vmem:[%s4624_s0 + $0x3c4] ss:$20 sps:$4 sm:$0xff]   ;;  %v3046_v38 = vld [vmem:[%s4624_s0 + $0x14c] ss:$20 sps:$4 sm:$0xff]  }
  0x56   :  { %1699 = vmatpush1.bf16.msra.mxu0 %v2953_v39  ;;  %v3048_v39 = vld [vmem:[%s4624_s0 + $0x3c0] ss:$20 sps:$4 sm:$0xff]  }
  0x57   :  { %1700 = vmatprep.subr.bf16.mxu0 %v3302_v0 }
  0x59   :  { %1456 = vmatmul.mubr.bf16.gmra.mrb[12].mxu0 %v2958_v40  ;;  %1520 = vmatmul.mubr.bf16.gmra.mrb[12].mxu1 %v2959_v41  ;;  %v3049_v40 = vld [vmem:[%s4624_s0 + $0x148] ss:$20 sps:$4 sm:$0xff]   ;;  %v3050_v41 = vld [vmem:[%s4624_s0 + $0x3ec] ss:$20 sps:$4 sm:$0xff]  }
  0x5a   :  { %1701 = vmatpush1.bf16.msra.mxu0 %v2960_v42  ;;  %1463 = vmatprep.mubr.bf16.mxu0 %v2962_v43  ;;  %v3052_v42 = vld [vmem:[%s4624_s0 + $0x174] ss:$20 sps:$4 sm:$0xff]  }
  0x5b   :  { %1702 = vmatprep.subr.bf16.mxu0 %v3302_v0  ;;  %1527 = vmatprep.mubr.bf16.mxu1 %v2964_v45  ;;  %v3054_v43 = vld [vmem:[%s4624_s0 + $0x3e8] ss:$20 sps:$4 sm:$0xff]  }
  0x5c   :  { %v3056_v45 = vld [vmem:[%s4624_s0 + $0x414] ss:$20 sps:$4 sm:$0xff]  }
  0x5e   :  { %1703 = vmatpush1.bf16.msra.mxu0 %v2961_v46  ;;  %v3058_v46 = vld [vmem:[%s4624_s0 + $0x19c] ss:$20 sps:$4 sm:$0xff]  }
  0x5f   :  { %1704 = vmatprep.subr.bf16.mxu0 %v3302_v0 }
  0x61   :  { %1464 = vmatmul.mubr.bf16.gmra.mrb[16].mxu0 %v2966_v47  ;;  %1528 = vmatmul.mubr.bf16.gmra.mrb[16].mxu1 %v2967_v48  ;;  %v3060_v47 = vld [vmem:[%s4624_s0 + $0x410] ss:$20 sps:$4 sm:$0xff]   ;;  %v3061_v48 = vld [vmem:[%s4624_s0 + $0x198] ss:$20 sps:$4 sm:$0xff]  }
  0x62   :  { %1705 = vmatpush1.bf16.msra.mxu0 %v2968_v49  ;;  %1471 = vmatprep.mubr.bf16.mxu0 %v2970_v50  ;;  %v3063_v49 = vld [vmem:[%s4624_s0 + $0x43c] ss:$20 sps:$4 sm:$0xff]   ;;  %v3065_v50 = vld [vmem:[%s4624_s0 + $0x1c4] ss:$20 sps:$4 sm:$0xff]  }
  0x63   :  { %1706 = vmatprep.subr.bf16.mxu0 %v3302_v0  ;;  %1535 = vmatprep.mubr.bf16.mxu1 %v2972_v51  ;;  %v3067_v51 = vld [vmem:[%s4624_s0 + $0x438] ss:$20 sps:$4 sm:$0xff]  }
  0x66   :  { %1707 = vmatpush1.bf16.msra.mxu0 %v2969_v52  ;;  %v3068_v52 = vld [vmem:[%s4624_s0 + $0x1c0] ss:$20 sps:$4 sm:$0xff]  }
  0x67   :  { %1708 = vmatprep.subr.bf16.mxu0 %v3302_v0 }
  0x69   :  { %1472 = vmatmul.mubr.bf16.gmra.mrb[20].mxu0 %v2974_v53  ;;  %1536 = vmatmul.mubr.bf16.gmra.mrb[20].mxu1 %v2975_v54  ;;  %v3069_v53 = vld [vmem:[%s4624_s0 + $0x464] ss:$20 sps:$4 sm:$0xff]   ;;  %v3071_v54 = vld [vmem:[%s4624_s0 + $0x1ec] ss:$20 sps:$4 sm:$0xff]  }
  0x6a   :  { %1709 = vmatpush1.bf16.msra.mxu0 %v2976_v55  ;;  %1479 = vmatprep.mubr.bf16.mxu0 %v2978_v56  ;;  %v3073_v55 = vld [vmem:[%s4624_s0 + $0x460] ss:$20 sps:$4 sm:$0xff]   ;;  %v3074_v56 = vld [vmem:[%s4624_s0 + $0x1e8] ss:$20 sps:$4 sm:$0xff]  }
  0x6b   :  { %1710 = vmatprep.subr.bf16.mxu0 %v3302_v0  ;;  %1543 = vmatprep.mubr.bf16.mxu1 %v2980_v57  ;;  %v3075_v57 = vld [vmem:[%s4624_s0 + $0x48c] ss:$20 sps:$4 sm:$0xff]  }
  0x6e   :  { %1711 = vmatpush1.bf16.msra.mxu0 %v2977_v58  ;;  %v3077_v58 = vld [vmem:[%s4624_s0 + $0x214] ss:$20 sps:$4 sm:$0xff]  }
  0x6f   :  { %1712 = vmatprep.subr.bf16.mxu0 %v3302_v0 }
  0x71   :  { %1480 = vmatmul.mubr.bf16.gmra.mrb[24].mxu0 %v2982_v59  ;;  %1544 = vmatmul.mubr.bf16.gmra.mrb[24].mxu1 %v2983_v60  ;;  %v3079_v59 = vld [vmem:[%s4624_s0 + $0x488] ss:$20 sps:$4 sm:$0xff]   ;;  %v3080_v60 = vld [vmem:[%s4624_s0 + $0x210] ss:$20 sps:$4 sm:$0xff]  }
  0x72   :  { %1713 = vmatpush1.bf16.msra.mxu0 %v2984_v61  ;;  %1487 = vmatprep.mubr.bf16.mxu0 %v2987_v62  ;;  %v3081_v61 = vld [vmem:[%s4624_s0 + $0x4b4] ss:$20 sps:$4 sm:$0xff]   ;;  %v3083_v62 = vld [vmem:[%s4624_s0 + $0x23c] ss:$20 sps:$4 sm:$0xff]  }
  0x73   :  { %1714 = vmatprep.subr.bf16.mxu0 %v3302_v0  ;;  %1551 = vmatprep.mubr.bf16.mxu1 %v2989_v63  ;;  %v3085_v63 = vld [vmem:[%s4624_s0 + $0x4b0] ss:$20 sps:$4 sm:$0xff]  }
  0x76   :  { %1715 = vmatpush1.bf16.msra.mxu0 %v2986_v1  ;;  %v3086_v1 = vld [vmem:[%s4624_s0 + $0x238] ss:$20 sps:$4 sm:$0xff]  }
  0x77   :  { %1716 = vmatprep.subr.bf16.mxu0 %v3302_v0 }
  0x79   :  { %1488 = vmatmul.mubr.bf16.gmra.mrb[28].mxu0 %v2991_v2  ;;  %1552 = vmatmul.mubr.bf16.gmra.mrb[28].mxu1 %v2992_v3  ;;  %v3087_v2 = vld [vmem:[%s4624_s0 + $0x4dc] ss:$20 sps:$4 sm:$0xff]   ;;  %v3089_v3 = vld [vmem:[%s4624_s0 + $0x264] ss:$20 sps:$4 sm:$0xff]  }
  0x7a   :  { %1717 = vmatpush1.bf16.msra.mxu0 %v2993_v4  ;;  %1559 = vmatprep.mubr.bf16.mxu1 %v2995_v5  ;;  %v3091_v4 = vld [vmem:[%s4624_s0 + $0x4d8] ss:$20 sps:$4 sm:$0xff]   ;;  %v3092_v5 = vld [vmem:[%s4624_s0 + $0x260] ss:$20 sps:$4 sm:$0xff]  }
  0x7b   :  { %1718 = vmatprep.subr.bf16.mxu0 %v3302_v0  ;;  %1720 = vmatprep.mubr.bf16.mxu0 %v2999_v6  ;;  %v3005_v0 = vld [vmem:[%s4624_s0 + $0x2a8] ss:$20 sps:$4 sm:$0xff]   ;;  %v3093_v6 = vld [vmem:[%s4624_s0 + $0x28c] ss:$20 sps:$4 sm:$0xff]  }
  0x7e   :  { %1719 = vmatpush1.bf16.msra.mxu0 %v2994_v7  ;;  %v3095_v7 = vld [vmem:[%s4624_s0 + $0x10] ss:$20 sps:$4 sm:$0xff]  }
  0x81   :  { %1560 = vmatmul.mubr.bf16.gmra.mrb[32].mxu1 %v3000_v9  ;;  %1721 = vmatmul.mubr.bf16.vlgmr.msra.gmra.mrb[0].mxu0 %v2997_v8  ;;  %v3096_v8 = vld [vmem:[%s4624_s0 + $0x288] ss:$20 sps:$4 sm:$0xff]   ;;  %v3097_v9 = vld [vmem:[%s4624_s0 + $0x38] ss:$20 sps:$4 sm:$0xff]  }
  0x82   :  { %1567 = vmatprep.mubr.bf16.mxu1 %v3001_v10  ;;  %1728 = vmatprep.mubr.bf16.mxu0 %v3003_v11  ;;  %v3098_v10 = vld [vmem:[%s4624_s0 + $0x2b4] ss:$20 sps:$4 sm:$0xff]  }
  0x83   :  { %v3100_v11 = vld [vmem:[%s4624_s0 + $0x60] ss:$20 sps:$4 sm:$0xff]  }
  0x89   :  { %1568 = vmatmul.mubr.bf16.gmra.mrb[36].mxu1 %v3005_v0  ;;  %1729 = vmatmul.mubr.bf16.gmra.mrb[4].mxu0 %v3006_v12  ;;  %v3101_v0 = vld [vmem:[%s4624_s0 + $0x2b0] ss:$20 sps:$4 sm:$0xff]   ;;  %v3102_v12 = vld [vmem:[%s4624_s0 + $0x88] ss:$20 sps:$4 sm:$0xff]  }
  0x8a   :  { %1575 = vmatprep.mubr.bf16.mxu1 %v3007_v13  ;;  %1736 = vmatprep.mubr.bf16.mxu0 %v3009_v14  ;;  %v3103_v13 = vld [vmem:[%s4624_s0 + $0x2dc] ss:$20 sps:$4 sm:$0xff]  }
  0x8b   :  { %v3105_v14 = vld [vmem:[%s4624_s0 + $0xb0] ss:$20 sps:$4 sm:$0xff]  }
  0x91   :  { %1576 = vmatmul.mubr.bf16.gmra.mrb[40].mxu1 %v3011_v15  ;;  %1737 = vmatmul.mubr.bf16.gmra.mrb[8].mxu0 %v3012_v16  ;;  %v3106_v15 = vld [vmem:[%s4624_s0 + $0x2d8] ss:$20 sps:$4 sm:$0xff]  }
  0x92   :  { %1583 = vmatprep.mubr.bf16.mxu1 %v3013_v17  ;;  %1744 = vmatprep.mubr.bf16.mxu0 %v3015_v18  ;;  %v3107_v16 = vld [vmem:[%s4624_s0 + $0xd8] ss:$20 sps:$4 sm:$0xff]   ;;  %v3110_v18 = vld [vmem:[%s4624_s0 + $0x100] ss:$20 sps:$4 sm:$0xff]  }
  0x93   :  { %v3108_v17 = vld [vmem:[%s4624_s0 + $0x304] ss:$20 sps:$4 sm:$0xff]  }
  0x99   :  { %1584 = vmatmul.mubr.bf16.gmra.mrb[44].mxu1 %v3017_v19  ;;  %1745 = vmatmul.mubr.bf16.gmra.mrb[12].mxu0 %v3018_v20 }
  0x9a   :  { %1591 = vmatprep.mubr.bf16.mxu1 %v3019_v21  ;;  %1752 = vmatprep.mubr.bf16.mxu0 %v3021_v22  ;;  %v3111_v21 = vld [vmem:[%s4624_s0 + $0x300] ss:$20 sps:$4 sm:$0xff]   ;;  %v3112_v22 = vld [vmem:[%s4624_s0 + $0x128] ss:$20 sps:$4 sm:$0xff]  }
  0xa1   :  { %1592 = vmatmul.mubr.bf16.gmra.mrb[48].mxu1 %v3023_v23  ;;  %1753 = vmatmul.mubr.bf16.gmra.mrb[16].mxu0 %v3024_v24  ;;  %v3113_v24 = vld [vmem:[%s4624_s0 + $0x32c] ss:$20 sps:$4 sm:$0xff]  }
  0xa2   :  { %1599 = vmatprep.mubr.bf16.mxu1 %v3026_v25  ;;  %1760 = vmatprep.mubr.bf16.mxu0 %v3028_v26  ;;  %v3115_v25 = vld [vmem:[%s4624_s0 + $0x150] ss:$20 sps:$4 sm:$0xff]  }
  0xa9   :  { %1600 = vmatmul.mubr.bf16.gmra.mrb[52].mxu1 %v3030_v27  ;;  %1761 = vmatmul.mubr.bf16.gmra.mrb[20].mxu0 %v3031_v28 }
  0xaa   :  { %1607 = vmatprep.mubr.bf16.mxu1 %v3032_v29  ;;  %1768 = vmatprep.mubr.bf16.mxu0 %v3034_v30  ;;  %v3116_v29 = vld [vmem:[%s4624_s0 + $0x328] ss:$20 sps:$4 sm:$0xff]   ;;  %v3117_v30 = vld [vmem:[%s4624_s0 + $0x178] ss:$20 sps:$4 sm:$0xff]  }
  0xb1   :  { %1608 = vmatmul.mubr.bf16.gmra.mrb[56].mxu1 %v3036_v31  ;;  %1769 = vmatmul.mubr.bf16.gmra.mrb[24].mxu0 %v3037_v32  ;;  %v3118_v32 = vld [vmem:[%s4624_s0 + $0x354] ss:$20 sps:$4 sm:$0xff]  }
  0xb2   :  { %1615 = vmatprep.mubr.bf16.mxu1 %v3038_v33  ;;  %1776 = vmatprep.mubr.bf16.mxu0 %v3040_v34  ;;  %v3120_v33 = vld [vmem:[%s4624_s0 + $0x1a0] ss:$20 sps:$4 sm:$0xff]  }
  0xb9   :  { %1616 = vmatmul.mubr.bf16.gmra.mrb[60].mxu1 %v3042_v35  ;;  %1777 = vmatmul.mubr.bf16.gmra.mrb[28].mxu0 %v3043_v36 }
  0xba   :  { %1623 = vmatprep.mubr.bf16.mxu1 %v3044_v37  ;;  %1784 = vmatprep.mubr.bf16.mxu0 %v3046_v38  ;;  %v3121_v37 = vld [vmem:[%s4624_s0 + $0x350] ss:$20 sps:$4 sm:$0xff]   ;;  %v3122_v38 = vld [vmem:[%s4624_s0 + $0x1c8] ss:$20 sps:$4 sm:$0xff]  }
  0xc1   :  { %1624 = vmatmul.mubr.bf16.gmra.mrb[64].mxu1 %v3048_v39  ;;  %1785 = vmatmul.mubr.bf16.gmra.mrb[32].mxu0 %v3049_v40  ;;  %v3123_v40 = vld [vmem:[%s4624_s0 + $0x37c] ss:$20 sps:$4 sm:$0xff]  }
  0xc2   :  { %1631 = vmatprep.mubr.bf16.mxu1 %v3050_v41  ;;  %1792 = vmatprep.mubr.bf16.mxu0 %v3052_v42  ;;  %v3125_v41 = vld [vmem:[%s4624_s0 + $0x1f0] ss:$20 sps:$4 sm:$0xff]  }
  0xc9   :  { %1632 = vmatmul.mubr.bf16.gmra.mrb[68].mxu1 %v3054_v43  ;;  %1793 = vmatmul.mubr.bf16.gmra.mrb[36].mxu0 %v3055_v44 }
  0xca   :  { %1639 = vmatprep.mubr.bf16.mxu1 %v3056_v45  ;;  %1800 = vmatprep.mubr.bf16.mxu0 %v3058_v46  ;;  %v3126_v45 = vld [vmem:[%s4624_s0 + $0x378] ss:$20 sps:$4 sm:$0xff]  }
  0xcb   :  { %v3127_v46 = vld [vmem:[%s4624_s0 + $0x218] ss:$20 sps:$4 sm:$0xff]  }
  0xd1   :  { %1640 = vmatmul.mubr.bf16.gmra.mrb[72].mxu1 %v3060_v47  ;;  %1801 = vmatmul.mubr.bf16.gmra.mrb[40].mxu0 %v3061_v48  ;;  %v3128_v48 = vld [vmem:[%s4624_s0 + $0x3a4] ss:$20 sps:$4 sm:$0xff]  }
  0xd2   :  { %1647 = vmatprep.mubr.bf16.mxu1 %v3063_v49  ;;  %1808 = vmatprep.mubr.bf16.mxu0 %v3065_v50  ;;  %v3130_v49 = vld [vmem:[%s4624_s0 + $0x240] ss:$20 sps:$4 sm:$0xff]  }
  0xd9   :  { %1648 = vmatmul.mubr.bf16.gmra.mrb[76].mxu1 %v3067_v51  ;;  %1809 = vmatmul.mubr.bf16.gmra.mrb[44].mxu0 %v3068_v52 }
  0xda   :  { %1655 = vmatprep.mubr.bf16.mxu1 %v3069_v53  ;;  %1816 = vmatprep.mubr.bf16.mxu0 %v3071_v54  ;;  %v3131_v53 = vld [vmem:[%s4624_s0 + $0x3a0] ss:$20 sps:$4 sm:$0xff]   ;;  %v3132_v54 = vld [vmem:[%s4624_s0 + $0x268] ss:$20 sps:$4 sm:$0xff]  }
  0xe1   :  { %1656 = vmatmul.mubr.bf16.gmra.mrb[80].mxu1 %v3073_v55  ;;  %1817 = vmatmul.mubr.bf16.gmra.mrb[48].mxu0 %v3074_v56  ;;  %v3133_v56 = vld [vmem:[%s4624_s0 + $0x3cc] ss:$20 sps:$4 sm:$0xff]  }
  0xe2   :  { %1663 = vmatprep.mubr.bf16.mxu1 %v3075_v57  ;;  %1824 = vmatprep.mubr.bf16.mxu0 %v3077_v58  ;;  %v3135_v57 = vld [vmem:[%s4624_s0 + $0x290] ss:$20 sps:$4 sm:$0xff]  }
  0xe9   :  { %1664 = vmatmul.mubr.bf16.gmra.mrb[84].mxu1 %v3079_v59  ;;  %1825 = vmatmul.mubr.bf16.gmra.mrb[52].mxu0 %v3080_v60 }
  0xea   :  { %1671 = vmatprep.mubr.bf16.mxu1 %v3081_v61  ;;  %1832 = vmatprep.mubr.bf16.mxu0 %v3083_v62  ;;  %v3136_v61 = vld [vmem:[%s4624_s0 + $0x3c8] ss:$20 sps:$4 sm:$0xff]   ;;  %v3137_v62 = vld [vmem:[%s4624_s0 + $0x2b8] ss:$20 sps:$4 sm:$0xff]  }
  0xf1   :  { %1672 = vmatmul.mubr.bf16.gmra.mrb[88].mxu1 %v3085_v63  ;;  %1833 = vmatmul.mubr.bf16.gmra.mrb[56].mxu0 %v3086_v1  ;;  %v3138_v1 = vld [vmem:[%s4624_s0 + $0x3f4] ss:$20 sps:$4 sm:$0xff]  }
  0xf2   :  { %1679 = vmatprep.mubr.bf16.mxu1 %v3087_v2  ;;  %1840 = vmatprep.mubr.bf16.mxu0 %v3089_v3  ;;  %v3140_v2 = vld [vmem:[%s4624_s0 + $0x2e0] ss:$20 sps:$4 sm:$0xff]  }
  0xf9   :  { %1680 = vmatmul.mubr.bf16.gmra.mrb[92].mxu1 %v3091_v4  ;;  %1841 = vmatmul.mubr.bf16.gmra.mrb[60].mxu0 %v3092_v5 }
  0xfa   :  { %1848 = vmatprep.mubr.bf16.mxu0 %v3093_v6  ;;  %2672 = vmatprep.mubr.msk.bf16.mxu1 %vm1302_vm0, %v3095_v7  ;;  %v3141_v6 = vld [vmem:[%s4624_s0 + $0x3f0] ss:$20 sps:$4 sm:$0xff]   ;;  %v3142_v7 = vld [vmem:[%s4624_s0 + $0x308] ss:$20 sps:$4 sm:$0xff]  }
 0x101   :  { %1849 = vmatmul.mubr.bf16.gmra.mrb[64].mxu0 %v3096_v8  ;;  %2673 = vmatmul.mubr.msk.bf16.vlgmr.msra.gmra.mrb[96].mxu1 %vm1302_vm0, %v3097_v9  ;;  %v3143_v9 = vld [vmem:[%s4624_s0 + $0x41c] ss:$20 sps:$4 sm:$0xff]  }
 0x102   :  { %1856 = vmatprep.mubr.bf16.mxu0 %v3098_v10  ;;  %2676 = vmatprep.mubr.msk.bf16.mxu1 %vm1302_vm0, %v3100_v11  ;;  %v3145_v10 = vld [vmem:[%s4624_s0 + $0x330] ss:$20 sps:$4 sm:$0xff]  }
 0x109   :  { %1857 = vmatmul.mubr.bf16.gmra.mrb[68].mxu0 %v3101_v0  ;;  %2677 = vmatmul.mubr.msk.bf16.gmra.mrb[100].mxu1 %vm1302_vm0, %v3102_v12 }
 0x10a   :  { %1864 = vmatprep.mubr.bf16.mxu0 %v3103_v13  ;;  %2680 = vmatprep.mubr.msk.bf16.mxu1 %vm1302_vm0, %v3105_v14  ;;  %v3146_v13 = vld [vmem:[%s4624_s0 + $0x418] ss:$20 sps:$4 sm:$0xff]  }
 0x10b   :  { %v3147_v14 = vld [vmem:[%s4624_s0 + $0x358] ss:$20 sps:$4 sm:$0xff]  }
 0x111   :  { %1865 = vmatmul.mubr.bf16.gmra.mrb[72].mxu0 %v3106_v15  ;;  %2681 = vmatmul.mubr.msk.bf16.gmra.mrb[104].mxu1 %vm1302_vm0, %v3107_v16  ;;  %v3148_v16 = vld [vmem:[%s4624_s0 + $0x444] ss:$20 sps:$4 sm:$0xff]  }
 0x112   :  { %1872 = vmatprep.mubr.bf16.mxu0 %v3108_v17  ;;  %2684 = vmatprep.mubr.msk.bf16.mxu1 %vm1302_vm0, %v3110_v18  ;;  %v3150_v17 = vld [vmem:[%s4624_s0 + $0x380] ss:$20 sps:$4 sm:$0xff]  }
 0x114   :  { %v3816_v19 = vpop.f32.mrb[0].mxu1 }
 0x115   :  { %v1499_v20 = vpop.f32.mrb[1].mxu1 }
 0x116   :  { %v3824_v23 = vpop.f32.mrb[2].mxu1 }
 0x117   :  { %v1502_v26 = vpop.f32.mrb[3].mxu1 }
 0x118   :  { %v3152_v26 = vld [vmem:[%s4624_s0 + $0x3a8] ss:$20 sps:$4 sm:$0xff]  }
 0x119   :  { %1873 = vmatmul.mubr.bf16.gmra.mrb[76].mxu0 %v3111_v21  ;;  %2685 = vmatmul.mubr.msk.bf16.gmra.mrb[108].mxu1 %vm1302_vm0, %v3112_v22 }
 0x11a   :  { %1880 = vmatprep.mubr.bf16.mxu0 %v3113_v24  ;;  %2688 = vmatprep.mubr.msk.bf16.mxu1 %vm1302_vm0, %v3115_v25  ;;  %v3151_v25 = vld [vmem:[%s4624_s0 + $0x440] ss:$20 sps:$4 sm:$0xff]  }
 0x11c   :  { %v3834_v27 = vpop.f32.mrb[4].mxu1 }
 0x11d   :  { %v1507_v28 = vpop.f32.mrb[5].mxu1 }
 0x11e   :  { %v3842_v31 = vpop.f32.mrb[6].mxu1 }
 0x11f   :  { %v1510_v34 = vpop.f32.mrb[7].mxu1 }
 0x121   :  { %1881 = vmatmul.mubr.bf16.gmra.mrb[80].mxu0 %v3116_v29  ;;  %2689 = vmatmul.mubr.msk.bf16.gmra.mrb[112].mxu1 %vm1302_vm0, %v3117_v30  ;;  %v3153_v30 = vld [vmem:[%s4624_s0 + $0x46c] ss:$20 sps:$4 sm:$0xff]  }
 0x122   :  { %1888 = vmatprep.mubr.bf16.mxu0 %v3118_v32  ;;  %2692 = vmatprep.mubr.msk.bf16.mxu1 %vm1302_vm0, %v3120_v33  ;;  %v3155_v32 = vld [vmem:[%s4624_s0 + $0x3d0] ss:$20 sps:$4 sm:$0xff]  }
 0x124   :  { %v3852_v35 = vpop.f32.mrb[8].mxu1 }
 0x125   :  { %v1515_v36 = vpop.f32.mrb[9].mxu1 }
 0x126   :  { %v3860_v39 = vpop.f32.mrb[10].mxu1 }
 0x127   :  { %v1518_v42 = vpop.f32.mrb[11].mxu1 }
 0x128   :  { %v3157_v42 = vld [vmem:[%s4624_s0 + $0x3f8] ss:$20 sps:$4 sm:$0xff]  }
 0x129   :  { %1889 = vmatmul.mubr.bf16.gmra.mrb[84].mxu0 %v3121_v37  ;;  %2693 = vmatmul.mubr.msk.bf16.gmra.mrb[116].mxu1 %vm1302_vm0, %v3122_v38 }
 0x12a   :  { %1896 = vmatprep.mubr.bf16.mxu0 %v3123_v40  ;;  %2696 = vmatprep.mubr.msk.bf16.mxu1 %vm1302_vm0, %v3125_v41  ;;  %v3156_v41 = vld [vmem:[%s4624_s0 + $0x468] ss:$20 sps:$4 sm:$0xff]  }
 0x12c   :  { %v3870_v43 = vpop.f32.mrb[12].mxu1 }
 0x12d   :  { %v1523_v44 = vpop.f32.mrb[13].mxu1 }
 0x12e   :  { %v3878_v47 = vpop.f32.mrb[14].mxu1 }
 0x12f   :  { %v1526_v50 = vpop.f32.mrb[15].mxu1 }
 0x131   :  { %1897 = vmatmul.mubr.bf16.gmra.mrb[88].mxu0 %v3126_v45  ;;  %2697 = vmatmul.mubr.msk.bf16.gmra.mrb[120].mxu1 %vm1302_vm0, %v3127_v46  ;;  %v3158_v46 = vld [vmem:[%s4624_s0 + $0x494] ss:$20 sps:$4 sm:$0xff]  }
 0x132   :  { %1904 = vmatprep.mubr.bf16.mxu0 %v3128_v48  ;;  %2700 = vmatprep.mubr.msk.bf16.mxu1 %vm1302_vm0, %v3130_v49  ;;  %v3160_v48 = vld [vmem:[%s4624_s0 + $0x420] ss:$20 sps:$4 sm:$0xff]  }
 0x134   :  { %v3888_v51 = vpop.f32.mrb[16].mxu1 }
 0x135   :  { %v1531_v52 = vpop.f32.mrb[17].mxu1 }
 0x136   :  { %v3896_v55 = vpop.f32.mrb[18].mxu1 }
 0x137   :  { %v1534_v58 = vpop.f32.mrb[19].mxu1 }
 0x138   :  { %v3162_v58 = vld [vmem:[%s4624_s0 + $0x448] ss:$20 sps:$4 sm:$0xff]  }
 0x139   :  { %1905 = vmatmul.mubr.bf16.gmra.mrb[92].mxu0 %v3131_v53  ;;  %2701 = vmatmul.mubr.msk.bf16.gmra.mrb[124].mxu1 %vm1302_vm0, %v3132_v54 }
 0x13a   :  { %1912 = vmatprep.mubr.bf16.mxu0 %v3133_v56  ;;  %2704 = vmatprep.mubr.msk.bf16.mxu1 %vm1302_vm0, %v3135_v57  ;;  %v3161_v57 = vld [vmem:[%s4624_s0 + $0x490] ss:$20 sps:$4 sm:$0xff]  }
 0x13c   :  { %v3906_v59 = vpop.f32.mrb[20].mxu1 }
 0x13d   :  { %v1539_v60 = vpop.f32.mrb[21].mxu1 }
 0x13e   :  { %v3914_v63 = vpop.f32.mrb[22].mxu1 }
 0x13f   :  { %v1542_v3 = vpop.f32.mrb[23].mxu1 }
 0x141   :  { %1913 = vmatmul.mubr.bf16.gmra.mrb[96].mxu0 %v3136_v61  ;;  %2705 = vmatmul.mubr.msk.bf16.gmra.mrb[128].mxu1 %vm1302_vm0, %v3137_v62  ;;  %v3163_v62 = vld [vmem:[%s4624_s0 + $0x4bc] ss:$20 sps:$4 sm:$0xff]  }
 0x142   :  { %1920 = vmatprep.mubr.bf16.mxu0 %v3138_v1  ;;  %2708 = vmatprep.mubr.msk.bf16.mxu1 %vm1302_vm0, %v3140_v2  ;;  %v3165_v1 = vld [vmem:[%s4624_s0 + $0x470] ss:$20 sps:$4 sm:$0xff]  }
 0x144   :  { %v3924_v4 = vpop.f32.mrb[24].mxu1 }
 0x145   :  { %v1547_v5 = vpop.f32.mrb[25].mxu1 }
 0x146   :  { %v3932_v8 = vpop.f32.mrb[26].mxu1 }
 0x147   :  { %v1550_v11 = vpop.f32.mrb[27].mxu1 }
 0x148   :  { %v3167_v11 = vld [vmem:[%s4624_s0 + $0x498] ss:$20 sps:$4 sm:$0xff]  }
 0x149   :  { %1921 = vmatmul.mubr.bf16.gmra.mrb[100].mxu0 %v3141_v6  ;;  %2709 = vmatmul.mubr.msk.bf16.gmra.mrb[132].mxu1 %vm1302_vm0, %v3142_v7 }
 0x14a   :  { %1928 = vmatprep.mubr.bf16.mxu0 %v3143_v9  ;;  %2712 = vmatprep.mubr.msk.bf16.mxu1 %vm1302_vm0, %v3145_v10  ;;  %v3166_v10 = vld [vmem:[%s4624_s0 + $0x4b8] ss:$20 sps:$4 sm:$0xff]  }
 0x14c   :  { %v3942_v0 = vpop.f32.mrb[28].mxu1 }
 0x14d   :  { %v1555_v12 = vpop.f32.mrb[29].mxu1 }
 0x14e   :  { %v3950_v15 = vpop.f32.mrb[30].mxu1 }
 0x14f   :  { %v1558_v18 = vpop.f32.mrb[31].mxu1 }
 0x151   :  { %1929 = vmatmul.mubr.bf16.gmra.mrb[104].mxu0 %v3146_v13  ;;  %2713 = vmatmul.mubr.msk.bf16.gmra.mrb[136].mxu1 %vm1302_vm0, %v3147_v14  ;;  %v3168_v14 = vld [vmem:[%s4624_s0 + $0x4e4] ss:$20 sps:$4 sm:$0xff]  }
 0x152   :  { %1936 = vmatprep.mubr.bf16.mxu0 %v3148_v16  ;;  %2716 = vmatprep.mubr.msk.bf16.mxu1 %vm1302_vm0, %v3150_v17  ;;  %v3170_v16 = vld [vmem:[%s4624_s0 + $0x4c0] ss:$20 sps:$4 sm:$0xff]  }
 0x154   :  { %v3960_v20 = vpop.f32.mrb[32].mxu1  ;;  %v3962_v21 = vpop.f32.mrb[0].mxu0 }
 0x155   :  { %v1563_v22 = vpop.f32.mrb[33].mxu1  ;;  %v1724_v24 = vpop.f32.mrb[1].mxu0 }
 0x156   :  { %v3970_v28 = vpop.f32.mrb[34].mxu1  ;;  %v3972_v29 = vpop.f32.mrb[2].mxu0 }
 0x157   :  { %v1566_v33 = vpop.f32.mrb[35].mxu1  ;;  %v1727_v34 = vpop.f32.mrb[3].mxu0 }
 0x159   :  { %1937 = vmatmul.mubr.bf16.gmra.mrb[108].mxu0 %v3151_v25  ;;  %2717 = vmatmul.mubr.msk.bf16.gmra.mrb[140].mxu1 %vm1302_vm0, %v3152_v26 }
 0x15a   :  { %1944 = vmatprep.mubr.bf16.mxu0 %v3153_v30  ;;  %2720 = vmatprep.mubr.msk.bf16.mxu1 %vm1302_vm0, %v3155_v32  ;;  %v3171_v30 = vld [vmem:[%s4624_s0 + $0x4e0] ss:$20 sps:$4 sm:$0xff]   ;;  %v3172_v32 = vld [vmem:[%s4624_s0 + $0x4e8] ss:$20 sps:$4 sm:$0xff]  }
 0x15c   :  { %v3982_v36 = vpop.f32.mrb[36].mxu1  ;;  %v3984_v37 = vpop.f32.mrb[4].mxu0 }
 0x15d   :  { %v1571_v38 = vpop.f32.mrb[37].mxu1  ;;  %v1732_v40 = vpop.f32.mrb[5].mxu0 }
 0x15e   :  { %v3992_v44 = vpop.f32.mrb[38].mxu1  ;;  %v3994_v45 = vpop.f32.mrb[6].mxu0 }
 0x15f   :  { %v1574_v49 = vpop.f32.mrb[39].mxu1  ;;  %v1735_v50 = vpop.f32.mrb[7].mxu0 }
 0x161   :  { %1945 = vmatmul.mubr.bf16.gmra.mrb[112].mxu0 %v3156_v41  ;;  %2721 = vmatmul.mubr.msk.bf16.gmra.mrb[144].mxu1 %vm1302_vm0, %v3157_v42 }
 0x162   :  { %1952 = vmatprep.mubr.bf16.mxu0 %v3158_v46  ;;  %2724 = vmatprep.mubr.msk.bf16.mxu1 %vm1302_vm0, %v3160_v48 }
 0x164   :  { %v4004_v52 = vpop.f32.mrb[40].mxu1  ;;  %v4006_v53 = vpop.f32.mrb[8].mxu0 }
 0x165   :  { %v1579_v54 = vpop.f32.mrb[41].mxu1  ;;  %v1740_v56 = vpop.f32.mrb[9].mxu0 }
 0x166   :  { %v4014_v60 = vpop.f32.mrb[42].mxu1  ;;  %v4016_v61 = vpop.f32.mrb[10].mxu0 }
 0x167   :  { %v1582_v2 = vpop.f32.mrb[43].mxu1  ;;  %v1743_v3 = vpop.f32.mrb[11].mxu0 }
 0x169   :  { %1953 = vmatmul.mubr.bf16.gmra.mrb[116].mxu0 %v3161_v57  ;;  %2725 = vmatmul.mubr.msk.bf16.gmra.mrb[148].mxu1 %vm1302_vm0, %v3162_v58 }
 0x16a   :  { %1960 = vmatprep.mubr.bf16.mxu0 %v3163_v62  ;;  %2728 = vmatprep.mubr.msk.bf16.mxu1 %vm1302_vm0, %v3165_v1 }
 0x16c   :  { %v4026_v5 = vpop.f32.mrb[44].mxu1  ;;  %v4028_v6 = vpop.f32.mrb[12].mxu0 }
 0x16d   :  { %v1587_v7 = vpop.f32.mrb[45].mxu1  ;;  %v1748_v9 = vpop.f32.mrb[13].mxu0 }
 0x16e   :  { %v4036_v12 = vpop.f32.mrb[46].mxu1  ;;  %v4038_v13 = vpop.f32.mrb[14].mxu0 }
 0x16f   :  { %v1590_v17 = vpop.f32.mrb[47].mxu1  ;;  %v1751_v18 = vpop.f32.mrb[15].mxu0 }
 0x171   :  { %1961 = vmatmul.mubr.bf16.gmra.mrb[120].mxu0 %v3166_v10  ;;  %2729 = vmatmul.mubr.msk.bf16.gmra.mrb[152].mxu1 %vm1302_vm0, %v3167_v11 }
 0x172   :  { %1968 = vmatprep.mubr.bf16.mxu0 %v3168_v14  ;;  %2732 = vmatprep.mubr.msk.bf16.mxu1 %vm1302_vm0, %v3170_v16 }
 0x174   :  { %v4048_v22 = vpop.f32.mrb[48].mxu1  ;;  %v4050_v24 = vpop.f32.mrb[16].mxu0 }
 0x175   :  { %v1595_v25 = vpop.f32.mrb[49].mxu1  ;;  %v1756_v26 = vpop.f32.mrb[17].mxu0 }
 0x176   :  { %v4058_v33 = vpop.f32.mrb[50].mxu1  ;;  %v4060_v34 = vpop.f32.mrb[18].mxu0 }
 0x177   :  { %v1598_v38 = vpop.f32.mrb[51].mxu1  ;;  %v1759_v40 = vpop.f32.mrb[19].mxu0 }
 0x179   :  { %1969 = vmatmul.mubr.bf16.gmra.mrb[124].mxu0 %v3171_v30  ;;  %2733 = vmatmul.mubr.msk.bf16.gmra.mrb[156].mxu1 %vm1302_vm0, %v3172_v32  ;;  %v4090_v30 = vld [vmem:[%s4625_s2] ss:$0 sm:$0xff] }
 0x17a   :  { %v1498_v32 = vadd.f32 %v4090_v30, %v3816_v19  ;;  %v1506_v19 = vadd.f32 %v4090_v30, %v3834_v27  ;;  %v1514_v27 = vadd.f32 %v4090_v30, %v3852_v35  ;;  %v1522_v35 = vadd.f32 %v4090_v30, %v3870_v43 }
 0x17b   :  { %v1530_v43 = vadd.f32 %v4090_v30, %v3888_v51  ;;  %v1538_v51 = vadd.f32 %v4090_v30, %v3906_v59  ;;  %v1546_v59 = vadd.f32 %v4090_v30, %v3924_v4  ;;  %v1554_v4 = vadd.f32 %v4090_v30, %v3942_v0 }
 0x17c   :  { %v4063_v41 = vpop.f32.mrb[52].mxu1  ;;  %v4065_v42 = vpop.f32.mrb[20].mxu0  ;;  %v1562_v0 = vadd.f32 %v4090_v30, %v3960_v20  ;;  %v2769_v20 = vadd.f32 %v4090_v30, %v3972_v29  ;;  %v2772_v29 = vadd.f32 %v4090_v30, %v4006_v53 }
 0x17d   :  { %v1603_v46 = vpop.f32.mrb[53].mxu1  ;;  %v1764_v48 = vpop.f32.mrb[21].mxu0 }
 0x17e   :  { %v4067_v49 = vpop.f32.mrb[54].mxu1  ;;  %v4069_v50 = vpop.f32.mrb[22].mxu0  ;;  %v1501_v46 = vadd.f32 %v4090_v30, %v3824_v23  ;;  %v1509_v23 = vadd.f32 %v4090_v30, %v3842_v31  ;;  %v1517_v31 = vadd.f32 %v4090_v30, %v3860_v39  ;;  %v1525_v39 = vadd.f32 %v4090_v30, %v3878_v47 }
 0x17f   :  { %v1606_v54 = vpop.f32.mrb[55].mxu1  ;;  %v1767_v56 = vpop.f32.mrb[23].mxu0  ;;  %v1533_v47 = vadd.f32 %v4090_v30, %v3896_v55  ;;  %v1541_v55 = vadd.f32 %v4090_v30, %v3914_v63  ;;  %v1549_v63 = vadd.f32 %v4090_v30, %v3932_v8  ;;  %v1557_v8 = vadd.f32 %v4090_v30, %v3950_v15 }
 0x180   :  { %v2768_v15 = vadd.f32 %v4090_v30, %v3962_v21 }
 0x184   :  { %v4071_v57 = vpop.f32.mrb[56].mxu1  ;;  %v4073_v58 = vpop.f32.mrb[24].mxu0 }
 0x185   :  { %v1611_v62 = vpop.f32.mrb[57].mxu1  ;;  %v1772_v1 = vpop.f32.mrb[25].mxu0 }
 0x186   :  { %v4075_v2 = vpop.f32.mrb[58].mxu1  ;;  %v4077_v3 = vpop.f32.mrb[26].mxu0 }
 0x187   :  { %v1614_v7 = vpop.f32.mrb[59].mxu1  ;;  %v1775_v9 = vpop.f32.mrb[27].mxu0 }
 0x18c   :  { %v4079_v10 = vpop.f32.mrb[60].mxu1  ;;  %v4081_v11 = vpop.f32.mrb[28].mxu0 }
 0x18d   :  { %v1619_v14 = vpop.f32.mrb[61].mxu1  ;;  %v1780_v16 = vpop.f32.mrb[29].mxu0 }
 0x18e   :  { %v4083_v17 = vpop.f32.mrb[62].mxu1  ;;  %v4085_v18 = vpop.f32.mrb[30].mxu0 }
 0x18f   :  { %v1622_v25 = vpop.f32.mrb[63].mxu1  ;;  %v1783_v26 = vpop.f32.mrb[31].mxu0 }
 0x194   :  { %v4094_v38 = vpop.f32.mrb[64].mxu1  ;;  %v1786_v40 = vpop.f32.mrb[32].mxu0 }
 0x195   :  { %4627 = vst [vmem:[#allocation2_spill] sm:$0xff] %v4094_v38  ;;  %v4098_v48 = vadd.f32 %v1786_v40, %v1498_v32  ;;  %v1627_v54 = vpop.f32.mrb[65].mxu1  ;;  %v1788_v56 = vpop.f32.mrb[33].mxu0 }
 0x196   :  { %v4100_v62 = vpop.f32.mrb[66].mxu1  ;;  %v1789_v1 = vpop.f32.mrb[34].mxu0 }
 0x197   :  { %4628 = vst [vmem:[#allocation3_spill] sm:$0xff] %v4100_v62  ;;  %v4102_v7 = vadd.f32 %v1789_v1, %v1501_v46  ;;  %v1630_v9 = vpop.f32.mrb[67].mxu1  ;;  %v1791_v14 = vpop.f32.mrb[35].mxu0 }
 0x19c   :  { %v4106_v16 = vpop.f32.mrb[68].mxu1  ;;  %v1794_v25 = vpop.f32.mrb[36].mxu0 }
 0x19d   :  { %4629 = vst [vmem:[#allocation4_spill] sm:$0xff] %v4106_v16  ;;  %v4110_v26 = vadd.f32 %v1794_v25, %v1506_v19  ;;  %v1635_v32 = vpop.f32.mrb[69].mxu1  ;;  %v1796_v40 = vpop.f32.mrb[37].mxu0 }
 0x19e   :  { %v4112_v54 = vpop.f32.mrb[70].mxu1  ;;  %v1797_v56 = vpop.f32.mrb[38].mxu0 }
 0x19f   :  { %4630 = vst [vmem:[#allocation5_spill] sm:$0xff] %v4112_v54  ;;  %v4114_v46 = vadd.f32 %v1797_v56, %v1509_v23  ;;  %v1638_v1 = vpop.f32.mrb[71].mxu1  ;;  %v1799_v9 = vpop.f32.mrb[39].mxu0 }
 0x1a4   :  { %v4118_v14 = vpop.f32.mrb[72].mxu1  ;;  %v1802_v16 = vpop.f32.mrb[40].mxu0 }
 0x1a5   :  { %4631 = vst [vmem:[#allocation6_spill] sm:$0xff] %v4118_v14  ;;  %v4122_v19 = vadd.f32 %v1802_v16, %v1514_v27  ;;  %v1643_v25 = vpop.f32.mrb[73].mxu1  ;;  %v1804_v32 = vpop.f32.mrb[41].mxu0 }
 0x1a6   :  { %v4124_v40 = vpop.f32.mrb[74].mxu1  ;;  %v1805_v54 = vpop.f32.mrb[42].mxu0 }
 0x1a7   :  { %4632 = vst [vmem:[#allocation7_spill] sm:$0xff] %v4124_v40  ;;  %v4126_v23 = vadd.f32 %v1805_v54, %v1517_v31  ;;  %v1646_v56 = vpop.f32.mrb[75].mxu1  ;;  %v1807_v1 = vpop.f32.mrb[43].mxu0 }
 0x1ac   :  { %v4130_v9 = vpop.f32.mrb[76].mxu1  ;;  %v1810_v14 = vpop.f32.mrb[44].mxu0 }
 0x1ad   :  { %4633 = vst [vmem:[#allocation8_spill] sm:$0xff] %v4130_v9  ;;  %v4134_v16 = vadd.f32 %v1810_v14, %v1522_v35  ;;  %v1651_v27 = vpop.f32.mrb[77].mxu1  ;;  %v1812_v25 = vpop.f32.mrb[45].mxu0 }
 0x1ae   :  { %v4136_v32 = vpop.f32.mrb[78].mxu1  ;;  %v1813_v40 = vpop.f32.mrb[46].mxu0 }
 0x1af   :  { %4634 = vst [vmem:[#allocation9_spill] sm:$0xff] %v4136_v32  ;;  %v4138_v54 = vadd.f32 %v1813_v40, %v1525_v39  ;;  %v1654_v31 = vpop.f32.mrb[79].mxu1  ;;  %v1815_v56 = vpop.f32.mrb[47].mxu0 }
 0x1b4   :  { %v4142_v1 = vpop.f32.mrb[80].mxu1  ;;  %v1818_v9 = vpop.f32.mrb[48].mxu0 }
 0x1b5   :  { %4635 = vst [vmem:[#allocation10_spill] sm:$0xff] %v4142_v1  ;;  %v4146_v14 = vadd.f32 %v1818_v9, %v1530_v43  ;;  %v1659_v35 = vpop.f32.mrb[81].mxu1  ;;  %v1820_v27 = vpop.f32.mrb[49].mxu0 }
 0x1b6   :  { %v4148_v25 = vpop.f32.mrb[82].mxu1  ;;  %v1821_v32 = vpop.f32.mrb[50].mxu0 }
 0x1b7   :  { %4636 = vst [vmem:[#allocation11_spill] sm:$0xff] %v4148_v25  ;;  %v4150_v40 = vadd.f32 %v1821_v32, %v1533_v47  ;;  %v1662_v39 = vpop.f32.mrb[83].mxu1  ;;  %v1823_v31 = vpop.f32.mrb[51].mxu0 }
 0x1bc   :  { %v4154_v56 = vpop.f32.mrb[84].mxu1  ;;  %v1826_v1 = vpop.f32.mrb[52].mxu0 }
 0x1bd   :  { %4637 = vst [vmem:[#allocation12_spill] sm:$0xff] %v4154_v56  ;;  %v4158_v9 = vadd.f32 %v1826_v1, %v1538_v51  ;;  %v1667_v43 = vpop.f32.mrb[85].mxu1  ;;  %v1828_v35 = vpop.f32.mrb[53].mxu0 }
 0x1be   :  { %v4160_v27 = vpop.f32.mrb[86].mxu1  ;;  %v1829_v25 = vpop.f32.mrb[54].mxu0 }
 0x1bf   :  { %4638 = vst [vmem:[#allocation13_spill] sm:$0xff] %v4160_v27  ;;  %v4162_v32 = vadd.f32 %v1829_v25, %v1541_v55  ;;  %v1670_v47 = vpop.f32.mrb[87].mxu1  ;;  %v1831_v39 = vpop.f32.mrb[55].mxu0 }
 0x1c4   :  { %v4166_v31 = vpop.f32.mrb[88].mxu1  ;;  %v1834_v56 = vpop.f32.mrb[56].mxu0 }
 0x1c5   :  { %4639 = vst [vmem:[#allocation14_spill] sm:$0xff] %v4166_v31  ;;  %v4170_v1 = vadd.f32 %v1834_v56, %v1546_v59  ;;  %v1675_v51 = vpop.f32.mrb[89].mxu1  ;;  %v1836_v43 = vpop.f32.mrb[57].mxu0 }
 0x1c6   :  { %v4172_v35 = vpop.f32.mrb[90].mxu1  ;;  %v1837_v27 = vpop.f32.mrb[58].mxu0 }
 0x1c7   :  { %4640 = vst [vmem:[#allocation15_spill] sm:$0xff] %v4172_v35  ;;  %v4174_v25 = vadd.f32 %v1837_v27, %v1549_v63  ;;  %v1678_v55 = vpop.f32.mrb[91].mxu1  ;;  %v1839_v47 = vpop.f32.mrb[59].mxu0 }
 0x1c8   :  { %v2770_v47 = vadd.f32 %v4090_v30, %v3984_v37 }
 0x1c9   :  { %4641 = vst [vmem:[#allocation16_spill] sm:$0xff] %v4174_v25 }
 0x1cc   :  { %v4178_v39 = vpop.f32.mrb[92].mxu1  ;;  %v1842_v31 = vpop.f32.mrb[60].mxu0 }
 0x1cd   :  { %4642 = vst [vmem:[#allocation17_spill] sm:$0xff] %v4178_v39  ;;  %v4182_v56 = vadd.f32 %v1842_v31, %v1554_v4  ;;  %v1683_v59 = vpop.f32.mrb[93].mxu1  ;;  %v1844_v51 = vpop.f32.mrb[61].mxu0 }
 0x1ce   :  { %v4184_v43 = vpop.f32.mrb[94].mxu1  ;;  %v1845_v35 = vpop.f32.mrb[62].mxu0  ;;  %v1565_v59 = vadd.f32 %v4090_v30, %v3970_v28 }
 0x1cf   :  { %4643 = vst [vmem:[#allocation18_spill] sm:$0xff] %v4184_v43  ;;  %v4186_v27 = vadd.f32 %v1845_v35, %v1557_v8  ;;  %v1686_v63 = vpop.f32.mrb[95].mxu1  ;;  %v1847_v55 = vpop.f32.mrb[63].mxu0  ;;  %v2771_v35 = vadd.f32 %v4090_v30, %v3994_v45  ;;  %v1570_v45 = vadd.f32 %v4090_v30, %v3982_v36  ;;  %v2773_v36 = vadd.f32 %v4090_v30, %v4016_v61 }
 0x1d4   :  { %v1850_v31 = vpop.f32.mrb[64].mxu0  ;;  %v2674_v4 = vpop.f32.mrb[96].mxu1 }
 0x1d5   :  { %v4198_v8 = vadd.f32 %v1850_v31, %v1562_v0  ;;  %v2020_v51 = vadd.f32 %v2770_v47, %v2674_v4  ;;  %v1852_v63 = vpop.f32.mrb[65].mxu0  ;;  %v2011_v55 = vpop.f32.mrb[97].mxu1  ;;  %v2774_v0 = vadd.f32 %v4090_v30, %v4028_v6 }
 0x1d6   :  { %v2012_v37 = vadd.f32 %v2768_v15, %v2011_v55  ;;  %v1853_v43 = vpop.f32.mrb[66].mxu0  ;;  %v2675_v39 = vpop.f32.mrb[98].mxu1 }
 0x1d7   :  { %3173 = vtanh.f32 %v2020_v51  ;;  %v4202_v21 = vadd.f32 %v1853_v43, %v1565_v59  ;;  %v2023_v62 = vadd.f32 %v2771_v35, %v2675_v39  ;;  %v1855_v38 = vpop.f32.mrb[67].mxu0  ;;  %v2014_v28 = vpop.f32.mrb[99].mxu1  ;;  %v1573_v39 = vadd.f32 %v4090_v30, %v3992_v44 }
 0x1d8   :  { %3175 = vtanh.f32 %v2012_v37  ;;  %v2015_v25 = vadd.f32 %v2769_v20, %v2014_v28  ;;  %v2775_v38 = vadd.f32 %v4090_v30, %v4038_v13  ;;  %v1578_v20 = vadd.f32 %v4090_v30, %v4004_v52 }
 0x1d9   :  { %3177 = vtanh.f32 %v2023_v62  ;;  %v2778_v37 = vadd.f32 %v4090_v30, %v4065_v42  ;;  %v1581_v52 = vadd.f32 %v4090_v30, %v4014_v60  ;;  %v2779_v42 = vadd.f32 %v4090_v30, %v4069_v50 }
 0x1da   :  { %3179 = vtanh.f32 %v2015_v25 }
 0x1dc   :  { %v1858_v47 = vpop.f32.mrb[68].mxu0  ;;  %v2678_v15 = vpop.f32.mrb[100].mxu1 }
 0x1dd   :  { %v4214_v43 = vadd.f32 %v1858_v47, %v1570_v45  ;;  %v2036_v62 = vadd.f32 %v2774_v0, %v2678_v15  ;;  %v1860_v25 = vpop.f32.mrb[69].mxu0  ;;  %v2027_v31 = vpop.f32.mrb[101].mxu1  ;;  %v2776_v45 = vadd.f32 %v4090_v30, %v4050_v24 }
 0x1de   :  { %v2028_v6 = vadd.f32 %v2772_v29, %v2027_v31  ;;  %v1861_v4 = vpop.f32.mrb[70].mxu0  ;;  %v2679_v59 = vpop.f32.mrb[102].mxu1 }
 0x1df   :  { %3181 = vtanh.f32 %v2036_v62  ;;  %v4218_v53 = vadd.f32 %v1861_v4, %v1573_v39  ;;  %v2039_v35 = vadd.f32 %v2775_v38, %v2679_v59  ;;  %v1863_v44 = vpop.f32.mrb[71].mxu0  ;;  %v2030_v51 = vpop.f32.mrb[103].mxu1  ;;  %v2777_v38 = vadd.f32 %v4090_v30, %v4060_v34 }
 0x1e0   :  { %3183 = vtanh.f32 %v2028_v6  ;;  %v2031_v13 = vadd.f32 %v2773_v36, %v2030_v51  ;;  %v1586_v44 = vadd.f32 %v4090_v30, %v4026_v5  ;;  %v2782_v51 = vadd.f32 %v4090_v30, %v4081_v11 }
 0x1e1   :  { %v3174_v63 = vpop.eup %3173  ;;  %3185 = vtanh.f32 %v2039_v35  ;;  %v1589_v5 = vadd.f32 %v4090_v30, %v4036_v12  ;;  %v2783_v11 = vadd.f32 %v4090_v30, %v4085_v18 }
 0x1e2   :  { %v3176_v55 = vpop.eup %3175  ;;  %2333 = vst.msk [vmem:[%s4626_s3 + $0x10] sm:$0xff] %vm2330_vm1, %v3174_v63  ;;  %3187 = vtanh.f32 %v2031_v13  ;;  %v2780_v63 = vadd.f32 %v4090_v30, %v4073_v58 }
 0x1e3   :  { %v3178_v61 = vpop.eup %3177  ;;  %2331 = vst.msk [vmem:[%s4626_s3] sm:$0xff] %vm2330_vm1, %v3176_v55 }
 0x1e4   :  { %v3180_v28 = vpop.eup %3179  ;;  %2334 = vst.msk [vmem:[%s4626_s3 + $0x18] sm:$0xff] %vm2330_vm1, %v3178_v61  ;;  %v1866_v0 = vpop.f32.mrb[72].mxu0 }
 0x1e5   :  { %v2682_v29 = vpop.f32.mrb[104].mxu1  ;;  %2332 = vst.msk [vmem:[%s4626_s3 + $0x8] sm:$0xff] %vm2330_vm1, %v3180_v28  ;;  %v4246_v47 = vadd.f32 %v1866_v0, %v1578_v20  ;;  %v1868_v15 = vpop.f32.mrb[73].mxu0 }
 0x1e6   :  { %v2052_v24 = vadd.f32 %v2778_v37, %v2682_v29  ;;  %v2043_v39 = vpop.f32.mrb[105].mxu1  ;;  %v1869_v25 = vpop.f32.mrb[74].mxu0 }
 0x1e7   :  { %v2044_v62 = vadd.f32 %v2776_v45, %v2043_v39  ;;  %v2683_v31 = vpop.f32.mrb[106].mxu1  ;;  %v4250_v60 = vadd.f32 %v1869_v25, %v1581_v52  ;;  %v1871_v36 = vpop.f32.mrb[75].mxu0  ;;  %v2781_v45 = vadd.f32 %v4090_v30, %v4077_v3 }
 0x1e8   :  { %3189 = vtanh.f32 %v2052_v24  ;;  %v2055_v50 = vadd.f32 %v2779_v42, %v2683_v31  ;;  %v2046_v6 = vpop.f32.mrb[107].mxu1  ;;  %v1597_v36 = vadd.f32 %v4090_v30, %v4058_v33 }
 0x1e9   :  { %3191 = vtanh.f32 %v2044_v62  ;;  %v2047_v4 = vadd.f32 %v2777_v38, %v2046_v6  ;;  %v3182_v59 = vpop.eup %3181  ;;  %v1594_v62 = vadd.f32 %v4090_v30, %v4048_v22 }
 0x1ea   :  { %3193 = vtanh.f32 %v2055_v50  ;;  %v3184_v35 = vpop.eup %3183  ;;  %2337 = vst.msk [vmem:[%s4626_s3 + $0x30] sm:$0xff] %vm2330_vm1, %v3182_v59 }
 0x1eb   :  { %3195 = vtanh.f32 %v2047_v4  ;;  %v3186_v34 = vpop.eup %3185  ;;  %2335 = vst.msk [vmem:[%s4626_s3 + $0x20] sm:$0xff] %vm2330_vm1, %v3184_v35 }
 0x1ec   :  { %v3188_v13 = vpop.eup %3187  ;;  %2338 = vst.msk [vmem:[%s4626_s3 + $0x38] sm:$0xff] %vm2330_vm1, %v3186_v34  ;;  %v1874_v55 = vpop.f32.mrb[76].mxu0 }
 0x1ed   :  { %v2686_v61 = vpop.f32.mrb[108].mxu1  ;;  %2336 = vst.msk [vmem:[%s4626_s3 + $0x28] sm:$0xff] %vm2330_vm1, %v3188_v13  ;;  %v4278_v20 = vadd.f32 %v1874_v55, %v1586_v44  ;;  %v1876_v37 = vpop.f32.mrb[77].mxu0 }
 0x1ee   :  { %v2068_v58 = vadd.f32 %v2782_v51, %v2686_v61  ;;  %v2059_v28 = vpop.f32.mrb[109].mxu1  ;;  %v1877_v29 = vpop.f32.mrb[78].mxu0 }
 0x1ef   :  { %v2060_v0 = vadd.f32 %v2780_v63, %v2059_v28  ;;  %v2687_v52 = vpop.f32.mrb[110].mxu1  ;;  %v4282_v12 = vadd.f32 %v1877_v29, %v1589_v5  ;;  %v1879_v42 = vpop.f32.mrb[79].mxu0 }
 0x1f0   :  { %3197 = vtanh.f32 %v2068_v58  ;;  %v2071_v18 = vadd.f32 %v2783_v11, %v2687_v52  ;;  %v2062_v24 = vpop.f32.mrb[111].mxu1  ;;  %v1605_v58 = vadd.f32 %v4090_v30, %v4067_v49 }
 0x1f1   :  { %3199 = vtanh.f32 %v2060_v0  ;;  %v2063_v15 = vadd.f32 %v2781_v45, %v2062_v24 }
 0x1f2   :  { %v3190_v39 = vpop.eup %3189  ;;  %3201 = vtanh.f32 %v2071_v18 }
 0x1f3   :  { %v3192_v38 = vpop.eup %3191  ;;  %2341 = vst.msk [vmem:[%s4626_s3 + $0x50] sm:$0xff] %vm2330_vm1, %v3190_v39  ;;  %3203 = vtanh.f32 %v2063_v15 }
 0x1f4   :  { %v3194_v3 = vpop.eup %3193  ;;  %2339 = vst.msk [vmem:[%s4626_s3 + $0x40] sm:$0xff] %vm2330_vm1, %v3192_v38  ;;  %v1882_v31 = vpop.f32.mrb[80].mxu0 }
 0x1f5   :  { %v3196_v25 = vpop.eup %3195  ;;  %2342 = vst.msk [vmem:[%s4626_s3 + $0x58] sm:$0xff] %vm2330_vm1, %v3194_v3  ;;  %v2690_v50 = vpop.f32.mrb[112].mxu1  ;;  %v4304_v22 = vadd.f32 %v1882_v31, %v1594_v62  ;;  %v1613_v62 = vadd.f32 %v4090_v30, %v4075_v2 }
 0x1f6   :  { %2340 = vst.msk [vmem:[%s4626_s3 + $0x48] sm:$0xff] %vm2330_vm1, %v3196_v25  ;;  %v2084_v6 = vadd.f32 %v2690_v50, %v4110_v26  ;;  %v1884_v4 = vpop.f32.mrb[81].mxu0  ;;  %v2075_v59 = vpop.f32.mrb[113].mxu1  ;;  %v1602_v26 = vadd.f32 %v4090_v30, %v4063_v41 }
 0x1f7   :  { %v2076_v35 = vadd.f32 %v2075_v59, %v4098_v48  ;;  %v1885_v34 = vpop.f32.mrb[82].mxu0  ;;  %v2691_v44 = vpop.f32.mrb[114].mxu1 }
 0x1f8   :  { %3205 = vtanh.f32 %v2084_v6  ;;  %v4308_v51 = vadd.f32 %v1885_v34, %v1597_v36  ;;  %v2087_v33 = vadd.f32 %v2691_v44, %v4114_v46  ;;  %v1887_v13 = vpop.f32.mrb[83].mxu0  ;;  %v2078_v63 = vpop.f32.mrb[115].mxu1 }
 0x1f9   :  { %3207 = vtanh.f32 %v2076_v35  ;;  %v2079_v55 = vadd.f32 %v2078_v63, %v4102_v7 }
 0x1fa   :  { %v3198_v61 = vpop.eup %3197  ;;  %3209 = vtanh.f32 %v2087_v33 }
 0x1fb   :  { %v3200_v5 = vpop.eup %3199  ;;  %2345 = vst.msk [vmem:[%s4626_s3 + $0x70] sm:$0xff] %vm2330_vm1, %v3198_v61  ;;  %3211 = vtanh.f32 %v2079_v55  ;;  %v1621_v55 = vadd.f32 %v4090_v30, %v4083_v17 }
 0x1fc   :  { %v3202_v48 = vpop.eup %3201  ;;  %2343 = vst.msk [vmem:[%s4626_s3 + $0x60] sm:$0xff] %vm2330_vm1, %v3200_v5  ;;  %v1890_v7 = vpop.f32.mrb[84].mxu0 }
 0x1fd   :  { %v3204_v46 = vpop.eup %3203  ;;  %2346 = vst.msk [vmem:[%s4626_s3 + $0x78] sm:$0xff] %vm2330_vm1, %v3202_v48  ;;  %v2694_v11 = vpop.f32.mrb[116].mxu1  ;;  %v4332_v41 = vadd.f32 %v1890_v7, %v1602_v26 }
 0x1fe   :  { %2344 = vst.msk [vmem:[%s4626_s3 + $0x68] sm:$0xff] %vm2330_vm1, %v3204_v46  ;;  %v2100_v37 = vadd.f32 %v2694_v11, %v4134_v16  ;;  %v1892_v28 = vpop.f32.mrb[85].mxu0  ;;  %v2091_v45 = vpop.f32.mrb[117].mxu1  ;;  %v1610_v16 = vadd.f32 %v4090_v30, %v4071_v57 }
 0x1ff   :  { %v2092_v0 = vadd.f32 %v2091_v45, %v4122_v19  ;;  %v1893_v29 = vpop.f32.mrb[86].mxu0  ;;  %v2695_v52 = vpop.f32.mrb[118].mxu1  ;;  %v4644_v28 = vld [vmem:[#allocation16_spill] sm:$0xff] }
 0x200   :  { %3213 = vtanh.f32 %v2100_v37  ;;  %v4336_v18 = vadd.f32 %v1893_v29, %v1605_v58  ;;  %v2103_v49 = vadd.f32 %v2695_v52, %v4138_v54  ;;  %v1895_v42 = vpop.f32.mrb[87].mxu0  ;;  %v2094_v24 = vpop.f32.mrb[119].mxu1 }
 0x201   :  { %3215 = vtanh.f32 %v2092_v0  ;;  %v2095_v15 = vadd.f32 %v2094_v24, %v4126_v23  ;;  %v4646_v24 = vld [vmem:[#allocation3_spill] sm:$0xff] }
 0x202   :  { %v3206_v39 = vpop.eup %3205  ;;  %3217 = vtanh.f32 %v2103_v49 }
 0x203   :  { %v3208_v38 = vpop.eup %3207  ;;  %2349 = vst.msk [vmem:[%s4626_s3 + $0x90] sm:$0xff] %vm2330_vm1, %v3206_v39  ;;  %3219 = vtanh.f32 %v2095_v15  ;;  %v1629_v15 = vadd.f32 %v4090_v30, %v4646_v24 }
 0x204   :  { %v3210_v19 = vpop.eup %3209  ;;  %2347 = vst.msk [vmem:[%s4626_s3 + $0x80] sm:$0xff] %vm2330_vm1, %v3208_v38  ;;  %v1898_v23 = vpop.f32.mrb[88].mxu0 }
 0x205   :  { %v3212_v54 = vpop.eup %3211  ;;  %2350 = vst.msk [vmem:[%s4626_s3 + $0x98] sm:$0xff] %vm2330_vm1, %v3210_v19  ;;  %v2698_v3 = vpop.f32.mrb[120].mxu1  ;;  %v4360_v57 = vadd.f32 %v1898_v23, %v1610_v16 }
 0x206   :  { %2348 = vst.msk [vmem:[%s4626_s3 + $0x88] sm:$0xff] %vm2330_vm1, %v3212_v54  ;;  %v2116_v25 = vadd.f32 %v2698_v3, %v4158_v9  ;;  %v1900_v31 = vpop.f32.mrb[89].mxu0  ;;  %v2107_v50 = vpop.f32.mrb[121].mxu1  ;;  %v1618_v9 = vadd.f32 %v4090_v30, %v4079_v10 }
 0x207   :  { %v2108_v36 = vadd.f32 %v2107_v50, %v4146_v14  ;;  %v1901_v6 = vpop.f32.mrb[90].mxu0  ;;  %v2699_v4 = vpop.f32.mrb[122].mxu1 }
 0x208   :  { %3221 = vtanh.f32 %v2116_v25  ;;  %v4364_v59 = vadd.f32 %v1901_v6, %v1613_v62  ;;  %v2119_v2 = vadd.f32 %v2699_v4, %v4162_v32  ;;  %v1903_v35 = vpop.f32.mrb[91].mxu0  ;;  %v2110_v34 = vpop.f32.mrb[123].mxu1 }
 0x209   :  { %3223 = vtanh.f32 %v2108_v36  ;;  %v2111_v44 = vadd.f32 %v2110_v34, %v4150_v40  ;;  %v4648_v34 = vld [vmem:[#allocation5_spill] sm:$0xff] }
 0x20a   :  { %v3214_v33 = vpop.eup %3213  ;;  %3225 = vtanh.f32 %v2119_v2 }
 0x20b   :  { %v3216_v13 = vpop.eup %3215  ;;  %2353 = vst.msk [vmem:[%s4626_s3 + $0xb0] sm:$0xff] %vm2330_vm1, %v3214_v33  ;;  %3227 = vtanh.f32 %v2111_v44  ;;  %v1637_v44 = vadd.f32 %v4090_v30, %v4648_v34 }
 0x20c   :  { %v3218_v14 = vpop.eup %3217  ;;  %2351 = vst.msk [vmem:[%s4626_s3 + $0xa0] sm:$0xff] %vm2330_vm1, %v3216_v13  ;;  %v1906_v40 = vpop.f32.mrb[92].mxu0 }
 0x20d   :  { %v3220_v32 = vpop.eup %3219  ;;  %2354 = vst.msk [vmem:[%s4626_s3 + $0xb8] sm:$0xff] %vm2330_vm1, %v3218_v14  ;;  %v2702_v63 = vpop.f32.mrb[124].mxu1  ;;  %v4388_v10 = vadd.f32 %v1906_v40, %v1618_v9 }
 0x20e   :  { %2352 = vst.msk [vmem:[%s4626_s3 + $0xa8] sm:$0xff] %vm2330_vm1, %v3220_v32  ;;  %v2132_v61 = vadd.f32 %v2702_v63, %v4182_v56  ;;  %v1908_v5 = vpop.f32.mrb[93].mxu0  ;;  %v2123_v48 = vpop.f32.mrb[125].mxu1  ;;  %v4645_v56 = vld [vmem:[#allocation2_spill] sm:$0xff] }
 0x20f   :  { %v2124_v26 = vadd.f32 %v2123_v48, %v4170_v1  ;;  %v1909_v46 = vpop.f32.mrb[94].mxu0  ;;  %v2703_v7 = vpop.f32.mrb[126].mxu1  ;;  %v1626_v52 = vadd.f32 %v4090_v30, %v4645_v56 }
 0x210   :  { %3229 = vtanh.f32 %v2132_v61  ;;  %v4392_v11 = vadd.f32 %v1909_v46, %v1621_v55  ;;  %v2135_v17 = vadd.f32 %v2703_v7, %v4186_v27  ;;  %v1911_v58 = vpop.f32.mrb[95].mxu0  ;;  %v2126_v37 = vpop.f32.mrb[127].mxu1 }
 0x211   :  { %3231 = vtanh.f32 %v2124_v26  ;;  %v2127_v45 = vadd.f32 %v2126_v37, %v4644_v28  ;;  %v4650_v37 = vld [vmem:[#allocation7_spill] sm:$0xff] }
 0x212   :  { %v3222_v0 = vpop.eup %3221  ;;  %3233 = vtanh.f32 %v2135_v17  ;;  %v1645_v28 = vadd.f32 %v4090_v30, %v4650_v37 }
 0x213   :  { %v3224_v29 = vpop.eup %3223  ;;  %2357 = vst.msk [vmem:[%s4626_s3 + $0xd0] sm:$0xff] %vm2330_vm1, %v3222_v0  ;;  %3235 = vtanh.f32 %v2127_v45 }
 0x214   :  { %v3226_v1 = vpop.eup %3225  ;;  %2355 = vst.msk [vmem:[%s4626_s3 + $0xc0] sm:$0xff] %vm2330_vm1, %v3224_v29  ;;  %v1914_v49 = vpop.f32.mrb[96].mxu0 }
 0x215   :  { %v3228_v27 = vpop.eup %3227  ;;  %2358 = vst.msk [vmem:[%s4626_s3 + $0xd8] sm:$0xff] %vm2330_vm1, %v3226_v1  ;;  %v2706_v42 = vpop.f32.mrb[128].mxu1  ;;  %v4416_v39 = vadd.f32 %v1914_v49, %v1626_v52 }
 0x216   :  { %2356 = vst.msk [vmem:[%s4626_s3 + $0xc8] sm:$0xff] %vm2330_vm1, %v3228_v27  ;;  %v2148_v38 = vadd.f32 %v2706_v42, %v4214_v43  ;;  %v1916_v19 = vpop.f32.mrb[97].mxu0  ;;  %v2139_v16 = vpop.f32.mrb[129].mxu1  ;;  %v4647_v43 = vld [vmem:[#allocation4_spill] sm:$0xff] }
 0x217   :  { %v2140_v54 = vadd.f32 %v2139_v16, %v4198_v8  ;;  %v1917_v23 = vpop.f32.mrb[98].mxu0  ;;  %v2707_v3 = vpop.f32.mrb[130].mxu1  ;;  %v1634_v2 = vadd.f32 %v4090_v30, %v4647_v43 }
 0x218   :  { %3237 = vtanh.f32 %v2148_v38  ;;  %v4420_v62 = vadd.f32 %v1917_v23, %v1629_v15  ;;  %v2151_v25 = vadd.f32 %v2707_v3, %v4218_v53  ;;  %v1919_v31 = vpop.f32.mrb[99].mxu0  ;;  %v2142_v50 = vpop.f32.mrb[131].mxu1  ;;  %v4652_v3 = vld [vmem:[#allocation9_spill] sm:$0xff] }
 0x219   :  { %3239 = vtanh.f32 %v2140_v54  ;;  %v2143_v36 = vadd.f32 %v2142_v50, %v4202_v21 }
 0x21a   :  { %v3230_v6 = vpop.eup %3229  ;;  %3241 = vtanh.f32 %v2151_v25  ;;  %v1653_v25 = vadd.f32 %v4090_v30, %v4652_v3 }
 0x21b   :  { %v3232_v4 = vpop.eup %3231  ;;  %2361 = vst.msk [vmem:[%s4626_s3 + $0xf0] sm:$0xff] %vm2330_vm1, %v3230_v6  ;;  %3243 = vtanh.f32 %v2143_v36 }
 0x21c   :  { %v3234_v8 = vpop.eup %3233  ;;  %2359 = vst.msk [vmem:[%s4626_s3 + $0xe0] sm:$0xff] %vm2330_vm1, %v3232_v4  ;;  %v1922_v21 = vpop.f32.mrb[100].mxu0 }
 0x21d   :  { %v3236_v53 = vpop.eup %3235  ;;  %2362 = vst.msk [vmem:[%s4626_s3 + $0xf8] sm:$0xff] %vm2330_vm1, %v3234_v8  ;;  %v2710_v35 = vpop.f32.mrb[132].mxu1  ;;  %v4444_v33 = vadd.f32 %v1922_v21, %v1634_v2 }
 0x21e   :  { %2360 = vst.msk [vmem:[%s4626_s3 + $0xe8] sm:$0xff] %vm2330_vm1, %v3236_v53  ;;  %v2164_v13 = vadd.f32 %v2710_v35, %v4278_v20  ;;  %v1924_v14 = vpop.f32.mrb[101].mxu0  ;;  %v2155_v9 = vpop.f32.mrb[133].mxu1  ;;  %v4649_v20 = vld [vmem:[#allocation6_spill] sm:$0xff] }
 0x21f   :  { %v2156_v32 = vadd.f32 %v2155_v9, %v4246_v47  ;;  %v1925_v40 = vpop.f32.mrb[102].mxu0  ;;  %v2711_v63 = vpop.f32.mrb[134].mxu1  ;;  %v1642_v17 = vadd.f32 %v4090_v30, %v4649_v20 }
 0x220   :  { %3245 = vtanh.f32 %v2164_v13  ;;  %v4448_v55 = vadd.f32 %v1925_v40, %v1637_v44  ;;  %v2167_v61 = vadd.f32 %v2711_v63, %v4282_v12  ;;  %v1927_v5 = vpop.f32.mrb[103].mxu0  ;;  %v2158_v48 = vpop.f32.mrb[135].mxu1 }
 0x221   :  { %3247 = vtanh.f32 %v2156_v32  ;;  %v2159_v26 = vadd.f32 %v2158_v48, %v4250_v60  ;;  %v4654_v32 = vld [vmem:[#allocation11_spill] sm:$0xff] }
 0x222   :  { %v3238_v46 = vpop.eup %3237  ;;  %3249 = vtanh.f32 %v2167_v61  ;;  %v1661_v40 = vadd.f32 %v4090_v30, %v4654_v32 }
 0x223   :  { %v3240_v7 = vpop.eup %3239  ;;  %2365 = vst.msk [vmem:[%s4626_s3 + $0x110] sm:$0xff] %vm2330_vm1, %v3238_v46  ;;  %3251 = vtanh.f32 %v2159_v26 }
 0x224   :  { %v3242_v47 = vpop.eup %3241  ;;  %2363 = vst.msk [vmem:[%s4626_s3 + $0x100] sm:$0xff] %vm2330_vm1, %v3240_v7  ;;  %v1930_v60 = vpop.f32.mrb[104].mxu0 }
 0x225   :  { %v3244_v12 = vpop.eup %3243  ;;  %2366 = vst.msk [vmem:[%s4626_s3 + $0x118] sm:$0xff] %vm2330_vm1, %v3242_v47  ;;  %v2714_v58 = vpop.f32.mrb[136].mxu1  ;;  %v4472_v45 = vadd.f32 %v1930_v60, %v1642_v17 }
 0x226   :  { %2364 = vst.msk [vmem:[%s4626_s3 + $0x108] sm:$0xff] %vm2330_vm1, %v3244_v12  ;;  %v2180_v0 = vadd.f32 %v2714_v58, %v4332_v41  ;;  %v1932_v29 = vpop.f32.mrb[105].mxu0  ;;  %v2171_v1 = vpop.f32.mrb[137].mxu1  ;;  %v4651_v41 = vld [vmem:[#allocation8_spill] sm:$0xff] }
 0x227   :  { %v2172_v56 = vadd.f32 %v2171_v1, %v4304_v22  ;;  %v1933_v52 = vpop.f32.mrb[106].mxu0  ;;  %v2715_v27 = vpop.f32.mrb[138].mxu1  ;;  %v1650_v54 = vadd.f32 %v4090_v30, %v4651_v41  ;;  %v4656_v29 = vld [vmem:[#allocation13_spill] sm:$0xff] }
 0x228   :  { %3253 = vtanh.f32 %v2180_v0  ;;  %v4476_v49 = vadd.f32 %v1933_v52, %v1645_v28  ;;  %v2183_v42 = vadd.f32 %v2715_v27, %v4336_v18  ;;  %v1935_v24 = vpop.f32.mrb[107].mxu0  ;;  %v2174_v15 = vpop.f32.mrb[139].mxu1  ;;  %v1669_v1 = vadd.f32 %v4090_v30, %v4656_v29 }
 0x229   :  { %3255 = vtanh.f32 %v2172_v56  ;;  %v2175_v38 = vadd.f32 %v2174_v15, %v4308_v51 }
 0x22a   :  { %v3246_v19 = vpop.eup %3245  ;;  %3257 = vtanh.f32 %v2183_v42 }
 0x22b   :  { %v3248_v16 = vpop.eup %3247  ;;  %2369 = vst.msk [vmem:[%s4626_s3 + $0x130] sm:$0xff] %vm2330_vm1, %v3246_v19  ;;  %3259 = vtanh.f32 %v2175_v38 }
 0x22c   :  { %v3250_v22 = vpop.eup %3249  ;;  %2367 = vst.msk [vmem:[%s4626_s3 + $0x120] sm:$0xff] %vm2330_vm1, %v3248_v16  ;;  %v1938_v51 = vpop.f32.mrb[108].mxu0 }
 0x22d   :  { %v3252_v18 = vpop.eup %3251  ;;  %2370 = vst.msk [vmem:[%s4626_s3 + $0x138] sm:$0xff] %vm2330_vm1, %v3250_v22  ;;  %v2718_v23 = vpop.f32.mrb[140].mxu1  ;;  %v1939_v31 = vadd.f32 %v1938_v51, %v1650_v54 }
 0x22e   :  { %2368 = vst.msk [vmem:[%s4626_s3 + $0x128] sm:$0xff] %vm2330_vm1, %v3252_v18  ;;  %v2196_v50 = vadd.f32 %v2718_v23, %v4388_v10  ;;  %v1940_v36 = vpop.f32.mrb[109].mxu0  ;;  %v2187_v6 = vpop.f32.mrb[141].mxu1  ;;  %v4653_v10 = vld [vmem:[#allocation10_spill] sm:$0xff] }
 0x22f   :  { %v2188_v4 = vadd.f32 %v2187_v6, %v4360_v57  ;;  %v1941_v8 = vpop.f32.mrb[110].mxu0  ;;  %v2719_v43 = vpop.f32.mrb[142].mxu1  ;;  %v1658_v14 = vadd.f32 %v4090_v30, %v4653_v10  ;;  %v4657_v23 = vld [vmem:[#allocation14_spill] sm:$0xff] }
 0x230   :  { %3261 = vtanh.f32 %v2196_v50  ;;  %v1942_v2 = vadd.f32 %v1941_v8, %v1653_v25  ;;  %v2199_v53 = vadd.f32 %v2719_v43, %v4392_v11  ;;  %v1943_v21 = vpop.f32.mrb[111].mxu0  ;;  %v2190_v35 = vpop.f32.mrb[143].mxu1  ;;  %v1674_v3 = vadd.f32 %v4090_v30, %v4657_v23  ;;  %v4658_v50 = vld [vmem:[#allocation15_spill] sm:$0xff] }
 0x231   :  { %3263 = vtanh.f32 %v2188_v4  ;;  %v2191_v34 = vadd.f32 %v2190_v35, %v4364_v59  ;;  %v1677_v36 = vadd.f32 %v4090_v30, %v4658_v50 }
 0x232   :  { %v3254_v44 = vpop.eup %3253  ;;  %3265 = vtanh.f32 %v2199_v53 }
 0x233   :  { %v3256_v13 = vpop.eup %3255  ;;  %2373 = vst.msk [vmem:[%s4626_s3 + $0x150] sm:$0xff] %vm2330_vm1, %v3254_v44  ;;  %3267 = vtanh.f32 %v2191_v34 }
 0x234   :  { %v3258_v57 = vpop.eup %3257  ;;  %2371 = vst.msk [vmem:[%s4626_s3 + $0x140] sm:$0xff] %vm2330_vm1, %v3256_v13  ;;  %v1946_v59 = vpop.f32.mrb[112].mxu0 }
 0x235   :  { %v3260_v11 = vpop.eup %3259  ;;  %2374 = vst.msk [vmem:[%s4626_s3 + $0x158] sm:$0xff] %vm2330_vm1, %v3258_v57  ;;  %v2722_v9 = vpop.f32.mrb[144].mxu1  ;;  %v1947_v63 = vadd.f32 %v1946_v59, %v1658_v14  ;;  %v4659_v59 = vld [vmem:[#allocation17_spill] sm:$0xff] }
 0x236   :  { %2372 = vst.msk [vmem:[%s4626_s3 + $0x148] sm:$0xff] %vm2330_vm1, %v3260_v11  ;;  %v2212_v61 = vadd.f32 %v2722_v9, %v4444_v33  ;;  %v1948_v5 = vpop.f32.mrb[113].mxu0  ;;  %v2203_v48 = vpop.f32.mrb[145].mxu1  ;;  %v4655_v33 = vld [vmem:[#allocation12_spill] sm:$0xff]  ;;  %v3301_v11 = vld [vmem:[%s4625_s2] ss:$0 sm:$0xff] }
 0x237   :  { %v2204_v26 = vadd.f32 %v2203_v48, %v4416_v39  ;;  %v1949_v46 = vpop.f32.mrb[114].mxu0  ;;  %v2723_v7 = vpop.f32.mrb[146].mxu1  ;;  %v1666_v28 = vadd.f32 %v4090_v30, %v4655_v33  ;;  %v1682_v9 = vadd.f32 %v3301_v11, %v4659_v59 }
 0x238   :  { %3269 = vtanh.f32 %v2212_v61  ;;  %v1950_v47 = vadd.f32 %v1949_v46, %v1661_v40  ;;  %v2215_v20 = vadd.f32 %v2723_v7, %v4448_v55  ;;  %v1951_v17 = vpop.f32.mrb[115].mxu0  ;;  %v2206_v12 = vpop.f32.mrb[147].mxu1  ;;  %v4660_v61 = vld [vmem:[#allocation18_spill] sm:$0xff] }
 0x239   :  { %3271 = vtanh.f32 %v2204_v26  ;;  %v2207_v60 = vadd.f32 %v2206_v12, %v4420_v62  ;;  %v1685_v5 = vadd.f32 %v3301_v11, %v4660_v61 }
 0x23a   :  { %v3262_v58 = vpop.eup %3261  ;;  %3273 = vtanh.f32 %v2215_v20 }
 0x23b   :  { %v3264_v37 = vpop.eup %3263  ;;  %2377 = vst.msk [vmem:[%s4626_s3 + $0x170] sm:$0xff] %vm2330_vm1, %v3262_v58  ;;  %3275 = vtanh.f32 %v2207_v60 }
 0x23c   :  { %v3266_v39 = vpop.eup %3265  ;;  %2375 = vst.msk [vmem:[%s4626_s3 + $0x160] sm:$0xff] %vm2330_vm1, %v3264_v37  ;;  %v1954_v62 = vpop.f32.mrb[116].mxu0 }
 0x23d   :  { %v3268_v55 = vpop.eup %3267  ;;  %2378 = vst.msk [vmem:[%s4626_s3 + $0x178] sm:$0xff] %vm2330_vm1, %v3266_v39  ;;  %v2726_v0 = vpop.f32.mrb[148].mxu1  ;;  %v1955_v56 = vadd.f32 %v1954_v62, %v1666_v28 }
 0x23e   :  { %2376 = vst.msk [vmem:[%s4626_s3 + $0x168] sm:$0xff] %vm2330_vm1, %v3268_v55  ;;  %v2228_v52 = vadd.f32 %v2726_v0, %v1939_v31  ;;  %v1956_v27 = vpop.f32.mrb[117].mxu0  ;;  %v2219_v42 = vpop.f32.mrb[149].mxu1 }
 0x23f   :  { %v2220_v24 = vadd.f32 %v2219_v42, %v4472_v45  ;;  %v1957_v15 = vpop.f32.mrb[118].mxu0  ;;  %v2727_v38 = vpop.f32.mrb[150].mxu1 }
 0x240   :  { %3277 = vtanh.f32 %v2228_v52  ;;  %v1958_v19 = vadd.f32 %v1957_v15, %v1669_v1  ;;  %v2231_v16 = vadd.f32 %v2727_v38, %v1942_v2  ;;  %v1959_v22 = vpop.f32.mrb[119].mxu0  ;;  %v2222_v41 = vpop.f32.mrb[151].mxu1 }
 0x241   :  { %3279 = vtanh.f32 %v2220_v24  ;;  %v2223_v54 = vadd.f32 %v2222_v41, %v4476_v49 }
 0x242   :  { %v3270_v18 = vpop.eup %3269  ;;  %3281 = vtanh.f32 %v2231_v16 }
 0x243   :  { %v3272_v51 = vpop.eup %3271  ;;  %2381 = vst.msk [vmem:[%s4626_s3 + $0x190] sm:$0xff] %vm2330_vm1, %v3270_v18  ;;  %3283 = vtanh.f32 %v2223_v54 }
 0x244   :  { %v3274_v45 = vpop.eup %3273  ;;  %2379 = vst.msk [vmem:[%s4626_s3 + $0x180] sm:$0xff] %vm2330_vm1, %v3272_v51  ;;  %v1962_v49 = vpop.f32.mrb[120].mxu0 }
 0x245   :  { %v3276_v25 = vpop.eup %3275  ;;  %2382 = vst.msk [vmem:[%s4626_s3 + $0x198] sm:$0xff] %vm2330_vm1, %v3274_v45  ;;  %v2730_v31 = vpop.f32.mrb[152].mxu1  ;;  %v1963_v6 = vadd.f32 %v1962_v49, %v1674_v3 }
 0x246   :  { %2380 = vst.msk [vmem:[%s4626_s3 + $0x188] sm:$0xff] %vm2330_vm1, %v3276_v25  ;;  %v2244_v4 = vadd.f32 %v2730_v31, %v1955_v56  ;;  %v1964_v8 = vpop.f32.mrb[121].mxu0  ;;  %v2235_v43 = vpop.f32.mrb[153].mxu1 }
 0x247   :  { %v2236_v2 = vadd.f32 %v2235_v43, %v1947_v63  ;;  %v1965_v53 = vpop.f32.mrb[122].mxu0  ;;  %v2731_v21 = vpop.f32.mrb[154].mxu1 }
 0x248   :  { %3285 = vtanh.f32 %v2244_v4  ;;  %v1966_v35 = vadd.f32 %v1965_v53, %v1677_v36  ;;  %v2247_v34 = vadd.f32 %v2731_v21, %v1958_v19  ;;  %v1967_v44 = vpop.f32.mrb[123].mxu0  ;;  %v2238_v13 = vpop.f32.mrb[155].mxu1 }
 0x249   :  { %3287 = vtanh.f32 %v2236_v2  ;;  %v2239_v57 = vadd.f32 %v2238_v13, %v1950_v47 }
 0x24a   :  { %v3278_v30 = vpop.eup %3277  ;;  %3289 = vtanh.f32 %v2247_v34 }
 0x24b   :  { %v3280_v10 = vpop.eup %3279  ;;  %2385 = vst.msk [vmem:[%s4626_s3 + $0x1b0] sm:$0xff] %vm2330_vm1, %v3278_v30  ;;  %3291 = vtanh.f32 %v2239_v57 }
 0x24c   :  { %v3282_v14 = vpop.eup %3281  ;;  %2383 = vst.msk [vmem:[%s4626_s3 + $0x1a0] sm:$0xff] %vm2330_vm1, %v3280_v10  ;;  %v1970_v40 = vpop.f32.mrb[124].mxu0 }
 0x24d   :  { %v3284_v32 = vpop.eup %3283  ;;  %2386 = vst.msk [vmem:[%s4626_s3 + $0x1b8] sm:$0xff] %vm2330_vm1, %v3282_v14  ;;  %v2734_v63 = vpop.f32.mrb[156].mxu1  ;;  %v1971_v48 = vadd.f32 %v1970_v40, %v1682_v9 }
 0x24e   :  { %2384 = vst.msk [vmem:[%s4626_s3 + $0x1a8] sm:$0xff] %vm2330_vm1, %v3284_v32  ;;  %v1972_v26 = vpop.f32.mrb[125].mxu0  ;;  %v2251_v46 = vpop.f32.mrb[157].mxu1 }
 0x24f   :  { %v2252_v7 = vadd.f32 %v2251_v46, %v1963_v6  ;;  %v1973_v47 = vpop.f32.mrb[126].mxu0  ;;  %v2735_v20 = vpop.f32.mrb[158].mxu1  ;;  %v2260_v17 = vadd.f32 %v2734_v63, %v1971_v48 }
 0x250   :  { %v1974_v12 = vadd.f32 %v1973_v47, %v1685_v5  ;;  %v1975_v60 = vpop.f32.mrb[127].mxu0  ;;  %v2254_v58 = vpop.f32.mrb[159].mxu1 }
 0x251   :  { %3293 = vtanh.f32 %v2252_v7  ;;  %v2255_v37 = vadd.f32 %v2254_v58, %v1966_v35 }
 0x252   :  { %v3286_v39 = vpop.eup %3285  ;;  %3295 = vtanh.f32 %v2260_v17  ;;  %v2263_v33 = vadd.f32 %v2735_v20, %v1974_v12 }
 0x253   :  { %v3288_v28 = vpop.eup %3287  ;;  %2389 = vst.msk [vmem:[%s4626_s3 + $0x1d0] sm:$0xff] %vm2330_vm1, %v3286_v39  ;;  %3297 = vtanh.f32 %v2255_v37 }
 0x254   :  { %v3290_v55 = vpop.eup %3289  ;;  %2387 = vst.msk [vmem:[%s4626_s3 + $0x1c0] sm:$0xff] %vm2330_vm1, %v3288_v28  ;;  %3299 = vtanh.f32 %v2263_v33 }
 0x255   :  { %v3292_v62 = vpop.eup %3291  ;;  %2390 = vst.msk [vmem:[%s4626_s3 + $0x1d8] sm:$0xff] %vm2330_vm1, %v3290_v55 }
 0x256   :  { %2388 = vst.msk [vmem:[%s4626_s3 + $0x1c8] sm:$0xff] %vm2330_vm1, %v3292_v62 }
 0x25b   :  { %v3294_v0 = vpop.eup %3293 }
 0x25c   :  { %v3296_v29 = vpop.eup %3295  ;;  %2391 = vst.msk [vmem:[%s4626_s3 + $0x1e0] sm:$0xff] %vm2330_vm1, %v3294_v0 }
 0x25d   :  { %v3298_v1 = vpop.eup %3297  ;;  %2393 = vst.msk [vmem:[%s4626_s3 + $0x1f0] sm:$0xff] %vm2330_vm1, %v3296_v29 }
 0x25e   :  { %v3300_v56 = vpop.eup %3299  ;;  %2392 = vst.msk [vmem:[%s4626_s3 + $0x1e8] sm:$0xff] %vm2330_vm1, %v3298_v1 }
 0x25f   :  { %2394 = vst.msk [vmem:[%s4626_s3 + $0x1f8] sm:$0xff] %vm2330_vm1, %v3300_v56 }

</bundles_post_ra>
